<compile_context>
chip_gen: v6e
topology: v6e:2x2x1
jax: 0.10.0
libtpu: 0.0.40
codegen_flags: <defaults>
</compile_context>

<pallas_src>
import jax
import jax.numpy as jnp
from jax.experimental import pallas as pl
from jax.experimental.pallas import tpu as pltpu


# ----------------------------- Pallas kernel ---------------------------------

def make_ner_kernel(S, B, H, n_cls):
    """Fused BiGRU + head kernel. S, B, H, n_cls are static Python ints."""

    def kernel(x_ref,                       # (S*B, D)   time-major (row = s*B + b)
               wih_ref, bih_ref,            # (D, 6H), (1, 6H)   [fwd r,z,n | bwd r,z,n]
               whh_f_ref, bhh_f_ref,        # (H, 3H), (1, 3H)
               whh_b_ref, bhh_b_ref,        # (H, 3H), (1, 3H)
               w1_ref, b1_ref,              # (2H, H), (1, H)
               w2_ref, b2_ref,              # (H, n_cls), (1, n_cls)
               out_ref,                     # (S*B, n_cls) time-major log-probs
               gi_s,                        # VMEM (S*B, 6H)
               z_s):                        # VMEM (S*B, 2H) time-major concat GRU output
        # --- 1) hoisted input projection for BOTH directions: one MXU matmul ---
        gi_s[...] = (jnp.dot(x_ref[...], wih_ref[...],
                             preferred_element_type=jnp.float32)
                     + bih_ref[...])

        # small biases only are hoisted into values; large weights stay as refs
        bhh_f = bhh_f_ref[...]
        bhh_b = bhh_b_ref[...]

        def cell(gi, h_prev, whh_ref, bhh):
            # PyTorch GRU gate order r, z, n; b_hn stays inside the r-multiply.
            gh = jnp.dot(h_prev, whh_ref[...],
                         preferred_element_type=jnp.float32) + bhh
            r = jax.nn.sigmoid(gi[:, 0:H] + gh[:, 0:H])
            z = jax.nn.sigmoid(gi[:, H:2 * H] + gh[:, H:2 * H])
            n = jnp.tanh(gi[:, 2 * H:3 * H] + r * gh[:, 2 * H:3 * H])
            return (1.0 - z) * n + z * h_prev

        # --- 2) fused fwd/bwd recurrence, statically unrolled (S is small) ---
        h_f = jnp.zeros((B, H), jnp.float32)
        h_b = jnp.zeros((B, H), jnp.float32)
        for t in range(S):
            tb = S - 1 - t
            gi_f = gi_s[t * B:(t + 1) * B, 0:3 * H]          # (B, 3H)
            gi_b = gi_s[tb * B:(tb + 1) * B, 3 * H:6 * H]    # (B, 3H)
            h_f = cell(gi_f, h_f, whh_f_ref, bhh_f)
            h_b = cell(gi_b, h_b, whh_b_ref, bhh_b)
            # time-major layout, one full (B, H) block store per direction/step
            z_s[t * B:(t + 1) * B, 0:H] = h_f
            z_s[tb * B:(tb + 1) * B, H:2 * H] = h_b

        # --- 3) fused head: Linear(2H->H) -> Dropout(eval: identity) ->
        #        Linear(H->n_cls) -> log_softmax(dim=1) ---
        # TODO(synk): Dropout(p=0.1) is identity in eval mode; training-mode RNG
        #             mask not implemented.
        z = z_s[...]                                         # (S*B, 2H)
        h1 = jnp.dot(z, w1_ref[...],
                     preferred_element_type=jnp.float32) + b1_ref[...]
        logits = jnp.dot(h1, w2_ref[...],
                         preferred_element_type=jnp.float32) + b2_ref[...]
        m = jnp.max(logits, axis=1, keepdims=True)
        sh = logits - m
        lse = jnp.log(jnp.sum(jnp.exp(sh), axis=1, keepdims=True))
        out_ref[...] = (sh - lse).astype(out_ref.dtype)

    return kernel


# ------------------------------ Pallas wrapper --------------------------------

def _full_spec(shape):
    return pl.BlockSpec(shape, lambda i: (0,) * len(shape))


def ner_fused_pallas(x_smajor, p, *, S, B):
    """x_smajor: (S*B, D) time-major embeddings (row = s*B + b).

    Returns (B*S, n_cls) log-probs in batch-first row order (matching the
    PyTorch `output.reshape(-1, 2H)` convention).
    """
    SB, D = x_smajor.shape
    H = p["whh_f"].shape[0]
    n_cls = p["w2"].shape[1]
    kernel = make_ner_kernel(S, B, H, n_cls)
    out_tm = pl.pallas_call(
        kernel,
        out_shape=jax.ShapeDtypeStruct((S * B, n_cls), jnp.float32),
        grid_spec=pltpu.PrefetchScalarGridSpec(
            num_scalar_prefetch=0,
            grid=(1,),
            in_specs=[
                _full_spec((SB, D)),
                _full_spec((D, 6 * H)), _full_spec((1, 6 * H)),
                _full_spec((H, 3 * H)), _full_spec((1, 3 * H)),
                _full_spec((H, 3 * H)), _full_spec((1, 3 * H)),
                _full_spec((2 * H, H)), _full_spec((1, H)),
                _full_spec((H, n_cls)), _full_spec((1, n_cls)),
            ],
            out_specs=_full_spec((S * B, n_cls)),
            scratch_shapes=[pltpu.VMEM((SB, 6 * H), jnp.float32),
                            pltpu.VMEM((SB, 2 * H), jnp.float32)]),
        compiler_params=pltpu.CompilerParams(dimension_semantics=("arbitrary",)),
    )(x_smajor, p["wih"], p["bih"],
      p["whh_f"], p["bhh_f"], p["whh_b"], p["bhh_b"],
      p["w1"], p["b1"], p["w2"], p["b2"])
    # tiny time-major (s*B+b) -> batch-first (b*S+s) reorder of a (S*B, n_cls) array
    return out_tm.reshape(S, B, n_cls).transpose(1, 0, 2).reshape(B * S, n_cls)


# ------------------------------ Parameters ------------------------------------

def init_params(key, D=768, H=128, vocab=1000, max_pos=64, n_cls=3):
    ks = jax.random.split(key, 16)
    sH = 1.0 / float(H) ** 0.5
    s2H = 1.0 / float(2 * H) ** 0.5

    def unif(k, shape, scale):
        return jax.random.uniform(k, shape, jnp.float32, -scale, scale)

    return {
        # embedding proxy (stands in for the pretrained BERT encoder)
        "emb": 0.02 * jax.random.normal(ks[0], (vocab, D), jnp.float32),
        "pos": 0.02 * jax.random.normal(ks[1], (max_pos, D), jnp.float32),
        # GRU input projections, both directions packed: (D, 6H) = [fwd r,z,n | bwd r,z,n]
        "wih": unif(ks[2], (D, 6 * H), sH),
        "bih": unif(ks[3], (1, 6 * H), sH),
        # GRU hidden projections per direction (pre-transposed to (H, 3H))
        "whh_f": unif(ks[4], (H, 3 * H), sH),
        "bhh_f": unif(ks[5], (1, 3 * H), sH),
        "whh_b": unif(ks[6], (H, 3 * H), sH),
        "bhh_b": unif(ks[7], (1, 3 * H), sH),
        # intermediate_layer: Linear(2H -> H)
        "w1": unif(ks[8], (2 * H, H), s2H),
        "b1": unif(ks[9], (1, H), s2H),
        # final_layer: Linear(H -> n_cls)
        "w2": unif(ks[10], (H, n_cls), sH),
        "b2": unif(ks[11], (1, n_cls), sH),
    }


# ------------------------------ Forward pass ----------------------------------

def ner_forward(tokens, masks, p):
    del masks  # only consumed by the (not replicated) BERT attention stack
    B, S = tokens.shape
    emb = p["emb"][tokens] + p["pos"][:S][None, :, :]            # (B, S, D)
    # time-major, flattened: row = s*B + b (tiny XLA transpose, done once)
    x_smajor = jnp.transpose(emb, (1, 0, 2)).reshape(S * B, -1)  # (S*B, D)
    return ner_fused_pallas(x_smajor, p, S=S, B=B)               # (B*S, n_cls) log-probs


# --------------------------------- Main ----------------------------------------

if __name__ == "__main__":
    B, S, D, H, VOCAB = 2, 8, 768, 128, 1000
    key = jax.random.PRNGKey(0)
    k_param, k_tok = jax.random.split(key)

    params = init_params(k_param, D=D, H=H, vocab=VOCAB, max_pos=S)
    tokens = jax.random.randint(k_tok, (B, S), 0, VOCAB, dtype=jnp.int32)
    masks = jnp.ones((B, S), dtype=jnp.int32)

    fwd = jax.jit(lambda t, m: ner_forward(t, m, params))
    out = fwd(tokens, masks)
    out = jax.block_until_ready(out)

    assert out.shape == (B * S, 3), out.shape
    # rows are log-probabilities: exp-sums should be ~1
    row_sums = jnp.exp(out).sum(axis=1)
    assert bool(jnp.all(jnp.abs(row_sums - 1.0) < 1e-4))

    print("KERNEL_OK")
</pallas_src>

<mosaic_0001>
module attributes {stable_mosaic.version = 11 : i64} {
  func.func @kernel(%arg0: i32, %arg1: memref<16x768xf32, #tpu.memory_space<vmem>>, %arg2: memref<768x768xf32, #tpu.memory_space<vmem>>, %arg3: memref<1x768xf32, #tpu.memory_space<vmem>>, %arg4: memref<128x384xf32, #tpu.memory_space<vmem>>, %arg5: memref<1x384xf32, #tpu.memory_space<vmem>>, %arg6: memref<128x384xf32, #tpu.memory_space<vmem>>, %arg7: memref<1x384xf32, #tpu.memory_space<vmem>>, %arg8: memref<256x128xf32, #tpu.memory_space<vmem>>, %arg9: memref<1x128xf32, #tpu.memory_space<vmem>>, %arg10: memref<128x3xf32, #tpu.memory_space<vmem>>, %arg11: memref<1x3xf32, #tpu.memory_space<vmem>>, %arg12: memref<16x3xf32, #tpu.memory_space<vmem>>, %arg13: memref<16x768xf32, #tpu.memory_space<vmem>>, %arg14: memref<16x256xf32, #tpu.memory_space<vmem>>) attributes {dimension_semantics = [#tpu.dimension_semantics<arbitrary>], iteration_bounds = array<i64: 1>, scalar_prefetch = 0 : i64, scratch_operands = 2 : i64, tpu.core_type = #tpu.core_type<tc>, window_params = [{pipeline_mode = #tpu.pipeline_mode<synchronous>, transform_indices = @transform_0, window_bounds = array<i64: 16, 768>}, {pipeline_mode = #tpu.pipeline_mode<synchronous>, transform_indices = @transform_1, window_bounds = array<i64: 768, 768>}, {pipeline_mode = #tpu.pipeline_mode<synchronous>, transform_indices = @transform_2, window_bounds = array<i64: 1, 768>}, {pipeline_mode = #tpu.pipeline_mode<synchronous>, transform_indices = @transform_3, window_bounds = array<i64: 128, 384>}, {pipeline_mode = #tpu.pipeline_mode<synchronous>, transform_indices = @transform_4, window_bounds = array<i64: 1, 384>}, {pipeline_mode = #tpu.pipeline_mode<synchronous>, transform_indices = @transform_5, window_bounds = array<i64: 128, 384>}, {pipeline_mode = #tpu.pipeline_mode<synchronous>, transform_indices = @transform_6, window_bounds = array<i64: 1, 384>}, {pipeline_mode = #tpu.pipeline_mode<synchronous>, transform_indices = @transform_7, window_bounds = array<i64: 256, 128>}, {pipeline_mode = #tpu.pipeline_mode<synchronous>, transform_indices = @transform_8, window_bounds = array<i64: 1, 128>}, {pipeline_mode = #tpu.pipeline_mode<synchronous>, transform_indices = @transform_9, window_bounds = array<i64: 128, 3>}, {pipeline_mode = #tpu.pipeline_mode<synchronous>, transform_indices = @transform_10, window_bounds = array<i64: 1, 3>}, {pipeline_mode = #tpu.pipeline_mode<synchronous>, transform_indices = @transform_11, window_bounds = array<i64: 16, 3>}]} {
    %c0 = arith.constant 0 : index
    %c0_0 = arith.constant 0 : index
    %0 = vector.load %arg1[%c0, %c0_0] : memref<16x768xf32, #tpu.memory_space<vmem>>, vector<16x768xf32>
    %c0_1 = arith.constant 0 : index
    %c0_2 = arith.constant 0 : index
    %1 = vector.load %arg2[%c0_1, %c0_2] : memref<768x768xf32, #tpu.memory_space<vmem>>, vector<768x768xf32>
    %cst = arith.constant dense<0.000000e+00> : vector<16x768xf32>
    %2 = tpu.matmul %0, %1, %cst {dimension_numbers = #tpu.dot_dimension_numbers<[1], [0], [0], [1], [0, 0, 1, 1], [], []>} : vector<16x768xf32>, vector<768x768xf32>, vector<16x768xf32> -> vector<16x768xf32>
    %c0_3 = arith.constant 0 : index
    %c0_4 = arith.constant 0 : index
    %3 = vector.load %arg3[%c0_3, %c0_4] : memref<1x768xf32, #tpu.memory_space<vmem>>, vector<1x768xf32>
    %4 = vector.broadcast %3 : vector<1x768xf32> to vector<16x768xf32>
    %5 = arith.addf %2, %4 : vector<16x768xf32>
    %c0_5 = arith.constant 0 : index
    %c0_6 = arith.constant 0 : index
    %6 = vector.load %arg13[%c0_5, %c0_6] : memref<16x768xf32, #tpu.memory_space<vmem>>, vector<16x768xf32>
    tpu.vector_store %arg13[%c0_5, %c0_6], %5 {strides = array<i32>} : memref<16x768xf32, #tpu.memory_space<vmem>>, vector<16x768xf32>,
    %c0_7 = arith.constant 0 : index
    %c0_8 = arith.constant 0 : index
    %7 = vector.load %arg5[%c0_7, %c0_8] : memref<1x384xf32, #tpu.memory_space<vmem>>, vector<1x384xf32>
    %c0_9 = arith.constant 0 : index
    %c0_10 = arith.constant 0 : index
    %8 = vector.load %arg7[%c0_9, %c0_10] : memref<1x384xf32, #tpu.memory_space<vmem>>, vector<1x384xf32>
    %cst_11 = arith.constant 0.000000e+00 : f32
    %9 = vector.broadcast %cst_11 : f32 to vector<2x128xf32>
    %cst_12 = arith.constant 0.000000e+00 : f32
    %10 = vector.broadcast %cst_12 : f32 to vector<2x128xf32>
    %c0_13 = arith.constant 0 : index
    %c0_14 = arith.constant 0 : index
    %11 = vector.load %arg13[%c0_13, %c0_14] : memref<16x768xf32, #tpu.memory_space<vmem>>, vector<2x384xf32>
    %c14 = arith.constant 14 : index
    %c384 = arith.constant 384 : index
    %12 = vector.load %arg13[%c14, %c384] : memref<16x768xf32, #tpu.memory_space<vmem>>, vector<2x384xf32>
    %c0_15 = arith.constant 0 : index
    %c0_16 = arith.constant 0 : index
    %13 = vector.load %arg4[%c0_15, %c0_16] : memref<128x384xf32, #tpu.memory_space<vmem>>, vector<128x384xf32>
    %cst_17 = arith.constant dense<0.000000e+00> : vector<2x384xf32>
    %14 = tpu.matmul %9, %13, %cst_17 {dimension_numbers = #tpu.dot_dimension_numbers<[1], [0], [0], [1], [0, 0, 1, 1], [], []>} : vector<2x128xf32>, vector<128x384xf32>, vector<2x384xf32> -> vector<2x384xf32>
    %15 = vector.broadcast %7 : vector<1x384xf32> to vector<2x384xf32>
    %16 = arith.addf %14, %15 : vector<2x384xf32>
    %17 = vector.extract_strided_slice %11 {offsets = [0, 0], sizes = [2, 128], strides = [1, 1]} : vector<2x384xf32> to vector<2x128xf32>
    %18 = vector.extract_strided_slice %16 {offsets = [0, 0], sizes = [2, 128], strides = [1, 1]} : vector<2x384xf32> to vector<2x128xf32>
    %19 = arith.addf %17, %18 : vector<2x128xf32>
    %20 = arith.negf %19 : vector<2x128xf32>
    %21 = math.exp %20 : vector<2x128xf32>
    %cst_18 = arith.constant 1.000000e+00 : f32
    %22 = vector.broadcast %cst_18 : f32 to vector<2x128xf32>
    %23 = arith.addf %22, %21 : vector<2x128xf32>
    %24 = arith.divf %22, %23 : vector<2x128xf32>
    %25 = vector.extract_strided_slice %11 {offsets = [0, 128], sizes = [2, 128], strides = [1, 1]} : vector<2x384xf32> to vector<2x128xf32>
    %26 = vector.extract_strided_slice %16 {offsets = [0, 128], sizes = [2, 128], strides = [1, 1]} : vector<2x384xf32> to vector<2x128xf32>
    %27 = arith.addf %25, %26 : vector<2x128xf32>
    %28 = arith.negf %27 : vector<2x128xf32>
    %29 = math.exp %28 : vector<2x128xf32>
    %cst_19 = arith.constant 1.000000e+00 : f32
    %30 = vector.broadcast %cst_19 : f32 to vector<2x128xf32>
    %31 = arith.addf %30, %29 : vector<2x128xf32>
    %32 = arith.divf %30, %31 : vector<2x128xf32>
    %33 = vector.extract_strided_slice %11 {offsets = [0, 256], sizes = [2, 128], strides = [1, 1]} : vector<2x384xf32> to vector<2x128xf32>
    %34 = vector.extract_strided_slice %16 {offsets = [0, 256], sizes = [2, 128], strides = [1, 1]} : vector<2x384xf32> to vector<2x128xf32>
    %35 = arith.mulf %24, %34 : vector<2x128xf32>
    %36 = arith.addf %33, %35 : vector<2x128xf32>
    %37 = math.tanh %36 : vector<2x128xf32>
    %cst_20 = arith.constant 1.000000e+00 : f32
    %38 = vector.broadcast %cst_20 : f32 to vector<2x128xf32>
    %39 = arith.subf %38, %32 : vector<2x128xf32>
    %40 = arith.mulf %39, %37 : vector<2x128xf32>
    %41 = arith.mulf %32, %9 : vector<2x128xf32>
    %42 = arith.addf %40, %41 : vector<2x128xf32>
    %c0_21 = arith.constant 0 : index
    %c0_22 = arith.constant 0 : index
    %43 = vector.load %arg6[%c0_21, %c0_22] : memref<128x384xf32, #tpu.memory_space<vmem>>, vector<128x384xf32>
    %cst_23 = arith.constant dense<0.000000e+00> : vector<2x384xf32>
    %44 = tpu.matmul %10, %43, %cst_23 {dimension_numbers = #tpu.dot_dimension_numbers<[1], [0], [0], [1], [0, 0, 1, 1], [], []>} : vector<2x128xf32>, vector<128x384xf32>, vector<2x384xf32> -> vector<2x384xf32>
    %45 = vector.broadcast %8 : vector<1x384xf32> to vector<2x384xf32>
    %46 = arith.addf %44, %45 : vector<2x384xf32>
    %47 = vector.extract_strided_slice %12 {offsets = [0, 0], sizes = [2, 128], strides = [1, 1]} : vector<2x384xf32> to vector<2x128xf32>
    %48 = vector.extract_strided_slice %46 {offsets = [0, 0], sizes = [2, 128], strides = [1, 1]} : vector<2x384xf32> to vector<2x128xf32>
    %49 = arith.addf %47, %48 : vector<2x128xf32>
    %50 = arith.negf %49 : vector<2x128xf32>
    %51 = math.exp %50 : vector<2x128xf32>
    %cst_24 = arith.constant 1.000000e+00 : f32
    %52 = vector.broadcast %cst_24 : f32 to vector<2x128xf32>
    %53 = arith.addf %52, %51 : vector<2x128xf32>
    %54 = arith.divf %52, %53 : vector<2x128xf32>
    %55 = vector.extract_strided_slice %12 {offsets = [0, 128], sizes = [2, 128], strides = [1, 1]} : vector<2x384xf32> to vector<2x128xf32>
    %56 = vector.extract_strided_slice %46 {offsets = [0, 128], sizes = [2, 128], strides = [1, 1]} : vector<2x384xf32> to vector<2x128xf32>
    %57 = arith.addf %55, %56 : vector<2x128xf32>
    %58 = arith.negf %57 : vector<2x128xf32>
    %59 = math.exp %58 : vector<2x128xf32>
    %cst_25 = arith.constant 1.000000e+00 : f32
    %60 = vector.broadcast %cst_25 : f32 to vector<2x128xf32>
    %61 = arith.addf %60, %59 : vector<2x128xf32>
    %62 = arith.divf %60, %61 : vector<2x128xf32>
    %63 = vector.extract_strided_slice %12 {offsets = [0, 256], sizes = [2, 128], strides = [1, 1]} : vector<2x384xf32> to vector<2x128xf32>
    %64 = vector.extract_strided_slice %46 {offsets = [0, 256], sizes = [2, 128], strides = [1, 1]} : vector<2x384xf32> to vector<2x128xf32>
    %65 = arith.mulf %54, %64 : vector<2x128xf32>
    %66 = arith.addf %63, %65 : vector<2x128xf32>
    %67 = math.tanh %66 : vector<2x128xf32>
    %cst_26 = arith.constant 1.000000e+00 : f32
    %68 = vector.broadcast %cst_26 : f32 to vector<2x128xf32>
    %69 = arith.subf %68, %62 : vector<2x128xf32>
    %70 = arith.mulf %69, %67 : vector<2x128xf32>
    %71 = arith.mulf %62, %10 : vector<2x128xf32>
    %72 = arith.addf %70, %71 : vector<2x128xf32>
    %c0_27 = arith.constant 0 : index
    %c0_28 = arith.constant 0 : index
    %73 = vector.load %arg14[%c0_27, %c0_28] : memref<16x256xf32, #tpu.memory_space<vmem>>, vector<2x128xf32>
    tpu.vector_store %arg14[%c0_27, %c0_28], %42 {strides = array<i32>} : memref<16x256xf32, #tpu.memory_space<vmem>>, vector<2x128xf32>,
    %c14_29 = arith.constant 14 : index
    %c128 = arith.constant 128 : index
    %74 = vector.load %arg14[%c14_29, %c128] : memref<16x256xf32, #tpu.memory_space<vmem>>, vector<2x128xf32>
    tpu.vector_store %arg14[%c14_29, %c128], %72 {strides = array<i32>} : memref<16x256xf32, #tpu.memory_space<vmem>>, vector<2x128xf32>,
    %c2 = arith.constant 2 : index
    %c0_30 = arith.constant 0 : index
    %75 = vector.load %arg13[%c2, %c0_30] : memref<16x768xf32, #tpu.memory_space<vmem>>, vector<2x384xf32>
    %c12 = arith.constant 12 : index
    %c384_31 = arith.constant 384 : index
    %76 = vector.load %arg13[%c12, %c384_31] : memref<16x768xf32, #tpu.memory_space<vmem>>, vector<2x384xf32>
    %c0_32 = arith.constant 0 : index
    %c0_33 = arith.constant 0 : index
    %77 = vector.load %arg4[%c0_32, %c0_33] : memref<128x384xf32, #tpu.memory_space<vmem>>, vector<128x384xf32>
    %cst_34 = arith.constant dense<0.000000e+00> : vector<2x384xf32>
    %78 = tpu.matmul %42, %77, %cst_34 {dimension_numbers = #tpu.dot_dimension_numbers<[1], [0], [0], [1], [0, 0, 1, 1], [], []>} : vector<2x128xf32>, vector<128x384xf32>, vector<2x384xf32> -> vector<2x384xf32>
    %79 = vector.broadcast %7 : vector<1x384xf32> to vector<2x384xf32>
    %80 = arith.addf %78, %79 : vector<2x384xf32>
    %81 = vector.extract_strided_slice %75 {offsets = [0, 0], sizes = [2, 128], strides = [1, 1]} : vector<2x384xf32> to vector<2x128xf32>
    %82 = vector.extract_strided_slice %80 {offsets = [0, 0], sizes = [2, 128], strides = [1, 1]} : vector<2x384xf32> to vector<2x128xf32>
    %83 = arith.addf %81, %82 : vector<2x128xf32>
    %84 = arith.negf %83 : vector<2x128xf32>
    %85 = math.exp %84 : vector<2x128xf32>
    %cst_35 = arith.constant 1.000000e+00 : f32
    %86 = vector.broadcast %cst_35 : f32 to vector<2x128xf32>
    %87 = arith.addf %86, %85 : vector<2x128xf32>
    %88 = arith.divf %86, %87 : vector<2x128xf32>
    %89 = vector.extract_strided_slice %75 {offsets = [0, 128], sizes = [2, 128], strides = [1, 1]} : vector<2x384xf32> to vector<2x128xf32>
    %90 = vector.extract_strided_slice %80 {offsets = [0, 128], sizes = [2, 128], strides = [1, 1]} : vector<2x384xf32> to vector<2x128xf32>
    %91 = arith.addf %89, %90 : vector<2x128xf32>
    %92 = arith.negf %91 : vector<2x128xf32>
    %93 = math.exp %92 : vector<2x128xf32>
    %cst_36 = arith.constant 1.000000e+00 : f32
    %94 = vector.broadcast %cst_36 : f32 to vector<2x128xf32>
    %95 = arith.addf %94, %93 : vector<2x128xf32>
    %96 = arith.divf %94, %95 : vector<2x128xf32>
    %97 = vector.extract_strided_slice %75 {offsets = [0, 256], sizes = [2, 128], strides = [1, 1]} : vector<2x384xf32> to vector<2x128xf32>
    %98 = vector.extract_strided_slice %80 {offsets = [0, 256], sizes = [2, 128], strides = [1, 1]} : vector<2x384xf32> to vector<2x128xf32>
    %99 = arith.mulf %88, %98 : vector<2x128xf32>
    %100 = arith.addf %97, %99 : vector<2x128xf32>
    %101 = math.tanh %100 : vector<2x128xf32>
    %cst_37 = arith.constant 1.000000e+00 : f32
    %102 = vector.broadcast %cst_37 : f32 to vector<2x128xf32>
    %103 = arith.subf %102, %96 : vector<2x128xf32>
    %104 = arith.mulf %103, %101 : vector<2x128xf32>
    %105 = arith.mulf %96, %42 : vector<2x128xf32>
    %106 = arith.addf %104, %105 : vector<2x128xf32>
    %c0_38 = arith.constant 0 : index
    %c0_39 = arith.constant 0 : index
    %107 = vector.load %arg6[%c0_38, %c0_39] : memref<128x384xf32, #tpu.memory_space<vmem>>, vector<128x384xf32>
    %cst_40 = arith.constant dense<0.000000e+00> : vector<2x384xf32>
    %108 = tpu.matmul %72, %107, %cst_40 {dimension_numbers = #tpu.dot_dimension_numbers<[1], [0], [0], [1], [0, 0, 1, 1], [], []>} : vector<2x128xf32>, vector<128x384xf32>, vector<2x384xf32> -> vector<2x384xf32>
    %109 = vector.broadcast %8 : vector<1x384xf32> to vector<2x384xf32>
    %110 = arith.addf %108, %109 : vector<2x384xf32>
    %111 = vector.extract_strided_slice %76 {offsets = [0, 0], sizes = [2, 128], strides = [1, 1]} : vector<2x384xf32> to vector<2x128xf32>
    %112 = vector.extract_strided_slice %110 {offsets = [0, 0], sizes = [2, 128], strides = [1, 1]} : vector<2x384xf32> to vector<2x128xf32>
    %113 = arith.addf %111, %112 : vector<2x128xf32>
    %114 = arith.negf %113 : vector<2x128xf32>
    %115 = math.exp %114 : vector<2x128xf32>
    %cst_41 = arith.constant 1.000000e+00 : f32
    %116 = vector.broadcast %cst_41 : f32 to vector<2x128xf32>
    %117 = arith.addf %116, %115 : vector<2x128xf32>
    %118 = arith.divf %116, %117 : vector<2x128xf32>
    %119 = vector.extract_strided_slice %76 {offsets = [0, 128], sizes = [2, 128], strides = [1, 1]} : vector<2x384xf32> to vector<2x128xf32>
    %120 = vector.extract_strided_slice %110 {offsets = [0, 128], sizes = [2, 128], strides = [1, 1]} : vector<2x384xf32> to vector<2x128xf32>
    %121 = arith.addf %119, %120 : vector<2x128xf32>
    %122 = arith.negf %121 : vector<2x128xf32>
    %123 = math.exp %122 : vector<2x128xf32>
    %cst_42 = arith.constant 1.000000e+00 : f32
    %124 = vector.broadcast %cst_42 : f32 to vector<2x128xf32>
    %125 = arith.addf %124, %123 : vector<2x128xf32>
    %126 = arith.divf %124, %125 : vector<2x128xf32>
    %127 = vector.extract_strided_slice %76 {offsets = [0, 256], sizes = [2, 128], strides = [1, 1]} : vector<2x384xf32> to vector<2x128xf32>
    %128 = vector.extract_strided_slice %110 {offsets = [0, 256], sizes = [2, 128], strides = [1, 1]} : vector<2x384xf32> to vector<2x128xf32>
    %129 = arith.mulf %118, %128 : vector<2x128xf32>
    %130 = arith.addf %127, %129 : vector<2x128xf32>
    %131 = math.tanh %130 : vector<2x128xf32>
    %cst_43 = arith.constant 1.000000e+00 : f32
    %132 = vector.broadcast %cst_43 : f32 to vector<2x128xf32>
    %133 = arith.subf %132, %126 : vector<2x128xf32>
    %134 = arith.mulf %133, %131 : vector<2x128xf32>
    %135 = arith.mulf %126, %72 : vector<2x128xf32>
    %136 = arith.addf %134, %135 : vector<2x128xf32>
    %c2_44 = arith.constant 2 : index
    %c0_45 = arith.constant 0 : index
    %137 = vector.load %arg14[%c2_44, %c0_45] : memref<16x256xf32, #tpu.memory_space<vmem>>, vector<2x128xf32>
    tpu.vector_store %arg14[%c2_44, %c0_45], %106 {strides = array<i32>} : memref<16x256xf32, #tpu.memory_space<vmem>>, vector<2x128xf32>,
    %c12_46 = arith.constant 12 : index
    %c128_47 = arith.constant 128 : index
    %138 = vector.load %arg14[%c12_46, %c128_47] : memref<16x256xf32, #tpu.memory_space<vmem>>, vector<2x128xf32>
    tpu.vector_store %arg14[%c12_46, %c128_47], %136 {strides = array<i32>} : memref<16x256xf32, #tpu.memory_space<vmem>>, vector<2x128xf32>,
    %c4 = arith.constant 4 : index
    %c0_48 = arith.constant 0 : index
    %139 = vector.load %arg13[%c4, %c0_48] : memref<16x768xf32, #tpu.memory_space<vmem>>, vector<2x384xf32>
    %c10 = arith.constant 10 : index
    %c384_49 = arith.constant 384 : index
    %140 = vector.load %arg13[%c10, %c384_49] : memref<16x768xf32, #tpu.memory_space<vmem>>, vector<2x384xf32>
    %c0_50 = arith.constant 0 : index
    %c0_51 = arith.constant 0 : index
    %141 = vector.load %arg4[%c0_50, %c0_51] : memref<128x384xf32, #tpu.memory_space<vmem>>, vector<128x384xf32>
    %cst_52 = arith.constant dense<0.000000e+00> : vector<2x384xf32>
    %142 = tpu.matmul %106, %141, %cst_52 {dimension_numbers = #tpu.dot_dimension_numbers<[1], [0], [0], [1], [0, 0, 1, 1], [], []>} : vector<2x128xf32>, vector<128x384xf32>, vector<2x384xf32> -> vector<2x384xf32>
    %143 = vector.broadcast %7 : vector<1x384xf32> to vector<2x384xf32>
    %144 = arith.addf %142, %143 : vector<2x384xf32>
    %145 = vector.extract_strided_slice %139 {offsets = [0, 0], sizes = [2, 128], strides = [1, 1]} : vector<2x384xf32> to vector<2x128xf32>
    %146 = vector.extract_strided_slice %144 {offsets = [0, 0], sizes = [2, 128], strides = [1, 1]} : vector<2x384xf32> to vector<2x128xf32>
    %147 = arith.addf %145, %146 : vector<2x128xf32>
    %148 = arith.negf %147 : vector<2x128xf32>
    %149 = math.exp %148 : vector<2x128xf32>
    %cst_53 = arith.constant 1.000000e+00 : f32
    %150 = vector.broadcast %cst_53 : f32 to vector<2x128xf32>
    %151 = arith.addf %150, %149 : vector<2x128xf32>
    %152 = arith.divf %150, %151 : vector<2x128xf32>
    %153 = vector.extract_strided_slice %139 {offsets = [0, 128], sizes = [2, 128], strides = [1, 1]} : vector<2x384xf32> to vector<2x128xf32>
    %154 = vector.extract_strided_slice %144 {offsets = [0, 128], sizes = [2, 128], strides = [1, 1]} : vector<2x384xf32> to vector<2x128xf32>
    %155 = arith.addf %153, %154 : vector<2x128xf32>
    %156 = arith.negf %155 : vector<2x128xf32>
    %157 = math.exp %156 : vector<2x128xf32>
    %cst_54 = arith.constant 1.000000e+00 : f32
    %158 = vector.broadcast %cst_54 : f32 to vector<2x128xf32>
    %159 = arith.addf %158, %157 : vector<2x128xf32>
    %160 = arith.divf %158, %159 : vector<2x128xf32>
    %161 = vector.extract_strided_slice %139 {offsets = [0, 256], sizes = [2, 128], strides = [1, 1]} : vector<2x384xf32> to vector<2x128xf32>
    %162 = vector.extract_strided_slice %144 {offsets = [0, 256], sizes = [2, 128], strides = [1, 1]} : vector<2x384xf32> to vector<2x128xf32>
    %163 = arith.mulf %152, %162 : vector<2x128xf32>
    %164 = arith.addf %161, %163 : vector<2x128xf32>
    %165 = math.tanh %164 : vector<2x128xf32>
    %cst_55 = arith.constant 1.000000e+00 : f32
    %166 = vector.broadcast %cst_55 : f32 to vector<2x128xf32>
    %167 = arith.subf %166, %160 : vector<2x128xf32>
    %168 = arith.mulf %167, %165 : vector<2x128xf32>
    %169 = arith.mulf %160, %106 : vector<2x128xf32>
    %170 = arith.addf %168, %169 : vector<2x128xf32>
    %c0_56 = arith.constant 0 : index
    %c0_57 = arith.constant 0 : index
    %171 = vector.load %arg6[%c0_56, %c0_57] : memref<128x384xf32, #tpu.memory_space<vmem>>, vector<128x384xf32>
    %cst_58 = arith.constant dense<0.000000e+00> : vector<2x384xf32>
    %172 = tpu.matmul %136, %171, %cst_58 {dimension_numbers = #tpu.dot_dimension_numbers<[1], [0], [0], [1], [0, 0, 1, 1], [], []>} : vector<2x128xf32>, vector<128x384xf32>, vector<2x384xf32> -> vector<2x384xf32>
    %173 = vector.broadcast %8 : vector<1x384xf32> to vector<2x384xf32>
    %174 = arith.addf %172, %173 : vector<2x384xf32>
    %175 = vector.extract_strided_slice %140 {offsets = [0, 0], sizes = [2, 128], strides = [1, 1]} : vector<2x384xf32> to vector<2x128xf32>
    %176 = vector.extract_strided_slice %174 {offsets = [0, 0], sizes = [2, 128], strides = [1, 1]} : vector<2x384xf32> to vector<2x128xf32>
    %177 = arith.addf %175, %176 : vector<2x128xf32>
    %178 = arith.negf %177 : vector<2x128xf32>
    %179 = math.exp %178 : vector<2x128xf32>
    %cst_59 = arith.constant 1.000000e+00 : f32
    %180 = vector.broadcast %cst_59 : f32 to vector<2x128xf32>
    %181 = arith.addf %180, %179 : vector<2x128xf32>
    %182 = arith.divf %180, %181 : vector<2x128xf32>
    %183 = vector.extract_strided_slice %140 {offsets = [0, 128], sizes = [2, 128], strides = [1, 1]} : vector<2x384xf32> to vector<2x128xf32>
    %184 = vector.extract_strided_slice %174 {offsets = [0, 128], sizes = [2, 128], strides = [1, 1]} : vector<2x384xf32> to vector<2x128xf32>
    %185 = arith.addf %183, %184 : vector<2x128xf32>
    %186 = arith.negf %185 : vector<2x128xf32>
    %187 = math.exp %186 : vector<2x128xf32>
    %cst_60 = arith.constant 1.000000e+00 : f32
    %188 = vector.broadcast %cst_60 : f32 to vector<2x128xf32>
    %189 = arith.addf %188, %187 : vector<2x128xf32>
    %190 = arith.divf %188, %189 : vector<2x128xf32>
    %191 = vector.extract_strided_slice %140 {offsets = [0, 256], sizes = [2, 128], strides = [1, 1]} : vector<2x384xf32> to vector<2x128xf32>
    %192 = vector.extract_strided_slice %174 {offsets = [0, 256], sizes = [2, 128], strides = [1, 1]} : vector<2x384xf32> to vector<2x128xf32>
    %193 = arith.mulf %182, %192 : vector<2x128xf32>
    %194 = arith.addf %191, %193 : vector<2x128xf32>
    %195 = math.tanh %194 : vector<2x128xf32>
    %cst_61 = arith.constant 1.000000e+00 : f32
    %196 = vector.broadcast %cst_61 : f32 to vector<2x128xf32>
    %197 = arith.subf %196, %190 : vector<2x128xf32>
    %198 = arith.mulf %197, %195 : vector<2x128xf32>
    %199 = arith.mulf %190, %136 : vector<2x128xf32>
    %200 = arith.addf %198, %199 : vector<2x128xf32>
    %c4_62 = arith.constant 4 : index
    %c0_63 = arith.constant 0 : index
    %201 = vector.load %arg14[%c4_62, %c0_63] : memref<16x256xf32, #tpu.memory_space<vmem>>, vector<2x128xf32>
    tpu.vector_store %arg14[%c4_62, %c0_63], %170 {strides = array<i32>} : memref<16x256xf32, #tpu.memory_space<vmem>>, vector<2x128xf32>,
    %c10_64 = arith.constant 10 : index
    %c128_65 = arith.constant 128 : index
    %202 = vector.load %arg14[%c10_64, %c128_65] : memref<16x256xf32, #tpu.memory_space<vmem>>, vector<2x128xf32>
    tpu.vector_store %arg14[%c10_64, %c128_65], %200 {strides = array<i32>} : memref<16x256xf32, #tpu.memory_space<vmem>>, vector<2x128xf32>,
    %c6 = arith.constant 6 : index
    %c0_66 = arith.constant 0 : index
    %203 = vector.load %arg13[%c6, %c0_66] : memref<16x768xf32, #tpu.memory_space<vmem>>, vector<2x384xf32>
    %c8 = arith.constant 8 : index
    %c384_67 = arith.constant 384 : index
    %204 = vector.load %arg13[%c8, %c384_67] : memref<16x768xf32, #tpu.memory_space<vmem>>, vector<2x384xf32>
    %c0_68 = arith.constant 0 : index
    %c0_69 = arith.constant 0 : index
    %205 = vector.load %arg4[%c0_68, %c0_69] : memref<128x384xf32, #tpu.memory_space<vmem>>, vector<128x384xf32>
    %cst_70 = arith.constant dense<0.000000e+00> : vector<2x384xf32>
    %206 = tpu.matmul %170, %205, %cst_70 {dimension_numbers = #tpu.dot_dimension_numbers<[1], [0], [0], [1], [0, 0, 1, 1], [], []>} : vector<2x128xf32>, vector<128x384xf32>, vector<2x384xf32> -> vector<2x384xf32>
    %207 = vector.broadcast %7 : vector<1x384xf32> to vector<2x384xf32>
    %208 = arith.addf %206, %207 : vector<2x384xf32>
    %209 = vector.extract_strided_slice %203 {offsets = [0, 0], sizes = [2, 128], strides = [1, 1]} : vector<2x384xf32> to vector<2x128xf32>
    %210 = vector.extract_strided_slice %208 {offsets = [0, 0], sizes = [2, 128], strides = [1, 1]} : vector<2x384xf32> to vector<2x128xf32>
    %211 = arith.addf %209, %210 : vector<2x128xf32>
    %212 = arith.negf %211 : vector<2x128xf32>
    %213 = math.exp %212 : vector<2x128xf32>
    %cst_71 = arith.constant 1.000000e+00 : f32
    %214 = vector.broadcast %cst_71 : f32 to vector<2x128xf32>
    %215 = arith.addf %214, %213 : vector<2x128xf32>
    %216 = arith.divf %214, %215 : vector<2x128xf32>
    %217 = vector.extract_strided_slice %203 {offsets = [0, 128], sizes = [2, 128], strides = [1, 1]} : vector<2x384xf32> to vector<2x128xf32>
    %218 = vector.extract_strided_slice %208 {offsets = [0, 128], sizes = [2, 128], strides = [1, 1]} : vector<2x384xf32> to vector<2x128xf32>
    %219 = arith.addf %217, %218 : vector<2x128xf32>
    %220 = arith.negf %219 : vector<2x128xf32>
    %221 = math.exp %220 : vector<2x128xf32>
    %cst_72 = arith.constant 1.000000e+00 : f32
    %222 = vector.broadcast %cst_72 : f32 to vector<2x128xf32>
    %223 = arith.addf %222, %221 : vector<2x128xf32>
    %224 = arith.divf %222, %223 : vector<2x128xf32>
    %225 = vector.extract_strided_slice %203 {offsets = [0, 256], sizes = [2, 128], strides = [1, 1]} : vector<2x384xf32> to vector<2x128xf32>
    %226 = vector.extract_strided_slice %208 {offsets = [0, 256], sizes = [2, 128], strides = [1, 1]} : vector<2x384xf32> to vector<2x128xf32>
    %227 = arith.mulf %216, %226 : vector<2x128xf32>
    %228 = arith.addf %225, %227 : vector<2x128xf32>
    %229 = math.tanh %228 : vector<2x128xf32>
    %cst_73 = arith.constant 1.000000e+00 : f32
    %230 = vector.broadcast %cst_73 : f32 to vector<2x128xf32>
    %231 = arith.subf %230, %224 : vector<2x128xf32>
    %232 = arith.mulf %231, %229 : vector<2x128xf32>
    %233 = arith.mulf %224, %170 : vector<2x128xf32>
    %234 = arith.addf %232, %233 : vector<2x128xf32>
    %c0_74 = arith.constant 0 : index
    %c0_75 = arith.constant 0 : index
    %235 = vector.load %arg6[%c0_74, %c0_75] : memref<128x384xf32, #tpu.memory_space<vmem>>, vector<128x384xf32>
    %cst_76 = arith.constant dense<0.000000e+00> : vector<2x384xf32>
    %236 = tpu.matmul %200, %235, %cst_76 {dimension_numbers = #tpu.dot_dimension_numbers<[1], [0], [0], [1], [0, 0, 1, 1], [], []>} : vector<2x128xf32>, vector<128x384xf32>, vector<2x384xf32> -> vector<2x384xf32>
    %237 = vector.broadcast %8 : vector<1x384xf32> to vector<2x384xf32>
    %238 = arith.addf %236, %237 : vector<2x384xf32>
    %239 = vector.extract_strided_slice %204 {offsets = [0, 0], sizes = [2, 128], strides = [1, 1]} : vector<2x384xf32> to vector<2x128xf32>
    %240 = vector.extract_strided_slice %238 {offsets = [0, 0], sizes = [2, 128], strides = [1, 1]} : vector<2x384xf32> to vector<2x128xf32>
    %241 = arith.addf %239, %240 : vector<2x128xf32>
    %242 = arith.negf %241 : vector<2x128xf32>
    %243 = math.exp %242 : vector<2x128xf32>
    %cst_77 = arith.constant 1.000000e+00 : f32
    %244 = vector.broadcast %cst_77 : f32 to vector<2x128xf32>
    %245 = arith.addf %244, %243 : vector<2x128xf32>
    %246 = arith.divf %244, %245 : vector<2x128xf32>
    %247 = vector.extract_strided_slice %204 {offsets = [0, 128], sizes = [2, 128], strides = [1, 1]} : vector<2x384xf32> to vector<2x128xf32>
    %248 = vector.extract_strided_slice %238 {offsets = [0, 128], sizes = [2, 128], strides = [1, 1]} : vector<2x384xf32> to vector<2x128xf32>
    %249 = arith.addf %247, %248 : vector<2x128xf32>
    %250 = arith.negf %249 : vector<2x128xf32>
    %251 = math.exp %250 : vector<2x128xf32>
    %cst_78 = arith.constant 1.000000e+00 : f32
    %252 = vector.broadcast %cst_78 : f32 to vector<2x128xf32>
    %253 = arith.addf %252, %251 : vector<2x128xf32>
    %254 = arith.divf %252, %253 : vector<2x128xf32>
    %255 = vector.extract_strided_slice %204 {offsets = [0, 256], sizes = [2, 128], strides = [1, 1]} : vector<2x384xf32> to vector<2x128xf32>
    %256 = vector.extract_strided_slice %238 {offsets = [0, 256], sizes = [2, 128], strides = [1, 1]} : vector<2x384xf32> to vector<2x128xf32>
    %257 = arith.mulf %246, %256 : vector<2x128xf32>
    %258 = arith.addf %255, %257 : vector<2x128xf32>
    %259 = math.tanh %258 : vector<2x128xf32>
    %cst_79 = arith.constant 1.000000e+00 : f32
    %260 = vector.broadcast %cst_79 : f32 to vector<2x128xf32>
    %261 = arith.subf %260, %254 : vector<2x128xf32>
    %262 = arith.mulf %261, %259 : vector<2x128xf32>
    %263 = arith.mulf %254, %200 : vector<2x128xf32>
    %264 = arith.addf %262, %263 : vector<2x128xf32>
    %c6_80 = arith.constant 6 : index
    %c0_81 = arith.constant 0 : index
    %265 = vector.load %arg14[%c6_80, %c0_81] : memref<16x256xf32, #tpu.memory_space<vmem>>, vector<2x128xf32>
    tpu.vector_store %arg14[%c6_80, %c0_81], %234 {strides = array<i32>} : memref<16x256xf32, #tpu.memory_space<vmem>>, vector<2x128xf32>,
    %c8_82 = arith.constant 8 : index
    %c128_83 = arith.constant 128 : index
    %266 = vector.load %arg14[%c8_82, %c128_83] : memref<16x256xf32, #tpu.memory_space<vmem>>, vector<2x128xf32>
    tpu.vector_store %arg14[%c8_82, %c128_83], %264 {strides = array<i32>} : memref<16x256xf32, #tpu.memory_space<vmem>>, vector<2x128xf32>,
    %c8_84 = arith.constant 8 : index
    %c0_85 = arith.constant 0 : index
    %267 = vector.load %arg13[%c8_84, %c0_85] : memref<16x768xf32, #tpu.memory_space<vmem>>, vector<2x384xf32>
    %c6_86 = arith.constant 6 : index
    %c384_87 = arith.constant 384 : index
    %268 = vector.load %arg13[%c6_86, %c384_87] : memref<16x768xf32, #tpu.memory_space<vmem>>, vector<2x384xf32>
    %c0_88 = arith.constant 0 : index
    %c0_89 = arith.constant 0 : index
    %269 = vector.load %arg4[%c0_88, %c0_89] : memref<128x384xf32, #tpu.memory_space<vmem>>, vector<128x384xf32>
    %cst_90 = arith.constant dense<0.000000e+00> : vector<2x384xf32>
    %270 = tpu.matmul %234, %269, %cst_90 {dimension_numbers = #tpu.dot_dimension_numbers<[1], [0], [0], [1], [0, 0, 1, 1], [], []>} : vector<2x128xf32>, vector<128x384xf32>, vector<2x384xf32> -> vector<2x384xf32>
    %271 = vector.broadcast %7 : vector<1x384xf32> to vector<2x384xf32>
    %272 = arith.addf %270, %271 : vector<2x384xf32>
    %273 = vector.extract_strided_slice %267 {offsets = [0, 0], sizes = [2, 128], strides = [1, 1]} : vector<2x384xf32> to vector<2x128xf32>
    %274 = vector.extract_strided_slice %272 {offsets = [0, 0], sizes = [2, 128], strides = [1, 1]} : vector<2x384xf32> to vector<2x128xf32>
    %275 = arith.addf %273, %274 : vector<2x128xf32>
    %276 = arith.negf %275 : vector<2x128xf32>
    %277 = math.exp %276 : vector<2x128xf32>
    %cst_91 = arith.constant 1.000000e+00 : f32
    %278 = vector.broadcast %cst_91 : f32 to vector<2x128xf32>
    %279 = arith.addf %278, %277 : vector<2x128xf32>
    %280 = arith.divf %278, %279 : vector<2x128xf32>
    %281 = vector.extract_strided_slice %267 {offsets = [0, 128], sizes = [2, 128], strides = [1, 1]} : vector<2x384xf32> to vector<2x128xf32>
    %282 = vector.extract_strided_slice %272 {offsets = [0, 128], sizes = [2, 128], strides = [1, 1]} : vector<2x384xf32> to vector<2x128xf32>
    %283 = arith.addf %281, %282 : vector<2x128xf32>
    %284 = arith.negf %283 : vector<2x128xf32>
    %285 = math.exp %284 : vector<2x128xf32>
    %cst_92 = arith.constant 1.000000e+00 : f32
    %286 = vector.broadcast %cst_92 : f32 to vector<2x128xf32>
    %287 = arith.addf %286, %285 : vector<2x128xf32>
    %288 = arith.divf %286, %287 : vector<2x128xf32>
    %289 = vector.extract_strided_slice %267 {offsets = [0, 256], sizes = [2, 128], strides = [1, 1]} : vector<2x384xf32> to vector<2x128xf32>
    %290 = vector.extract_strided_slice %272 {offsets = [0, 256], sizes = [2, 128], strides = [1, 1]} : vector<2x384xf32> to vector<2x128xf32>
    %291 = arith.mulf %280, %290 : vector<2x128xf32>
    %292 = arith.addf %289, %291 : vector<2x128xf32>
    %293 = math.tanh %292 : vector<2x128xf32>
    %cst_93 = arith.constant 1.000000e+00 : f32
    %294 = vector.broadcast %cst_93 : f32 to vector<2x128xf32>
    %295 = arith.subf %294, %288 : vector<2x128xf32>
    %296 = arith.mulf %295, %293 : vector<2x128xf32>
    %297 = arith.mulf %288, %234 : vector<2x128xf32>
    %298 = arith.addf %296, %297 : vector<2x128xf32>
    %c0_94 = arith.constant 0 : index
    %c0_95 = arith.constant 0 : index
    %299 = vector.load %arg6[%c0_94, %c0_95] : memref<128x384xf32, #tpu.memory_space<vmem>>, vector<128x384xf32>
    %cst_96 = arith.constant dense<0.000000e+00> : vector<2x384xf32>
    %300 = tpu.matmul %264, %299, %cst_96 {dimension_numbers = #tpu.dot_dimension_numbers<[1], [0], [0], [1], [0, 0, 1, 1], [], []>} : vector<2x128xf32>, vector<128x384xf32>, vector<2x384xf32> -> vector<2x384xf32>
    %301 = vector.broadcast %8 : vector<1x384xf32> to vector<2x384xf32>
    %302 = arith.addf %300, %301 : vector<2x384xf32>
    %303 = vector.extract_strided_slice %268 {offsets = [0, 0], sizes = [2, 128], strides = [1, 1]} : vector<2x384xf32> to vector<2x128xf32>
    %304 = vector.extract_strided_slice %302 {offsets = [0, 0], sizes = [2, 128], strides = [1, 1]} : vector<2x384xf32> to vector<2x128xf32>
    %305 = arith.addf %303, %304 : vector<2x128xf32>
    %306 = arith.negf %305 : vector<2x128xf32>
    %307 = math.exp %306 : vector<2x128xf32>
    %cst_97 = arith.constant 1.000000e+00 : f32
    %308 = vector.broadcast %cst_97 : f32 to vector<2x128xf32>
    %309 = arith.addf %308, %307 : vector<2x128xf32>
    %310 = arith.divf %308, %309 : vector<2x128xf32>
    %311 = vector.extract_strided_slice %268 {offsets = [0, 128], sizes = [2, 128], strides = [1, 1]} : vector<2x384xf32> to vector<2x128xf32>
    %312 = vector.extract_strided_slice %302 {offsets = [0, 128], sizes = [2, 128], strides = [1, 1]} : vector<2x384xf32> to vector<2x128xf32>
    %313 = arith.addf %311, %312 : vector<2x128xf32>
    %314 = arith.negf %313 : vector<2x128xf32>
    %315 = math.exp %314 : vector<2x128xf32>
    %cst_98 = arith.constant 1.000000e+00 : f32
    %316 = vector.broadcast %cst_98 : f32 to vector<2x128xf32>
    %317 = arith.addf %316, %315 : vector<2x128xf32>
    %318 = arith.divf %316, %317 : vector<2x128xf32>
    %319 = vector.extract_strided_slice %268 {offsets = [0, 256], sizes = [2, 128], strides = [1, 1]} : vector<2x384xf32> to vector<2x128xf32>
    %320 = vector.extract_strided_slice %302 {offsets = [0, 256], sizes = [2, 128], strides = [1, 1]} : vector<2x384xf32> to vector<2x128xf32>
    %321 = arith.mulf %310, %320 : vector<2x128xf32>
    %322 = arith.addf %319, %321 : vector<2x128xf32>
    %323 = math.tanh %322 : vector<2x128xf32>
    %cst_99 = arith.constant 1.000000e+00 : f32
    %324 = vector.broadcast %cst_99 : f32 to vector<2x128xf32>
    %325 = arith.subf %324, %318 : vector<2x128xf32>
    %326 = arith.mulf %325, %323 : vector<2x128xf32>
    %327 = arith.mulf %318, %264 : vector<2x128xf32>
    %328 = arith.addf %326, %327 : vector<2x128xf32>
    %c8_100 = arith.constant 8 : index
    %c0_101 = arith.constant 0 : index
    %329 = vector.load %arg14[%c8_100, %c0_101] : memref<16x256xf32, #tpu.memory_space<vmem>>, vector<2x128xf32>
    tpu.vector_store %arg14[%c8_100, %c0_101], %298 {strides = array<i32>} : memref<16x256xf32, #tpu.memory_space<vmem>>, vector<2x128xf32>,
    %c6_102 = arith.constant 6 : index
    %c128_103 = arith.constant 128 : index
    %330 = vector.load %arg14[%c6_102, %c128_103] : memref<16x256xf32, #tpu.memory_space<vmem>>, vector<2x128xf32>
    tpu.vector_store %arg14[%c6_102, %c128_103], %328 {strides = array<i32>} : memref<16x256xf32, #tpu.memory_space<vmem>>, vector<2x128xf32>,
    %c10_104 = arith.constant 10 : index
    %c0_105 = arith.constant 0 : index
    %331 = vector.load %arg13[%c10_104, %c0_105] : memref<16x768xf32, #tpu.memory_space<vmem>>, vector<2x384xf32>
    %c4_106 = arith.constant 4 : index
    %c384_107 = arith.constant 384 : index
    %332 = vector.load %arg13[%c4_106, %c384_107] : memref<16x768xf32, #tpu.memory_space<vmem>>, vector<2x384xf32>
    %c0_108 = arith.constant 0 : index
    %c0_109 = arith.constant 0 : index
    %333 = vector.load %arg4[%c0_108, %c0_109] : memref<128x384xf32, #tpu.memory_space<vmem>>, vector<128x384xf32>
    %cst_110 = arith.constant dense<0.000000e+00> : vector<2x384xf32>
    %334 = tpu.matmul %298, %333, %cst_110 {dimension_numbers = #tpu.dot_dimension_numbers<[1], [0], [0], [1], [0, 0, 1, 1], [], []>} : vector<2x128xf32>, vector<128x384xf32>, vector<2x384xf32> -> vector<2x384xf32>
    %335 = vector.broadcast %7 : vector<1x384xf32> to vector<2x384xf32>
    %336 = arith.addf %334, %335 : vector<2x384xf32>
    %337 = vector.extract_strided_slice %331 {offsets = [0, 0], sizes = [2, 128], strides = [1, 1]} : vector<2x384xf32> to vector<2x128xf32>
    %338 = vector.extract_strided_slice %336 {offsets = [0, 0], sizes = [2, 128], strides = [1, 1]} : vector<2x384xf32> to vector<2x128xf32>
    %339 = arith.addf %337, %338 : vector<2x128xf32>
    %340 = arith.negf %339 : vector<2x128xf32>
    %341 = math.exp %340 : vector<2x128xf32>
    %cst_111 = arith.constant 1.000000e+00 : f32
    %342 = vector.broadcast %cst_111 : f32 to vector<2x128xf32>
    %343 = arith.addf %342, %341 : vector<2x128xf32>
    %344 = arith.divf %342, %343 : vector<2x128xf32>
    %345 = vector.extract_strided_slice %331 {offsets = [0, 128], sizes = [2, 128], strides = [1, 1]} : vector<2x384xf32> to vector<2x128xf32>
    %346 = vector.extract_strided_slice %336 {offsets = [0, 128], sizes = [2, 128], strides = [1, 1]} : vector<2x384xf32> to vector<2x128xf32>
    %347 = arith.addf %345, %346 : vector<2x128xf32>
    %348 = arith.negf %347 : vector<2x128xf32>
    %349 = math.exp %348 : vector<2x128xf32>
    %cst_112 = arith.constant 1.000000e+00 : f32
    %350 = vector.broadcast %cst_112 : f32 to vector<2x128xf32>
    %351 = arith.addf %350, %349 : vector<2x128xf32>
    %352 = arith.divf %350, %351 : vector<2x128xf32>
    %353 = vector.extract_strided_slice %331 {offsets = [0, 256], sizes = [2, 128], strides = [1, 1]} : vector<2x384xf32> to vector<2x128xf32>
    %354 = vector.extract_strided_slice %336 {offsets = [0, 256], sizes = [2, 128], strides = [1, 1]} : vector<2x384xf32> to vector<2x128xf32>
    %355 = arith.mulf %344, %354 : vector<2x128xf32>
    %356 = arith.addf %353, %355 : vector<2x128xf32>
    %357 = math.tanh %356 : vector<2x128xf32>
    %cst_113 = arith.constant 1.000000e+00 : f32
    %358 = vector.broadcast %cst_113 : f32 to vector<2x128xf32>
    %359 = arith.subf %358, %352 : vector<2x128xf32>
    %360 = arith.mulf %359, %357 : vector<2x128xf32>
    %361 = arith.mulf %352, %298 : vector<2x128xf32>
    %362 = arith.addf %360, %361 : vector<2x128xf32>
    %c0_114 = arith.constant 0 : index
    %c0_115 = arith.constant 0 : index
    %363 = vector.load %arg6[%c0_114, %c0_115] : memref<128x384xf32, #tpu.memory_space<vmem>>, vector<128x384xf32>
    %cst_116 = arith.constant dense<0.000000e+00> : vector<2x384xf32>
    %364 = tpu.matmul %328, %363, %cst_116 {dimension_numbers = #tpu.dot_dimension_numbers<[1], [0], [0], [1], [0, 0, 1, 1], [], []>} : vector<2x128xf32>, vector<128x384xf32>, vector<2x384xf32> -> vector<2x384xf32>
    %365 = vector.broadcast %8 : vector<1x384xf32> to vector<2x384xf32>
    %366 = arith.addf %364, %365 : vector<2x384xf32>
    %367 = vector.extract_strided_slice %332 {offsets = [0, 0], sizes = [2, 128], strides = [1, 1]} : vector<2x384xf32> to vector<2x128xf32>
    %368 = vector.extract_strided_slice %366 {offsets = [0, 0], sizes = [2, 128], strides = [1, 1]} : vector<2x384xf32> to vector<2x128xf32>
    %369 = arith.addf %367, %368 : vector<2x128xf32>
    %370 = arith.negf %369 : vector<2x128xf32>
    %371 = math.exp %370 : vector<2x128xf32>
    %cst_117 = arith.constant 1.000000e+00 : f32
    %372 = vector.broadcast %cst_117 : f32 to vector<2x128xf32>
    %373 = arith.addf %372, %371 : vector<2x128xf32>
    %374 = arith.divf %372, %373 : vector<2x128xf32>
    %375 = vector.extract_strided_slice %332 {offsets = [0, 128], sizes = [2, 128], strides = [1, 1]} : vector<2x384xf32> to vector<2x128xf32>
    %376 = vector.extract_strided_slice %366 {offsets = [0, 128], sizes = [2, 128], strides = [1, 1]} : vector<2x384xf32> to vector<2x128xf32>
    %377 = arith.addf %375, %376 : vector<2x128xf32>
    %378 = arith.negf %377 : vector<2x128xf32>
    %379 = math.exp %378 : vector<2x128xf32>
    %cst_118 = arith.constant 1.000000e+00 : f32
    %380 = vector.broadcast %cst_118 : f32 to vector<2x128xf32>
    %381 = arith.addf %380, %379 : vector<2x128xf32>
    %382 = arith.divf %380, %381 : vector<2x128xf32>
    %383 = vector.extract_strided_slice %332 {offsets = [0, 256], sizes = [2, 128], strides = [1, 1]} : vector<2x384xf32> to vector<2x128xf32>
    %384 = vector.extract_strided_slice %366 {offsets = [0, 256], sizes = [2, 128], strides = [1, 1]} : vector<2x384xf32> to vector<2x128xf32>
    %385 = arith.mulf %374, %384 : vector<2x128xf32>
    %386 = arith.addf %383, %385 : vector<2x128xf32>
    %387 = math.tanh %386 : vector<2x128xf32>
    %cst_119 = arith.constant 1.000000e+00 : f32
    %388 = vector.broadcast %cst_119 : f32 to vector<2x128xf32>
    %389 = arith.subf %388, %382 : vector<2x128xf32>
    %390 = arith.mulf %389, %387 : vector<2x128xf32>
    %391 = arith.mulf %382, %328 : vector<2x128xf32>
    %392 = arith.addf %390, %391 : vector<2x128xf32>
    %c10_120 = arith.constant 10 : index
    %c0_121 = arith.constant 0 : index
    %393 = vector.load %arg14[%c10_120, %c0_121] : memref<16x256xf32, #tpu.memory_space<vmem>>, vector<2x128xf32>
    tpu.vector_store %arg14[%c10_120, %c0_121], %362 {strides = array<i32>} : memref<16x256xf32, #tpu.memory_space<vmem>>, vector<2x128xf32>,
    %c4_122 = arith.constant 4 : index
    %c128_123 = arith.constant 128 : index
    %394 = vector.load %arg14[%c4_122, %c128_123] : memref<16x256xf32, #tpu.memory_space<vmem>>, vector<2x128xf32>
    tpu.vector_store %arg14[%c4_122, %c128_123], %392 {strides = array<i32>} : memref<16x256xf32, #tpu.memory_space<vmem>>, vector<2x128xf32>,
    %c12_124 = arith.constant 12 : index
    %c0_125 = arith.constant 0 : index
    %395 = vector.load %arg13[%c12_124, %c0_125] : memref<16x768xf32, #tpu.memory_space<vmem>>, vector<2x384xf32>
    %c2_126 = arith.constant 2 : index
    %c384_127 = arith.constant 384 : index
    %396 = vector.load %arg13[%c2_126, %c384_127] : memref<16x768xf32, #tpu.memory_space<vmem>>, vector<2x384xf32>
    %c0_128 = arith.constant 0 : index
    %c0_129 = arith.constant 0 : index
    %397 = vector.load %arg4[%c0_128, %c0_129] : memref<128x384xf32, #tpu.memory_space<vmem>>, vector<128x384xf32>
    %cst_130 = arith.constant dense<0.000000e+00> : vector<2x384xf32>
    %398 = tpu.matmul %362, %397, %cst_130 {dimension_numbers = #tpu.dot_dimension_numbers<[1], [0], [0], [1], [0, 0, 1, 1], [], []>} : vector<2x128xf32>, vector<128x384xf32>, vector<2x384xf32> -> vector<2x384xf32>
    %399 = vector.broadcast %7 : vector<1x384xf32> to vector<2x384xf32>
    %400 = arith.addf %398, %399 : vector<2x384xf32>
    %401 = vector.extract_strided_slice %395 {offsets = [0, 0], sizes = [2, 128], strides = [1, 1]} : vector<2x384xf32> to vector<2x128xf32>
    %402 = vector.extract_strided_slice %400 {offsets = [0, 0], sizes = [2, 128], strides = [1, 1]} : vector<2x384xf32> to vector<2x128xf32>
    %403 = arith.addf %401, %402 : vector<2x128xf32>
    %404 = arith.negf %403 : vector<2x128xf32>
    %405 = math.exp %404 : vector<2x128xf32>
    %cst_131 = arith.constant 1.000000e+00 : f32
    %406 = vector.broadcast %cst_131 : f32 to vector<2x128xf32>
    %407 = arith.addf %406, %405 : vector<2x128xf32>
    %408 = arith.divf %406, %407 : vector<2x128xf32>
    %409 = vector.extract_strided_slice %395 {offsets = [0, 128], sizes = [2, 128], strides = [1, 1]} : vector<2x384xf32> to vector<2x128xf32>
    %410 = vector.extract_strided_slice %400 {offsets = [0, 128], sizes = [2, 128], strides = [1, 1]} : vector<2x384xf32> to vector<2x128xf32>
    %411 = arith.addf %409, %410 : vector<2x128xf32>
    %412 = arith.negf %411 : vector<2x128xf32>
    %413 = math.exp %412 : vector<2x128xf32>
    %cst_132 = arith.constant 1.000000e+00 : f32
    %414 = vector.broadcast %cst_132 : f32 to vector<2x128xf32>
    %415 = arith.addf %414, %413 : vector<2x128xf32>
    %416 = arith.divf %414, %415 : vector<2x128xf32>
    %417 = vector.extract_strided_slice %395 {offsets = [0, 256], sizes = [2, 128], strides = [1, 1]} : vector<2x384xf32> to vector<2x128xf32>
    %418 = vector.extract_strided_slice %400 {offsets = [0, 256], sizes = [2, 128], strides = [1, 1]} : vector<2x384xf32> to vector<2x128xf32>
    %419 = arith.mulf %408, %418 : vector<2x128xf32>
    %420 = arith.addf %417, %419 : vector<2x128xf32>
    %421 = math.tanh %420 : vector<2x128xf32>
    %cst_133 = arith.constant 1.000000e+00 : f32
    %422 = vector.broadcast %cst_133 : f32 to vector<2x128xf32>
    %423 = arith.subf %422, %416 : vector<2x128xf32>
    %424 = arith.mulf %423, %421 : vector<2x128xf32>
    %425 = arith.mulf %416, %362 : vector<2x128xf32>
    %426 = arith.addf %424, %425 : vector<2x128xf32>
    %c0_134 = arith.constant 0 : index
    %c0_135 = arith.constant 0 : index
    %427 = vector.load %arg6[%c0_134, %c0_135] : memref<128x384xf32, #tpu.memory_space<vmem>>, vector<128x384xf32>
    %cst_136 = arith.constant dense<0.000000e+00> : vector<2x384xf32>
    %428 = tpu.matmul %392, %427, %cst_136 {dimension_numbers = #tpu.dot_dimension_numbers<[1], [0], [0], [1], [0, 0, 1, 1], [], []>} : vector<2x128xf32>, vector<128x384xf32>, vector<2x384xf32> -> vector<2x384xf32>
    %429 = vector.broadcast %8 : vector<1x384xf32> to vector<2x384xf32>
    %430 = arith.addf %428, %429 : vector<2x384xf32>
    %431 = vector.extract_strided_slice %396 {offsets = [0, 0], sizes = [2, 128], strides = [1, 1]} : vector<2x384xf32> to vector<2x128xf32>
    %432 = vector.extract_strided_slice %430 {offsets = [0, 0], sizes = [2, 128], strides = [1, 1]} : vector<2x384xf32> to vector<2x128xf32>
    %433 = arith.addf %431, %432 : vector<2x128xf32>
    %434 = arith.negf %433 : vector<2x128xf32>
    %435 = math.exp %434 : vector<2x128xf32>
    %cst_137 = arith.constant 1.000000e+00 : f32
    %436 = vector.broadcast %cst_137 : f32 to vector<2x128xf32>
    %437 = arith.addf %436, %435 : vector<2x128xf32>
    %438 = arith.divf %436, %437 : vector<2x128xf32>
    %439 = vector.extract_strided_slice %396 {offsets = [0, 128], sizes = [2, 128], strides = [1, 1]} : vector<2x384xf32> to vector<2x128xf32>
    %440 = vector.extract_strided_slice %430 {offsets = [0, 128], sizes = [2, 128], strides = [1, 1]} : vector<2x384xf32> to vector<2x128xf32>
    %441 = arith.addf %439, %440 : vector<2x128xf32>
    %442 = arith.negf %441 : vector<2x128xf32>
    %443 = math.exp %442 : vector<2x128xf32>
    %cst_138 = arith.constant 1.000000e+00 : f32
    %444 = vector.broadcast %cst_138 : f32 to vector<2x128xf32>
    %445 = arith.addf %444, %443 : vector<2x128xf32>
    %446 = arith.divf %444, %445 : vector<2x128xf32>
    %447 = vector.extract_strided_slice %396 {offsets = [0, 256], sizes = [2, 128], strides = [1, 1]} : vector<2x384xf32> to vector<2x128xf32>
    %448 = vector.extract_strided_slice %430 {offsets = [0, 256], sizes = [2, 128], strides = [1, 1]} : vector<2x384xf32> to vector<2x128xf32>
    %449 = arith.mulf %438, %448 : vector<2x128xf32>
    %450 = arith.addf %447, %449 : vector<2x128xf32>
    %451 = math.tanh %450 : vector<2x128xf32>
    %cst_139 = arith.constant 1.000000e+00 : f32
    %452 = vector.broadcast %cst_139 : f32 to vector<2x128xf32>
    %453 = arith.subf %452, %446 : vector<2x128xf32>
    %454 = arith.mulf %453, %451 : vector<2x128xf32>
    %455 = arith.mulf %446, %392 : vector<2x128xf32>
    %456 = arith.addf %454, %455 : vector<2x128xf32>
    %c12_140 = arith.constant 12 : index
    %c0_141 = arith.constant 0 : index
    %457 = vector.load %arg14[%c12_140, %c0_141] : memref<16x256xf32, #tpu.memory_space<vmem>>, vector<2x128xf32>
    tpu.vector_store %arg14[%c12_140, %c0_141], %426 {strides = array<i32>} : memref<16x256xf32, #tpu.memory_space<vmem>>, vector<2x128xf32>,
    %c2_142 = arith.constant 2 : index
    %c128_143 = arith.constant 128 : index
    %458 = vector.load %arg14[%c2_142, %c128_143] : memref<16x256xf32, #tpu.memory_space<vmem>>, vector<2x128xf32>
    tpu.vector_store %arg14[%c2_142, %c128_143], %456 {strides = array<i32>} : memref<16x256xf32, #tpu.memory_space<vmem>>, vector<2x128xf32>,
    %c14_144 = arith.constant 14 : index
    %c0_145 = arith.constant 0 : index
    %459 = vector.load %arg13[%c14_144, %c0_145] : memref<16x768xf32, #tpu.memory_space<vmem>>, vector<2x384xf32>
    %c0_146 = arith.constant 0 : index
    %c384_147 = arith.constant 384 : index
    %460 = vector.load %arg13[%c0_146, %c384_147] : memref<16x768xf32, #tpu.memory_space<vmem>>, vector<2x384xf32>
    %c0_148 = arith.constant 0 : index
    %c0_149 = arith.constant 0 : index
    %461 = vector.load %arg4[%c0_148, %c0_149] : memref<128x384xf32, #tpu.memory_space<vmem>>, vector<128x384xf32>
    %cst_150 = arith.constant dense<0.000000e+00> : vector<2x384xf32>
    %462 = tpu.matmul %426, %461, %cst_150 {dimension_numbers = #tpu.dot_dimension_numbers<[1], [0], [0], [1], [0, 0, 1, 1], [], []>} : vector<2x128xf32>, vector<128x384xf32>, vector<2x384xf32> -> vector<2x384xf32>
    %463 = vector.broadcast %7 : vector<1x384xf32> to vector<2x384xf32>
    %464 = arith.addf %462, %463 : vector<2x384xf32>
    %465 = vector.extract_strided_slice %459 {offsets = [0, 0], sizes = [2, 128], strides = [1, 1]} : vector<2x384xf32> to vector<2x128xf32>
    %466 = vector.extract_strided_slice %464 {offsets = [0, 0], sizes = [2, 128], strides = [1, 1]} : vector<2x384xf32> to vector<2x128xf32>
    %467 = arith.addf %465, %466 : vector<2x128xf32>
    %468 = arith.negf %467 : vector<2x128xf32>
    %469 = math.exp %468 : vector<2x128xf32>
    %cst_151 = arith.constant 1.000000e+00 : f32
    %470 = vector.broadcast %cst_151 : f32 to vector<2x128xf32>
    %471 = arith.addf %470, %469 : vector<2x128xf32>
    %472 = arith.divf %470, %471 : vector<2x128xf32>
    %473 = vector.extract_strided_slice %459 {offsets = [0, 128], sizes = [2, 128], strides = [1, 1]} : vector<2x384xf32> to vector<2x128xf32>
    %474 = vector.extract_strided_slice %464 {offsets = [0, 128], sizes = [2, 128], strides = [1, 1]} : vector<2x384xf32> to vector<2x128xf32>
    %475 = arith.addf %473, %474 : vector<2x128xf32>
    %476 = arith.negf %475 : vector<2x128xf32>
    %477 = math.exp %476 : vector<2x128xf32>
    %cst_152 = arith.constant 1.000000e+00 : f32
    %478 = vector.broadcast %cst_152 : f32 to vector<2x128xf32>
    %479 = arith.addf %478, %477 : vector<2x128xf32>
    %480 = arith.divf %478, %479 : vector<2x128xf32>
    %481 = vector.extract_strided_slice %459 {offsets = [0, 256], sizes = [2, 128], strides = [1, 1]} : vector<2x384xf32> to vector<2x128xf32>
    %482 = vector.extract_strided_slice %464 {offsets = [0, 256], sizes = [2, 128], strides = [1, 1]} : vector<2x384xf32> to vector<2x128xf32>
    %483 = arith.mulf %472, %482 : vector<2x128xf32>
    %484 = arith.addf %481, %483 : vector<2x128xf32>
    %485 = math.tanh %484 : vector<2x128xf32>
    %cst_153 = arith.constant 1.000000e+00 : f32
    %486 = vector.broadcast %cst_153 : f32 to vector<2x128xf32>
    %487 = arith.subf %486, %480 : vector<2x128xf32>
    %488 = arith.mulf %487, %485 : vector<2x128xf32>
    %489 = arith.mulf %480, %426 : vector<2x128xf32>
    %490 = arith.addf %488, %489 : vector<2x128xf32>
    %c0_154 = arith.constant 0 : index
    %c0_155 = arith.constant 0 : index
    %491 = vector.load %arg6[%c0_154, %c0_155] : memref<128x384xf32, #tpu.memory_space<vmem>>, vector<128x384xf32>
    %cst_156 = arith.constant dense<0.000000e+00> : vector<2x384xf32>
    %492 = tpu.matmul %456, %491, %cst_156 {dimension_numbers = #tpu.dot_dimension_numbers<[1], [0], [0], [1], [0, 0, 1, 1], [], []>} : vector<2x128xf32>, vector<128x384xf32>, vector<2x384xf32> -> vector<2x384xf32>
    %493 = vector.broadcast %8 : vector<1x384xf32> to vector<2x384xf32>
    %494 = arith.addf %492, %493 : vector<2x384xf32>
    %495 = vector.extract_strided_slice %460 {offsets = [0, 0], sizes = [2, 128], strides = [1, 1]} : vector<2x384xf32> to vector<2x128xf32>
    %496 = vector.extract_strided_slice %494 {offsets = [0, 0], sizes = [2, 128], strides = [1, 1]} : vector<2x384xf32> to vector<2x128xf32>
    %497 = arith.addf %495, %496 : vector<2x128xf32>
    %498 = arith.negf %497 : vector<2x128xf32>
    %499 = math.exp %498 : vector<2x128xf32>
    %cst_157 = arith.constant 1.000000e+00 : f32
    %500 = vector.broadcast %cst_157 : f32 to vector<2x128xf32>
    %501 = arith.addf %500, %499 : vector<2x128xf32>
    %502 = arith.divf %500, %501 : vector<2x128xf32>
    %503 = vector.extract_strided_slice %460 {offsets = [0, 128], sizes = [2, 128], strides = [1, 1]} : vector<2x384xf32> to vector<2x128xf32>
    %504 = vector.extract_strided_slice %494 {offsets = [0, 128], sizes = [2, 128], strides = [1, 1]} : vector<2x384xf32> to vector<2x128xf32>
    %505 = arith.addf %503, %504 : vector<2x128xf32>
    %506 = arith.negf %505 : vector<2x128xf32>
    %507 = math.exp %506 : vector<2x128xf32>
    %cst_158 = arith.constant 1.000000e+00 : f32
    %508 = vector.broadcast %cst_158 : f32 to vector<2x128xf32>
    %509 = arith.addf %508, %507 : vector<2x128xf32>
    %510 = arith.divf %508, %509 : vector<2x128xf32>
    %511 = vector.extract_strided_slice %460 {offsets = [0, 256], sizes = [2, 128], strides = [1, 1]} : vector<2x384xf32> to vector<2x128xf32>
    %512 = vector.extract_strided_slice %494 {offsets = [0, 256], sizes = [2, 128], strides = [1, 1]} : vector<2x384xf32> to vector<2x128xf32>
    %513 = arith.mulf %502, %512 : vector<2x128xf32>
    %514 = arith.addf %511, %513 : vector<2x128xf32>
    %515 = math.tanh %514 : vector<2x128xf32>
    %cst_159 = arith.constant 1.000000e+00 : f32
    %516 = vector.broadcast %cst_159 : f32 to vector<2x128xf32>
    %517 = arith.subf %516, %510 : vector<2x128xf32>
    %518 = arith.mulf %517, %515 : vector<2x128xf32>
    %519 = arith.mulf %510, %456 : vector<2x128xf32>
    %520 = arith.addf %518, %519 : vector<2x128xf32>
    %c14_160 = arith.constant 14 : index
    %c0_161 = arith.constant 0 : index
    %521 = vector.load %arg14[%c14_160, %c0_161] : memref<16x256xf32, #tpu.memory_space<vmem>>, vector<2x128xf32>
    tpu.vector_store %arg14[%c14_160, %c0_161], %490 {strides = array<i32>} : memref<16x256xf32, #tpu.memory_space<vmem>>, vector<2x128xf32>,
    %c0_162 = arith.constant 0 : index
    %c128_163 = arith.constant 128 : index
    %522 = vector.load %arg14[%c0_162, %c128_163] : memref<16x256xf32, #tpu.memory_space<vmem>>, vector<2x128xf32>
    tpu.vector_store %arg14[%c0_162, %c128_163], %520 {strides = array<i32>} : memref<16x256xf32, #tpu.memory_space<vmem>>, vector<2x128xf32>,
    %c0_164 = arith.constant 0 : index
    %c0_165 = arith.constant 0 : index
    %523 = vector.load %arg14[%c0_164, %c0_165] : memref<16x256xf32, #tpu.memory_space<vmem>>, vector<16x256xf32>
    %c0_166 = arith.constant 0 : index
    %c0_167 = arith.constant 0 : index
    %524 = vector.load %arg8[%c0_166, %c0_167] : memref<256x128xf32, #tpu.memory_space<vmem>>, vector<256x128xf32>
    %cst_168 = arith.constant dense<0.000000e+00> : vector<16x128xf32>
    %525 = tpu.matmul %523, %524, %cst_168 {dimension_numbers = #tpu.dot_dimension_numbers<[1], [0], [0], [1], [0, 0, 1, 1], [], []>} : vector<16x256xf32>, vector<256x128xf32>, vector<16x128xf32> -> vector<16x128xf32>
    %c0_169 = arith.constant 0 : index
    %c0_170 = arith.constant 0 : index
    %526 = vector.load %arg9[%c0_169, %c0_170] : memref<1x128xf32, #tpu.memory_space<vmem>>, vector<1x128xf32>
    %527 = vector.broadcast %526 : vector<1x128xf32> to vector<16x128xf32>
    %528 = arith.addf %525, %527 : vector<16x128xf32>
    %c0_171 = arith.constant 0 : index
    %c0_172 = arith.constant 0 : index
    %529 = vector.load %arg10[%c0_171, %c0_172] : memref<128x3xf32, #tpu.memory_space<vmem>>, vector<128x3xf32>
    %cst_173 = arith.constant dense<0.000000e+00> : vector<16x3xf32>
    %530 = tpu.matmul %528, %529, %cst_173 {dimension_numbers = #tpu.dot_dimension_numbers<[1], [0], [0], [1], [0, 0, 1, 1], [], []>} : vector<16x128xf32>, vector<128x3xf32>, vector<16x3xf32> -> vector<16x3xf32>
    %c0_174 = arith.constant 0 : index
    %c0_175 = arith.constant 0 : index
    %531 = vector.load %arg11[%c0_174, %c0_175] : memref<1x3xf32, #tpu.memory_space<vmem>>, vector<1x3xf32>
    %532 = vector.broadcast %531 : vector<1x3xf32> to vector<16x3xf32>
    %533 = arith.addf %530, %532 : vector<16x3xf32>
    %cst_176 = arith.constant dense<0xFF800000> : vector<16xf32>
    %534 = vector.multi_reduction <maximumf>, %533, %cst_176 [1] : vector<16x3xf32> to vector<16xf32>
    %535 = vector.shape_cast %534 : vector<16xf32> to vector<16x1xf32>
    %536 = vector.broadcast %535 : vector<16x1xf32> to vector<16x3xf32>
    %537 = arith.subf %533, %536 : vector<16x3xf32>
    %538 = math.exp %537 : vector<16x3xf32>
    %cst_177 = arith.constant dense<0.000000e+00> : vector<16xf32>
    %539 = vector.multi_reduction <add>, %538, %cst_177 [1] : vector<16x3xf32> to vector<16xf32>
    %540 = vector.shape_cast %539 : vector<16xf32> to vector<16x1xf32>
    %541 = math.log %540 : vector<16x1xf32>
    %542 = vector.broadcast %541 : vector<16x1xf32> to vector<16x3xf32>
    %543 = arith.subf %537, %542 : vector<16x3xf32>
    %c0_178 = arith.constant 0 : index
    %c0_179 = arith.constant 0 : index
    %544 = vector.load %arg12[%c0_178, %c0_179] : memref<16x3xf32, #tpu.memory_space<vmem>>, vector<16x3xf32>
    tpu.vector_store %arg12[%c0_178, %c0_179], %543 {strides = array<i32>} : memref<16x3xf32, #tpu.memory_space<vmem>>, vector<16x3xf32>,
    return
  }
  func.func @transform_0(%arg0: i32) -> (i32, i32) {
    %c0_i32 = arith.constant 0 : i32
    %c0_i32_0 = arith.constant 0 : i32
    %c0_i32_1 = arith.constant 0 : i32
    return %c0_i32, %c0_i32_0 : i32, i32
  }
  func.func @transform_1(%arg0: i32) -> (i32, i32) {
    %c0_i32 = arith.constant 0 : i32
    %c0_i32_0 = arith.constant 0 : i32
    %c0_i32_1 = arith.constant 0 : i32
    return %c0_i32, %c0_i32_0 : i32, i32
  }
  func.func @transform_2(%arg0: i32) -> (i32, i32) {
    %c0_i32 = arith.constant 0 : i32
    %c0_i32_0 = arith.constant 0 : i32
    %c0_i32_1 = arith.constant 0 : i32
    return %c0_i32, %c0_i32_0 : i32, i32
  }
  func.func @transform_3(%arg0: i32) -> (i32, i32) {
    %c0_i32 = arith.constant 0 : i32
    %c0_i32_0 = arith.constant 0 : i32
    %c0_i32_1 = arith.constant 0 : i32
    return %c0_i32, %c0_i32_0 : i32, i32
  }
  func.func @transform_4(%arg0: i32) -> (i32, i32) {
    %c0_i32 = arith.constant 0 : i32
    %c0_i32_0 = arith.constant 0 : i32
    %c0_i32_1 = arith.constant 0 : i32
    return %c0_i32, %c0_i32_0 : i32, i32
  }
  func.func @transform_5(%arg0: i32) -> (i32, i32) {
    %c0_i32 = arith.constant 0 : i32
    %c0_i32_0 = arith.constant 0 : i32
    %c0_i32_1 = arith.constant 0 : i32
    return %c0_i32, %c0_i32_0 : i32, i32
  }
  func.func @transform_6(%arg0: i32) -> (i32, i32) {
    %c0_i32 = arith.constant 0 : i32
    %c0_i32_0 = arith.constant 0 : i32
    %c0_i32_1 = arith.constant 0 : i32
    return %c0_i32, %c0_i32_0 : i32, i32
  }
  func.func @transform_7(%arg0: i32) -> (i32, i32) {
    %c0_i32 = arith.constant 0 : i32
    %c0_i32_0 = arith.constant 0 : i32
    %c0_i32_1 = arith.constant 0 : i32
    return %c0_i32, %c0_i32_0 : i32, i32
  }
  func.func @transform_8(%arg0: i32) -> (i32, i32) {
    %c0_i32 = arith.constant 0 : i32
    %c0_i32_0 = arith.constant 0 : i32
    %c0_i32_1 = arith.constant 0 : i32
    return %c0_i32, %c0_i32_0 : i32, i32
  }
  func.func @transform_9(%arg0: i32) -> (i32, i32) {
    %c0_i32 = arith.constant 0 : i32
    %c0_i32_0 = arith.constant 0 : i32
    %c0_i32_1 = arith.constant 0 : i32
    return %c0_i32, %c0_i32_0 : i32, i32
  }
  func.func @transform_10(%arg0: i32) -> (i32, i32) {
    %c0_i32 = arith.constant 0 : i32
    %c0_i32_0 = arith.constant 0 : i32
    %c0_i32_1 = arith.constant 0 : i32
    return %c0_i32, %c0_i32_0 : i32, i32
  }
  func.func @transform_11(%arg0: i32) -> (i32, i32) {
    %c0_i32 = arith.constant 0 : i32
    %c0_i32_0 = arith.constant 0 : i32
    %c0_i32_1 = arith.constant 0 : i32
    return %c0_i32, %c0_i32_0 : i32, i32
  }
}

</mosaic_0001>

<bundles_post_ra>
// kernel: _lambda_.1
= control target key start
LH: loop header
LB: loop body
LE: loop exit
PB: predicated region body
PF: predicated region fallthrough
CT: control target
= control target key end

     0   :  { %16 = vsyncpa [#allocation5], 0  ;;  %s9007_s0 = inlined_call_operand.vmem [shape: f32[16,768], index: 0, kind: input, shape index: {}]   ;;  %s9008_s1 = inlined_call_operand.hbm [shape: f32[768,768], index: 1, kind: input, shape index: {}]   ;;  %s9009_s2 = inlined_call_operand.hbm [shape: f32[1,768], index: 2, kind: input, shape index: {}]   ;;  %s9010_s3 = inlined_call_operand.hbm [shape: f32[128,384], index: 3, kind: input, shape index: {}]   ;;  %s9011_s4 = inlined_call_operand.hbm [shape: f32[1,384], index: 4, kind: input, shape index: {}]   ;;  %s9012_s5 = inlined_call_operand.hbm [shape: f32[128,384], index: 5, kind: input, shape index: {}]   ;;  %s9013_s6 = inlined_call_operand.hbm [shape: f32[1,384], index: 6, kind: input, shape index: {}]   ;;  %s9014_s7 = inlined_call_operand.hbm [shape: f32[256,128], index: 7, kind: input, shape index: {}]   ;;  %s9015_s8 = inlined_call_operand.hbm [shape: f32[1,128], index: 8, kind: input, shape index: {}]   ;;  %s9016_s9 = inlined_call_operand.hbm [shape: f32[128,3], index: 9, kind: input, shape index: {}]   ;;  %s9017_s10 = inlined_call_operand.hbm [shape: f32[1,3], index: 10, kind: input, shape index: {}]   ;;  %s9018_s11 = inlined_call_operand.vmem [shape: f32[16,3], index: 11, kind: output, shape index: {}]  }
   0x1   :  { %17 = vsyncpa [#allocation7], 0 }
   0x2   :  { %18 = vsyncpa [#allocation10], 0 }
   0x3   :  { %19 = vsyncpa [#allocation13], 0 }
   0x4   :  { %20 = vsyncpa [#allocation16], 0 }
   0x5   :  { %21 = vsyncpa [#allocation19], 0  ;;  %s6733_s17 = smov [#allocation6]   ;;  %s6734_s19 = smov [#allocation9]  }
   0x6   :  { %s42_s18 = sshll.u32 %s6733_s17, 4  ;;  %s64_s20 = sshll.u32 %s6734_s19, 4  ;;  %s43_s18 = int_to_ptr.vmem [resolvable:$true] %s42_s18  ;;  %s65_s20 = int_to_ptr.vmem [resolvable:$true] %s64_s20 }
   0x7   :  { %s6529_s21 = scalar_lea.vmem %s43_s18, 96  ;;  %p6534_p1 = scmp.lt.s32.totalorder %s43_s18, %s43_s18 }
   0x8   :  { %p6530_p0 = scmp.ne.s32.totalorder %s43_s18, %s6529_s21  ;;  %p6535_p2 = scmp.lt.s32.totalorder %s6529_s21, %s6529_s21 }
   0xa   :  { %p6536_p3 = por %p6535_p2, %p6534_p1 }
   0xc   :  { %p6537_p4 = pnand %p6536_p3, %p6530_p0 }
   0xe   :  { %6540 = shalt.err (!%p6537_p4)
}
   0xf   :  { %45 = dma.hbm_to_vmem [thread:$0]  %s9009_s2, 96, %s43_s18, [#allocation7]  }
  0x10   :  { %s6549_s24 = scalar_lea.vmem %s65_s20, 48  ;;  %s6553_s25 = scalar_lea.vmem %s65_s20, 64 }
  0x11   :  { %p6550_p5 = scmp.ne.s32.totalorder %s65_s20, %s6549_s24  ;;  %p6554_p6 = scmp.lt.s32.totalorder %s65_s20, %s65_s20 }
  0x12   :  { %p6555_p7 = scmp.lt.s32.totalorder %s6553_s25, %s6549_s24 }
  0x14   :  { %p6556_p8 = por %p6555_p7, %p6554_p6 }
  0x16   :  { %p6557_p9 = pnand %p6556_p8, %p6550_p5 }
  0x18   :  { %6560 = shalt.err (!%p6557_p9)
}
  0x19   :  { %67 = dma.hbm_to_vmem [thread:$0]  %s9011_s4, 48, %s65_s20, [#allocation10]  }
  0x1a   :  { %s6735_s28 = smov [#allocation12]   ;;  %s6736_s30 = smov [#allocation15]  }
  0x1b   :  { %s86_s29 = sshll.u32 %s6735_s28, 4  ;;  %s108_s12 = sshll.u32 %s6736_s30, 4  ;;  %s87_s29 = int_to_ptr.vmem [resolvable:$true] %s86_s29  ;;  %s109_s12 = int_to_ptr.vmem [resolvable:$true] %s108_s12 }
  0x1c   :  { %s6569_s13 = scalar_lea.vmem %s87_s29, 48  ;;  %s6573_s2 = scalar_lea.vmem %s87_s29, 64 }
  0x1d   :  { %p6570_p10 = scmp.ne.s32.totalorder %s87_s29, %s6569_s13  ;;  %p6574_p11 = scmp.lt.s32.totalorder %s87_s29, %s87_s29 }
  0x1e   :  { %p6575_p12 = scmp.lt.s32.totalorder %s6573_s2, %s6569_s13 }
  0x20   :  { %p6576_p13 = por %p6575_p12, %p6574_p11 }
  0x22   :  { %p6577_p0 = pnand %p6576_p13, %p6570_p10 }
  0x24   :  { %6580 = shalt.err (!%p6577_p0)
}
  0x25   :  { %89 = dma.hbm_to_vmem [thread:$0]  %s9013_s6, 48, %s87_s29, [#allocation13]  }
  0x26   :  { %s6589_s16 = scalar_lea.vmem %s109_s12, 16  ;;  %s6593_s4 = scalar_lea.vmem %s109_s12, 32 }
  0x27   :  { %p6590_p1 = scmp.ne.s32.totalorder %s109_s12, %s6589_s16  ;;  %p6594_p2 = scmp.lt.s32.totalorder %s109_s12, %s109_s12 }
  0x28   :  { %p6595_p3 = scmp.lt.s32.totalorder %s6593_s4, %s6589_s16 }
  0x2a   :  { %p6596_p4 = por %p6595_p3, %p6594_p2 }
  0x2c   :  { %p6597_p5 = pnand %p6596_p4, %p6590_p1 }
  0x2e   :  { %6600 = shalt.err (!%p6597_p5)
}
  0x2f   :  { %111 = dma.hbm_to_vmem [thread:$0]  %s9015_s8, 16, %s109_s12, [#allocation16]  }
  0x30   :  { %s6737_s19 = smov [#allocation4]  }
  0x31   :  { %s29_s20 = sshll.u32 %s6737_s19, 4  ;;  %s30_s20 = int_to_ptr.vmem [resolvable:$true] %s29_s20 }
  0x32   :  { %s6609_s21 = scalar_lea.vmem %s30_s20, 73728  ;;  %p6614_p7 = scmp.lt.s32.totalorder %s30_s20, %s30_s20 }
  0x33   :  { %p6610_p6 = scmp.ne.s32.totalorder %s30_s20, %s6609_s21  ;;  %p6615_p8 = scmp.lt.s32.totalorder %s6609_s21, %s6609_s21 }
  0x35   :  { %p6616_p9 = por %p6615_p8, %p6614_p7 }
  0x37   :  { %p6617_p10 = pnand %p6616_p9, %p6610_p6 }
  0x39   :  { %6620 = shalt.err (!%p6617_p10)
}
  0x3a   :  { %s6738_s6 = smov 768   ;;  %s6739_s22 = smov 48  }
  0x3b   :  { %35 = dma.hbm_to_vmem [thread:$0]  %s9008_s1, 73728, %s30_s20, [#allocation5], %s6738_s6, %s6738_s6, %s6739_s22  }
  0x3c   :  { %s6740_s25 = smov [#allocation8]  }
  0x3d   :  { %s51_s26 = sshll.u32 %s6740_s25, 4  ;;  %s52_s26 = int_to_ptr.vmem [resolvable:$true] %s51_s26 }
  0x3e   :  { %s6629_s8 = scalar_lea.vmem %s52_s26, 6144  ;;  %p6634_p12 = scmp.lt.s32.totalorder %s52_s26, %s52_s26 }
  0x3f   :  { %p6630_p11 = scmp.ne.s32.totalorder %s52_s26, %s6629_s8  ;;  %p6635_p13 = scmp.lt.s32.totalorder %s6629_s8, %s6629_s8 }
  0x41   :  { %p6636_p0 = por %p6635_p13, %p6634_p12 }
  0x43   :  { %p6637_p1 = pnand %p6636_p0, %p6630_p11 }
  0x45   :  { %6640 = shalt.err (!%p6637_p1)
}
  0x46   :  { %s6741_s27 = smov 384   ;;  %s6742_s28 = smov 24  }
  0x47   :  { %57 = dma.hbm_to_vmem [thread:$0]  %s9010_s3, 6144, %s52_s26, [#allocation7], %s6741_s27, %s6741_s27, %s6742_s28  }
  0x48   :  { %s6743_s12 = smov [#allocation11]   ;;  %s6744_s2 = smov [#allocation14]  }
  0x49   :  { %s73_s13 = sshll.u32 %s6743_s12, 4  ;;  %s95_s1 = sshll.u32 %s6744_s2, 4  ;;  %s74_s13 = int_to_ptr.vmem [resolvable:$true] %s73_s13  ;;  %s96_s1 = int_to_ptr.vmem [resolvable:$true] %s95_s1 }
  0x4a   :  { %s6649_s14 = scalar_lea.vmem %s74_s13, 6144  ;;  %p6654_p3 = scmp.lt.s32.totalorder %s74_s13, %s74_s13 }
  0x4b   :  { %p6650_p2 = scmp.ne.s32.totalorder %s74_s13, %s6649_s14  ;;  %p6655_p4 = scmp.lt.s32.totalorder %s6649_s14, %s6649_s14 }
  0x4d   :  { %p6656_p5 = por %p6655_p4, %p6654_p3 }
  0x4f   :  { %p6657_p6 = pnand %p6656_p5, %p6650_p2 }
  0x51   :  { %6660 = shalt.err (!%p6657_p6)
}
  0x52   :  { %79 = dma.hbm_to_vmem [thread:$0]  %s9012_s5, 6144, %s74_s13, [#allocation10], %s6741_s27, %s6741_s27, %s6742_s28  }
  0x53   :  { %s6669_s4 = scalar_lea.vmem %s96_s1, 4096  ;;  %p6674_p8 = scmp.lt.s32.totalorder %s96_s1, %s96_s1 }
  0x54   :  { %p6670_p7 = scmp.ne.s32.totalorder %s96_s1, %s6669_s4  ;;  %p6675_p9 = scmp.lt.s32.totalorder %s6669_s4, %s6669_s4 }
  0x56   :  { %p6676_p10 = por %p6675_p9, %p6674_p8 }
  0x58   :  { %p6677_p11 = pnand %p6676_p10, %p6670_p7 }
  0x5a   :  { %6680 = shalt.err (!%p6677_p11)
}
  0x5b   :  { %s6745_s3 = smov 128   ;;  %s6746_s17 = smov 8  }
  0x5c   :  { %101 = dma.hbm_to_vmem [thread:$0]  %s9014_s7, 4096, %s96_s1, [#allocation13], %s6745_s3, %s6745_s3, %s6746_s17  }
  0x5d   :  { %s6747_s20 = smov [#allocation17]   ;;  %s6748_s6 = smov [#allocation18]  }
  0x5e   :  { %s117_s21 = sshll.u32 %s6747_s20, 4  ;;  %s130_s22 = sshll.u32 %s6748_s6, 4  ;;  %s118_s21 = int_to_ptr.vmem [resolvable:$true] %s117_s21  ;;  %s131_s22 = int_to_ptr.vmem [resolvable:$true] %s130_s22 }
  0x5f   :  { %s6689_s5 = scalar_lea.vmem %s118_s21, 2048  ;;  %p6694_p13 = scmp.lt.s32.totalorder %s118_s21, %s118_s21 }
  0x60   :  { %p6690_p12 = scmp.ne.s32.totalorder %s118_s21, %s6689_s5  ;;  %p6695_p0 = scmp.lt.s32.totalorder %s6689_s5, %s6689_s5 }
  0x62   :  { %p6696_p1 = por %p6695_p0, %p6694_p13 }
  0x64   :  { %p6697_p2 = pnand %p6696_p1, %p6690_p12 }
  0x66   :  { %6700 = shalt.err (!%p6697_p2)
}
  0x67   :  { %123 = dma.hbm_to_vmem [thread:$0]  %s9016_s9, 2048, %s118_s21, [#allocation16], %s6745_s3, %s6745_s3, %s6746_s17  }
  0x68   :  { %s6709_s25 = scalar_lea.vmem %s131_s22, 16  ;;  %s6713_s7 = scalar_lea.vmem %s131_s22, 32 }
  0x69   :  { %p6710_p3 = scmp.ne.s32.totalorder %s131_s22, %s6709_s25  ;;  %p6714_p4 = scmp.lt.s32.totalorder %s131_s22, %s131_s22 }
  0x6a   :  { %p6715_p5 = scmp.lt.s32.totalorder %s6713_s7, %s6709_s25 }
  0x6c   :  { %p6716_p6 = por %p6715_p5, %p6714_p4 }
  0x6e   :  { %p6717_p7 = pnand %p6716_p6, %p6710_p3 }
  0x70   :  { %6720 = shalt.err (!%p6717_p7)
}
  0x71   :  { %133 = dma.hbm_to_vmem [thread:$0]  %s9017_s10, 16, %s131_s22, [#allocation19]  }
  0x72   :  { %6721 = dma.done.wait [#allocation5], 73728  }
  0x73   :  { %6722 = vsyncadd [#allocation5], 4294893568 }
  0x74   :  { %6723 = dma.done.wait [#allocation7], 6240  }
  0x75   :  { %6724 = vsyncadd [#allocation7], 4294961056 }
  0x76   :  { %6725 = dma.done.wait [#allocation10], 6192  }
  0x77   :  { %6726 = vsyncadd [#allocation10], 4294961104 }
  0x78   :  { %6727 = dma.done.wait [#allocation13], 4144  }
  0x79   :  { %6728 = vsyncadd [#allocation13], 4294963152 }
  0x7a   :  { %6729 = dma.done.wait [#allocation16], 2064  }
  0x7b   :  { %6730 = vsyncadd [#allocation16], 4294965232 }
  0x7c   :  { %6731 = dma.done.wait [#allocation19], 16  }
  0x7d   :  { %6732 = vsyncadd [#allocation19], 4294967280  ;;  %v267_v0 = vld [vmem:[#allocation4 + $0x2d8] sm:$0xff]  ;;  %v266_v2 = vld [vmem:[#allocation4 + $0x2d0] sm:$0xff]  ;;  %vm6750_vm0 = vmmov 0   ;;  %vm5329_vm1 = vcmask 23552  }
  0x7e   :  { %v459_v1 = vld [vmem:[#allocation4 + $0x8d8] sm:$0xff]  ;;  %784 = vmatprep.subr.mxu0 %v267_v0  ;;  %v458_v3 = vld [vmem:[#allocation4 + $0x8d0] sm:$0xff]  ;;  %v261_v4 = vld [vmem:[#allocation4 + $0x2a8] sm:$0xff] }
  0x7f   :  { %861 = vmatprep.subr.mxu1 %v459_v1  ;;  %v453_v5 = vld [vmem:[#allocation4 + $0x8a8] sm:$0xff]  ;;  %785 = vmatpush1.msra.mxu0 %v266_v2  ;;  %v260_v6 = vld [vmem:[#allocation4 + $0x2a0] sm:$0xff]  ;;  %v255_v8 = vld [vmem:[#allocation4 + $0x278] sm:$0xff] }
  0x80   :  { %862 = vmatpush1.msra.mxu1 %v458_v3  ;;  %v452_v7 = vld [vmem:[#allocation4 + $0x8a0] sm:$0xff]  ;;  %786 = vmatprep.subr.mxu0 %v261_v4  ;;  %v447_v9 = vld [vmem:[#allocation4 + $0x878] sm:$0xff]  ;;  %v254_v10 = vld [vmem:[#allocation4 + $0x270] sm:$0xff] }
  0x81   :  { %863 = vmatprep.subr.mxu1 %v453_v5  ;;  %v446_v11 = vld [vmem:[#allocation4 + $0x870] sm:$0xff]  ;;  %787 = vmatpush1.msra.mxu0 %v260_v6  ;;  %v249_v12 = vld [vmem:[#allocation4 + $0x248] sm:$0xff]  ;;  %v248_v14 = vld [vmem:[#allocation4 + $0x240] sm:$0xff] }
  0x82   :  { %864 = vmatpush1.msra.mxu1 %v452_v7  ;;  %v441_v13 = vld [vmem:[#allocation4 + $0x848] sm:$0xff]  ;;  %788 = vmatprep.subr.mxu0 %v255_v8  ;;  %v440_v15 = vld [vmem:[#allocation4 + $0x840] sm:$0xff]  ;;  %v243_v16 = vld [vmem:[#allocation4 + $0x218] sm:$0xff] }
  0x83   :  { %865 = vmatprep.subr.mxu1 %v447_v9  ;;  %789 = vmatpush1.msra.mxu0 %v254_v10  ;;  %v435_v17 = vld [vmem:[#allocation4 + $0x818] sm:$0xff]  ;;  %v242_v18 = vld [vmem:[#allocation4 + $0x210] sm:$0xff]  ;;  %v237_v20 = vld [vmem:[#allocation4 + $0x1e8] sm:$0xff] }
  0x84   :  { %866 = vmatpush1.msra.mxu1 %v446_v11  ;;  %790 = vmatprep.subr.mxu0 %v249_v12  ;;  %v434_v19 = vld [vmem:[#allocation4 + $0x810] sm:$0xff]  ;;  %v429_v21 = vld [vmem:[#allocation4 + $0x7e8] sm:$0xff]  ;;  %v236_v22 = vld [vmem:[#allocation4 + $0x1e0] sm:$0xff] }
  0x85   :  { %867 = vmatprep.subr.mxu1 %v441_v13  ;;  %791 = vmatpush1.msra.mxu0 %v248_v14  ;;  %v428_v23 = vld [vmem:[#allocation4 + $0x7e0] sm:$0xff]  ;;  %v231_v24 = vld [vmem:[#allocation4 + $0x1b8] sm:$0xff]  ;;  %v230_v26 = vld [vmem:[#allocation4 + $0x1b0] sm:$0xff] }
  0x86   :  { %868 = vmatpush1.msra.mxu1 %v440_v15  ;;  %792 = vmatprep.subr.mxu0 %v243_v16  ;;  %v423_v25 = vld [vmem:[#allocation4 + $0x7b8] sm:$0xff]  ;;  %v422_v27 = vld [vmem:[#allocation4 + $0x7b0] sm:$0xff]  ;;  %v225_v28 = vld [vmem:[#allocation4 + $0x188] sm:$0xff] }
  0x87   :  { %869 = vmatprep.subr.mxu1 %v435_v17  ;;  %793 = vmatpush1.msra.mxu0 %v242_v18  ;;  %v417_v29 = vld [vmem:[#allocation4 + $0x788] sm:$0xff]  ;;  %v224_v30 = vld [vmem:[#allocation4 + $0x180] sm:$0xff]  ;;  %v219_v32 = vld [vmem:[#allocation4 + $0x158] sm:$0xff] }
  0x88   :  { %870 = vmatpush1.msra.mxu1 %v434_v19  ;;  %794 = vmatprep.subr.mxu0 %v237_v20  ;;  %v416_v31 = vld [vmem:[#allocation4 + $0x780] sm:$0xff]  ;;  %v411_v33 = vld [vmem:[#allocation4 + $0x758] sm:$0xff]  ;;  %v218_v34 = vld [vmem:[#allocation4 + $0x150] sm:$0xff] }
  0x89   :  { %871 = vmatprep.subr.mxu1 %v429_v21  ;;  %795 = vmatpush1.msra.mxu0 %v236_v22  ;;  %v410_v35 = vld [vmem:[#allocation4 + $0x750] sm:$0xff]  ;;  %v213_v36 = vld [vmem:[#allocation4 + $0x128] sm:$0xff]  ;;  %v212_v38 = vld [vmem:[#allocation4 + $0x120] sm:$0xff] }
  0x8a   :  { %872 = vmatpush1.msra.mxu1 %v428_v23  ;;  %796 = vmatprep.subr.mxu0 %v231_v24  ;;  %v405_v37 = vld [vmem:[#allocation4 + $0x728] sm:$0xff]  ;;  %v404_v39 = vld [vmem:[#allocation4 + $0x720] sm:$0xff]  ;;  %v207_v40 = vld [vmem:[#allocation4 + $0xf8] sm:$0xff] }
  0x8b   :  { %873 = vmatprep.subr.mxu1 %v423_v25  ;;  %797 = vmatpush1.msra.mxu0 %v230_v26  ;;  %v399_v41 = vld [vmem:[#allocation4 + $0x6f8] sm:$0xff]  ;;  %v206_v42 = vld [vmem:[#allocation4 + $0xf0] sm:$0xff]  ;;  %v201_v44 = vld [vmem:[#allocation4 + $0xc8] sm:$0xff] }
  0x8c   :  { %874 = vmatpush1.msra.mxu1 %v422_v27  ;;  %798 = vmatprep.subr.mxu0 %v225_v28  ;;  %v398_v43 = vld [vmem:[#allocation4 + $0x6f0] sm:$0xff]  ;;  %v393_v45 = vld [vmem:[#allocation4 + $0x6c8] sm:$0xff]  ;;  %v200_v46 = vld [vmem:[#allocation4 + $0xc0] sm:$0xff] }
  0x8d   :  { %875 = vmatprep.subr.mxu1 %v417_v29  ;;  %799 = vmatpush1.msra.mxu0 %v224_v30  ;;  %v392_v47 = vld [vmem:[#allocation4 + $0x6c0] sm:$0xff]  ;;  %v195_v48 = vld [vmem:[#allocation4 + $0x98] sm:$0xff]  ;;  %v194_v50 = vld [vmem:[#allocation4 + $0x90] sm:$0xff] }
  0x8e   :  { %876 = vmatpush1.msra.mxu1 %v416_v31  ;;  %800 = vmatprep.subr.mxu0 %v219_v32  ;;  %v387_v49 = vld [vmem:[#allocation4 + $0x698] sm:$0xff]  ;;  %v386_v51 = vld [vmem:[#allocation4 + $0x690] sm:$0xff]  ;;  %v189_v52 = vld [vmem:[#allocation4 + $0x68] sm:$0xff] }
  0x8f   :  { %877 = vmatprep.subr.mxu1 %v411_v33  ;;  %801 = vmatpush1.msra.mxu0 %v218_v34  ;;  %v381_v53 = vld [vmem:[#allocation4 + $0x668] sm:$0xff]  ;;  %v188_v54 = vld [vmem:[#allocation4 + $0x60] sm:$0xff]  ;;  %v183_v56 = vld [vmem:[#allocation4 + $0x38] sm:$0xff] }
  0x90   :  { %878 = vmatpush1.msra.mxu1 %v410_v35  ;;  %802 = vmatprep.subr.mxu0 %v213_v36  ;;  %v380_v55 = vld [vmem:[#allocation4 + $0x660] sm:$0xff]  ;;  %v375_v57 = vld [vmem:[#allocation4 + $0x638] sm:$0xff]  ;;  %v182_v58 = vld [vmem:[#allocation4 + $0x30] sm:$0xff] }
  0x91   :  { %879 = vmatprep.subr.mxu1 %v405_v37  ;;  %803 = vmatpush1.msra.mxu0 %v212_v38  ;;  %v374_v59 = vld [vmem:[#allocation4 + $0x630] sm:$0xff]  ;;  %v177_v60 = vld [vmem:[#allocation4 + $0x8] sm:$0xff]  ;;  %v176_v62 = vld [vmem:[#allocation4] sm:$0xff] }
  0x92   :  { %880 = vmatpush1.msra.mxu1 %v404_v39  ;;  %804 = vmatprep.subr.mxu0 %v207_v40  ;;  %v369_v61 = vld [vmem:[#allocation4 + $0x608] sm:$0xff]  ;;  %v368_v63 = vld [vmem:[#allocation4 + $0x600] sm:$0xff]  ;;  %v363_v0 = vld [vmem:[#allocation4 + $0x5d8] sm:$0xff] }
  0x93   :  { %881 = vmatprep.subr.mxu1 %v399_v41  ;;  %805 = vmatpush1.msra.mxu0 %v206_v42  ;;  %v555_v1 = vld [vmem:[#allocation4 + $0xbd8] sm:$0xff]  ;;  %v362_v2 = vld [vmem:[#allocation4 + $0x5d0] sm:$0xff]  ;;  %v357_v4 = vld [vmem:[#allocation4 + $0x5a8] sm:$0xff] }
  0x94   :  { %882 = vmatpush1.msra.mxu1 %v398_v43  ;;  %806 = vmatprep.subr.mxu0 %v201_v44  ;;  %v554_v3 = vld [vmem:[#allocation4 + $0xbd0] sm:$0xff]  ;;  %v549_v5 = vld [vmem:[#allocation4 + $0xba8] sm:$0xff]  ;;  %v356_v6 = vld [vmem:[#allocation4 + $0x5a0] sm:$0xff] }
  0x95   :  { %883 = vmatprep.subr.mxu1 %v393_v45  ;;  %807 = vmatpush1.msra.mxu0 %v200_v46  ;;  %v548_v7 = vld [vmem:[#allocation4 + $0xba0] sm:$0xff]  ;;  %v351_v8 = vld [vmem:[#allocation4 + $0x578] sm:$0xff]  ;;  %v350_v10 = vld [vmem:[#allocation4 + $0x570] sm:$0xff] }
  0x96   :  { %884 = vmatpush1.msra.mxu1 %v392_v47  ;;  %808 = vmatprep.subr.mxu0 %v195_v48  ;;  %v543_v9 = vld [vmem:[#allocation4 + $0xb78] sm:$0xff]  ;;  %v542_v11 = vld [vmem:[#allocation4 + $0xb70] sm:$0xff]  ;;  %v345_v12 = vld [vmem:[#allocation4 + $0x548] sm:$0xff] }
  0x97   :  { %885 = vmatprep.subr.mxu1 %v387_v49  ;;  %809 = vmatpush1.msra.mxu0 %v194_v50  ;;  %v537_v13 = vld [vmem:[#allocation4 + $0xb48] sm:$0xff]  ;;  %v344_v14 = vld [vmem:[#allocation4 + $0x540] sm:$0xff]  ;;  %v339_v16 = vld [vmem:[#allocation4 + $0x518] sm:$0xff] }
  0x98   :  { %886 = vmatpush1.msra.mxu1 %v386_v51  ;;  %810 = vmatprep.subr.mxu0 %v189_v52  ;;  %v536_v15 = vld [vmem:[#allocation4 + $0xb40] sm:$0xff]  ;;  %v531_v17 = vld [vmem:[#allocation4 + $0xb18] sm:$0xff]  ;;  %v338_v18 = vld [vmem:[#allocation4 + $0x510] sm:$0xff] }
  0x99   :  { %887 = vmatprep.subr.mxu1 %v381_v53  ;;  %811 = vmatpush1.msra.mxu0 %v188_v54  ;;  %v530_v19 = vld [vmem:[#allocation4 + $0xb10] sm:$0xff]  ;;  %v333_v20 = vld [vmem:[#allocation4 + $0x4e8] sm:$0xff]  ;;  %v332_v22 = vld [vmem:[#allocation4 + $0x4e0] sm:$0xff] }
  0x9a   :  { %888 = vmatpush1.msra.mxu1 %v380_v55  ;;  %812 = vmatprep.subr.mxu0 %v183_v56  ;;  %v525_v21 = vld [vmem:[#allocation4 + $0xae8] sm:$0xff]  ;;  %v524_v23 = vld [vmem:[#allocation4 + $0xae0] sm:$0xff]  ;;  %v327_v24 = vld [vmem:[#allocation4 + $0x4b8] sm:$0xff] }
  0x9b   :  { %889 = vmatprep.subr.mxu1 %v375_v57  ;;  %813 = vmatpush1.msra.mxu0 %v182_v58  ;;  %v519_v25 = vld [vmem:[#allocation4 + $0xab8] sm:$0xff]  ;;  %v326_v26 = vld [vmem:[#allocation4 + $0x4b0] sm:$0xff]  ;;  %v321_v28 = vld [vmem:[#allocation4 + $0x488] sm:$0xff] }
  0x9c   :  { %890 = vmatpush1.msra.mxu1 %v374_v59  ;;  %814 = vmatprep.subr.mxu0 %v177_v60  ;;  %v518_v27 = vld [vmem:[#allocation4 + $0xab0] sm:$0xff]  ;;  %v513_v29 = vld [vmem:[#allocation4 + $0xa88] sm:$0xff]  ;;  %v320_v30 = vld [vmem:[#allocation4 + $0x480] sm:$0xff] }
  0x9d   :  { %891 = vmatprep.subr.mxu1 %v369_v61  ;;  %815 = vmatpush1.msra.mxu0 %v176_v62  ;;  %v512_v31 = vld [vmem:[#allocation4 + $0xa80] sm:$0xff]  ;;  %v315_v32 = vld [vmem:[#allocation4 + $0x458] sm:$0xff]  ;;  %v314_v34 = vld [vmem:[#allocation4 + $0x450] sm:$0xff] }
  0x9e   :  { %892 = vmatpush1.msra.mxu1 %v368_v63  ;;  %816 = vmatprep.subr.mxu0 %v363_v0  ;;  %v507_v33 = vld [vmem:[#allocation4 + $0xa58] sm:$0xff]  ;;  %v506_v35 = vld [vmem:[#allocation4 + $0xa50] sm:$0xff]  ;;  %v309_v36 = vld [vmem:[#allocation4 + $0x428] sm:$0xff] }
  0x9f   :  { %893 = vmatprep.subr.mxu1 %v555_v1  ;;  %817 = vmatpush2.msra.mxu0 %v362_v2  ;;  %v501_v37 = vld [vmem:[#allocation4 + $0xa28] sm:$0xff]  ;;  %v308_v38 = vld [vmem:[#allocation4 + $0x420] sm:$0xff]  ;;  %v303_v40 = vld [vmem:[#allocation4 + $0x3f8] sm:$0xff] }
  0xa0   :  { %894 = vmatpush2.msra.mxu1 %v554_v3  ;;  %818 = vmatprep.subr.mxu0 %v357_v4  ;;  %v500_v39 = vld [vmem:[#allocation4 + $0xa20] sm:$0xff]  ;;  %v495_v41 = vld [vmem:[#allocation4 + $0x9f8] sm:$0xff]  ;;  %v302_v42 = vld [vmem:[#allocation4 + $0x3f0] sm:$0xff] }
  0xa1   :  { %895 = vmatprep.subr.mxu1 %v549_v5  ;;  %819 = vmatpush2.msra.mxu0 %v356_v6  ;;  %v494_v43 = vld [vmem:[#allocation4 + $0x9f0] sm:$0xff]  ;;  %v297_v44 = vld [vmem:[#allocation4 + $0x3c8] sm:$0xff]  ;;  %v296_v46 = vld [vmem:[#allocation4 + $0x3c0] sm:$0xff] }
  0xa2   :  { %896 = vmatpush2.msra.mxu1 %v548_v7  ;;  %820 = vmatprep.subr.mxu0 %v351_v8  ;;  %v489_v45 = vld [vmem:[#allocation4 + $0x9c8] sm:$0xff]  ;;  %v488_v47 = vld [vmem:[#allocation4 + $0x9c0] sm:$0xff]  ;;  %v291_v48 = vld [vmem:[#allocation4 + $0x398] sm:$0xff] }
  0xa3   :  { %897 = vmatprep.subr.mxu1 %v543_v9  ;;  %821 = vmatpush2.msra.mxu0 %v350_v10  ;;  %v483_v49 = vld [vmem:[#allocation4 + $0x998] sm:$0xff]  ;;  %v290_v50 = vld [vmem:[#allocation4 + $0x390] sm:$0xff]  ;;  %v285_v52 = vld [vmem:[#allocation4 + $0x368] sm:$0xff] }
  0xa4   :  { %898 = vmatpush2.msra.mxu1 %v542_v11  ;;  %822 = vmatprep.subr.mxu0 %v345_v12  ;;  %v482_v51 = vld [vmem:[#allocation4 + $0x990] sm:$0xff]  ;;  %v477_v53 = vld [vmem:[#allocation4 + $0x968] sm:$0xff]  ;;  %v284_v54 = vld [vmem:[#allocation4 + $0x360] sm:$0xff] }
  0xa5   :  { %899 = vmatprep.subr.mxu1 %v537_v13  ;;  %823 = vmatpush2.msra.mxu0 %v344_v14  ;;  %v476_v55 = vld [vmem:[#allocation4 + $0x960] sm:$0xff]  ;;  %v279_v56 = vld [vmem:[#allocation4 + $0x338] sm:$0xff]  ;;  %v278_v58 = vld [vmem:[#allocation4 + $0x330] sm:$0xff] }
  0xa6   :  { %900 = vmatpush2.msra.mxu1 %v536_v15  ;;  %824 = vmatprep.subr.mxu0 %v339_v16  ;;  %v471_v57 = vld [vmem:[#allocation4 + $0x938] sm:$0xff]  ;;  %v470_v59 = vld [vmem:[#allocation4 + $0x930] sm:$0xff]  ;;  %v273_v60 = vld [vmem:[#allocation4 + $0x308] sm:$0xff] }
  0xa7   :  { %901 = vmatprep.subr.mxu1 %v531_v17  ;;  %825 = vmatpush2.msra.mxu0 %v338_v18  ;;  %v465_v61 = vld [vmem:[#allocation4 + $0x908] sm:$0xff]  ;;  %v272_v62 = vld [vmem:[#allocation4 + $0x300] sm:$0xff]  ;;  %v167_v2 = vld [vmem:[%s9007_s0 + $0x18] sm:$0xff] }
  0xa8   :  { %902 = vmatpush2.msra.mxu1 %v530_v19  ;;  %826 = vmatprep.subr.mxu0 %v333_v20  ;;  %v6844_v63 = vld [vmem:[%s9007_s0 + $0x8] sm:$0xff]  ;;  %v464_v0 = vld [vmem:[#allocation4 + $0x900] sm:$0xff]  ;;  %v651_v3 = vld [vmem:[#allocation4 + $0xed8] sm:$0xff] }
  0xa9   :  { %903 = vmatprep.subr.mxu1 %v525_v21  ;;  %827 = vmatpush2.msra.mxu0 %v332_v22  ;;  %v6849_v1 = vld [vmem:[%s9007_s0] sm:$0xff]  ;;  %v269_v4 = vld [vmem:[#allocation4 + $0x2e8] sm:$0xff]  ;;  %v166_v5 = vld [vmem:[%s9007_s0 + $0x10] sm:$0xff] }
  0xaa   :  { %904 = vmatpush2.msra.mxu1 %v524_v23  ;;  %828 = vmatprep.subr.mxu0 %v327_v24  ;;  %v650_v6 = vld [vmem:[#allocation4 + $0xed0] sm:$0xff]  ;;  %v268_v7 = vld [vmem:[#allocation4 + $0x2e0] sm:$0xff]  ;;  %v645_v8 = vld [vmem:[#allocation4 + $0xea8] sm:$0xff] }
  0xab   :  { %905 = vmatprep.subr.mxu1 %v519_v25  ;;  %829 = vmatpush2.msra.mxu0 %v326_v26  ;;  %v263_v9 = vld [vmem:[#allocation4 + $0x2b8] sm:$0xff]  ;;  %v644_v10 = vld [vmem:[#allocation4 + $0xea0] sm:$0xff]  ;;  %v262_v11 = vld [vmem:[#allocation4 + $0x2b0] sm:$0xff] }
  0xac   :  { %906 = vmatpush2.msra.mxu1 %v518_v27  ;;  %830 = vmatprep.subr.mxu0 %v321_v28  ;;  %v639_v12 = vld [vmem:[#allocation4 + $0xe78] sm:$0xff]  ;;  %v257_v13 = vld [vmem:[#allocation4 + $0x288] sm:$0xff]  ;;  %v638_v14 = vld [vmem:[#allocation4 + $0xe70] sm:$0xff] }
  0xad   :  { %907 = vmatprep.subr.mxu1 %v513_v29  ;;  %831 = vmatpush2.msra.mxu0 %v320_v30  ;;  %v256_v15 = vld [vmem:[#allocation4 + $0x280] sm:$0xff]  ;;  %v633_v16 = vld [vmem:[#allocation4 + $0xe48] sm:$0xff]  ;;  %v251_v17 = vld [vmem:[#allocation4 + $0x258] sm:$0xff] }
  0xae   :  { %908 = vmatpush2.msra.mxu1 %v512_v31  ;;  %832 = vmatprep.subr.mxu0 %v315_v32  ;;  %v632_v18 = vld [vmem:[#allocation4 + $0xe40] sm:$0xff]  ;;  %v250_v19 = vld [vmem:[#allocation4 + $0x250] sm:$0xff]  ;;  %v627_v20 = vld [vmem:[#allocation4 + $0xe18] sm:$0xff] }
  0xaf   :  { %909 = vmatprep.subr.mxu1 %v507_v33  ;;  %833 = vmatpush2.msra.mxu0 %v314_v34  ;;  %v245_v21 = vld [vmem:[#allocation4 + $0x228] sm:$0xff]  ;;  %v626_v22 = vld [vmem:[#allocation4 + $0xe10] sm:$0xff]  ;;  %v244_v23 = vld [vmem:[#allocation4 + $0x220] sm:$0xff] }
  0xb0   :  { %910 = vmatpush2.msra.mxu1 %v506_v35  ;;  %834 = vmatprep.subr.mxu0 %v309_v36  ;;  %v621_v24 = vld [vmem:[#allocation4 + $0xde8] sm:$0xff]  ;;  %v239_v25 = vld [vmem:[#allocation4 + $0x1f8] sm:$0xff]  ;;  %v620_v26 = vld [vmem:[#allocation4 + $0xde0] sm:$0xff] }
  0xb1   :  { %911 = vmatprep.subr.mxu1 %v501_v37  ;;  %835 = vmatpush2.msra.mxu0 %v308_v38  ;;  %v238_v27 = vld [vmem:[#allocation4 + $0x1f0] sm:$0xff]  ;;  %v615_v28 = vld [vmem:[#allocation4 + $0xdb8] sm:$0xff]  ;;  %v233_v29 = vld [vmem:[#allocation4 + $0x1c8] sm:$0xff] }
  0xb2   :  { %912 = vmatpush2.msra.mxu1 %v500_v39  ;;  %836 = vmatprep.subr.mxu0 %v303_v40  ;;  %v614_v30 = vld [vmem:[#allocation4 + $0xdb0] sm:$0xff]  ;;  %v232_v31 = vld [vmem:[#allocation4 + $0x1c0] sm:$0xff]  ;;  %v609_v32 = vld [vmem:[#allocation4 + $0xd88] sm:$0xff] }
  0xb3   :  { %913 = vmatprep.subr.mxu1 %v495_v41  ;;  %837 = vmatpush2.msra.mxu0 %v302_v42  ;;  %v227_v33 = vld [vmem:[#allocation4 + $0x198] sm:$0xff]  ;;  %v608_v34 = vld [vmem:[#allocation4 + $0xd80] sm:$0xff]  ;;  %v226_v35 = vld [vmem:[#allocation4 + $0x190] sm:$0xff] }
  0xb4   :  { %914 = vmatpush2.msra.mxu1 %v494_v43  ;;  %838 = vmatprep.subr.mxu0 %v297_v44  ;;  %v603_v36 = vld [vmem:[#allocation4 + $0xd58] sm:$0xff]  ;;  %v221_v37 = vld [vmem:[#allocation4 + $0x168] sm:$0xff]  ;;  %v602_v38 = vld [vmem:[#allocation4 + $0xd50] sm:$0xff] }
  0xb5   :  { %915 = vmatprep.subr.mxu1 %v489_v45  ;;  %839 = vmatpush2.msra.mxu0 %v296_v46  ;;  %v220_v39 = vld [vmem:[#allocation4 + $0x160] sm:$0xff]  ;;  %v597_v40 = vld [vmem:[#allocation4 + $0xd28] sm:$0xff]  ;;  %v215_v41 = vld [vmem:[#allocation4 + $0x138] sm:$0xff] }
  0xb6   :  { %916 = vmatpush2.msra.mxu1 %v488_v47  ;;  %840 = vmatprep.subr.mxu0 %v291_v48  ;;  %v596_v42 = vld [vmem:[#allocation4 + $0xd20] sm:$0xff]  ;;  %v214_v43 = vld [vmem:[#allocation4 + $0x130] sm:$0xff]  ;;  %v591_v44 = vld [vmem:[#allocation4 + $0xcf8] sm:$0xff] }
  0xb7   :  { %917 = vmatprep.subr.mxu1 %v483_v49  ;;  %841 = vmatpush2.msra.mxu0 %v290_v50  ;;  %v209_v45 = vld [vmem:[#allocation4 + $0x108] sm:$0xff]  ;;  %v590_v46 = vld [vmem:[#allocation4 + $0xcf0] sm:$0xff]  ;;  %v208_v47 = vld [vmem:[#allocation4 + $0x100] sm:$0xff] }
  0xb8   :  { %918 = vmatpush2.msra.mxu1 %v482_v51  ;;  %842 = vmatprep.subr.mxu0 %v285_v52  ;;  %v585_v48 = vld [vmem:[#allocation4 + $0xcc8] sm:$0xff]  ;;  %v203_v49 = vld [vmem:[#allocation4 + $0xd8] sm:$0xff]  ;;  %v584_v50 = vld [vmem:[#allocation4 + $0xcc0] sm:$0xff] }
  0xb9   :  { %919 = vmatprep.subr.mxu1 %v477_v53  ;;  %843 = vmatpush2.msra.mxu0 %v284_v54  ;;  %v202_v51 = vld [vmem:[#allocation4 + $0xd0] sm:$0xff]  ;;  %v579_v52 = vld [vmem:[#allocation4 + $0xc98] sm:$0xff]  ;;  %v197_v53 = vld [vmem:[#allocation4 + $0xa8] sm:$0xff] }
  0xba   :  { %920 = vmatpush2.msra.mxu1 %v476_v55  ;;  %844 = vmatprep.subr.mxu0 %v279_v56  ;;  %v578_v54 = vld [vmem:[#allocation4 + $0xc90] sm:$0xff]  ;;  %v196_v55 = vld [vmem:[#allocation4 + $0xa0] sm:$0xff]  ;;  %v573_v56 = vld [vmem:[#allocation4 + $0xc68] sm:$0xff] }
  0xbb   :  { %921 = vmatprep.subr.mxu1 %v471_v57  ;;  %845 = vmatpush2.msra.mxu0 %v278_v58  ;;  %v191_v57 = vld [vmem:[#allocation4 + $0x78] sm:$0xff]  ;;  %v572_v58 = vld [vmem:[#allocation4 + $0xc60] sm:$0xff] }
  0xbc   :  { %922 = vmatpush2.msra.mxu1 %v470_v59  ;;  %846 = vmatprep.subr.mxu0 %v273_v60  ;;  %v190_v59 = vld [vmem:[#allocation4 + $0x70] sm:$0xff]  ;;  %v567_v60 = vld [vmem:[#allocation4 + $0xc38] sm:$0xff] }
  0xbd   :  { %923 = vmatprep.subr.mxu1 %v465_v61  ;;  %847 = vmatpush2.msra.mxu0 %v272_v62  ;;  %v185_v61 = vld [vmem:[#allocation4 + $0x48] sm:$0xff]  ;;  %v566_v62 = vld [vmem:[#allocation4 + $0xc30] sm:$0xff] }
  0xbe   :  { %848 = vmatprep.mubr.f32.mxu0 %v6844_v63  ;;  %924 = vmatpush2.msra.mxu1 %v464_v0  ;;  %v184_v0 = vld [vmem:[#allocation4 + $0x40] sm:$0xff] }
  0xbf   :  { %849 = vmatmul.mubr.f32.vlgmr.msra.gmra.mxu0 %v6849_v1  ;;  %925 = vmatprep.mubr.f32.mxu1 %v167_v2  ;;  %v561_v2 = vld [vmem:[#allocation4 + $0xc08] sm:$0xff] }
  0xc0   :  { %938 = vmatprep.subr.mxu0 %v651_v3  ;;  %1015 = vmatprep.subr.mxu1 %v269_v4  ;;  %v179_v3 = vld [vmem:[#allocation4 + $0x18] sm:$0xff]  ;;  %v560_v4 = vld [vmem:[#allocation4 + $0xc00] sm:$0xff] }
  0xc1   :  { %926 = vmatmul.mubr.f32.vlgmr.msra.gmra.mxu1 %v166_v5  ;;  %939 = vmatpush1.msra.mxu0 %v650_v6  ;;  %v178_v5 = vld [vmem:[#allocation4 + $0x10] sm:$0xff]  ;;  %v747_v6 = vld [vmem:[#allocation4 + $0x11d8] sm:$0xff] }
  0xc2   :  { %1016 = vmatpush1.msra.mxu1 %v268_v7  ;;  %940 = vmatprep.subr.mxu0 %v645_v8  ;;  %v365_v7 = vld [vmem:[#allocation4 + $0x5e8] sm:$0xff]  ;;  %v746_v8 = vld [vmem:[#allocation4 + $0x11d0] sm:$0xff] }
  0xc3   :  { %1017 = vmatprep.subr.mxu1 %v263_v9  ;;  %941 = vmatpush1.msra.mxu0 %v644_v10  ;;  %v364_v9 = vld [vmem:[#allocation4 + $0x5e0] sm:$0xff]  ;;  %v741_v10 = vld [vmem:[#allocation4 + $0x11a8] sm:$0xff] }
  0xc4   :  { %1018 = vmatpush1.msra.mxu1 %v262_v11  ;;  %942 = vmatprep.subr.mxu0 %v639_v12  ;;  %v359_v11 = vld [vmem:[#allocation4 + $0x5b8] sm:$0xff]  ;;  %v740_v12 = vld [vmem:[#allocation4 + $0x11a0] sm:$0xff] }
  0xc5   :  { %1019 = vmatprep.subr.mxu1 %v257_v13  ;;  %943 = vmatpush1.msra.mxu0 %v638_v14  ;;  %v358_v13 = vld [vmem:[#allocation4 + $0x5b0] sm:$0xff]  ;;  %v735_v14 = vld [vmem:[#allocation4 + $0x1178] sm:$0xff] }
  0xc6   :  { %1020 = vmatpush1.msra.mxu1 %v256_v15  ;;  %944 = vmatprep.subr.mxu0 %v633_v16  ;;  %v353_v15 = vld [vmem:[#allocation4 + $0x588] sm:$0xff]  ;;  %v734_v16 = vld [vmem:[#allocation4 + $0x1170] sm:$0xff] }
  0xc7   :  { %1021 = vmatprep.subr.mxu1 %v251_v17  ;;  %945 = vmatpush1.msra.mxu0 %v632_v18  ;;  %v352_v17 = vld [vmem:[#allocation4 + $0x580] sm:$0xff]  ;;  %v729_v18 = vld [vmem:[#allocation4 + $0x1148] sm:$0xff] }
  0xc8   :  { %1022 = vmatpush1.msra.mxu1 %v250_v19  ;;  %946 = vmatprep.subr.mxu0 %v627_v20  ;;  %v347_v19 = vld [vmem:[#allocation4 + $0x558] sm:$0xff]  ;;  %v728_v20 = vld [vmem:[#allocation4 + $0x1140] sm:$0xff] }
  0xc9   :  { %1023 = vmatprep.subr.mxu1 %v245_v21  ;;  %947 = vmatpush1.msra.mxu0 %v626_v22  ;;  %v346_v21 = vld [vmem:[#allocation4 + $0x550] sm:$0xff]  ;;  %v723_v22 = vld [vmem:[#allocation4 + $0x1118] sm:$0xff] }
  0xca   :  { %1024 = vmatpush1.msra.mxu1 %v244_v23  ;;  %948 = vmatprep.subr.mxu0 %v621_v24  ;;  %v341_v23 = vld [vmem:[#allocation4 + $0x528] sm:$0xff]  ;;  %v722_v24 = vld [vmem:[#allocation4 + $0x1110] sm:$0xff] }
  0xcb   :  { %1025 = vmatprep.subr.mxu1 %v239_v25  ;;  %949 = vmatpush1.msra.mxu0 %v620_v26  ;;  %v340_v25 = vld [vmem:[#allocation4 + $0x520] sm:$0xff]  ;;  %v717_v26 = vld [vmem:[#allocation4 + $0x10e8] sm:$0xff] }
  0xcc   :  { %1026 = vmatpush1.msra.mxu1 %v238_v27  ;;  %950 = vmatprep.subr.mxu0 %v615_v28  ;;  %v335_v27 = vld [vmem:[#allocation4 + $0x4f8] sm:$0xff]  ;;  %v716_v28 = vld [vmem:[#allocation4 + $0x10e0] sm:$0xff] }
  0xcd   :  { %1027 = vmatprep.subr.mxu1 %v233_v29  ;;  %951 = vmatpush1.msra.mxu0 %v614_v30  ;;  %v334_v29 = vld [vmem:[#allocation4 + $0x4f0] sm:$0xff]  ;;  %v711_v30 = vld [vmem:[#allocation4 + $0x10b8] sm:$0xff] }
  0xce   :  { %1028 = vmatpush1.msra.mxu1 %v232_v31  ;;  %952 = vmatprep.subr.mxu0 %v609_v32  ;;  %v329_v31 = vld [vmem:[#allocation4 + $0x4c8] sm:$0xff]  ;;  %v710_v32 = vld [vmem:[#allocation4 + $0x10b0] sm:$0xff] }
  0xcf   :  { %1029 = vmatprep.subr.mxu1 %v227_v33  ;;  %953 = vmatpush1.msra.mxu0 %v608_v34  ;;  %v328_v33 = vld [vmem:[#allocation4 + $0x4c0] sm:$0xff]  ;;  %v705_v34 = vld [vmem:[#allocation4 + $0x1088] sm:$0xff] }
  0xd0   :  { %1030 = vmatpush1.msra.mxu1 %v226_v35  ;;  %954 = vmatprep.subr.mxu0 %v603_v36  ;;  %v323_v35 = vld [vmem:[#allocation4 + $0x498] sm:$0xff]  ;;  %v704_v36 = vld [vmem:[#allocation4 + $0x1080] sm:$0xff] }
  0xd1   :  { %1031 = vmatprep.subr.mxu1 %v221_v37  ;;  %955 = vmatpush1.msra.mxu0 %v602_v38  ;;  %v322_v37 = vld [vmem:[#allocation4 + $0x490] sm:$0xff]  ;;  %v699_v38 = vld [vmem:[#allocation4 + $0x1058] sm:$0xff] }
  0xd2   :  { %1032 = vmatpush1.msra.mxu1 %v220_v39  ;;  %956 = vmatprep.subr.mxu0 %v597_v40  ;;  %v317_v39 = vld [vmem:[#allocation4 + $0x468] sm:$0xff]  ;;  %v698_v40 = vld [vmem:[#allocation4 + $0x1050] sm:$0xff] }
  0xd3   :  { %1033 = vmatprep.subr.mxu1 %v215_v41  ;;  %957 = vmatpush1.msra.mxu0 %v596_v42  ;;  %v316_v41 = vld [vmem:[#allocation4 + $0x460] sm:$0xff]  ;;  %v693_v42 = vld [vmem:[#allocation4 + $0x1028] sm:$0xff] }
  0xd4   :  { %1034 = vmatpush1.msra.mxu1 %v214_v43  ;;  %958 = vmatprep.subr.mxu0 %v591_v44  ;;  %v311_v43 = vld [vmem:[#allocation4 + $0x438] sm:$0xff]  ;;  %v692_v44 = vld [vmem:[#allocation4 + $0x1020] sm:$0xff] }
  0xd5   :  { %1035 = vmatprep.subr.mxu1 %v209_v45  ;;  %959 = vmatpush1.msra.mxu0 %v590_v46  ;;  %v310_v45 = vld [vmem:[#allocation4 + $0x430] sm:$0xff]  ;;  %v687_v46 = vld [vmem:[#allocation4 + $0xff8] sm:$0xff] }
  0xd6   :  { %1036 = vmatpush1.msra.mxu1 %v208_v47  ;;  %960 = vmatprep.subr.mxu0 %v585_v48  ;;  %v305_v47 = vld [vmem:[#allocation4 + $0x408] sm:$0xff]  ;;  %v686_v48 = vld [vmem:[#allocation4 + $0xff0] sm:$0xff] }
  0xd7   :  { %1037 = vmatprep.subr.mxu1 %v203_v49  ;;  %961 = vmatpush1.msra.mxu0 %v584_v50  ;;  %v304_v49 = vld [vmem:[#allocation4 + $0x400] sm:$0xff]  ;;  %v681_v50 = vld [vmem:[#allocation4 + $0xfc8] sm:$0xff] }
  0xd8   :  { %1038 = vmatpush1.msra.mxu1 %v202_v51  ;;  %962 = vmatprep.subr.mxu0 %v579_v52  ;;  %v299_v51 = vld [vmem:[#allocation4 + $0x3d8] sm:$0xff]  ;;  %v680_v52 = vld [vmem:[#allocation4 + $0xfc0] sm:$0xff] }
  0xd9   :  { %1039 = vmatprep.subr.mxu1 %v197_v53  ;;  %963 = vmatpush1.msra.mxu0 %v578_v54  ;;  %v298_v53 = vld [vmem:[#allocation4 + $0x3d0] sm:$0xff]  ;;  %v675_v54 = vld [vmem:[#allocation4 + $0xf98] sm:$0xff] }
  0xda   :  { %1040 = vmatpush1.msra.mxu1 %v196_v55  ;;  %964 = vmatprep.subr.mxu0 %v573_v56  ;;  %v293_v55 = vld [vmem:[#allocation4 + $0x3a8] sm:$0xff]  ;;  %v674_v56 = vld [vmem:[#allocation4 + $0xf90] sm:$0xff] }
  0xdb   :  { %1041 = vmatprep.subr.mxu1 %v191_v57  ;;  %965 = vmatpush1.msra.mxu0 %v572_v58  ;;  %v292_v57 = vld [vmem:[#allocation4 + $0x3a0] sm:$0xff]  ;;  %v6862_v58 = vld [vmem:[%s9007_s0 + $0x38] sm:$0xff] }
  0xdc   :  { %1042 = vmatpush1.msra.mxu1 %v190_v59  ;;  %966 = vmatprep.subr.mxu0 %v567_v60  ;;  %v669_v59 = vld [vmem:[#allocation4 + $0xf68] sm:$0xff]  ;;  %v287_v60 = vld [vmem:[#allocation4 + $0x378] sm:$0xff] }
  0xdd   :  { %1043 = vmatprep.subr.mxu1 %v185_v61  ;;  %967 = vmatpush1.msra.mxu0 %v566_v62  ;;  %v6867_v61 = vld [vmem:[%s9007_s0 + $0x30] sm:$0xff]  ;;  %v668_v62 = vld [vmem:[#allocation4 + $0xf60] sm:$0xff] }
  0xde   :  { %1044 = vmatpush1.msra.mxu1 %v184_v0  ;;  %968 = vmatprep.subr.mxu0 %v561_v2  ;;  %v286_v0 = vld [vmem:[#allocation4 + $0x370] sm:$0xff]  ;;  %v6873_v2 = vld [vmem:[%s9007_s0 + $0x48] sm:$0xff] }
  0xdf   :  { %1045 = vmatprep.subr.mxu1 %v179_v3  ;;  %969 = vmatpush1.msra.mxu0 %v560_v4  ;;  %v663_v3 = vld [vmem:[#allocation4 + $0xf38] sm:$0xff]  ;;  %v281_v4 = vld [vmem:[#allocation4 + $0x348] sm:$0xff] }
  0xe0   :  { %1046 = vmatpush1.msra.mxu1 %v178_v5  ;;  %970 = vmatprep.subr.mxu0 %v747_v6  ;;  %v6879_v5 = vld [vmem:[%s9007_s0 + $0x40] sm:$0xff]  ;;  %v662_v6 = vld [vmem:[#allocation4 + $0xf30] sm:$0xff] }
  0xe1   :  { %1047 = vmatprep.subr.mxu1 %v365_v7  ;;  %971 = vmatpush2.msra.mxu0 %v746_v8  ;;  %v280_v7 = vld [vmem:[#allocation4 + $0x340] sm:$0xff]  ;;  %v657_v8 = vld [vmem:[#allocation4 + $0xf08] sm:$0xff] }
  0xe2   :  { %1048 = vmatpush2.msra.mxu1 %v364_v9  ;;  %972 = vmatprep.subr.mxu0 %v741_v10  ;;  %v275_v9 = vld [vmem:[#allocation4 + $0x318] sm:$0xff]  ;;  %v656_v10 = vld [vmem:[#allocation4 + $0xf00] sm:$0xff] }
  0xe3   :  { %1049 = vmatprep.subr.mxu1 %v359_v11  ;;  %973 = vmatpush2.msra.mxu0 %v740_v12  ;;  %v6886_v11 = vld [vmem:[%s9007_s0 + $0x28] sm:$0xff]  ;;  %v274_v12 = vld [vmem:[#allocation4 + $0x310] sm:$0xff] }
  0xe4   :  { %1050 = vmatpush2.msra.mxu1 %v358_v13  ;;  %974 = vmatprep.subr.mxu0 %v735_v14  ;;  %v6891_v13 = vld [vmem:[%s9007_s0 + $0x20] sm:$0xff]  ;;  %v461_v14 = vld [vmem:[#allocation4 + $0x8e8] sm:$0xff] }
  0xe5   :  { %1051 = vmatprep.subr.mxu1 %v353_v15  ;;  %975 = vmatpush2.msra.mxu0 %v734_v16  ;;  %v653_v15 = vld [vmem:[#allocation4 + $0xee8] sm:$0xff]  ;;  %v460_v16 = vld [vmem:[#allocation4 + $0x8e0] sm:$0xff] }
  0xe6   :  { %1052 = vmatpush2.msra.mxu1 %v352_v17  ;;  %976 = vmatprep.subr.mxu0 %v729_v18  ;;  %v652_v17 = vld [vmem:[#allocation4 + $0xee0] sm:$0xff]  ;;  %v455_v18 = vld [vmem:[#allocation4 + $0x8b8] sm:$0xff] }
  0xe7   :  { %1053 = vmatprep.subr.mxu1 %v347_v19  ;;  %977 = vmatpush2.msra.mxu0 %v728_v20  ;;  %v647_v19 = vld [vmem:[#allocation4 + $0xeb8] sm:$0xff] }
  0xe8   :  { %1054 = vmatpush2.msra.mxu1 %v346_v21  ;;  %978 = vmatprep.subr.mxu0 %v723_v22  ;;  %v6900_v20 = vld [vmem:[%s9007_s0 + $0x58] sm:$0xff]  ;;  %v454_v21 = vld [vmem:[#allocation4 + $0x8b0] sm:$0xff] }
  0xe9   :  { %1055 = vmatprep.subr.mxu1 %v341_v23  ;;  %979 = vmatpush2.msra.mxu0 %v722_v24  ;;  %v646_v22 = vld [vmem:[#allocation4 + $0xeb0] sm:$0xff]  ;;  %v641_v24 = vld [vmem:[#allocation4 + $0xe88] sm:$0xff] }
  0xea   :  { %1056 = vmatpush2.msra.mxu1 %v340_v25  ;;  %980 = vmatprep.subr.mxu0 %v717_v26  ;;  %v6905_v23 = vld [vmem:[%s9007_s0 + $0x50] sm:$0xff]  ;;  %v640_v25 = vld [vmem:[#allocation4 + $0xe80] sm:$0xff]  ;;  %v443_v26 = vld [vmem:[#allocation4 + $0x858] sm:$0xff] }
  0xeb   :  { %1057 = vmatprep.subr.mxu1 %v335_v27  ;;  %981 = vmatpush2.msra.mxu0 %v716_v28  ;;  %v635_v27 = vld [vmem:[#allocation4 + $0xe58] sm:$0xff]  ;;  %v442_v28 = vld [vmem:[#allocation4 + $0x850] sm:$0xff] }
  0xec   :  { %1058 = vmatpush2.msra.mxu1 %v334_v29  ;;  %982 = vmatprep.subr.mxu0 %v711_v30  ;;  %v634_v29 = vld [vmem:[#allocation4 + $0xe50] sm:$0xff]  ;;  %v437_v30 = vld [vmem:[#allocation4 + $0x828] sm:$0xff] }
  0xed   :  { %1059 = vmatprep.subr.mxu1 %v329_v31  ;;  %983 = vmatpush2.msra.mxu0 %v710_v32  ;;  %v629_v31 = vld [vmem:[#allocation4 + $0xe28] sm:$0xff]  ;;  %v436_v32 = vld [vmem:[#allocation4 + $0x820] sm:$0xff] }
  0xee   :  { %1060 = vmatpush2.msra.mxu1 %v328_v33  ;;  %984 = vmatprep.subr.mxu0 %v705_v34  ;;  %v628_v33 = vld [vmem:[#allocation4 + $0xe20] sm:$0xff]  ;;  %v431_v34 = vld [vmem:[#allocation4 + $0x7f8] sm:$0xff] }
  0xef   :  { %1061 = vmatprep.subr.mxu1 %v323_v35  ;;  %985 = vmatpush2.msra.mxu0 %v704_v36  ;;  %v623_v35 = vld [vmem:[#allocation4 + $0xdf8] sm:$0xff]  ;;  %v430_v36 = vld [vmem:[#allocation4 + $0x7f0] sm:$0xff] }
  0xf0   :  { %1062 = vmatpush2.msra.mxu1 %v322_v37  ;;  %986 = vmatprep.subr.mxu0 %v699_v38  ;;  %v622_v37 = vld [vmem:[#allocation4 + $0xdf0] sm:$0xff]  ;;  %v425_v38 = vld [vmem:[#allocation4 + $0x7c8] sm:$0xff] }
  0xf1   :  { %1063 = vmatprep.subr.mxu1 %v317_v39  ;;  %987 = vmatpush2.msra.mxu0 %v698_v40  ;;  %v617_v39 = vld [vmem:[#allocation4 + $0xdc8] sm:$0xff]  ;;  %v424_v40 = vld [vmem:[#allocation4 + $0x7c0] sm:$0xff] }
  0xf2   :  { %1064 = vmatpush2.msra.mxu1 %v316_v41  ;;  %988 = vmatprep.subr.mxu0 %v693_v42  ;;  %v616_v41 = vld [vmem:[#allocation4 + $0xdc0] sm:$0xff]  ;;  %v419_v42 = vld [vmem:[#allocation4 + $0x798] sm:$0xff] }
  0xf3   :  { %1065 = vmatprep.subr.mxu1 %v311_v43  ;;  %989 = vmatpush2.msra.mxu0 %v692_v44  ;;  %v611_v43 = vld [vmem:[#allocation4 + $0xd98] sm:$0xff]  ;;  %v418_v44 = vld [vmem:[#allocation4 + $0x790] sm:$0xff] }
  0xf4   :  { %1066 = vmatpush2.msra.mxu1 %v310_v45  ;;  %990 = vmatprep.subr.mxu0 %v687_v46  ;;  %v610_v45 = vld [vmem:[#allocation4 + $0xd90] sm:$0xff]  ;;  %v413_v46 = vld [vmem:[#allocation4 + $0x768] sm:$0xff] }
  0xf5   :  { %1067 = vmatprep.subr.mxu1 %v305_v47  ;;  %991 = vmatpush2.msra.mxu0 %v686_v48  ;;  %v605_v47 = vld [vmem:[#allocation4 + $0xd68] sm:$0xff]  ;;  %v412_v48 = vld [vmem:[#allocation4 + $0x760] sm:$0xff] }
  0xf6   :  { %1068 = vmatpush2.msra.mxu1 %v304_v49  ;;  %992 = vmatprep.subr.mxu0 %v681_v50  ;;  %v604_v49 = vld [vmem:[#allocation4 + $0xd60] sm:$0xff]  ;;  %v407_v50 = vld [vmem:[#allocation4 + $0x738] sm:$0xff] }
  0xf7   :  { %1069 = vmatprep.subr.mxu1 %v299_v51  ;;  %993 = vmatpush2.msra.mxu0 %v680_v52  ;;  %v599_v51 = vld [vmem:[#allocation4 + $0xd38] sm:$0xff]  ;;  %v406_v52 = vld [vmem:[#allocation4 + $0x730] sm:$0xff] }
  0xf8   :  { %1070 = vmatpush2.msra.mxu1 %v298_v53  ;;  %994 = vmatprep.subr.mxu0 %v675_v54  ;;  %v598_v53 = vld [vmem:[#allocation4 + $0xd30] sm:$0xff]  ;;  %v401_v54 = vld [vmem:[#allocation4 + $0x708] sm:$0xff] }
  0xf9   :  { %1071 = vmatprep.subr.mxu1 %v293_v55  ;;  %995 = vmatpush2.msra.mxu0 %v674_v56  ;;  %v593_v55 = vld [vmem:[#allocation4 + $0xd08] sm:$0xff]  ;;  %v400_v56 = vld [vmem:[#allocation4 + $0x700] sm:$0xff] }
  0xfa   :  { %1072 = vmatpush2.msra.mxu1 %v292_v57  ;;  %854 = vmatprep.mubr.f32.mxu0 %v6862_v58  ;;  %v592_v57 = vld [vmem:[#allocation4 + $0xd00] sm:$0xff] }
  0xfb   :  { %996 = vmatprep.subr.mxu0 %v669_v59  ;;  %1073 = vmatprep.subr.mxu1 %v287_v60  ;;  %v395_v59 = vld [vmem:[#allocation4 + $0x6d8] sm:$0xff] }
  0xfc   :  { %855 = vmatmul.mubr.f32.gmra.mxu0 %v6867_v61  ;;  %1074 = vmatpush2.msra.mxu1 %v286_v0  ;;  %v587_v60 = vld [vmem:[#allocation4 + $0xcd8] sm:$0xff]  ;;  %v586_v0 = vld [vmem:[#allocation4 + $0xcd0] sm:$0xff] }
  0xfd   :  { %997 = vmatpush2.msra.mxu0 %v668_v62  ;;  %931 = vmatprep.mubr.f32.mxu1 %v6873_v2  ;;  %v394_v62 = vld [vmem:[#allocation4 + $0x6d0] sm:$0xff] }
  0xfe   :  { %998 = vmatprep.subr.mxu0 %v663_v3  ;;  %1075 = vmatprep.subr.mxu1 %v281_v4  ;;  %v389_v3 = vld [vmem:[#allocation4 + $0x6a8] sm:$0xff] }
  0xff   :  { %932 = vmatmul.mubr.f32.gmra.mxu1 %v6879_v5  ;;  %999 = vmatpush2.msra.mxu0 %v662_v6  ;;  %v581_v4 = vld [vmem:[#allocation4 + $0xca8] sm:$0xff]  ;;  %v388_v6 = vld [vmem:[#allocation4 + $0x6a0] sm:$0xff] }
 0x100   :  { %1076 = vmatpush2.msra.mxu1 %v280_v7  ;;  %1000 = vmatprep.subr.mxu0 %v657_v8  ;;  %v580_v7 = vld [vmem:[#allocation4 + $0xca0] sm:$0xff]  ;;  %v383_v8 = vld [vmem:[#allocation4 + $0x678] sm:$0xff] }
 0x101   :  { %1077 = vmatprep.subr.mxu1 %v275_v9  ;;  %1001 = vmatpush2.msra.mxu0 %v656_v10  ;;  %v575_v9 = vld [vmem:[#allocation4 + $0xc78] sm:$0xff]  ;;  %v382_v10 = vld [vmem:[#allocation4 + $0x670] sm:$0xff] }
 0x102   :  { %1002 = vmatprep.mubr.f32.mxu0 %v6886_v11  ;;  %1078 = vmatpush2.msra.mxu1 %v274_v12  ;;  %v574_v12 = vld [vmem:[#allocation4 + $0xc70] sm:$0xff] }
 0x103   :  { %1003 = vmatmul.mubr.f32.vlgmr.msra.gmra.mxu0 %v6891_v13  ;;  %1079 = vmatprep.mubr.f32.mxu1 %v6844_v63  ;;  %v449_v63 = vld [vmem:[#allocation4 + $0x888] sm:$0xff] }
 0x104   :  { %1092 = vmatprep.subr.mxu0 %v461_v14  ;;  %1169 = vmatprep.subr.mxu1 %v653_v15  ;;  %v377_v14 = vld [vmem:[#allocation4 + $0x648] sm:$0xff] }
 0x105   :  { %1080 = vmatmul.mubr.f32.vlgmr.msra.gmra.mxu1 %v6849_v1  ;;  %1093 = vmatpush1.msra.mxu0 %v460_v16  ;;  %v448_v1 = vld [vmem:[#allocation4 + $0x880] sm:$0xff]  ;;  %v569_v15 = vld [vmem:[#allocation4 + $0xc48] sm:$0xff] }
 0x106   :  { %1170 = vmatpush1.msra.mxu1 %v652_v17  ;;  %1094 = vmatprep.subr.mxu0 %v455_v18  ;;  %v376_v16 = vld [vmem:[#allocation4 + $0x640] sm:$0xff]  ;;  %v371_v18 = vld [vmem:[#allocation4 + $0x618] sm:$0xff] }
 0x107   :  { %1171 = vmatprep.subr.mxu1 %v647_v19  ;;  %1008 = vmatprep.mubr.f32.mxu0 %v6900_v20  ;;  %v568_v17 = vld [vmem:[#allocation4 + $0xc40] sm:$0xff]  ;;  %v563_v19 = vld [vmem:[#allocation4 + $0xc18] sm:$0xff] }
 0x108   :  { %1095 = vmatpush1.msra.mxu0 %v454_v21  ;;  %1172 = vmatpush1.msra.mxu1 %v646_v22  ;;  %v370_v21 = vld [vmem:[#allocation4 + $0x610] sm:$0xff] }
 0x109   :  { %1009 = vmatmul.mubr.f32.gmra.mxu0 %v6905_v23  ;;  %1096 = vmatprep.subr.mxu0 %v449_v63  ;;  %v562_v22 = vld [vmem:[#allocation4 + $0xc10] sm:$0xff]  ;;  %v557_v63 = vld [vmem:[#allocation4 + $0xbe8] sm:$0xff] }
 0x10a   :  { %1173 = vmatprep.subr.mxu1 %v641_v24  ;;  %1097 = vmatpush1.msra.mxu0 %v448_v1  ;;  %v749_v24 = vld [vmem:[#allocation4 + $0x11e8] sm:$0xff]  ;;  %v556_v1 = vld [vmem:[#allocation4 + $0xbe0] sm:$0xff] }
 0x10b   :  { %1174 = vmatpush1.msra.mxu1 %v640_v25  ;;  %1098 = vmatprep.subr.mxu0 %v443_v26  ;;  %v748_v25 = vld [vmem:[#allocation4 + $0x11e0] sm:$0xff]  ;;  %v551_v26 = vld [vmem:[#allocation4 + $0xbb8] sm:$0xff] }
 0x10c   :  { %1175 = vmatprep.subr.mxu1 %v635_v27  ;;  %1099 = vmatpush1.msra.mxu0 %v442_v28  ;;  %v743_v27 = vld [vmem:[#allocation4 + $0x11b8] sm:$0xff]  ;;  %v550_v28 = vld [vmem:[#allocation4 + $0xbb0] sm:$0xff] }
 0x10d   :  { %1176 = vmatpush1.msra.mxu1 %v634_v29  ;;  %1100 = vmatprep.subr.mxu0 %v437_v30  ;;  %v742_v29 = vld [vmem:[#allocation4 + $0x11b0] sm:$0xff]  ;;  %v545_v30 = vld [vmem:[#allocation4 + $0xb88] sm:$0xff] }
 0x10e   :  { %1177 = vmatprep.subr.mxu1 %v629_v31  ;;  %1101 = vmatpush1.msra.mxu0 %v436_v32  ;;  %v737_v31 = vld [vmem:[#allocation4 + $0x1188] sm:$0xff]  ;;  %v544_v32 = vld [vmem:[#allocation4 + $0xb80] sm:$0xff] }
 0x10f   :  { %1178 = vmatpush1.msra.mxu1 %v628_v33  ;;  %1102 = vmatprep.subr.mxu0 %v431_v34  ;;  %v736_v33 = vld [vmem:[#allocation4 + $0x1180] sm:$0xff]  ;;  %v539_v34 = vld [vmem:[#allocation4 + $0xb58] sm:$0xff] }
 0x110   :  { %1179 = vmatprep.subr.mxu1 %v623_v35  ;;  %1103 = vmatpush1.msra.mxu0 %v430_v36  ;;  %v731_v35 = vld [vmem:[#allocation4 + $0x1158] sm:$0xff]  ;;  %v538_v36 = vld [vmem:[#allocation4 + $0xb50] sm:$0xff] }
 0x111   :  { %1180 = vmatpush1.msra.mxu1 %v622_v37  ;;  %1104 = vmatprep.subr.mxu0 %v425_v38  ;;  %v730_v37 = vld [vmem:[#allocation4 + $0x1150] sm:$0xff]  ;;  %v533_v38 = vld [vmem:[#allocation4 + $0xb28] sm:$0xff] }
 0x112   :  { %1181 = vmatprep.subr.mxu1 %v617_v39  ;;  %1105 = vmatpush1.msra.mxu0 %v424_v40  ;;  %v725_v39 = vld [vmem:[#allocation4 + $0x1128] sm:$0xff]  ;;  %v532_v40 = vld [vmem:[#allocation4 + $0xb20] sm:$0xff] }
 0x113   :  { %1182 = vmatpush1.msra.mxu1 %v616_v41  ;;  %1106 = vmatprep.subr.mxu0 %v419_v42  ;;  %v724_v41 = vld [vmem:[#allocation4 + $0x1120] sm:$0xff]  ;;  %v527_v42 = vld [vmem:[#allocation4 + $0xaf8] sm:$0xff] }
 0x114   :  { %1183 = vmatprep.subr.mxu1 %v611_v43  ;;  %1107 = vmatpush1.msra.mxu0 %v418_v44  ;;  %v719_v43 = vld [vmem:[#allocation4 + $0x10f8] sm:$0xff]  ;;  %v526_v44 = vld [vmem:[#allocation4 + $0xaf0] sm:$0xff] }
 0x115   :  { %1184 = vmatpush1.msra.mxu1 %v610_v45  ;;  %1108 = vmatprep.subr.mxu0 %v413_v46  ;;  %v718_v45 = vld [vmem:[#allocation4 + $0x10f0] sm:$0xff]  ;;  %v521_v46 = vld [vmem:[#allocation4 + $0xac8] sm:$0xff] }
 0x116   :  { %1185 = vmatprep.subr.mxu1 %v605_v47  ;;  %1109 = vmatpush1.msra.mxu0 %v412_v48  ;;  %v713_v47 = vld [vmem:[#allocation4 + $0x10c8] sm:$0xff]  ;;  %v520_v48 = vld [vmem:[#allocation4 + $0xac0] sm:$0xff] }
 0x117   :  { %1186 = vmatpush1.msra.mxu1 %v604_v49  ;;  %1110 = vmatprep.subr.mxu0 %v407_v50  ;;  %v712_v49 = vld [vmem:[#allocation4 + $0x10c0] sm:$0xff]  ;;  %v515_v50 = vld [vmem:[#allocation4 + $0xa98] sm:$0xff] }
 0x118   :  { %1187 = vmatprep.subr.mxu1 %v599_v51  ;;  %1111 = vmatpush1.msra.mxu0 %v406_v52  ;;  %v707_v51 = vld [vmem:[#allocation4 + $0x1098] sm:$0xff]  ;;  %v514_v52 = vld [vmem:[#allocation4 + $0xa90] sm:$0xff] }
 0x119   :  { %1188 = vmatpush1.msra.mxu1 %v598_v53  ;;  %1112 = vmatprep.subr.mxu0 %v401_v54  ;;  %v706_v53 = vld [vmem:[#allocation4 + $0x1090] sm:$0xff]  ;;  %v509_v54 = vld [vmem:[#allocation4 + $0xa68] sm:$0xff] }
 0x11a   :  { %1189 = vmatprep.subr.mxu1 %v593_v55  ;;  %1113 = vmatpush1.msra.mxu0 %v400_v56  ;;  %v701_v55 = vld [vmem:[#allocation4 + $0x1068] sm:$0xff]  ;;  %v508_v56 = vld [vmem:[#allocation4 + $0xa60] sm:$0xff] }
 0x11b   :  { %1190 = vmatpush1.msra.mxu1 %v592_v57  ;;  %1114 = vmatprep.subr.mxu0 %v395_v59  ;;  %v700_v57 = vld [vmem:[#allocation4 + $0x1060] sm:$0xff]  ;;  %v503_v59 = vld [vmem:[#allocation4 + $0xa38] sm:$0xff] }
 0x11c   :  { %1191 = vmatprep.subr.mxu1 %v587_v60  ;;  %1115 = vmatpush1.msra.mxu0 %v394_v62  ;;  %v695_v60 = vld [vmem:[#allocation4 + $0x1038] sm:$0xff]  ;;  %v502_v62 = vld [vmem:[#allocation4 + $0xa30] sm:$0xff] }
 0x11d   :  { %1192 = vmatpush1.msra.mxu1 %v586_v0  ;;  %1116 = vmatprep.subr.mxu0 %v389_v3  ;;  %v694_v0 = vld [vmem:[#allocation4 + $0x1030] sm:$0xff]  ;;  %v497_v3 = vld [vmem:[#allocation4 + $0xa08] sm:$0xff] }
 0x11e   :  { %1193 = vmatprep.subr.mxu1 %v581_v4  ;;  %1117 = vmatpush1.msra.mxu0 %v388_v6  ;;  %v689_v4 = vld [vmem:[#allocation4 + $0x1008] sm:$0xff]  ;;  %v496_v6 = vld [vmem:[#allocation4 + $0xa00] sm:$0xff] }
 0x11f   :  { %1194 = vmatpush1.msra.mxu1 %v580_v7  ;;  %1118 = vmatprep.subr.mxu0 %v383_v8  ;;  %v688_v7 = vld [vmem:[#allocation4 + $0x1000] sm:$0xff]  ;;  %v491_v8 = vld [vmem:[#allocation4 + $0x9d8] sm:$0xff] }
 0x120   :  { %1195 = vmatprep.subr.mxu1 %v575_v9  ;;  %1119 = vmatpush1.msra.mxu0 %v382_v10  ;;  %v683_v9 = vld [vmem:[#allocation4 + $0xfd8] sm:$0xff]  ;;  %v490_v10 = vld [vmem:[#allocation4 + $0x9d0] sm:$0xff] }
 0x121   :  { %1196 = vmatpush1.msra.mxu1 %v574_v12  ;;  %1120 = vmatprep.subr.mxu0 %v377_v14  ;;  %v682_v12 = vld [vmem:[#allocation4 + $0xfd0] sm:$0xff]  ;;  %v485_v14 = vld [vmem:[#allocation4 + $0x9a8] sm:$0xff] }
 0x122   :  { %1197 = vmatprep.subr.mxu1 %v569_v15  ;;  %1121 = vmatpush1.msra.mxu0 %v376_v16  ;;  %v677_v15 = vld [vmem:[#allocation4 + $0xfa8] sm:$0xff]  ;;  %v484_v16 = vld [vmem:[#allocation4 + $0x9a0] sm:$0xff] }
 0x123   :  { %1198 = vmatpush1.msra.mxu1 %v568_v17  ;;  %1122 = vmatprep.subr.mxu0 %v371_v18  ;;  %v676_v17 = vld [vmem:[#allocation4 + $0xfa0] sm:$0xff]  ;;  %v479_v18 = vld [vmem:[#allocation4 + $0x978] sm:$0xff] }
 0x124   :  { %1199 = vmatprep.subr.mxu1 %v563_v19  ;;  %1123 = vmatpush1.msra.mxu0 %v370_v21  ;;  %v671_v19 = vld [vmem:[#allocation4 + $0xf78] sm:$0xff]  ;;  %v478_v21 = vld [vmem:[#allocation4 + $0x970] sm:$0xff] }
 0x125   :  { %1200 = vmatpush1.msra.mxu1 %v562_v22  ;;  %1124 = vmatprep.subr.mxu0 %v557_v63  ;;  %v670_v22 = vld [vmem:[#allocation4 + $0xf70] sm:$0xff]  ;;  %v473_v63 = vld [vmem:[#allocation4 + $0x948] sm:$0xff] }
 0x126   :  { %1201 = vmatprep.subr.mxu1 %v749_v24  ;;  %1125 = vmatpush2.msra.mxu0 %v556_v1  ;;  %v665_v24 = vld [vmem:[#allocation4 + $0xf48] sm:$0xff]  ;;  %v472_v1 = vld [vmem:[#allocation4 + $0x940] sm:$0xff] }
 0x127   :  { %1202 = vmatpush2.msra.mxu1 %v748_v25  ;;  %1126 = vmatprep.subr.mxu0 %v551_v26  ;;  %v664_v25 = vld [vmem:[#allocation4 + $0xf40] sm:$0xff]  ;;  %v467_v26 = vld [vmem:[#allocation4 + $0x918] sm:$0xff] }
 0x128   :  { %1203 = vmatprep.subr.mxu1 %v743_v27  ;;  %1127 = vmatpush2.msra.mxu0 %v550_v28  ;;  %v659_v27 = vld [vmem:[#allocation4 + $0xf18] sm:$0xff]  ;;  %v466_v28 = vld [vmem:[#allocation4 + $0x910] sm:$0xff] }
 0x129   :  { %1204 = vmatpush2.msra.mxu1 %v742_v29  ;;  %1128 = vmatprep.subr.mxu0 %v545_v30  ;;  %v658_v29 = vld [vmem:[#allocation4 + $0xf10] sm:$0xff]  ;;  %v271_v30 = vld [vmem:[#allocation4 + $0x2f8] sm:$0xff] }
 0x12a   :  { %1205 = vmatprep.subr.mxu1 %v737_v31  ;;  %1129 = vmatpush2.msra.mxu0 %v544_v32  ;;  %v6914_v31 = vld [vmem:[%s9007_s0 + $0x18] sm:$0xff]  ;;  %v270_v32 = vld [vmem:[#allocation4 + $0x2f0] sm:$0xff] }
 0x12b   :  { %1206 = vmatpush2.msra.mxu1 %v736_v33  ;;  %1130 = vmatprep.subr.mxu0 %v539_v34  ;;  %v462_v33 = vld [vmem:[#allocation4 + $0x8f0] sm:$0xff]  ;;  %v265_v34 = vld [vmem:[#allocation4 + $0x2c8] sm:$0xff] }
 0x12c   :  { %1207 = vmatprep.subr.mxu1 %v731_v35  ;;  %1131 = vmatpush2.msra.mxu0 %v538_v36  ;;  %v457_v35 = vld [vmem:[#allocation4 + $0x8c8] sm:$0xff]  ;;  %v264_v36 = vld [vmem:[#allocation4 + $0x2c0] sm:$0xff] }
 0x12d   :  { %1208 = vmatpush2.msra.mxu1 %v730_v37  ;;  %1132 = vmatprep.subr.mxu0 %v533_v38  ;;  %v456_v37 = vld [vmem:[#allocation4 + $0x8c0] sm:$0xff]  ;;  %v259_v38 = vld [vmem:[#allocation4 + $0x298] sm:$0xff] }
 0x12e   :  { %1209 = vmatprep.subr.mxu1 %v725_v39  ;;  %1133 = vmatpush2.msra.mxu0 %v532_v40  ;;  %v451_v39 = vld [vmem:[#allocation4 + $0x898] sm:$0xff]  ;;  %v258_v40 = vld [vmem:[#allocation4 + $0x290] sm:$0xff] }
 0x12f   :  { %1210 = vmatpush2.msra.mxu1 %v724_v41  ;;  %1134 = vmatprep.subr.mxu0 %v527_v42  ;;  %v450_v41 = vld [vmem:[#allocation4 + $0x890] sm:$0xff]  ;;  %v253_v42 = vld [vmem:[#allocation4 + $0x268] sm:$0xff] }
 0x130   :  { %1211 = vmatprep.subr.mxu1 %v719_v43  ;;  %1135 = vmatpush2.msra.mxu0 %v526_v44  ;;  %v252_v43 = vld [vmem:[#allocation4 + $0x260] sm:$0xff] }
 0x131   :  { %1212 = vmatpush2.msra.mxu1 %v718_v45  ;;  %1136 = vmatprep.subr.mxu0 %v521_v46  ;;  %v444_v44 = vld [vmem:[#allocation4 + $0x860] sm:$0xff]  ;;  %v439_v45 = vld [vmem:[#allocation4 + $0x838] sm:$0xff]  ;;  %v246_v46 = vld [vmem:[#allocation4 + $0x230] sm:$0xff] }
 0x132   :  { %1213 = vmatprep.subr.mxu1 %v713_v47  ;;  %1137 = vmatpush2.msra.mxu0 %v520_v48  ;;  %v438_v47 = vld [vmem:[#allocation4 + $0x830] sm:$0xff]  ;;  %v241_v48 = vld [vmem:[#allocation4 + $0x208] sm:$0xff] }
 0x133   :  { %1214 = vmatpush2.msra.mxu1 %v712_v49  ;;  %1138 = vmatprep.subr.mxu0 %v515_v50  ;;  %v433_v49 = vld [vmem:[#allocation4 + $0x808] sm:$0xff]  ;;  %v240_v50 = vld [vmem:[#allocation4 + $0x200] sm:$0xff] }
 0x134   :  { %1215 = vmatprep.subr.mxu1 %v707_v51  ;;  %1139 = vmatpush2.msra.mxu0 %v514_v52  ;;  %v432_v51 = vld [vmem:[#allocation4 + $0x800] sm:$0xff]  ;;  %v235_v52 = vld [vmem:[#allocation4 + $0x1d8] sm:$0xff] }
 0x135   :  { %1216 = vmatpush2.msra.mxu1 %v706_v53  ;;  %1140 = vmatprep.subr.mxu0 %v509_v54  ;;  %v427_v53 = vld [vmem:[#allocation4 + $0x7d8] sm:$0xff]  ;;  %v234_v54 = vld [vmem:[#allocation4 + $0x1d0] sm:$0xff] }
 0x136   :  { %1217 = vmatprep.subr.mxu1 %v701_v55  ;;  %1141 = vmatpush2.msra.mxu0 %v508_v56  ;;  %v426_v55 = vld [vmem:[#allocation4 + $0x7d0] sm:$0xff]  ;;  %v229_v56 = vld [vmem:[#allocation4 + $0x1a8] sm:$0xff] }
 0x137   :  { %1218 = vmatpush2.msra.mxu1 %v700_v57  ;;  %1142 = vmatprep.subr.mxu0 %v503_v59  ;;  %v421_v57 = vld [vmem:[#allocation4 + $0x7a8] sm:$0xff]  ;;  %v228_v59 = vld [vmem:[#allocation4 + $0x1a0] sm:$0xff] }
 0x138   :  { %1219 = vmatprep.subr.mxu1 %v695_v60  ;;  %1143 = vmatpush2.msra.mxu0 %v502_v62  ;;  %v420_v60 = vld [vmem:[#allocation4 + $0x7a0] sm:$0xff]  ;;  %v223_v62 = vld [vmem:[#allocation4 + $0x178] sm:$0xff] }
 0x139   :  { %1220 = vmatpush2.msra.mxu1 %v694_v0  ;;  %1144 = vmatprep.subr.mxu0 %v497_v3  ;;  %v415_v0 = vld [vmem:[#allocation4 + $0x778] sm:$0xff]  ;;  %v222_v3 = vld [vmem:[#allocation4 + $0x170] sm:$0xff] }
 0x13a   :  { %1221 = vmatprep.subr.mxu1 %v689_v4  ;;  %1145 = vmatpush2.msra.mxu0 %v496_v6  ;;  %v414_v4 = vld [vmem:[#allocation4 + $0x770] sm:$0xff]  ;;  %v217_v6 = vld [vmem:[#allocation4 + $0x148] sm:$0xff] }
 0x13b   :  { %1222 = vmatpush2.msra.mxu1 %v688_v7  ;;  %1146 = vmatprep.subr.mxu0 %v491_v8  ;;  %v409_v7 = vld [vmem:[#allocation4 + $0x748] sm:$0xff]  ;;  %v216_v8 = vld [vmem:[#allocation4 + $0x140] sm:$0xff] }
 0x13c   :  { %1223 = vmatprep.subr.mxu1 %v683_v9  ;;  %1147 = vmatpush2.msra.mxu0 %v490_v10  ;;  %v408_v9 = vld [vmem:[#allocation4 + $0x740] sm:$0xff]  ;;  %v211_v10 = vld [vmem:[#allocation4 + $0x118] sm:$0xff] }
 0x13d   :  { %1224 = vmatpush2.msra.mxu1 %v682_v12  ;;  %1148 = vmatprep.subr.mxu0 %v485_v14  ;;  %v403_v12 = vld [vmem:[#allocation4 + $0x718] sm:$0xff]  ;;  %v210_v14 = vld [vmem:[#allocation4 + $0x110] sm:$0xff] }
 0x13e   :  { %1225 = vmatprep.subr.mxu1 %v677_v15  ;;  %1149 = vmatpush2.msra.mxu0 %v484_v16  ;;  %v402_v15 = vld [vmem:[#allocation4 + $0x710] sm:$0xff]  ;;  %v205_v16 = vld [vmem:[#allocation4 + $0xe8] sm:$0xff] }
 0x13f   :  { %1226 = vmatpush2.msra.mxu1 %v676_v17  ;;  %1150 = vmatprep.subr.mxu0 %v479_v18  ;;  %v397_v17 = vld [vmem:[#allocation4 + $0x6e8] sm:$0xff]  ;;  %v204_v18 = vld [vmem:[#allocation4 + $0xe0] sm:$0xff] }
 0x140   :  { %1227 = vmatprep.subr.mxu1 %v671_v19  ;;  %1151 = vmatpush2.msra.mxu0 %v478_v21  ;;  %v396_v19 = vld [vmem:[#allocation4 + $0x6e0] sm:$0xff]  ;;  %v199_v21 = vld [vmem:[#allocation4 + $0xb8] sm:$0xff] }
 0x141   :  { %1228 = vmatpush2.msra.mxu1 %v670_v22  ;;  %1085 = vmatprep.mubr.f32.mxu1 %v6862_v58  ;;  %v463_v58 = vld [vmem:[#allocation4 + $0x8f8] sm:$0xff] }
 0x142   :  { %1152 = vmatprep.subr.mxu0 %v473_v63  ;;  %1229 = vmatprep.subr.mxu1 %v665_v24  ;;  %v391_v22 = vld [vmem:[#allocation4 + $0x6b8] sm:$0xff]  ;;  %v198_v63 = vld [vmem:[#allocation4 + $0xb0] sm:$0xff] }
 0x143   :  { %1086 = vmatmul.mubr.f32.gmra.mxu1 %v6867_v61  ;;  %1153 = vmatpush2.msra.mxu0 %v472_v1  ;;  %v6920_v61 = vld [vmem:[%s9007_s0 + $0x10] sm:$0xff]  ;;  %v193_v1 = vld [vmem:[#allocation4 + $0x88] sm:$0xff] }
 0x144   :  { %1230 = vmatpush2.msra.mxu1 %v664_v25  ;;  %1154 = vmatprep.subr.mxu0 %v467_v26  ;;  %v390_v24 = vld [vmem:[#allocation4 + $0x6b0] sm:$0xff]  ;;  %v385_v25 = vld [vmem:[#allocation4 + $0x688] sm:$0xff]  ;;  %v192_v26 = vld [vmem:[#allocation4 + $0x80] sm:$0xff] }
 0x145   :  { %1231 = vmatprep.subr.mxu1 %v659_v27  ;;  %1155 = vmatpush2.msra.mxu0 %v466_v28  ;;  %v384_v27 = vld [vmem:[#allocation4 + $0x680] sm:$0xff]  ;;  %v187_v28 = vld [vmem:[#allocation4 + $0x58] sm:$0xff] }
 0x146   :  { %1156 = vmatprep.mubr.f32.mxu0 %v6914_v31  ;;  %1232 = vmatpush2.msra.mxu1 %v658_v29  ;;  %v379_v29 = vld [vmem:[#allocation4 + $0x658] sm:$0xff] }
 0x147   :  { %1157 = vmatmul.mubr.f32.vlgmr.msra.gmra.mxu0 %v6920_v61  ;;  %1233 = vmatprep.mubr.f32.mxu1 %v6886_v11  ;;  %v445_v11 = vld [vmem:[#allocation4 + $0x868] sm:$0xff] }
 0x148   :  { %1246 = vmatprep.subr.mxu0 %v271_v30  ;;  %1323 = vmatprep.subr.mxu1 %v463_v58  ;;  %v186_v30 = vld [vmem:[#allocation4 + $0x50] sm:$0xff] }
 0x149   :  { %1234 = vmatmul.mubr.f32.vlgmr.msra.gmra.mxu1 %v6891_v13  ;;  %1247 = vmatpush1.msra.mxu0 %v270_v32  ;;  %v247_v13 = vld [vmem:[#allocation4 + $0x238] sm:$0xff]  ;;  %v378_v58 = vld [vmem:[#allocation4 + $0x650] sm:$0xff]  ;;  %v181_v32 = vld [vmem:[#allocation4 + $0x28] sm:$0xff] }
 0x14a   :  { %1324 = vmatpush1.msra.mxu1 %v462_v33  ;;  %1248 = vmatprep.subr.mxu0 %v265_v34  ;;  %v373_v33 = vld [vmem:[#allocation4 + $0x628] sm:$0xff]  ;;  %v180_v34 = vld [vmem:[#allocation4 + $0x20] sm:$0xff] }
 0x14b   :  { %1325 = vmatprep.subr.mxu1 %v457_v35  ;;  %1249 = vmatpush1.msra.mxu0 %v264_v36  ;;  %v372_v35 = vld [vmem:[#allocation4 + $0x620] sm:$0xff]  ;;  %v367_v36 = vld [vmem:[#allocation4 + $0x5f8] sm:$0xff] }
 0x14c   :  { %1326 = vmatpush1.msra.mxu1 %v456_v37  ;;  %1250 = vmatprep.subr.mxu0 %v259_v38  ;;  %v559_v37 = vld [vmem:[#allocation4 + $0xbf8] sm:$0xff]  ;;  %v366_v38 = vld [vmem:[#allocation4 + $0x5f0] sm:$0xff] }
 0x14d   :  { %1327 = vmatprep.subr.mxu1 %v451_v39  ;;  %1251 = vmatpush1.msra.mxu0 %v258_v40  ;;  %v558_v39 = vld [vmem:[#allocation4 + $0xbf0] sm:$0xff]  ;;  %v361_v40 = vld [vmem:[#allocation4 + $0x5c8] sm:$0xff] }
 0x14e   :  { %1328 = vmatpush1.msra.mxu1 %v450_v41  ;;  %1252 = vmatprep.subr.mxu0 %v253_v42  ;;  %v553_v41 = vld [vmem:[#allocation4 + $0xbc8] sm:$0xff]  ;;  %v552_v42 = vld [vmem:[#allocation4 + $0xbc0] sm:$0xff] }
 0x14f   :  { %1329 = vmatprep.subr.mxu1 %v445_v11  ;;  %1253 = vmatpush1.msra.mxu0 %v252_v43  ;;  %v547_v11 = vld [vmem:[#allocation4 + $0xb98] sm:$0xff]  ;;  %v354_v43 = vld [vmem:[#allocation4 + $0x590] sm:$0xff] }
 0x150   :  { %1330 = vmatpush1.msra.mxu1 %v444_v44  ;;  %1254 = vmatprep.subr.mxu0 %v247_v13  ;;  %v349_v44 = vld [vmem:[#allocation4 + $0x568] sm:$0xff] }
 0x151   :  { %1331 = vmatprep.subr.mxu1 %v439_v45  ;;  %1255 = vmatpush1.msra.mxu0 %v246_v46  ;;  %v541_v13 = vld [vmem:[#allocation4 + $0xb68] sm:$0xff]  ;;  %v348_v45 = vld [vmem:[#allocation4 + $0x560] sm:$0xff] }
 0x152   :  { %1332 = vmatpush1.msra.mxu1 %v438_v47  ;;  %1256 = vmatprep.subr.mxu0 %v241_v48  ;;  %v540_v46 = vld [vmem:[#allocation4 + $0xb60] sm:$0xff]  ;;  %v535_v47 = vld [vmem:[#allocation4 + $0xb38] sm:$0xff]  ;;  %v342_v48 = vld [vmem:[#allocation4 + $0x530] sm:$0xff] }
 0x153   :  { %1333 = vmatprep.subr.mxu1 %v433_v49  ;;  %1257 = vmatpush1.msra.mxu0 %v240_v50  ;;  %v534_v49 = vld [vmem:[#allocation4 + $0xb30] sm:$0xff]  ;;  %v337_v50 = vld [vmem:[#allocation4 + $0x508] sm:$0xff] }
 0x154   :  { %1334 = vmatpush1.msra.mxu1 %v432_v51  ;;  %1258 = vmatprep.subr.mxu0 %v235_v52  ;;  %v529_v51 = vld [vmem:[#allocation4 + $0xb08] sm:$0xff]  ;;  %v336_v52 = vld [vmem:[#allocation4 + $0x500] sm:$0xff] }
 0x155   :  { %1335 = vmatprep.subr.mxu1 %v427_v53  ;;  %1259 = vmatpush1.msra.mxu0 %v234_v54  ;;  %v528_v53 = vld [vmem:[#allocation4 + $0xb00] sm:$0xff]  ;;  %v331_v54 = vld [vmem:[#allocation4 + $0x4d8] sm:$0xff] }
 0x156   :  { %1336 = vmatpush1.msra.mxu1 %v426_v55  ;;  %1260 = vmatprep.subr.mxu0 %v229_v56  ;;  %v523_v55 = vld [vmem:[#allocation4 + $0xad8] sm:$0xff]  ;;  %v330_v56 = vld [vmem:[#allocation4 + $0x4d0] sm:$0xff] }
 0x157   :  { %1337 = vmatprep.subr.mxu1 %v421_v57  ;;  %1261 = vmatpush1.msra.mxu0 %v228_v59  ;;  %v522_v57 = vld [vmem:[#allocation4 + $0xad0] sm:$0xff]  ;;  %v325_v59 = vld [vmem:[#allocation4 + $0x4a8] sm:$0xff] }
 0x158   :  { %1338 = vmatpush1.msra.mxu1 %v420_v60  ;;  %1262 = vmatprep.subr.mxu0 %v223_v62  ;;  %v517_v60 = vld [vmem:[#allocation4 + $0xaa8] sm:$0xff]  ;;  %v324_v62 = vld [vmem:[#allocation4 + $0x4a0] sm:$0xff] }
 0x159   :  { %1339 = vmatprep.subr.mxu1 %v415_v0  ;;  %1263 = vmatpush1.msra.mxu0 %v222_v3  ;;  %v516_v0 = vld [vmem:[#allocation4 + $0xaa0] sm:$0xff]  ;;  %v319_v3 = vld [vmem:[#allocation4 + $0x478] sm:$0xff] }
 0x15a   :  { %1340 = vmatpush1.msra.mxu1 %v414_v4  ;;  %1264 = vmatprep.subr.mxu0 %v217_v6  ;;  %v511_v4 = vld [vmem:[#allocation4 + $0xa78] sm:$0xff]  ;;  %v318_v6 = vld [vmem:[#allocation4 + $0x470] sm:$0xff] }
 0x15b   :  { %1341 = vmatprep.subr.mxu1 %v409_v7  ;;  %1265 = vmatpush1.msra.mxu0 %v216_v8  ;;  %v510_v7 = vld [vmem:[#allocation4 + $0xa70] sm:$0xff]  ;;  %v313_v8 = vld [vmem:[#allocation4 + $0x448] sm:$0xff] }
 0x15c   :  { %1342 = vmatpush1.msra.mxu1 %v408_v9  ;;  %1266 = vmatprep.subr.mxu0 %v211_v10  ;;  %v505_v9 = vld [vmem:[#allocation4 + $0xa48] sm:$0xff]  ;;  %v312_v10 = vld [vmem:[#allocation4 + $0x440] sm:$0xff] }
 0x15d   :  { %1343 = vmatprep.subr.mxu1 %v403_v12  ;;  %1267 = vmatpush1.msra.mxu0 %v210_v14  ;;  %v504_v12 = vld [vmem:[#allocation4 + $0xa40] sm:$0xff]  ;;  %v307_v14 = vld [vmem:[#allocation4 + $0x418] sm:$0xff] }
 0x15e   :  { %1344 = vmatpush1.msra.mxu1 %v402_v15  ;;  %1268 = vmatprep.subr.mxu0 %v205_v16  ;;  %v499_v15 = vld [vmem:[#allocation4 + $0xa18] sm:$0xff]  ;;  %v306_v16 = vld [vmem:[#allocation4 + $0x410] sm:$0xff] }
 0x15f   :  { %1345 = vmatprep.subr.mxu1 %v397_v17  ;;  %1269 = vmatpush1.msra.mxu0 %v204_v18  ;;  %v498_v17 = vld [vmem:[#allocation4 + $0xa10] sm:$0xff]  ;;  %v301_v18 = vld [vmem:[#allocation4 + $0x3e8] sm:$0xff] }
 0x160   :  { %1346 = vmatpush1.msra.mxu1 %v396_v19  ;;  %1270 = vmatprep.subr.mxu0 %v199_v21  ;;  %v493_v19 = vld [vmem:[#allocation4 + $0x9e8] sm:$0xff]  ;;  %v300_v21 = vld [vmem:[#allocation4 + $0x3e0] sm:$0xff] }
 0x161   :  { %1347 = vmatprep.subr.mxu1 %v391_v22  ;;  %1271 = vmatpush1.msra.mxu0 %v198_v63  ;;  %v492_v22 = vld [vmem:[#allocation4 + $0x9e0] sm:$0xff]  ;;  %v295_v63 = vld [vmem:[#allocation4 + $0x3b8] sm:$0xff] }
 0x162   :  { %1348 = vmatpush1.msra.mxu1 %v390_v24  ;;  %1272 = vmatprep.subr.mxu0 %v193_v1  ;;  %v487_v24 = vld [vmem:[#allocation4 + $0x9b8] sm:$0xff]  ;;  %v294_v1 = vld [vmem:[#allocation4 + $0x3b0] sm:$0xff] }
 0x163   :  { %1349 = vmatprep.subr.mxu1 %v385_v25  ;;  %1273 = vmatpush1.msra.mxu0 %v192_v26  ;;  %v486_v25 = vld [vmem:[#allocation4 + $0x9b0] sm:$0xff]  ;;  %v289_v26 = vld [vmem:[#allocation4 + $0x388] sm:$0xff] }
 0x164   :  { %1350 = vmatpush1.msra.mxu1 %v384_v27  ;;  %1274 = vmatprep.subr.mxu0 %v187_v28  ;;  %v481_v27 = vld [vmem:[#allocation4 + $0x988] sm:$0xff]  ;;  %v288_v28 = vld [vmem:[#allocation4 + $0x380] sm:$0xff] }
 0x165   :  { %1351 = vmatprep.subr.mxu1 %v379_v29  ;;  %1162 = vmatprep.mubr.f32.mxu0 %v6873_v2  ;;  %v360_v2 = vld [vmem:[#allocation4 + $0x5c0] sm:$0xff] }
 0x166   :  { %1275 = vmatpush1.msra.mxu0 %v186_v30  ;;  %1352 = vmatpush1.msra.mxu1 %v378_v58  ;;  %v480_v29 = vld [vmem:[#allocation4 + $0x980] sm:$0xff]  ;;  %v283_v30 = vld [vmem:[#allocation4 + $0x358] sm:$0xff] }
 0x167   :  { %1163 = vmatmul.mubr.f32.gmra.mxu0 %v6879_v5  ;;  %1276 = vmatprep.subr.mxu0 %v181_v32  ;;  %v355_v5 = vld [vmem:[#allocation4 + $0x598] sm:$0xff]  ;;  %v282_v32 = vld [vmem:[#allocation4 + $0x350] sm:$0xff] }
 0x168   :  { %1353 = vmatprep.subr.mxu1 %v373_v33  ;;  %1239 = vmatprep.mubr.f32.mxu1 %v6900_v20  ;;  %v546_v20 = vld [vmem:[#allocation4 + $0xb90] sm:$0xff]  ;;  %v475_v58 = vld [vmem:[#allocation4 + $0x958] sm:$0xff] }
 0x169   :  { %1277 = vmatpush1.msra.mxu0 %v180_v34  ;;  %1354 = vmatpush1.msra.mxu1 %v372_v35  ;;  %v474_v33 = vld [vmem:[#allocation4 + $0x950] sm:$0xff]  ;;  %v277_v34 = vld [vmem:[#allocation4 + $0x328] sm:$0xff] }
 0x16a   :  { %1278 = vmatprep.subr.mxu0 %v367_v36  ;;  %1240 = vmatmul.mubr.f32.gmra.mxu1 %v6905_v23  ;;  %v343_v23 = vld [vmem:[#allocation4 + $0x538] sm:$0xff]  ;;  %v469_v35 = vld [vmem:[#allocation4 + $0x928] sm:$0xff]  ;;  %v276_v36 = vld [vmem:[#allocation4 + $0x320] sm:$0xff] }
 0x16b   :  { %1355 = vmatprep.subr.mxu1 %v559_v37  ;;  %1279 = vmatpush2.msra.mxu0 %v366_v38  ;;  %v468_v37 = vld [vmem:[#allocation4 + $0x920] sm:$0xff]  ;;  %v655_v38 = vld [vmem:[#allocation4 + $0xef8] sm:$0xff] }
 0x16c   :  { %1356 = vmatpush2.msra.mxu1 %v558_v39  ;;  %1280 = vmatprep.subr.mxu0 %v361_v40  ;;  %v6511_v39 = vld [vmem:[%s9007_s0 + $0x8] sm:$0xff]  ;;  %v6932_v40 = vld [vmem:[#allocation8 + $0x170] sm:$0xff] }
 0x16d   :  { %1357 = vmatprep.subr.mxu1 %v553_v41  ;;  %1281 = vmatpush2.msra.mxu0 %v360_v2  ;;  %v6512_v41 = vld [vmem:[%s9007_s0] sm:$0xff]  ;;  %v654_v2 = vld [vmem:[#allocation4 + $0xef0] sm:$0xff] }
 0x16e   :  { %1358 = vmatpush2.msra.mxu1 %v552_v42  ;;  %1282 = vmatprep.subr.mxu0 %v355_v5  ;;  %v6937_v42 = vld [vmem:[#allocation8 + $0x168] sm:$0xff] }
 0x16f   :  { %1359 = vmatprep.subr.mxu1 %v547_v11  ;;  %1283 = vmatpush2.msra.mxu0 %v354_v43  ;;  %v649_v5 = vld [vmem:[#allocation4 + $0xec8] sm:$0xff]  ;;  %v6940_v11 = vld [vmem:[#allocation8 + $0x158] sm:$0xff] }
 0x170   :  { %1360 = vmatpush2.msra.mxu1 %v546_v20  ;;  %1284 = vmatprep.subr.mxu0 %v349_v44  ;;  %v648_v43 = vld [vmem:[#allocation4 + $0xec0] sm:$0xff]  ;;  %v6944_v20 = vld [vmem:[#allocation8 + $0x150] sm:$0xff] }
 0x171   :  { %1361 = vmatprep.subr.mxu1 %v541_v13  ;;  %1285 = vmatpush2.msra.mxu0 %v348_v45  ;;  %v643_v44 = vld [vmem:[#allocation4 + $0xe98] sm:$0xff]  ;;  %v6947_v13 = vld [vmem:[#allocation8 + $0x140] sm:$0xff] }
 0x172   :  { %1362 = vmatpush2.msra.mxu1 %v540_v46  ;;  %1286 = vmatprep.subr.mxu0 %v343_v23  ;;  %v6950_v45 = vld [vmem:[#allocation8 + $0x138] sm:$0xff]  ;;  %v637_v46 = vld [vmem:[#allocation4 + $0xe68] sm:$0xff] }
 0x173   :  { %1363 = vmatprep.subr.mxu1 %v535_v47  ;;  %1287 = vmatpush2.msra.mxu0 %v342_v48  ;;  %v636_v23 = vld [vmem:[#allocation4 + $0xe60] sm:$0xff]  ;;  %v631_v48 = vld [vmem:[#allocation4 + $0xe38] sm:$0xff] }
 0x174   :  { %1364 = vmatpush2.msra.mxu1 %v534_v49  ;;  %1288 = vmatprep.subr.mxu0 %v337_v50  ;;  %v6956_v47 = vld [vmem:[#allocation8 + $0x120] sm:$0xff]  ;;  %v6959_v49 = vld [vmem:[#allocation8 + $0x110] sm:$0xff] }
 0x175   :  { %1365 = vmatprep.subr.mxu1 %v529_v51  ;;  %1289 = vmatpush2.msra.mxu0 %v336_v52  ;;  %v630_v50 = vld [vmem:[#allocation4 + $0xe30] sm:$0xff]  ;;  %v625_v52 = vld [vmem:[#allocation4 + $0xe08] sm:$0xff] }
 0x176   :  { %1366 = vmatpush2.msra.mxu1 %v528_v53  ;;  %1290 = vmatprep.subr.mxu0 %v331_v54  ;;  %v6962_v51 = vld [vmem:[#allocation8 + $0x108] sm:$0xff]  ;;  %v6965_v53 = vld [vmem:[#allocation8 + $0xf8] sm:$0xff] }
 0x177   :  { %1367 = vmatprep.subr.mxu1 %v523_v55  ;;  %1291 = vmatpush2.msra.mxu0 %v330_v56  ;;  %v624_v54 = vld [vmem:[#allocation4 + $0xe00] sm:$0xff]  ;;  %v6968_v55 = vld [vmem:[#allocation8 + $0xf0] sm:$0xff] }
 0x178   :  { %1368 = vmatpush2.msra.mxu1 %v522_v57  ;;  %1292 = vmatprep.subr.mxu0 %v325_v59  ;;  %v619_v56 = vld [vmem:[#allocation4 + $0xdd8] sm:$0xff]  ;;  %v6971_v57 = vld [vmem:[#allocation8 + $0xe0] sm:$0xff]  ;;  %v618_v59 = vld [vmem:[#allocation4 + $0xdd0] sm:$0xff] }
 0x179   :  { %1369 = vmatprep.subr.mxu1 %v517_v60  ;;  %1293 = vmatpush2.msra.mxu0 %v324_v62  ;;  %v6974_v60 = vld [vmem:[#allocation8 + $0xd8] sm:$0xff]  ;;  %v613_v62 = vld [vmem:[#allocation4 + $0xda8] sm:$0xff] }
 0x17a   :  { %1370 = vmatpush2.msra.mxu1 %v516_v0  ;;  %1294 = vmatprep.subr.mxu0 %v319_v3  ;;  %v6977_v0 = vld [vmem:[#allocation8 + $0xc8] sm:$0xff]  ;;  %v612_v3 = vld [vmem:[#allocation4 + $0xda0] sm:$0xff] }
 0x17b   :  { %1371 = vmatprep.subr.mxu1 %v511_v4  ;;  %1295 = vmatpush2.msra.mxu0 %v318_v6  ;;  %v6980_v4 = vld [vmem:[#allocation8 + $0xc0] sm:$0xff]  ;;  %v607_v6 = vld [vmem:[#allocation4 + $0xd78] sm:$0xff] }
 0x17c   :  { %1372 = vmatpush2.msra.mxu1 %v510_v7  ;;  %1296 = vmatprep.subr.mxu0 %v313_v8  ;;  %v6983_v7 = vld [vmem:[#allocation8 + $0xb0] sm:$0xff] }
 0x17d   :  { %1373 = vmatprep.subr.mxu1 %v505_v9  ;;  %1297 = vmatpush2.msra.mxu0 %v312_v10  ;;  %v606_v8 = vld [vmem:[#allocation4 + $0xd70] sm:$0xff]  ;;  %v601_v10 = vld [vmem:[#allocation4 + $0xd48] sm:$0xff] }
 0x17e   :  { %1374 = vmatpush2.msra.mxu1 %v504_v12  ;;  %1298 = vmatprep.subr.mxu0 %v307_v14  ;;  %v6986_v9 = vld [vmem:[#allocation8 + $0xa8] sm:$0xff]  ;;  %v6989_v12 = vld [vmem:[#allocation8 + $0x98] sm:$0xff] }
 0x17f   :  { %1375 = vmatprep.subr.mxu1 %v499_v15  ;;  %1299 = vmatpush2.msra.mxu0 %v306_v16  ;;  %v600_v14 = vld [vmem:[#allocation4 + $0xd40] sm:$0xff]  ;;  %v6992_v15 = vld [vmem:[#allocation8 + $0x90] sm:$0xff] }
 0x180   :  { %1376 = vmatpush2.msra.mxu1 %v498_v17  ;;  %1300 = vmatprep.subr.mxu0 %v301_v18  ;;  %v595_v16 = vld [vmem:[#allocation4 + $0xd18] sm:$0xff]  ;;  %v6995_v17 = vld [vmem:[#allocation8 + $0x80] sm:$0xff]  ;;  %v594_v18 = vld [vmem:[#allocation4 + $0xd10] sm:$0xff] }
 0x181   :  { %1377 = vmatprep.subr.mxu1 %v493_v19  ;;  %1301 = vmatpush2.msra.mxu0 %v300_v21  ;;  %v6998_v19 = vld [vmem:[#allocation8 + $0x78] sm:$0xff]  ;;  %v589_v21 = vld [vmem:[#allocation4 + $0xce8] sm:$0xff] }
 0x182   :  { %1378 = vmatpush2.msra.mxu1 %v492_v22  ;;  %1302 = vmatprep.subr.mxu0 %v295_v63  ;;  %v7001_v22 = vld [vmem:[#allocation8 + $0x68] sm:$0xff]  ;;  %v588_v63 = vld [vmem:[#allocation4 + $0xce0] sm:$0xff] }
 0x183   :  { %1379 = vmatprep.subr.mxu1 %v487_v24  ;;  %1303 = vmatpush2.msra.mxu0 %v294_v1  ;;  %v7004_v24 = vld [vmem:[#allocation8 + $0x60] sm:$0xff]  ;;  %v583_v1 = vld [vmem:[#allocation4 + $0xcb8] sm:$0xff] }
 0x184   :  { %1380 = vmatpush2.msra.mxu1 %v486_v25  ;;  %1304 = vmatprep.subr.mxu0 %v289_v26  ;;  %v7007_v25 = vld [vmem:[#allocation8 + $0x50] sm:$0xff] }
 0x185   :  { %1381 = vmatprep.subr.mxu1 %v481_v27  ;;  %1305 = vmatpush2.msra.mxu0 %v288_v28  ;;  %v582_v26 = vld [vmem:[#allocation4 + $0xcb0] sm:$0xff]  ;;  %v577_v28 = vld [vmem:[#allocation4 + $0xc88] sm:$0xff] }
 0x186   :  { %1382 = vmatpush2.msra.mxu1 %v480_v29  ;;  %1306 = vmatprep.subr.mxu0 %v283_v30  ;;  %v7010_v27 = vld [vmem:[#allocation8 + $0x48] sm:$0xff]  ;;  %v7013_v29 = vld [vmem:[#allocation8 + $0x38] sm:$0xff] }
 0x187   :  { %1383 = vmatprep.subr.mxu1 %v475_v58  ;;  %1307 = vmatpush2.msra.mxu0 %v282_v32  ;;  %v576_v30 = vld [vmem:[#allocation4 + $0xc80] sm:$0xff]  ;;  %v7017_v58 = vld [vmem:[#allocation8 + $0x30] sm:$0xff] }
 0x188   :  { %1384 = vmatpush2.msra.mxu1 %v474_v33  ;;  %1308 = vmatprep.subr.mxu0 %v277_v34  ;;  %v571_v32 = vld [vmem:[#allocation4 + $0xc58] sm:$0xff]  ;;  %v7020_v33 = vld [vmem:[#allocation8 + $0x20] sm:$0xff] }
 0x189   :  { %1385 = vmatprep.subr.mxu1 %v469_v35  ;;  %1309 = vmatpush2.msra.mxu0 %v276_v36  ;;  %v6513_v34 = vld [vmem:[%s9007_s0 + $0x48] sm:$0xff]  ;;  %v570_v35 = vld [vmem:[#allocation4 + $0xc50] sm:$0xff]  ;;  %v7025_v36 = vld [vmem:[#allocation8 + $0x18] sm:$0xff] }
 0x18a   :  { %1310 = vmatprep.mubr.f32.mxu0 %v6511_v39  ;;  %1386 = vmatpush2.msra.mxu1 %v468_v37  ;;  %v565_v37 = vld [vmem:[#allocation4 + $0xc28] sm:$0xff]  ;;  %v6514_v39 = vld [vmem:[%s9007_s0 + $0x40] sm:$0xff] }
 0x18b   :  { %1311 = vmatmul.mubr.f32.vlgmr.msra.gmra.mxu0 %v6512_v41  ;;  %1387 = vmatprep.mubr.f32.mxu1 %v6914_v31  ;;  %v642_v31 = vld [vmem:[#allocation4 + $0xe90] sm:$0xff]  ;;  %v564_v41 = vld [vmem:[#allocation4 + $0xc20] sm:$0xff] }
 0x18c   :  { %1400 = vmatprep.subr.mxu0 %v655_v38  ;;  %1561 = vmatprep.subr.mxu1 %v6932_v40  ;;  %v7028_v38 = vld [vmem:[#allocation8 + $0x8] sm:$0xff] }
 0x18d   :  { %1388 = vmatmul.mubr.f32.vlgmr.msra.gmra.mxu1 %v6920_v61  ;;  %1401 = vmatpush1.msra.mxu0 %v654_v2  ;;  %v6953_v61 = vld [vmem:[#allocation8 + $0x128] sm:$0xff]  ;;  %9227 = vst [vmem:[#allocation26_spill] sm:$0xff] %v7028_v38  ;;  %v7034_v2 = vld [vmem:[#allocation8] sm:$0xff] }
 0x18e   :  { %1562 = vmatpush1.msra.mxu1 %v6937_v42  ;;  %1402 = vmatprep.subr.mxu0 %v649_v5  ;;  %9228 = vst [vmem:[#allocation27_spill] sm:$0xff] %v7034_v2  ;;  %v751_v5 = vld [vmem:[#allocation4 + $0x11f8] sm:$0xff] }
 0x18f   :  { %1563 = vmatprep.subr.mxu1 %v6940_v11  ;;  %1403 = vmatpush1.msra.mxu0 %v648_v43  ;;  %v750_v43 = vld [vmem:[#allocation4 + $0x11f0] sm:$0xff] }
 0x190   :  { %1564 = vmatpush1.msra.mxu1 %v6944_v20  ;;  %1404 = vmatprep.subr.mxu0 %v643_v44  ;;  %v745_v44 = vld [vmem:[#allocation4 + $0x11c8] sm:$0xff] }
 0x191   :  { %1565 = vmatprep.subr.mxu1 %v6947_v13  ;;  %1405 = vmatpush1.msra.mxu0 %v642_v31  ;;  %v754_v31 = vlaneseq }
 0x192   :  { %1566 = vmatpush1.msra.mxu1 %v6950_v45  ;;  %1406 = vmatprep.subr.mxu0 %v637_v46  ;;  %v9064_v46 = vmov 0.0  }
 0x193   :  { %1567 = vmatprep.subr.mxu1 %v6953_v61  ;;  %1407 = vmatpush1.msra.mxu0 %v636_v23  ;;  %v744_v23 = vld [vmem:[#allocation4 + $0x11c0] sm:$0xff] }
 0x194   :  { %1568 = vmatpush1.msra.mxu1 %v6956_v47  ;;  %1408 = vmatprep.subr.mxu0 %v631_v48  ;;  %v7040_v48 = vld [vmem:[#allocation8 + $0x178] sm:$0xff] }
 0x195   :  { %1569 = vmatprep.subr.mxu1 %v6959_v49  ;;  %1409 = vmatpush1.msra.mxu0 %v630_v50  ;;  %v739_v50 = vld [vmem:[#allocation4 + $0x1198] sm:$0xff] }
 0x196   :  { %1570 = vmatpush1.msra.mxu1 %v6962_v51  ;;  %1410 = vmatprep.subr.mxu0 %v625_v52  ;;  %v738_v52 = vld [vmem:[#allocation4 + $0x1190] sm:$0xff] }
 0x197   :  { %1571 = vmatprep.subr.mxu1 %v6965_v53  ;;  %1411 = vmatpush1.msra.mxu0 %v624_v54  ;;  %v7044_v54 = vld [vmem:[#allocation8 + $0x160] sm:$0xff] }
 0x198   :  { %1572 = vmatpush1.msra.mxu1 %v6968_v55  ;;  %1412 = vmatprep.subr.mxu0 %v619_v56  ;;  %v733_v56 = vld [vmem:[#allocation4 + $0x1168] sm:$0xff] }
 0x199   :  { %1573 = vmatprep.subr.mxu1 %v6971_v57  ;;  %1413 = vmatpush1.msra.mxu0 %v618_v59  ;;  %v7047_v59 = vshrl.u32 %v754_v31, 7  ;;  %v7082_v31 = vld [vmem:[#allocation8 + $0xd0] sm:$0xff] }
 0x19a   :  { %1574 = vmatpush1.msra.mxu1 %v6974_v60  ;;  %1414 = vmatprep.subr.mxu0 %v613_v62  ;;  %v732_v62 = vld [vmem:[#allocation4 + $0x1160] sm:$0xff] }
 0x19b   :  { %1575 = vmatprep.subr.mxu1 %v6977_v0  ;;  %1415 = vmatpush1.msra.mxu0 %v612_v3  ;;  %v7050_v3 = vld [vmem:[#allocation8 + $0x148] sm:$0xff] }
 0x19c   :  { %1576 = vmatpush1.msra.mxu1 %v6980_v4  ;;  %1416 = vmatprep.subr.mxu0 %v607_v6  ;;  %v727_v6 = vld [vmem:[#allocation4 + $0x1138] sm:$0xff] }
 0x19d   :  { %1577 = vmatprep.subr.mxu1 %v6983_v7  ;;  %1417 = vmatpush1.msra.mxu0 %v606_v8  ;;  %v726_v8 = vld [vmem:[#allocation4 + $0x1130] sm:$0xff] }
 0x19e   :  { %1578 = vmatpush1.msra.mxu1 %v6986_v9  ;;  %1418 = vmatprep.subr.mxu0 %v601_v10  ;;  %v7054_v10 = vld [vmem:[#allocation8 + $0x130] sm:$0xff] }
 0x19f   :  { %1579 = vmatprep.subr.mxu1 %v6989_v12  ;;  %1419 = vmatpush1.msra.mxu0 %v600_v14  ;;  %v721_v14 = vld [vmem:[#allocation4 + $0x1108] sm:$0xff] }
 0x1a0   :  { %1580 = vmatpush1.msra.mxu1 %v6992_v15  ;;  %1420 = vmatprep.subr.mxu0 %v595_v16  ;;  %v7058_v16 = vsub.s32 0, %v7047_v59 }
 0x1a1   :  { %1581 = vmatprep.subr.mxu1 %v6995_v17  ;;  %1421 = vmatpush1.msra.mxu0 %v594_v18  ;;  %v850_v18 = vpop.f32.mrf.mxu0 }
 0x1a2   :  { %1582 = vmatpush1.msra.mxu1 %v6998_v19  ;;  %1422 = vmatprep.subr.mxu0 %v589_v21  ;;  %9229 = vst [vmem:[#allocation28_spill] sm:$0xff] %v7058_v16  ;;  %v720_v21 = vld [vmem:[#allocation4 + $0x1100] sm:$0xff] }
 0x1a3   :  { %1583 = vmatprep.subr.mxu1 %v7001_v22  ;;  %1423 = vmatpush1.msra.mxu0 %v588_v63  ;;  %v7061_v63 = vld [vmem:[#allocation8 + $0x118] sm:$0xff] }
 0x1a4   :  { %1584 = vmatpush1.msra.mxu1 %v7004_v24  ;;  %1424 = vmatprep.subr.mxu0 %v583_v1  ;;  %v7063_v1 = vld [vmem:[#allocation6] sm:$0x3f] }
 0x1a5   :  { %1585 = vmatprep.subr.mxu1 %v7007_v25  ;;  %1425 = vmatpush1.msra.mxu0 %v582_v26  ;;  %v715_v26 = vld [vmem:[#allocation4 + $0x10d8] sm:$0xff] }
 0x1a6   :  { %1586 = vmatpush1.msra.mxu1 %v7010_v27  ;;  %1426 = vmatprep.subr.mxu0 %v577_v28  ;;  %v7067_v28 = vsub.s32 1, %v7047_v59 }
 0x1a7   :  { %1587 = vmatprep.subr.mxu1 %v7013_v29  ;;  %1393 = vmatprep.mubr.f32.mxu1 %v6513_v34  ;;  %v709_v34 = vld [vmem:[#allocation4 + $0x10a8] sm:$0xff] }
 0x1a8   :  { %1427 = vmatpush1.msra.mxu0 %v576_v30  ;;  %1588 = vmatpush1.msra.mxu1 %v7017_v58  ;;  %9230 = vst [vmem:[#allocation29_spill] sm:$0xff] %v7067_v28  ;;  %v714_v30 = vld [vmem:[#allocation4 + $0x10d0] sm:$0xff] }
 0x1a9   :  { %1428 = vmatprep.subr.mxu0 %v571_v32  ;;  %1394 = vmatmul.mubr.f32.gmra.mxu1 %v6514_v39  ;;  %v7070_v32 = vld [vmem:[#allocation8 + $0x100] sm:$0xff] }
 0x1aa   :  { %1589 = vmatprep.subr.mxu1 %v7020_v33  ;;  %1429 = vmatpush1.msra.mxu0 %v570_v35  ;;  %v757_v35 = vrot.slane %v7063_v1, %v7058_v16  ;;  %v708_v39 = vld [vmem:[#allocation4 + $0x10a0] sm:$0xff] }
 0x1ab   :  { %1590 = vmatpush1.msra.mxu1 %v7025_v36  ;;  %1430 = vmatprep.subr.mxu0 %v565_v37  ;;  %v852_v37 = vpop.f32.mrf.mxu0 }
 0x1ac   :  { %1591 = vmatprep.subr.mxu1 %v7028_v38  ;;  %1431 = vmatpush1.msra.mxu0 %v564_v41  ;;  %v7076_v41 = vld [vmem:[#allocation8 + $0xe8] sm:$0xff] }
 0x1ad   :  { %1592 = vmatpush1.msra.mxu1 %v7034_v2  ;;  %1625 = vmatprep.mubr.f32.mxu1 %v9064_v46  ;;  %v673_v38 = vld [vmem:[#allocation4 + $0xf88] sm:$0xff] }
 0x1ae   :  { %1432 = vmatprep.subr.mxu0 %v751_v5  ;;  %1626 = vmatmul.mubr.f32.vlgmr.msra.gmra.mxu1 %v9064_v46  ;;  %v703_v5 = vld [vmem:[#allocation4 + $0x1078] sm:$0xff] }
 0x1af   :  { %1433 = vmatpush2.msra.mxu0 %v750_v43  ;;  %5728 = vmatprep.subr.mxu1 %v9064_v46  ;;  %v761_v43 = vrot.slane %v7063_v1, %v7067_v28 }
 0x1b0   :  { %1434 = vmatprep.subr.mxu0 %v745_v44  ;;  %5729 = vmatpush3.msra.mxu1 %v7040_v48  ;;  %v702_v44 = vld [vmem:[#allocation4 + $0x1070] sm:$0xff] }
 0x1b1   :  { %1435 = vmatpush2.msra.mxu0 %v744_v23  ;;  %5730 = vmatprep.subr.mxu1 %v9064_v46 }
 0x1b2   :  { %1436 = vmatprep.subr.mxu0 %v739_v50  ;;  %5731 = vmatpush3.msra.mxu1 %v7044_v54  ;;  %v927_v50 = vpop.f32.mrf.mxu1 }
 0x1b3   :  { %1437 = vmatpush2.msra.mxu0 %v738_v52  ;;  %5732 = vmatprep.subr.mxu1 %v9064_v46  ;;  %v697_v52 = vld [vmem:[#allocation4 + $0x1048] sm:$0xff] }
 0x1b4   :  { %1438 = vmatprep.subr.mxu0 %v733_v56  ;;  %5733 = vmatpush3.msra.mxu1 %v7050_v3  ;;  %v851_v56 = vadd.f32 %v850_v18, %v757_v35  ;;  %v685_v18 = vld [vmem:[#allocation4 + $0xfe8] sm:$0xff] }
 0x1b5   :  { %1439 = vmatpush2.msra.mxu0 %v732_v62  ;;  %5734 = vmatprep.subr.mxu1 %v9064_v46  ;;  %v696_v62 = vld [vmem:[#allocation4 + $0x1040] sm:$0xff] }
 0x1b6   :  { %1440 = vmatprep.subr.mxu0 %v727_v6  ;;  %5735 = vmatpush3.msra.mxu1 %v7054_v10  ;;  %v7086_v6 = vld [vmem:[#allocation8 + $0xb8] sm:$0xff] }
 0x1b7   :  { %1441 = vmatpush2.msra.mxu0 %v726_v8  ;;  %5736 = vmatprep.subr.mxu1 %v9064_v46  ;;  %v691_v8 = vld [vmem:[#allocation4 + $0x1018] sm:$0xff] }
 0x1b8   :  { %1442 = vmatprep.subr.mxu0 %v721_v14  ;;  %5737 = vmatpush3.msra.mxu1 %v7061_v63 }
 0x1b9   :  { %1443 = vmatpush2.msra.mxu0 %v720_v21  ;;  %5738 = vmatprep.subr.mxu1 %v9064_v46  ;;  %v853_v21 = vadd.f32 %v852_v37, %v761_v43  ;;  %v679_v37 = vld [vmem:[#allocation4 + $0xfb8] sm:$0xff] }
 0x1ba   :  { %1444 = vmatprep.subr.mxu0 %v715_v26  ;;  %5739 = vmatpush3.msra.mxu1 %v7070_v32  ;;  %v690_v26 = vld [vmem:[#allocation4 + $0x1010] sm:$0xff] }
 0x1bb   :  { %1445 = vmatpush2.msra.mxu0 %v714_v30  ;;  %5740 = vmatprep.subr.mxu1 %v9064_v46  ;;  %v7090_v30 = vld [vmem:[#allocation8 + $0xa0] sm:$0xff] }
 0x1bc   :  { %1446 = vmatprep.subr.mxu0 %v709_v34  ;;  %v856_v23 = vpop.f32.mrf.mxu0  ;;  %5741 = vmatpush3.msra.mxu1 %v7076_v41  ;;  %v929_v34 = vpop.f32.mrf.mxu1 }
 0x1bd   :  { %1447 = vmatpush2.msra.mxu0 %v708_v39  ;;  %5742 = vmatprep.subr.mxu1 %v9064_v46  ;;  %v928_v39 = vadd.f32 %v927_v50, %v851_v56  ;;  %v930_v16 = vadd.f32 %v929_v34, %v853_v21  ;;  %v678_v50 = vld [vmem:[#allocation4 + $0xfb0] sm:$0xff] }
 0x1be   :  { %1448 = vmatprep.subr.mxu0 %v703_v5  ;;  %5743 = vmatpush3.msra.mxu1 %v7082_v31  ;;  %v858_v14 = vpop.f32.mrf.mxu0  ;;  %v684_v5 = vld [vmem:[#allocation4 + $0xfe0] sm:$0xff]  ;;  %v7099_v56 = vld [vmem:[#allocation8 + $0x70] sm:$0xff] }
 0x1bf   :  { %1449 = vmatpush2.msra.mxu0 %v702_v44  ;;  %5744 = vmatprep.subr.mxu1 %v9064_v46  ;;  %v7094_v44 = vld [vmem:[#allocation8 + $0x88] sm:$0xff]  ;;  %v859_v21 = vadd.f32 %v858_v14, %v761_v43 }
 0x1c0   :  { %1450 = vmatprep.subr.mxu0 %v697_v52  ;;  %5745 = vmatpush3.msra.mxu1 %v7086_v6  ;;  %v933_v52 = vpop.f32.mrf.mxu1  ;;  %v661_v14 = vld [vmem:[#allocation4 + $0xf28] sm:$0xff] }
 0x1c1   :  { %1451 = vmatpush2.msra.mxu0 %v696_v62  ;;  %5746 = vmatprep.subr.mxu1 %v9064_v46  ;;  %v857_v62 = vadd.f32 %v856_v23, %v757_v35  ;;  %v672_v35 = vld [vmem:[#allocation4 + $0xf80] sm:$0xff] }
 0x1c2   :  { %1452 = vmatprep.subr.mxu0 %v691_v8  ;;  %5747 = vmatpush3.msra.mxu1 %v7090_v30  ;;  %v7108_v23 = vld [vmem:[#allocation8 + $0x58] sm:$0xff] }
 0x1c3   :  { %1453 = vmatpush2.msra.mxu0 %v690_v26  ;;  %v1004_v28 = vpop.f32.mrf.mxu0  ;;  %5748 = vmatprep.subr.mxu1 %v9064_v46  ;;  %v6515_v26 = vld [vmem:[%s9007_s0 + $0x38] sm:$0xff] }
 0x1c4   :  { %1454 = vmatprep.subr.mxu0 %v685_v18  ;;  %v1005_v2 = vadd.f32 %v1004_v28, %v928_v39  ;;  %5749 = vmatpush3.msra.mxu1 %v7094_v44  ;;  %v6516_v28 = vld [vmem:[%s9007_s0 + $0x30] sm:$0xff]  ;;  %v935_v18 = vpop.f32.mrf.mxu1  ;;  %v667_v39 = vld [vmem:[#allocation4 + $0xf58] sm:$0xff] }
 0x1c5   :  { %1455 = vmatpush2.msra.mxu0 %v684_v5  ;;  %v1006_v8 = vpop.f32.mrf.mxu0  ;;  %1316 = vmatprep.mubr.f32.mxu0 %v6515_v26  ;;  %v934_v5 = vadd.f32 %v933_v52, %v857_v62  ;;  %v7120_v62 = vld [vmem:[#allocation11 + $0x170] sm:$0xff] }
 0x1c6   :  { %1456 = vmatprep.subr.mxu0 %v679_v37  ;;  %1477 = vst [vmem:[#allocation2 + $0x30] sm:$0xff] %v1005_v2  ;;  %v1007_v34 = vadd.f32 %v1006_v8, %v930_v16  ;;  %5750 = vmatprep.subr.mxu1 %v9064_v46  ;;  %v666_v2 = vld [vmem:[#allocation4 + $0xf50] sm:$0xff]  ;;  %v7112_v16 = vld [vmem:[#allocation8 + $0x40] sm:$0xff]  ;;  %v936_v37 = vadd.f32 %v935_v18, %v859_v21 }
 0x1c7   :  { %1317 = vmatmul.mubr.f32.gmra.mxu0 %v6516_v28  ;;  %5751 = vmatpush3.msra.mxu1 %v7099_v56  ;;  %v6517_v21 = vld [vmem:[%s9007_s0 + $0x28] sm:$0xff]  ;;  %v6518_v28 = vld [vmem:[%s9007_s0 + $0x20] sm:$0xff] }
 0x1c8   :  { %1457 = vmatpush2.msra.mxu0 %v678_v50  ;;  %1478 = vst [vmem:[#allocation2] sm:$0xff] %v1007_v34  ;;  %5752 = vmatprep.subr.mxu1 %v9064_v46  ;;  %v660_v50 = vld [vmem:[#allocation4 + $0xf20] sm:$0xff]  ;;  %v7125_v34 = vld [vmem:[#allocation8 + $0x10] sm:$0xff] }
 0x1c9   :  { %1458 = vmatprep.subr.mxu0 %v673_v38  ;;  %v1010_v43 = vpop.f32.mrf.mxu0  ;;  %5753 = vmatpush3.msra.mxu1 %v7108_v23  ;;  %v7117_v38 = vld [vmem:[#allocation8 + $0x28] sm:$0xff]  ;;  %v7135_v18 = vld [vmem:[#allocation11 + $0x158] sm:$0xff] }
 0x1ca   :  { %1459 = vmatpush2.msra.mxu0 %v672_v35  ;;  %v1011_v8 = vadd.f32 %v1010_v43, %v934_v5  ;;  %5754 = vmatprep.subr.mxu1 %v9064_v46  ;;  %v7131_v35 = vld [vmem:[#allocation11 + $0x168] sm:$0xff]  ;;  %v7144_v5 = vld [vmem:[#allocation11 + $0x140] sm:$0xff]  ;;  %v7150_v43 = vld [vmem:[#allocation11 + $0x138] sm:$0xff] }
 0x1cb   :  { %1460 = vmatprep.subr.mxu0 %v667_v39  ;;  %v1012_v26 = vpop.f32.mrf.mxu0  ;;  %5755 = vmatpush3.msra.mxu1 %v7112_v16  ;;  %v7140_v39 = vld [vmem:[#allocation11 + $0x150] sm:$0xff]  ;;  %9231 = vst [vmem:[#allocation30_spill] sm:$0xff] %v7144_v5  ;;  %9232 = vst [vmem:[#allocation31_spill] sm:$0xff] %v7150_v43 }
 0x1cc   :  { %1461 = vmatpush2.msra.mxu0 %v666_v2  ;;  %1483 = vst [vmem:[#allocation2 + $0x8] sm:$0xff] %v1011_v8  ;;  %v1013_v52 = vadd.f32 %v1012_v26, %v936_v37  ;;  %5756 = vmatprep.subr.mxu1 %v9064_v46  ;;  %v6519_v2 = vld [vmem:[%s9007_s0 + $0x58] sm:$0xff]  ;;  %v7156_v37 = vld [vmem:[#allocation11 + $0x178] sm:$0xff]  ;;  %v6520_v8 = vld [vmem:[%s9007_s0 + $0x50] sm:$0xff] }
 0x1cd   :  { %1462 = vmatprep.subr.mxu0 %v661_v14  ;;  %1464 = vmatprep.mubr.f32.mxu0 %v6517_v21  ;;  %v7153_v14 = vld [vmem:[#allocation11 + $0x128] sm:$0xff]  ;;  %v7165_v26 = vld [vmem:[#allocation11 + $0x110] sm:$0xff] }
 0x1ce   :  { %1463 = vmatpush2.msra.mxu0 %v660_v50  ;;  %1484 = vst [vmem:[#allocation2 + $0x38] sm:$0xff] %v1013_v52  ;;  %5757 = vmatpush3.msra.mxu1 %v7117_v38  ;;  %9233 = vst [vmem:[#allocation32_spill] sm:$0xff] %v7153_v14  ;;  %v7162_v50 = vld [vmem:[#allocation11 + $0x120] sm:$0xff]  ;;  %v7171_v21 = vld [vmem:[#allocation11 + $0x108] sm:$0xff] }
 0x1cf   :  { %1465 = vmatmul.mubr.f32.vlgmr.msra.gmra.mxu0 %v6518_v28  ;;  %5758 = vmatprep.subr.mxu1 %v9064_v46  ;;  %9234 = vst [vmem:[#allocation33_spill] sm:$0xff] %v7162_v50  ;;  %9235 = vst [vmem:[#allocation34_spill] sm:$0xff] %v7165_v26  ;;  %v7168_v52 = vld [vmem:[#allocation11 + $0x160] sm:$0xff]  ;;  %v7175_v28 = vld [vmem:[#allocation11 + $0xf8] sm:$0xff] }
 0x1d0   :  { %1787 = vmatprep.subr.mxu0 %v7120_v62  ;;  %5759 = vmatpush3.msra.mxu1 %v7125_v34  ;;  %9236 = vst [vmem:[#allocation35_spill] sm:$0xff] %v7171_v21  ;;  %9237 = vst [vmem:[#allocation36_spill] sm:$0xff] %v7175_v28 }
 0x1d1   :  { %5760 = vmatprep.mubr.msk.f32.mxu1 %vm6750_vm0, %v9064_v46  ;;  %1788 = vmatpush1.msra.mxu0 %v7131_v35 }
 0x1d2   :  { %5761 = vmatmul.mubr.f32.vlgmr.msra.gmra.mxu1 %v9064_v46  ;;  %1789 = vmatprep.subr.mxu0 %v7135_v18 }
 0x1d3   :  { %1470 = vmatprep.mubr.f32.mxu0 %v6519_v2  ;;  %1790 = vmatpush1.msra.mxu0 %v7140_v39  ;;  %v7178_v2 = vld [vmem:[#allocation11 + $0x148] sm:$0xff] }
 0x1d4   :  { %5763 = vmatprep.subr.mxu1 %v9064_v46  ;;  %1471 = vmatmul.mubr.f32.gmra.mxu0 %v6520_v8  ;;  %9238 = vst [vmem:[#allocation37_spill] sm:$0xff] %v7178_v2  ;;  %v7181_v8 = vld [vmem:[#allocation11 + $0xf0] sm:$0xff] }
 0x1d5   :  { %1791 = vmatprep.subr.mxu0 %v7144_v5  ;;  %1851 = vmatprep.mubr.f32.mxu0 %v9064_v46  ;;  %9239 = vst [vmem:[#allocation38_spill] sm:$0xff] %v7181_v8  ;;  %v7198_v5 = vld [vmem:[#allocation11 + $0x118] sm:$0xff] }
 0x1d6   :  { %1792 = vmatpush1.msra.mxu0 %v7150_v43  ;;  %5764 = vmatpush3.msra.mxu1 %v7156_v37  ;;  %v7188_v43 = vld [vmem:[#allocation11 + $0x130] sm:$0xff]  ;;  %9244 = vst [vmem:[#allocation43_spill] sm:$0xff] %v7198_v5 }
 0x1d7   :  { %1793 = vmatprep.subr.mxu0 %v7153_v14  ;;  %5765 = vmatprep.subr.mxu1 %v9064_v46  ;;  %v7185_v14 = vld [vmem:[#allocation11 + $0xe0] sm:$0xff]  ;;  %9241 = vst [vmem:[#allocation40_spill] sm:$0xff] %v7188_v43 }
 0x1d8   :  { %1794 = vmatpush1.msra.mxu0 %v7162_v50  ;;  %5766 = vmatpush3.msra.mxu1 %v7168_v52  ;;  %9240 = vst [vmem:[#allocation39_spill] sm:$0xff] %v7185_v14  ;;  %v7191_v50 = vld [vmem:[#allocation11 + $0xd8] sm:$0xff] }
 0x1d9   :  { %1795 = vmatprep.subr.mxu0 %v7165_v26  ;;  %5767 = vmatprep.subr.mxu1 %v9064_v46  ;;  %9242 = vst [vmem:[#allocation41_spill] sm:$0xff] %v7191_v50  ;;  %v7195_v26 = vld [vmem:[#allocation11 + $0xc8] sm:$0xff] }
 0x1da   :  { %1796 = vmatpush1.msra.mxu0 %v7171_v21  ;;  %5768 = vmatpush3.msra.mxu1 %v7178_v2  ;;  %9243 = vst [vmem:[#allocation42_spill] sm:$0xff] %v7195_v26  ;;  %v7201_v21 = vld [vmem:[#allocation11 + $0xc0] sm:$0xff] }
 0x1db   :  { %1797 = vmatprep.subr.mxu0 %v7175_v28  ;;  %5769 = vmatprep.subr.mxu1 %v9064_v46  ;;  %9245 = vst [vmem:[#allocation44_spill] sm:$0xff] %v7201_v21  ;;  %v7205_v28 = vld [vmem:[#allocation11 + $0xb0] sm:$0xff]  ;;  %v7208_v2 = vld [vmem:[#allocation11 + $0x100] sm:$0xff] }
 0x1dc   :  { %1798 = vmatpush1.msra.mxu0 %v7181_v8  ;;  %5770 = vmatpush3.msra.mxu1 %v7188_v43  ;;  %9246 = vst [vmem:[#allocation45_spill] sm:$0xff] %v7205_v28  ;;  %9247 = vst [vmem:[#allocation46_spill] sm:$0xff] %v7208_v2  ;;  %v7211_v8 = vld [vmem:[#allocation11 + $0xa8] sm:$0xff] }
 0x1dd   :  { %1799 = vmatprep.subr.mxu0 %v7185_v14  ;;  %5771 = vmatprep.subr.mxu1 %v9064_v46  ;;  %9248 = vst [vmem:[#allocation47_spill] sm:$0xff] %v7211_v8  ;;  %v7215_v14 = vld [vmem:[#allocation11 + $0x98] sm:$0xff]  ;;  %v7218_v43 = vld [vmem:[#allocation11 + $0xe8] sm:$0xff] }
 0x1de   :  { %1800 = vmatpush1.msra.mxu0 %v7191_v50  ;;  %5772 = vmatpush3.msra.mxu1 %v7198_v5  ;;  %9249 = vst [vmem:[#allocation48_spill] sm:$0xff] %v7215_v14  ;;  %9250 = vst [vmem:[#allocation49_spill] sm:$0xff] %v7218_v43  ;;  %v7221_v50 = vld [vmem:[#allocation11 + $0x90] sm:$0xff] }
 0x1df   :  { %1801 = vmatprep.subr.mxu0 %v7195_v26  ;;  %5773 = vmatprep.subr.mxu1 %v9064_v46  ;;  %9251 = vst [vmem:[#allocation50_spill] sm:$0xff] %v7221_v50  ;;  %v7225_v26 = vld [vmem:[#allocation11 + $0x80] sm:$0xff]  ;;  %v7228_v5 = vld [vmem:[#allocation11 + $0xd0] sm:$0xff] }
 0x1e0   :  { %1802 = vmatpush1.msra.mxu0 %v7201_v21  ;;  %5774 = vmatpush3.msra.mxu1 %v7208_v2  ;;  %9252 = vst [vmem:[#allocation51_spill] sm:$0xff] %v7225_v26  ;;  %9253 = vst [vmem:[#allocation52_spill] sm:$0xff] %v7228_v5  ;;  %v7231_v21 = vld [vmem:[#allocation11 + $0x78] sm:$0xff] }
 0x1e1   :  { %1803 = vmatprep.subr.mxu0 %v7205_v28  ;;  %5775 = vmatprep.subr.mxu1 %v9064_v46  ;;  %9254 = vst [vmem:[#allocation53_spill] sm:$0xff] %v7231_v21  ;;  %v7235_v28 = vld [vmem:[#allocation11 + $0x68] sm:$0xff]  ;;  %v7238_v2 = vld [vmem:[#allocation11 + $0xb8] sm:$0xff] }
 0x1e2   :  { %1804 = vmatpush1.msra.mxu0 %v7211_v8  ;;  %5776 = vmatpush3.msra.mxu1 %v7218_v43  ;;  %9255 = vst [vmem:[#allocation54_spill] sm:$0xff] %v7235_v28  ;;  %9256 = vst [vmem:[#allocation55_spill] sm:$0xff] %v7238_v2  ;;  %v7241_v8 = vld [vmem:[#allocation11 + $0x60] sm:$0xff] }
 0x1e3   :  { %1805 = vmatprep.subr.mxu0 %v7215_v14  ;;  %5777 = vmatprep.subr.mxu1 %v9064_v46  ;;  %9257 = vst [vmem:[#allocation56_spill] sm:$0xff] %v7241_v8  ;;  %v7245_v14 = vld [vmem:[#allocation11 + $0x50] sm:$0xff]  ;;  %v7248_v43 = vld [vmem:[#allocation11 + $0xa0] sm:$0xff] }
 0x1e4   :  { %1806 = vmatpush1.msra.mxu0 %v7221_v50  ;;  %5778 = vmatpush3.msra.mxu1 %v7228_v5  ;;  %9258 = vst [vmem:[#allocation57_spill] sm:$0xff] %v7245_v14  ;;  %9259 = vst [vmem:[#allocation58_spill] sm:$0xff] %v7248_v43  ;;  %v7251_v50 = vld [vmem:[#allocation11 + $0x48] sm:$0xff] }
 0x1e5   :  { %1807 = vmatprep.subr.mxu0 %v7225_v26  ;;  %5779 = vmatprep.subr.mxu1 %v9064_v46  ;;  %9260 = vst [vmem:[#allocation59_spill] sm:$0xff] %v7251_v50  ;;  %v7255_v26 = vld [vmem:[#allocation11 + $0x38] sm:$0xff]  ;;  %v7258_v5 = vld [vmem:[#allocation11 + $0x88] sm:$0xff] }
 0x1e6   :  { %1808 = vmatpush1.msra.mxu0 %v7231_v21  ;;  %5780 = vmatpush3.msra.mxu1 %v7238_v2  ;;  %9261 = vst [vmem:[#allocation60_spill] sm:$0xff] %v7255_v26  ;;  %v7261_v21 = vld [vmem:[#allocation11 + $0x30] sm:$0xff] }
 0x1e7   :  { %1809 = vmatprep.subr.mxu0 %v7235_v28  ;;  %5781 = vmatprep.subr.mxu1 %v9064_v46  ;;  %9262 = vst [vmem:[#allocation61_spill] sm:$0xff] %v7261_v21  ;;  %v7265_v28 = vld [vmem:[#allocation11 + $0x20] sm:$0xff]  ;;  %v7268_v2 = vld [vmem:[#allocation11 + $0x70] sm:$0xff] }
 0x1e8   :  { %1810 = vmatpush1.msra.mxu0 %v7241_v8  ;;  %5782 = vmatpush3.msra.mxu1 %v7248_v43  ;;  %v7271_v8 = vld [vmem:[#allocation11 + $0x18] sm:$0xff] }
 0x1e9   :  { %1811 = vmatprep.subr.mxu0 %v7245_v14  ;;  %5783 = vmatprep.subr.mxu1 %v9064_v46  ;;  %9263 = vst [vmem:[#allocation62_spill] sm:$0xff] %v7271_v8  ;;  %v7275_v14 = vld [vmem:[#allocation11 + $0x8] sm:$0xff]  ;;  %v7278_v43 = vld [vmem:[#allocation11 + $0x58] sm:$0xff] }
 0x1ea   :  { %1812 = vmatpush1.msra.mxu0 %v7251_v50  ;;  %5784 = vmatpush3.msra.mxu1 %v7258_v5  ;;  %v7281_v50 = vld [vmem:[#allocation11] sm:$0xff] }
 0x1eb   :  { %1813 = vmatprep.subr.mxu0 %v7255_v26  ;;  %5785 = vmatprep.subr.mxu1 %v9064_v46  ;;  %v7286_v26 = vld [vmem:[#allocation11 + $0x40] sm:$0xff] }
 0x1ec   :  { %1814 = vmatpush1.msra.mxu0 %v7261_v21  ;;  %5786 = vmatpush3.msra.mxu1 %v7268_v2  ;;  %v7292_v21 = vld [vmem:[#allocation11 + $0x28] sm:$0xff] }
 0x1ed   :  { %1815 = vmatprep.subr.mxu0 %v7265_v28  ;;  %5787 = vmatprep.subr.mxu1 %v9064_v46 }
 0x1ee   :  { %1816 = vmatpush1.msra.mxu0 %v7271_v8  ;;  %5788 = vmatpush3.msra.mxu1 %v7278_v43  ;;  %v7297_v8 = vld [vmem:[#allocation11 + $0x10] sm:$0xff] }
 0x1ef   :  { %1817 = vmatprep.subr.mxu0 %v7275_v14  ;;  %5789 = vmatprep.subr.mxu1 %v9064_v46 }
 0x1f0   :  { %1818 = vmatpush1.msra.mxu0 %v7281_v50  ;;  %5790 = vmatpush3.msra.mxu1 %v7286_v26 }
 0x1f1   :  { %1852 = vmatmul.mubr.f32.vlgmr.msra.gmra.mxu0 %v9064_v46  ;;  %5791 = vmatprep.subr.mxu1 %v9064_v46 }
 0x1f2   :  { %5795 = vmatprep.mubr.msk.f32.mxu1 %vm6750_vm0, %v9064_v46  ;;  %5792 = vmatpush3.msra.mxu1 %v7292_v21 }
 0x1f3   :  { %2014 = vmatprep.subr.mxu0 %v6932_v40  ;;  %5793 = vmatprep.subr.mxu1 %v9064_v46  ;;  %v1081_v40 = vpop.f32.mrf.mxu1 }
 0x1f4   :  { %2015 = vmatpush1.msra.mxu0 %v6937_v42  ;;  %5794 = vmatpush3.msra.mxu1 %v7297_v8  ;;  %v7324_v42 = vsub.s32 2, %v7047_v59 }
 0x1f5   :  { %2016 = vmatprep.subr.mxu0 %v6940_v11  ;;  %5796 = vmatmul.mubr.f32.vlgmr.msra.gmra.mxu1 %v9064_v46  ;;  %v768_v11 = vsub.s32 3, %v7047_v59 }
 0x1f6   :  { %5798 = vmatprep.subr.mxu1 %v9064_v46  ;;  %2017 = vmatpush1.msra.mxu0 %v6944_v20  ;;  %v1083_v20 = vpop.f32.mrf.mxu1 }
 0x1f7   :  { %5799 = vmatpush3.msra.mxu1 %v7040_v48  ;;  %2018 = vmatprep.subr.mxu0 %v6947_v13  ;;  %v765_v13 = vrot.slane %v7063_v1, %v7324_v42 }
 0x1f8   :  { %5800 = vmatprep.subr.mxu1 %v9064_v46  ;;  %2019 = vmatpush1.msra.mxu0 %v6950_v45 }
 0x1f9   :  { %5801 = vmatpush3.msra.mxu1 %v7044_v54  ;;  %2020 = vmatprep.subr.mxu0 %v6953_v61  ;;  %v769_v61 = vrot.slane %v7063_v1, %v768_v11 }
 0x1fa   :  { %5802 = vmatprep.subr.mxu1 %v9064_v46  ;;  %2021 = vmatpush1.msra.mxu0 %v6956_v47 }
 0x1fb   :  { %5803 = vmatpush3.msra.mxu1 %v7050_v3  ;;  %2022 = vmatprep.subr.mxu0 %v6959_v49  ;;  %v1082_v49 = vadd.f32 %v1081_v40, %v765_v13  ;;  %v1489_v3 = vld [vmem:[#allocation9] sm:$0x7] }
 0x1fc   :  { %5804 = vmatprep.subr.mxu1 %v9064_v46  ;;  %2023 = vmatpush1.msra.mxu0 %v6962_v51 }
 0x1fd   :  { %5805 = vmatpush3.msra.mxu1 %v7054_v10  ;;  %2024 = vmatprep.subr.mxu0 %v6965_v53  ;;  %v1084_v53 = vadd.f32 %v1083_v20, %v769_v61  ;;  %v772_v20 = vsub.s32 4, %v7047_v59 }
 0x1fe   :  { %5806 = vmatprep.subr.mxu1 %v9064_v46  ;;  %2025 = vmatpush1.msra.mxu0 %v6968_v55 }
 0x1ff   :  { %5807 = vmatpush3.msra.mxu1 %v7061_v63  ;;  %2026 = vmatprep.subr.mxu0 %v6971_v57  ;;  %v9266_v63 = vld [vmem:[#allocation28_spill] sm:$0xff] }
 0x200   :  { %5808 = vmatprep.subr.mxu1 %v9064_v46  ;;  %2027 = vmatpush1.msra.mxu0 %v6974_v60 }
 0x201   :  { %5809 = vmatpush3.msra.mxu1 %v7070_v32  ;;  %2028 = vmatprep.subr.mxu0 %v6977_v0  ;;  %v7382_v32 = vrot.slane %v1489_v3, %v9266_v63 }
 0x202   :  { %5810 = vmatprep.subr.mxu1 %v9064_v46  ;;  %2029 = vmatpush1.msra.mxu0 %v6980_v4 }
 0x203   :  { %v1087_v45 = vpop.f32.mrf.mxu1  ;;  %5811 = vmatpush3.msra.mxu1 %v7076_v41  ;;  %2030 = vmatprep.subr.mxu0 %v6983_v7 }
 0x204   :  { %5812 = vmatprep.subr.mxu1 %v9064_v46  ;;  %2031 = vmatpush1.msra.mxu0 %v6986_v9 }
 0x205   :  { %v1089_v47 = vpop.f32.mrf.mxu1  ;;  %5813 = vmatpush3.msra.mxu1 %v7082_v31  ;;  %2032 = vmatprep.subr.mxu0 %v6989_v12  ;;  %v9264_v12 = vld [vmem:[#allocation26_spill] sm:$0xff] }
 0x206   :  { %5814 = vmatprep.subr.mxu1 %v9064_v46  ;;  %2033 = vmatpush1.msra.mxu0 %v6992_v15  ;;  %v9265_v15 = vld [vmem:[#allocation27_spill] sm:$0xff]  ;;  %9267 = vst [vmem:[#allocation26_spill] sm:$0xff] %v7382_v32 }
 0x207   :  { %v1158_v51 = vpop.f32.mrf.mxu0  ;;  %5815 = vmatpush3.msra.mxu1 %v7086_v6  ;;  %2034 = vmatprep.subr.mxu0 %v6995_v17  ;;  %v1088_v17 = vadd.f32 %v1087_v45, %v765_v13 }
 0x208   :  { %v1159_v55 = vadd.f32 %v1158_v51, %v1082_v49  ;;  %5816 = vmatprep.subr.mxu1 %v9064_v46  ;;  %2035 = vmatpush1.msra.mxu0 %v6998_v19  ;;  %v1090_v19 = vadd.f32 %v1089_v47, %v769_v61  ;;  %v776_v61 = vsub.s32 5, %v7047_v59  ;;  %v773_v49 = vrot.slane %v7063_v1, %v772_v20  ;;  %v9269_v20 = vld [vmem:[#allocation30_spill] sm:$0xff] }
 0x209   :  { %v1160_v57 = vpop.f32.mrf.mxu0  ;;  %v1235_v60 = vpop.f32.mrf.mxu1  ;;  %5817 = vmatpush3.msra.mxu1 %v7090_v30  ;;  %2036 = vmatprep.subr.mxu0 %v7001_v22  ;;  %v9268_v30 = vld [vmem:[#allocation29_spill] sm:$0xff] }
 0x20a   :  { %v1161_v0 = vadd.f32 %v1160_v57, %v1084_v53  ;;  %v1236_v4 = vadd.f32 %v1235_v60, %v1159_v55  ;;  %5818 = vmatprep.subr.mxu1 %v9064_v46  ;;  %2037 = vmatpush1.msra.mxu0 %v7004_v24  ;;  %v777_v53 = vrot.slane %v7063_v1, %v776_v61 }
 0x20b   :  { %v1237_v7 = vpop.f32.mrf.mxu1  ;;  %5819 = vmatpush3.msra.mxu1 %v7094_v44  ;;  %2038 = vmatprep.subr.mxu0 %v7007_v25  ;;  %v7386_v44 = vrot.slane %v1489_v3, %v9268_v30 }
 0x20c   :  { %1479 = vst [vmem:[#allocation2 + $0x58] sm:$0xff] %v1236_v4  ;;  %v1238_v9 = vadd.f32 %v1237_v7, %v1161_v0  ;;  %5820 = vmatprep.subr.mxu1 %v9064_v46  ;;  %2039 = vmatpush1.msra.mxu0 %v7010_v27 }
 0x20d   :  { %5821 = vmatpush3.msra.mxu1 %v7099_v56  ;;  %2040 = vmatprep.subr.mxu0 %v7013_v29  ;;  %v1491_v56 = vld [vmem:[#allocation2 + $0x30] sm:$0x3] }
 0x20e   :  { %1480 = vst [vmem:[#allocation2 + $0x18] sm:$0xff] %v1238_v9  ;;  %5822 = vmatprep.subr.mxu1 %v9064_v46  ;;  %2041 = vmatpush1.msra.mxu0 %v7017_v58  ;;  %v7394_v9 = vrot.slane %v1489_v3, %v7324_v42 }
 0x20f   :  { %5823 = vmatpush3.msra.mxu1 %v7108_v23  ;;  %2042 = vmatprep.subr.mxu0 %v7020_v33 }
 0x210   :  { %5824 = vmatprep.subr.mxu1 %v9064_v46  ;;  %2043 = vmatpush1.msra.mxu0 %v7025_v36 }
 0x211   :  { %5825 = vmatpush3.msra.mxu1 %v7112_v16  ;;  %2044 = vmatprep.subr.mxu0 %v9264_v12 }
 0x212   :  { %5826 = vmatprep.subr.mxu1 %v9064_v46  ;;  %2045 = vmatpush1.msra.mxu0 %v9265_v15 }
 0x213   :  { %5827 = vmatpush3.msra.mxu1 %v7117_v38  ;;  %2078 = vmatprep.mubr.f32.mxu0 %v9064_v46  ;;  %v1493_v3 = vld [vmem:[#allocation2 + $0x58] sm:$0x3] }
 0x214   :  { %5828 = vmatprep.subr.mxu1 %v9064_v46  ;;  %5830 = vmatprep.mubr.msk.f32.mxu1 %vm6750_vm0, %v9064_v46 }
 0x215   :  { %5829 = vmatpush3.msra.mxu1 %v7125_v34  ;;  %2239 = vmatprep.subr.mxu0 %v7120_v62  ;;  %v1492_v34 = vld [vmem:[#allocation2] sm:$0x3] }
 0x216   :  { %5833 = vmatprep.subr.mxu1 %v9064_v46 }
 0x227   :  { %v1164_v22 = vpop.f32.mrf.mxu0 }
 0x228   :  { %v1165_v24 = vadd.f32 %v1164_v22, %v1088_v17 }
 0x229   :  { %v1166_v25 = vpop.f32.mrf.mxu0 }
 0x22a   :  { %v1167_v27 = vadd.f32 %v1166_v25, %v1090_v19  ;;  %v1241_v29 = vpop.f32.mrf.mxu1 }
 0x22b   :  { %v1242_v58 = vadd.f32 %v1241_v29, %v1165_v24 }
 0x22c   :  { %v1243_v33 = vpop.f32.mrf.mxu1 }
 0x22d   :  { %1485 = vst [vmem:[#allocation2 + $0x28] sm:$0xff] %v1242_v58  ;;  %v1244_v36 = vadd.f32 %v1243_v33, %v1167_v27 }
 0x22f   :  { %1486 = vst [vmem:[#allocation2 + $0x48] sm:$0xff] %v1244_v36 }
 0x24b   :  { %v1312_v45 = vpop.f32.mrf.mxu0 }
 0x24c   :  { %v1313_v57 = vadd.f32 %v1312_v45, %v773_v49  ;;  %v9272_v45 = vld [vmem:[#allocation32_spill] sm:$0xff] }
 0x24d   :  { %v1389_v48 = vpop.f32.mrf.mxu1  ;;  %v1314_v51 = vpop.f32.mrf.mxu0 }
 0x24e   :  { %v1315_v60 = vadd.f32 %v1314_v51, %v777_v53  ;;  %v1390_v7 = vadd.f32 %v1389_v48, %v1313_v57  ;;  %v9276_v51 = vld [vmem:[#allocation35_spill] sm:$0xff]  ;;  %v9278_v57 = vld [vmem:[#allocation36_spill] sm:$0xff] }
 0x24f   :  { %v1391_v54 = vpop.f32.mrf.mxu1 }
 0x250   :  { %v1392_v15 = vadd.f32 %v1391_v54, %v1315_v60 }
 0x269   :  { %v1395_v10 = vpop.f32.mrf.mxu1 }
 0x26b   :  { %v1397_v41 = vpop.f32.mrf.mxu1 }
 0x26e   :  { %v1627_v31 = vpop.f32.mrf.mxu1 }
 0x26f   :  { %v1628_v6 = vadd.f32 %v1627_v31, %v7382_v32 }
 0x270   :  { %v1629_v16 = vpop.f32.mrf.mxu1 }
 0x271   :  { %v1702_v23 = vadd.f32 %v1628_v6, %v1491_v56  ;;  %v1630_v62 = vadd.f32 %v1629_v16, %v7386_v44 }
 0x273   :  { %v5366_v38 = vmul.f32 -1.442695, %v1702_v23  ;;  %v1709_v40 = vadd.f32 %v1630_v62, %v1492_v34 }
 0x275   :  { %6341 = vpow2.f32 %v5366_v38  ;;  %v5367_v11 = vmul.f32 -1.442695, %v1709_v40 }
 0x277   :  { %6343 = vpow2.f32 %v5367_v11 }
 0x282   :  { %v6342_v13 = vpop.eup %6341 }
 0x283   :  { %v1706_v47 = vadd.f32 1.0, %v6342_v13 }
 0x284   :  { %v6344_v4 = vpop.eup %6343 }
 0x285   :  { %6345 = vrcp.f32 %v1706_v47  ;;  %v1713_v19 = vadd.f32 1.0, %v6344_v4  ;;  %v9275_v47 = vld [vmem:[#allocation34_spill] sm:$0xff] }
 0x286   :  { %v9279_v4 = vld [vmem:[#allocation38_spill] sm:$0xff] }
 0x287   :  { %v1318_v55 = vpop.f32.mrf.mxu0  ;;  %6347 = vrcp.f32 %v1713_v19  ;;  %v9282_v19 = vld [vmem:[#allocation41_spill] sm:$0xff] }
 0x288   :  { %v1319_v17 = vadd.f32 %v1318_v55, %v773_v49  ;;  %v1494_v55 = vld [vmem:[#allocation2 + $0x48] sm:$0xc0] }
 0x289   :  { %v1320_v0 = vpop.f32.mrf.mxu0 }
 0x28a   :  { %v1321_v24 = vadd.f32 %v1320_v0, %v777_v53  ;;  %v1396_v58 = vadd.f32 %v1395_v10, %v1319_v17  ;;  %v7399_v10 = vld [vmem:[#allocation12] sm:$0x7]  ;;  %v9277_v53 = vld [vmem:[#allocation43_spill] sm:$0xff] }
 0x28c   :  { %v1398_v54 = vadd.f32 %v1397_v41, %v1321_v24  ;;  %v7410_v41 = vrot.slane %v7399_v10, %v9266_v63  ;;  %v9274_v63 = vld [vmem:[#allocation40_spill] sm:$0xff]  ;;  %v9284_v24 = vld [vmem:[#allocation42_spill] sm:$0xff] }
 0x28f   :  { %v1466_v12 = vpop.f32.mrf.mxu0 }
 0x290   :  { %v1467_v59 = vadd.f32 %v1466_v12, %v1390_v7  ;;  %v9280_v7 = vld [vmem:[#allocation46_spill] sm:$0xff]  ;;  %v9281_v12 = vld [vmem:[#allocation39_spill] sm:$0xff] }
 0x291   :  { %v1468_v22 = vpop.f32.mrf.mxu0 }
 0x292   :  { %1481 = vst [vmem:[#allocation2 + $0x50] sm:$0xff] %v1467_v59  ;;  %v1469_v25 = vadd.f32 %v1468_v22, %v1392_v15  ;;  %v1698_v27 = vpop.f32.mrf.mxu1  ;;  %v6346_v1 = vpop.eup %6345  ;;  %v9283_v22 = vld [vmem:[#allocation49_spill] sm:$0xff] }
 0x293   :  { %v1699_v29 = vadd.f32 %v1698_v27, %v7394_v9  ;;  %v9286_v27 = vld [vmem:[#allocation52_spill] sm:$0xff] }
 0x294   :  { %1482 = vst [vmem:[#allocation2 + $0x20] sm:$0xff] %v1469_v25  ;;  %v5762_v33 = vpop.f32.mrf.mxu1  ;;  %v1472_v48 = vpop.f32.mrf.mxu0  ;;  %v9285_v25 = vld [vmem:[#allocation44_spill] sm:$0xff] }
 0x295   :  { %v1716_v36 = vmul.f32 %v6346_v1, %v1699_v29  ;;  %v1473_v31 = vadd.f32 %v1472_v48, %v1396_v58  ;;  %v6348_v16 = vpop.eup %6347  ;;  %v9287_v29 = vld [vmem:[#allocation45_spill] sm:$0xff]  ;;  %v9288_v33 = vld [vmem:[#allocation47_spill] sm:$0xff]  ;;  %v9290_v48 = vld [vmem:[#allocation48_spill] sm:$0xff] }
 0x296   :  { %v1474_v56 = vpop.f32.mrf.mxu0  ;;  %v1719_v38 = vsub.f32 1.0, %v6348_v16  ;;  %v1721_v40 = vmul.f32 0.0, %v6348_v16  ;;  %v9296_v16 = vld [vmem:[#allocation56_spill] sm:$0xff] }
 0x297   :  { %v1717_v6 = vadd.f32 %v1716_v36, %v1493_v3  ;;  %1487 = vst [vmem:[#allocation2 + $0x10] sm:$0xff] %v1473_v31  ;;  %v1475_v23 = vadd.f32 %v1474_v56, %v1398_v54  ;;  %v9289_v36 = vld [vmem:[#allocation55_spill] sm:$0xff]  ;;  %v9291_v3 = vld [vmem:[#allocation50_spill] sm:$0xff]  ;;  %v9294_v56 = vld [vmem:[#allocation53_spill] sm:$0xff] }
 0x298   :  { %v9292_v31 = vld [vmem:[#allocation58_spill] sm:$0xff]  ;;  %v9293_v54 = vld [vmem:[#allocation51_spill] sm:$0xff] }
 0x299   :  { %6349 = vtanh.f32 %v1717_v6  ;;  %1488 = vst [vmem:[#allocation2 + $0x40] sm:$0xff] %v1475_v23  ;;  %v9295_v23 = vld [vmem:[#allocation54_spill] sm:$0xff] }
 0x29e   :  { %v1495_v1 = vld [vmem:[#allocation2 + $0x10] sm:$0xc0] }
 0x2a6   :  { %v6350_v62 = vpop.eup %6349 }
 0x2a7   :  { %v1720_v34 = vmul.f32 %v6350_v62, %v1719_v38  ;;  %v9297_v38 = vld [vmem:[#allocation57_spill] sm:$0xff]  ;;  %v9298_v62 = vld [vmem:[#allocation59_spill] sm:$0xff] }
 0x2a9   :  { %v7397_v11 = vadd.f32 %v1721_v40, %v1720_v34  ;;  %v9299_v34 = vld [vmem:[#allocation60_spill] sm:$0xff] }
 0x2ab   :  { %1958 = vst [vmem:[#allocation3 + $0x18] sm:$0x3] %v7397_v11  ;;  %2079 = vmatmul.mubr.f32.vlgmr.msra.gmra.mxu0 %v7397_v11  ;;  %5831 = vmatmul.mubr.f32.vlgmr.msra.gmra.mxu1 %v7397_v11 }
 0x2ac   :  { %2240 = vmatpush1.msra.mxu0 %v7131_v35  ;;  %5834 = vmatpush3.msra.mxu1 %v7156_v37  ;;  %v7418_v35 = vrot.slane %v7399_v10, %v9268_v30  ;;  %v9270_v37 = vld [vmem:[#allocation31_spill] sm:$0xff] }
 0x2ad   :  { %2241 = vmatprep.subr.mxu0 %v7135_v18  ;;  %5835 = vmatprep.subr.mxu1 %v9064_v46  ;;  %v9271_v18 = vld [vmem:[#allocation37_spill] sm:$0xff] }
 0x2ae   :  { %2242 = vmatpush1.msra.mxu0 %v7140_v39  ;;  %5836 = vmatpush3.msra.mxu1 %v7168_v52  ;;  %v9273_v52 = vld [vmem:[#allocation33_spill] sm:$0xff] }
 0x2af   :  { %2243 = vmatprep.subr.mxu0 %v9269_v20  ;;  %5837 = vmatprep.subr.mxu1 %v9064_v46  ;;  %v9301_v20 = vld [vmem:[#allocation62_spill] sm:$0xff] }
 0x2b0   :  { %2244 = vmatpush1.msra.mxu0 %v9270_v37  ;;  %5838 = vmatpush3.msra.mxu1 %v9271_v18  ;;  %v1496_v18 = vld [vmem:[#allocation2 + $0x40] sm:$0xc0] }
 0x2b1   :  { %v1853_v13 = vpop.f32.mrf.mxu0  ;;  %2245 = vmatprep.subr.mxu0 %v9272_v45  ;;  %5839 = vmatprep.subr.mxu1 %v9064_v46 }
 0x2b2   :  { %v1854_v39 = vadd.f32 %v1853_v13, %v7410_v41  ;;  %2246 = vmatpush1.msra.mxu0 %v9273_v52  ;;  %5840 = vmatpush3.msra.mxu1 %v9274_v63 }
 0x2b3   :  { %v1855_v61 = vpop.f32.mrf.mxu0  ;;  %2247 = vmatprep.subr.mxu0 %v9275_v47  ;;  %5841 = vmatprep.subr.mxu1 %v9064_v46  ;;  %v7495_v47 = vld [vmem:[#allocation8 + $0x168] sm:$0xff] }
 0x2b4   :  { %v1929_v30 = vrot.slane %v1854_v39, 2  ;;  %v1856_v49 = vadd.f32 %v1855_v61, %v7418_v35  ;;  %2248 = vmatpush1.msra.mxu0 %v9276_v51  ;;  %5842 = vmatpush3.msra.mxu1 %v9277_v53  ;;  %v7492_v61 = vld [vmem:[#allocation8 + $0x170] sm:$0xff]  ;;  %v7507_v53 = vld [vmem:[#allocation8 + $0x160] sm:$0xff] }
 0x2b5   :  { %2249 = vmatprep.subr.mxu0 %v9278_v57  ;;  %5843 = vmatprep.subr.mxu1 %v9064_v46  ;;  %v1924_v0 = vpop.f32.mrf.mxu1  ;;  %v7505_v51 = vld [vmem:[#allocation8 + $0x150] sm:$0xff]  ;;  %v7515_v57 = vld [vmem:[#allocation8 + $0x138] sm:$0xff] }
 0x2b6   :  { %v1931_v60 = vadd.f32 %v1929_v30, %v1494_v55  ;;  %2250 = vmatpush1.msra.mxu0 %v9279_v4  ;;  %5844 = vmatpush3.msra.mxu1 %v9280_v7  ;;  %v1939_v17 = vrot.slane %v1856_v49, 2  ;;  %v7497_v30 = vld [vmem:[#allocation8 + $0x178] sm:$0xff]  ;;  %v7511_v55 = vld [vmem:[#allocation8 + $0x140] sm:$0xff]  ;;  %v7527_v7 = vld [vmem:[#allocation8 + $0x130] sm:$0xff] }
 0x2b7   :  { %2251 = vmatprep.subr.mxu0 %v9281_v12  ;;  %5845 = vmatprep.subr.mxu1 %v9064_v46  ;;  %v5797_v59 = vpop.f32.mrf.mxu1  ;;  %v7501_v49 = vld [vmem:[#allocation8 + $0x158] sm:$0xff]  ;;  %v7525_v4 = vld [vmem:[#allocation8 + $0x120] sm:$0xff]  ;;  %v7531_v12 = vld [vmem:[#allocation8 + $0x110] sm:$0xff] }
 0x2b8   :  { %v5368_v15 = vmul.f32 -1.442695, %v1931_v60  ;;  %2252 = vmatpush1.msra.mxu0 %v9282_v19  ;;  %5846 = vmatpush3.msra.mxu1 %v9283_v22  ;;  %v1941_v58 = vadd.f32 %v1939_v17, %v1495_v1  ;;  %v7517_v60 = vld [vmem:[#allocation8 + $0x148] sm:$0xff]  ;;  %v7537_v17 = vld [vmem:[#allocation8 + $0x118] sm:$0xff]  ;;  %v7545_v19 = vld [vmem:[#allocation8 + $0xf0] sm:$0xff] }
 0x2b9   :  { %2253 = vmatprep.subr.mxu0 %v9284_v24  ;;  %5847 = vmatprep.subr.mxu1 %v9064_v46  ;;  %v7541_v59 = vld [vmem:[#allocation8 + $0xf8] sm:$0xff]  ;;  %v7547_v22 = vld [vmem:[#allocation8 + $0x100] sm:$0xff]  ;;  %v7559_v1 = vld [vmem:[#allocation8 + $0xc8] sm:$0xff] }
 0x2ba   :  { %6351 = vpow2.f32 %v5368_v15  ;;  %2254 = vmatpush1.msra.mxu0 %v9285_v25  ;;  %5848 = vmatpush3.msra.mxu1 %v9286_v27  ;;  %v5369_v6 = vmul.f32 -1.442695, %v1941_v58  ;;  %v7535_v15 = vld [vmem:[#allocation8 + $0x108] sm:$0xff]  ;;  %v7551_v24 = vld [vmem:[#allocation8 + $0xe0] sm:$0xff]  ;;  %v7553_v25 = vld [vmem:[#allocation8 + $0xd8] sm:$0xff] }
 0x2bb   :  { %2255 = vmatprep.subr.mxu0 %v9287_v29  ;;  %5849 = vmatprep.subr.mxu1 %v9064_v46  ;;  %v7555_v27 = vld [vmem:[#allocation8 + $0xe8] sm:$0xff]  ;;  %v7561_v29 = vld [vmem:[#allocation8 + $0xc0] sm:$0xff]  ;;  %v7563_v58 = vld [vmem:[#allocation8 + $0xd0] sm:$0xff] }
 0x2bc   :  { %2256 = vmatpush1.msra.mxu0 %v9288_v33  ;;  %5850 = vmatpush3.msra.mxu1 %v9289_v36  ;;  %6353 = vpow2.f32 %v5369_v6  ;;  %v7567_v33 = vld [vmem:[#allocation8 + $0xb0] sm:$0xff]  ;;  %v7571_v36 = vld [vmem:[#allocation8 + $0xa8] sm:$0xff]  ;;  %v7587_v6 = vld [vmem:[#allocation8 + $0x80] sm:$0xff] }
 0x2bd   :  { %2257 = vmatprep.subr.mxu0 %v9290_v48  ;;  %5851 = vmatprep.subr.mxu1 %v9064_v46  ;;  %v7573_v48 = vld [vmem:[#allocation8 + $0xb8] sm:$0xff] }
 0x2be   :  { %2258 = vmatpush1.msra.mxu0 %v9291_v3  ;;  %5852 = vmatpush3.msra.mxu1 %v9292_v31  ;;  %v7577_v3 = vld [vmem:[#allocation8 + $0x98] sm:$0xff]  ;;  %v7581_v31 = vld [vmem:[#allocation8 + $0x90] sm:$0xff] }
 0x2bf   :  { %2259 = vmatprep.subr.mxu0 %v9293_v54  ;;  %5853 = vmatprep.subr.mxu1 %v9064_v46  ;;  %v7583_v54 = vld [vmem:[#allocation8 + $0xa0] sm:$0xff] }
 0x2c0   :  { %2260 = vmatpush1.msra.mxu0 %v9294_v56  ;;  %5854 = vmatpush3.msra.mxu1 %v7258_v5  ;;  %v9300_v5 = vld [vmem:[#allocation61_spill] sm:$0xff]  ;;  %v7591_v56 = vld [vmem:[#allocation8 + $0x78] sm:$0xff] }
 0x2c1   :  { %2261 = vmatprep.subr.mxu0 %v9295_v23  ;;  %5855 = vmatprep.subr.mxu1 %v9064_v46  ;;  %v7593_v23 = vld [vmem:[#allocation8 + $0x88] sm:$0xff] }
 0x2c2   :  { %2262 = vmatpush1.msra.mxu0 %v9296_v16  ;;  %5856 = vmatpush3.msra.mxu1 %v7268_v2  ;;  %v7597_v16 = vld [vmem:[#allocation8 + $0x68] sm:$0xff] }
 0x2c3   :  { %2263 = vmatprep.subr.mxu0 %v9297_v38  ;;  %5857 = vmatprep.subr.mxu1 %v9064_v46  ;;  %v7601_v38 = vld [vmem:[#allocation8 + $0x60] sm:$0xff] }
 0x2c4   :  { %2264 = vmatpush1.msra.mxu0 %v9298_v62  ;;  %5858 = vmatpush3.msra.mxu1 %v7278_v43  ;;  %v7481_v43 = vrot.slane %v7399_v10, %v7324_v42  ;;  %v7603_v62 = vld [vmem:[#allocation8 + $0x70] sm:$0xff] }
 0x2c5   :  { %2265 = vmatprep.subr.mxu0 %v9299_v34  ;;  %5859 = vmatprep.subr.mxu1 %v9064_v46  ;;  %v7607_v34 = vld [vmem:[#allocation8 + $0x50] sm:$0xff] }
 0x2c6   :  { %2266 = vmatpush1.msra.mxu0 %v9300_v5  ;;  %5860 = vmatpush3.msra.mxu1 %v7286_v26  ;;  %v7611_v5 = vld [vmem:[#allocation8 + $0x48] sm:$0xff] }
 0x2c7   :  { %v6352_v40 = vpop.eup %6351  ;;  %2267 = vmatprep.subr.mxu0 %v7265_v28  ;;  %5861 = vmatprep.subr.mxu1 %v9064_v46 }
 0x2c8   :  { %v1935_v2 = vadd.f32 1.0, %v6352_v40  ;;  %2268 = vmatpush1.msra.mxu0 %v9301_v20  ;;  %5862 = vmatpush3.msra.mxu1 %v7292_v21  ;;  %v7613_v40 = vld [vmem:[#allocation8 + $0x58] sm:$0xff]  ;;  %v7621_v20 = vld [vmem:[#allocation8 + $0x30] sm:$0xff] }
 0x2c9   :  { %2269 = vmatprep.subr.mxu0 %v7275_v14  ;;  %5863 = vmatprep.subr.mxu1 %v9064_v46  ;;  %v1925_v14 = vadd.f32 %v1924_v0, %v7481_v43  ;;  %v6354_v26 = vpop.eup %6353  ;;  %v7521_v0 = vld [vmem:[#allocation8 + $0x128] sm:$0xff]  ;;  %9302 = vst [vmem:[#allocation27_spill] sm:$0xff] %v7613_v40  ;;  %9304 = vst [vmem:[#allocation29_spill] sm:$0xff] %v7621_v20 }
 0x2ca   :  { %6355 = vrcp.f32 %v1935_v2  ;;  %2270 = vmatpush1.msra.mxu0 %v7281_v50  ;;  %2303 = vmatprep.mubr.f32.mxu0 %v9064_v46  ;;  %v1945_v21 = vadd.f32 1.0, %v6354_v26  ;;  %v7617_v2 = vld [vmem:[#allocation8 + $0x38] sm:$0xff]  ;;  %v7627_v26 = vld [vmem:[#allocation8 + $0x20] sm:$0xff] }
 0x2cb   :  { %5864 = vmatpush3.msra.mxu1 %v7297_v8  ;;  %5865 = vmatprep.mubr.msk.f32.mxu1 %vm6750_vm0, %v9064_v46  ;;  %v1949_v28 = vrot.slane %v1925_v14, 2  ;;  %9303 = vst [vmem:[#allocation28_spill] sm:$0xff] %v7617_v2  ;;  %v7623_v14 = vld [vmem:[#allocation8 + $0x40] sm:$0xff]  ;;  %9306 = vst [vmem:[#allocation31_spill] sm:$0xff] %v7627_v26 }
 0x2cc   :  { %5868 = vmatprep.subr.mxu1 %v9064_v46  ;;  %6357 = vrcp.f32 %v1945_v21  ;;  %2471 = vmatprep.subr.mxu0 %v7492_v61  ;;  %9305 = vst [vmem:[#allocation30_spill] sm:$0xff] %v7623_v14  ;;  %v7631_v21 = vld [vmem:[#allocation8 + $0x18] sm:$0xff] }
 0x2cd   :  { %9307 = vst [vmem:[#allocation37_spill] sm:$0xff] %v7631_v21 }
 0x2d7   :  { %v6356_v37 = vpop.eup %6355 }
 0x2d8   :  { %v1951_v50 = vmul.f32 %v6356_v37, %v1949_v28  ;;  %v7633_v28 = vld [vmem:[#allocation8 + $0x28] sm:$0xff] }
 0x2d9   :  { %v6358_v8 = vpop.eup %6357  ;;  %9308 = vst [vmem:[#allocation32_spill] sm:$0xff] %v7633_v28  ;;  %v7637_v37 = vld [vmem:[#allocation8 + $0x8] sm:$0xff] }
 0x2da   :  { %v1952_v13 = vadd.f32 %v1951_v50, %v1496_v18  ;;  %v1954_v45 = vsub.f32 1.0, %v6358_v8  ;;  %v1956_v63 = vmul.f32 0.0, %v6358_v8  ;;  %9309 = vst [vmem:[#allocation33_spill] sm:$0xff] %v7637_v37  ;;  %v7641_v50 = vld [vmem:[#allocation8] sm:$0xff]  ;;  %v7643_v18 = vld [vmem:[#allocation8 + $0x10] sm:$0xff] }
 0x2db   :  { %9310 = vst [vmem:[#allocation40_spill] sm:$0xff] %v7641_v50  ;;  %9311 = vst [vmem:[#allocation34_spill] sm:$0xff] %v7643_v18 }
 0x2dc   :  { %6359 = vtanh.f32 %v1952_v13  ;;  %v7652_v13 = vld [vmem:[#allocation11 + $0x170] sm:$0xff] }
 0x2dd   :  { %9312 = vst [vmem:[#allocation35_spill] sm:$0xff] %v7652_v13 }
 0x2e9   :  { %v6360_v39 = vpop.eup %6359 }
 0x2ea   :  { %v1955_v52 = vmul.f32 %v6360_v39, %v1954_v45 }
 0x2ec   :  { %v7485_v42 = vadd.f32 %v1956_v63, %v1955_v52 }
 0x2ee   :  { %1959 = vst [vmem:[#allocation3] sm:$0xc0] %v7485_v42  ;;  %v2237_v10 = vrot.slane %v7485_v42, 6 }
 0x2f0   :  { %2304 = vmatmul.mubr.f32.vlgmr.msra.gmra.mxu0 %v2237_v10  ;;  %5866 = vmatmul.mubr.f32.vlgmr.msra.gmra.mxu1 %v2237_v10 }
 0x2f1   :  { %2535 = vmatprep.mubr.f32.mxu0 %v9064_v46  ;;  %5900 = vmatprep.mubr.msk.f32.mxu1 %vm6750_vm0, %v9064_v46 }
 0x2f2   :  { %2472 = vmatpush1.msra.mxu0 %v7495_v47  ;;  %5869 = vmatpush3.msra.mxu1 %v7497_v30 }
 0x2f3   :  { %2473 = vmatprep.subr.mxu0 %v7501_v49  ;;  %5870 = vmatprep.subr.mxu1 %v9064_v46 }
 0x2f4   :  { %2474 = vmatpush1.msra.mxu0 %v7505_v51  ;;  %5871 = vmatpush3.msra.mxu1 %v7507_v53 }
 0x2f5   :  { %2475 = vmatprep.subr.mxu0 %v7511_v55  ;;  %5872 = vmatprep.subr.mxu1 %v9064_v46 }
 0x2f6   :  { %2476 = vmatpush1.msra.mxu0 %v7515_v57  ;;  %5873 = vmatpush3.msra.mxu1 %v7517_v60 }
 0x2f7   :  { %2477 = vmatprep.subr.mxu0 %v7521_v0  ;;  %5874 = vmatprep.subr.mxu1 %v9064_v46 }
 0x2f8   :  { %2478 = vmatpush1.msra.mxu0 %v7525_v4  ;;  %5875 = vmatpush3.msra.mxu1 %v7527_v7 }
 0x2f9   :  { %2479 = vmatprep.subr.mxu0 %v7531_v12  ;;  %5876 = vmatprep.subr.mxu1 %v9064_v46 }
 0x2fa   :  { %2480 = vmatpush1.msra.mxu0 %v7535_v15  ;;  %5877 = vmatpush3.msra.mxu1 %v7537_v17 }
 0x2fb   :  { %2481 = vmatprep.subr.mxu0 %v7541_v59  ;;  %5878 = vmatprep.subr.mxu1 %v9064_v46 }
 0x2fc   :  { %2482 = vmatpush1.msra.mxu0 %v7545_v19  ;;  %5879 = vmatpush3.msra.mxu1 %v7547_v22 }
 0x2fd   :  { %2483 = vmatprep.subr.mxu0 %v7551_v24  ;;  %5880 = vmatprep.subr.mxu1 %v9064_v46 }
 0x2fe   :  { %2484 = vmatpush1.msra.mxu0 %v7553_v25  ;;  %5881 = vmatpush3.msra.mxu1 %v7555_v27 }
 0x2ff   :  { %2485 = vmatprep.subr.mxu0 %v7559_v1  ;;  %5882 = vmatprep.subr.mxu1 %v9064_v46 }
 0x300   :  { %2486 = vmatpush1.msra.mxu0 %v7561_v29  ;;  %5883 = vmatpush3.msra.mxu1 %v7563_v58 }
 0x301   :  { %2487 = vmatprep.subr.mxu0 %v7567_v33  ;;  %5884 = vmatprep.subr.mxu1 %v9064_v46 }
 0x302   :  { %2488 = vmatpush1.msra.mxu0 %v7571_v36  ;;  %5885 = vmatpush3.msra.mxu1 %v7573_v48 }
 0x303   :  { %2489 = vmatprep.subr.mxu0 %v7577_v3  ;;  %5886 = vmatprep.subr.mxu1 %v9064_v46 }
 0x304   :  { %2490 = vmatpush1.msra.mxu0 %v7581_v31  ;;  %5887 = vmatpush3.msra.mxu1 %v7583_v54 }
 0x305   :  { %2491 = vmatprep.subr.mxu0 %v7587_v6  ;;  %5888 = vmatprep.subr.mxu1 %v9064_v46 }
 0x306   :  { %2492 = vmatpush1.msra.mxu0 %v7591_v56  ;;  %5889 = vmatpush3.msra.mxu1 %v7593_v23 }
 0x307   :  { %2493 = vmatprep.subr.mxu0 %v7597_v16  ;;  %5890 = vmatprep.subr.mxu1 %v9064_v46 }
 0x308   :  { %2494 = vmatpush1.msra.mxu0 %v7601_v38  ;;  %5891 = vmatpush3.msra.mxu1 %v7603_v62 }
 0x309   :  { %2495 = vmatprep.subr.mxu0 %v7607_v34  ;;  %5892 = vmatprep.subr.mxu1 %v9064_v46 }
 0x30a   :  { %2496 = vmatpush1.msra.mxu0 %v7611_v5  ;;  %5893 = vmatpush3.msra.mxu1 %v7613_v40 }
 0x30b   :  { %2497 = vmatprep.subr.mxu0 %v7617_v2  ;;  %5894 = vmatprep.subr.mxu1 %v9064_v46 }
 0x30c   :  { %2498 = vmatpush1.msra.mxu0 %v7621_v20  ;;  %5895 = vmatpush3.msra.mxu1 %v7623_v14 }
 0x30d   :  { %2499 = vmatprep.subr.mxu0 %v7627_v26  ;;  %5896 = vmatprep.subr.mxu1 %v9064_v46 }
 0x30e   :  { %2500 = vmatpush1.msra.mxu0 %v7631_v21  ;;  %5897 = vmatpush3.msra.mxu1 %v7633_v28  ;;  %v1960_v28 = vld [vmem:[#allocation2 + $0x30] sm:$0xc] }
 0x30f   :  { %2501 = vmatprep.subr.mxu0 %v7637_v37  ;;  %5898 = vmatprep.subr.mxu1 %v9064_v46 }
 0x310   :  { %2502 = vmatpush1.msra.mxu0 %v7641_v50  ;;  %5899 = vmatpush3.msra.mxu1 %v7643_v18  ;;  %v1961_v18 = vld [vmem:[#allocation2] sm:$0xc] }
 0x311   :  { %5903 = vmatprep.subr.mxu1 %v9064_v46  ;;  %2695 = vmatprep.subr.mxu0 %v7652_v13 }
 0x36b   :  { %v2080_v8 = vpop.f32.mrf.mxu0  ;;  %v2151_v45 = vpop.f32.mrf.mxu1 }
 0x36c   :  { %v2081_v39 = vadd.f32 %v2080_v8, %v7382_v32  ;;  %v2152_v8 = vadd.f32 %v2151_v45, %v7394_v9  ;;  %v7675_v45 = vld [vmem:[#allocation11 + $0x140] sm:$0xff] }
 0x36d   :  { %v2082_v52 = vpop.f32.mrf.mxu0  ;;  %v5832_v63 = vpop.f32.mrf.mxu1  ;;  %9315 = vst [vmem:[#allocation38_spill] sm:$0xff] %v7675_v45 }
 0x36e   :  { %v2156_v10 = vrot.slane %v2081_v39, 6  ;;  %v2083_v37 = vadd.f32 %v2082_v52, %v7386_v44  ;;  %v2176_v63 = vrot.slane %v2152_v8, 6  ;;  %v1962_v52 = vld [vmem:[#allocation2 + $0x58] sm:$0xc]  ;;  %v7679_v8 = vld [vmem:[#allocation11 + $0x138] sm:$0xff] }
 0x36f   :  { %9317 = vst [vmem:[#allocation46_spill] sm:$0xff] %v7679_v8 }
 0x370   :  { %v2158_v21 = vadd.f32 %v2156_v10, %v1960_v28  ;;  %v2166_v26 = vrot.slane %v2083_v37, 6  ;;  %v2184_v37 = vrot.slane %v7397_v11, 6  ;;  %v7671_v11 = vld [vmem:[#allocation11 + $0x160] sm:$0xff]  ;;  %v9316_v10 = vmov 0.0  }
 0x371   :  { %9314 = vst [vmem:[#allocation36_spill] sm:$0xff] %v7671_v11 }
 0x372   :  { %v5370_v50 = vmul.f32 -1.442695, %v2158_v21  ;;  %v2168_v46 = vadd.f32 %v2166_v26, %v1961_v18  ;;  %v7663_v18 = vld [vmem:[#allocation11 + $0x168] sm:$0xff] }
 0x374   :  { %6361 = vpow2.f32 %v5370_v50  ;;  %v5371_v14 = vmul.f32 -1.442695, %v2168_v46 }
 0x376   :  { %6363 = vpow2.f32 %v5371_v14 }
 0x381   :  { %v6362_v20 = vpop.eup %6361 }
 0x382   :  { %v2162_v13 = vadd.f32 1.0, %v6362_v20 }
 0x383   :  { %v6364_v2 = vpop.eup %6363 }
 0x384   :  { %6365 = vrcp.f32 %v2162_v13  ;;  %v2172_v32 = vadd.f32 1.0, %v6364_v2  ;;  %v7665_v13 = vld [vmem:[#allocation11 + $0x178] sm:$0xff] }
 0x386   :  { %6367 = vrcp.f32 %v2172_v32  ;;  %v7667_v32 = vld [vmem:[#allocation11 + $0x158] sm:$0xff] }
 0x391   :  { %v6366_v39 = vpop.eup %6365 }
 0x392   :  { %v2178_v40 = vmul.f32 %v6366_v39, %v2176_v63  ;;  %v7681_v63 = vld [vmem:[#allocation11 + $0x148] sm:$0xff] }
 0x393   :  { %v6368_v21 = vpop.eup %6367  ;;  %9318 = vst [vmem:[#allocation39_spill] sm:$0xff] %v7681_v63  ;;  %v7685_v39 = vld [vmem:[#allocation11 + $0x128] sm:$0xff] }
 0x394   :  { %v2179_v28 = vadd.f32 %v2178_v40, %v1962_v52  ;;  %v2181_v26 = vsub.f32 1.0, %v6368_v21  ;;  %v2186_v50 = vmul.f32 %v6368_v21, %v2184_v37  ;;  %v7669_v40 = vld [vmem:[#allocation11 + $0x150] sm:$0xff]  ;;  %9319 = vst [vmem:[#allocation41_spill] sm:$0xff] %v7685_v39  ;;  %v7689_v52 = vld [vmem:[#allocation11 + $0x120] sm:$0xff] }
 0x395   :  { %9313 = vst [vmem:[#allocation43_spill] sm:$0xff] %v7669_v40  ;;  %9320 = vst [vmem:[#allocation49_spill] sm:$0xff] %v7689_v52  ;;  %v7695_v21 = vld [vmem:[#allocation11 + $0x110] sm:$0xff] }
 0x396   :  { %6369 = vtanh.f32 %v2179_v28  ;;  %v7691_v28 = vld [vmem:[#allocation11 + $0x130] sm:$0xff]  ;;  %9322 = vst [vmem:[#allocation44_spill] sm:$0xff] %v7695_v21 }
 0x397   :  { %9321 = vst [vmem:[#allocation42_spill] sm:$0xff] %v7691_v28 }
 0x3a3   :  { %v6370_v46 = vpop.eup %6369 }
 0x3a4   :  { %v2182_v14 = vmul.f32 %v6370_v46, %v2181_v26  ;;  %v7701_v46 = vld [vmem:[#allocation11 + $0x108] sm:$0xff] }
 0x3a5   :  { %9323 = vst [vmem:[#allocation52_spill] sm:$0xff] %v7701_v46 }
 0x3a6   :  { %v7659_v20 = vadd.f32 %v2186_v50, %v2182_v14  ;;  %v7703_v14 = vld [vmem:[#allocation11 + $0x118] sm:$0xff] }
 0x3a7   :  { %9324 = vst [vmem:[#allocation45_spill] sm:$0xff] %v7703_v14 }
 0x3a8   :  { %2412 = vst [vmem:[#allocation3 + $0x18] sm:$0xc] %v7659_v20  ;;  %v2469_v2 = vrot.slane %v7659_v20, 2 }
 0x3aa   :  { %2536 = vmatmul.mubr.f32.vlgmr.msra.gmra.mxu0 %v2469_v2  ;;  %5901 = vmatmul.mubr.f32.vlgmr.msra.gmra.mxu1 %v2469_v2  ;;  %v7708_v2 = vld [vmem:[#allocation11 + $0xf8] sm:$0xff] }
 0x3ab   :  { %2696 = vmatpush1.msra.mxu0 %v7663_v18  ;;  %5904 = vmatpush3.msra.mxu1 %v7665_v13  ;;  %9325 = vst [vmem:[#allocation47_spill] sm:$0xff] %v7708_v2 }
 0x3ac   :  { %2697 = vmatprep.subr.mxu0 %v7667_v32  ;;  %5905 = vmatprep.subr.mxu1 %v9316_v10 }
 0x3ad   :  { %2698 = vmatpush1.msra.mxu0 %v7669_v40  ;;  %5906 = vmatpush3.msra.mxu1 %v7671_v11 }
 0x3ae   :  { %2699 = vmatprep.subr.mxu0 %v7675_v45  ;;  %5907 = vmatprep.subr.mxu1 %v9316_v10  ;;  %v7714_v45 = vld [vmem:[#allocation11 + $0x100] sm:$0xff] }
 0x3af   :  { %2700 = vmatpush1.msra.mxu0 %v7679_v8  ;;  %5908 = vmatpush3.msra.mxu1 %v7681_v63  ;;  %9327 = vst [vmem:[#allocation48_spill] sm:$0xff] %v7714_v45 }
 0x3b0   :  { %v2305_v37 = vpop.f32.mrf.mxu0  ;;  %v7697_v26 = vpop.f32.mrf.mxu1  ;;  %2701 = vmatprep.subr.mxu0 %v7685_v39  ;;  %5909 = vmatprep.subr.mxu1 %v9316_v10  ;;  %v7712_v39 = vld [vmem:[#allocation11 + $0xf0] sm:$0xff] }
 0x3b1   :  { %v2306_v50 = vadd.f32 %v2305_v37, %v7410_v41  ;;  %2702 = vmatpush1.msra.mxu0 %v7689_v52  ;;  %5910 = vmatpush3.msra.mxu1 %v7691_v28  ;;  %9326 = vst [vmem:[#allocation55_spill] sm:$0xff] %v7712_v39  ;;  %v7719_v37 = vld [vmem:[#allocation11 + $0xe0] sm:$0xff] }
 0x3b2   :  { %v2307_v63 = vpop.f32.mrf.mxu0  ;;  %v5867_v8 = vpop.f32.mrf.mxu1  ;;  %2703 = vmatprep.subr.mxu0 %v7695_v21  ;;  %5911 = vmatprep.subr.mxu1 %v9316_v10  ;;  %9328 = vst [vmem:[#allocation50_spill] sm:$0xff] %v7719_v37  ;;  %v1963_v28 = vld [vmem:[#allocation2 + $0x48] sm:$0x30]  ;;  %v7725_v21 = vld [vmem:[#allocation11 + $0xe8] sm:$0xff] }
 0x3b3   :  { %v2381_v11 = vrot.slane %v2306_v50, 4  ;;  %v2308_v40 = vadd.f32 %v2307_v63, %v7418_v35  ;;  %2704 = vmatpush1.msra.mxu0 %v7701_v46  ;;  %5912 = vmatpush3.msra.mxu1 %v7703_v14  ;;  %v7723_v8 = vld [vmem:[#allocation11 + $0xd8] sm:$0xff]  ;;  %9330 = vst [vmem:[#allocation51_spill] sm:$0xff] %v7725_v21  ;;  %v7729_v63 = vld [vmem:[#allocation11 + $0xc8] sm:$0xff]  ;;  %v7733_v50 = vld [vmem:[#allocation11 + $0xc0] sm:$0xff] }
 0x3b4   :  { %2705 = vmatprep.subr.mxu0 %v7708_v2  ;;  %5913 = vmatprep.subr.mxu1 %v9316_v10  ;;  %9329 = vst [vmem:[#allocation58_spill] sm:$0xff] %v7723_v8  ;;  %9331 = vst [vmem:[#allocation53_spill] sm:$0xff] %v7729_v63  ;;  %v7735_v2 = vld [vmem:[#allocation11 + $0xd0] sm:$0xff] }
 0x3b5   :  { %v2383_v52 = vadd.f32 %v2381_v11, %v1963_v28  ;;  %2706 = vmatpush1.msra.mxu0 %v7712_v39  ;;  %5914 = vmatpush3.msra.mxu1 %v7714_v45  ;;  %9332 = vst [vmem:[#allocation54_spill] sm:$0xff] %v7733_v50  ;;  %9333 = vst [vmem:[#allocation56_spill] sm:$0xff] %v7735_v2  ;;  %v2391_v46 = vrot.slane %v2308_v40, 4  ;;  %v7739_v11 = vld [vmem:[#allocation11 + $0xb0] sm:$0xff]  ;;  %v7743_v28 = vld [vmem:[#allocation11 + $0xa8] sm:$0xff] }
 0x3b6   :  { %2707 = vmatprep.subr.mxu0 %v7719_v37  ;;  %5915 = vmatprep.subr.mxu1 %v9316_v10  ;;  %9334 = vst [vmem:[#allocation57_spill] sm:$0xff] %v7739_v11  ;;  %9335 = vst [vmem:[#allocation59_spill] sm:$0xff] %v7743_v28  ;;  %v7745_v37 = vld [vmem:[#allocation11 + $0xb8] sm:$0xff] }
 0x3b7   :  { %v5372_v14 = vmul.f32 -1.442695, %v2383_v52  ;;  %2708 = vmatpush1.msra.mxu0 %v7723_v8  ;;  %5916 = vmatpush3.msra.mxu1 %v7725_v21  ;;  %9336 = vst [vmem:[#allocation60_spill] sm:$0xff] %v7745_v37  ;;  %v7749_v40 = vld [vmem:[#allocation11 + $0x98] sm:$0xff]  ;;  %v1964_v52 = vld [vmem:[#allocation2 + $0x10] sm:$0x30] }
 0x3b8   :  { %2709 = vmatprep.subr.mxu0 %v7729_v63  ;;  %5917 = vmatprep.subr.mxu1 %v9316_v10  ;;  %9337 = vst [vmem:[#allocation61_spill] sm:$0xff] %v7749_v40  ;;  %v7753_v21 = vld [vmem:[#allocation11 + $0x90] sm:$0xff]  ;;  %v7755_v63 = vld [vmem:[#allocation11 + $0xa0] sm:$0xff]  ;;  %v2393_v8 = vadd.f32 %v2391_v46, %v1964_v52 }
 0x3b9   :  { %6371 = vpow2.f32 %v5372_v14  ;;  %2710 = vmatpush1.msra.mxu0 %v7733_v50  ;;  %5918 = vmatpush3.msra.mxu1 %v7735_v2  ;;  %9338 = vst [vmem:[#allocation62_spill] sm:$0xff] %v7753_v21  ;;  %9339 = vst [vmem:[#allocation63_spill] sm:$0xff] %v7755_v63  ;;  %v7759_v14 = vld [vmem:[#allocation11 + $0x80] sm:$0xff]  ;;  %v7763_v2 = vld [vmem:[#allocation11 + $0x78] sm:$0xff] }
 0x3ba   :  { %2711 = vmatprep.subr.mxu0 %v7739_v11  ;;  %5919 = vmatprep.subr.mxu1 %v9316_v10  ;;  %9340 = vst [vmem:[#allocation64_spill] sm:$0xff] %v7759_v14  ;;  %9341 = vst [vmem:[#allocation65_spill] sm:$0xff] %v7763_v2  ;;  %v7765_v11 = vld [vmem:[#allocation11 + $0x88] sm:$0xff]  ;;  %v7773_v46 = vld [vmem:[#allocation11 + $0x60] sm:$0xff] }
 0x3bb   :  { %2712 = vmatpush1.msra.mxu0 %v7743_v28  ;;  %5920 = vmatpush3.msra.mxu1 %v7745_v37  ;;  %9342 = vst [vmem:[#allocation66_spill] sm:$0xff] %v7765_v11  ;;  %v7769_v50 = vld [vmem:[#allocation11 + $0x68] sm:$0xff]  ;;  %9344 = vst [vmem:[#allocation68_spill] sm:$0xff] %v7773_v46  ;;  %v7775_v52 = vld [vmem:[#allocation11 + $0x70] sm:$0xff] }
 0x3bc   :  { %2713 = vmatprep.subr.mxu0 %v7749_v40  ;;  %5921 = vmatprep.subr.mxu1 %v9316_v10  ;;  %9343 = vst [vmem:[#allocation67_spill] sm:$0xff] %v7769_v50  ;;  %9345 = vst [vmem:[#allocation69_spill] sm:$0xff] %v7775_v52  ;;  %v5373_v40 = vmul.f32 -1.442695, %v2393_v8  ;;  %v7779_v37 = vld [vmem:[#allocation11 + $0x50] sm:$0xff] }
 0x3bd   :  { %2714 = vmatpush1.msra.mxu0 %v7753_v21  ;;  %5922 = vmatpush3.msra.mxu1 %v7755_v63  ;;  %9346 = vst [vmem:[#allocation70_spill] sm:$0xff] %v7779_v37  ;;  %v7783_v63 = vld [vmem:[#allocation11 + $0x48] sm:$0xff]  ;;  %v7789_v21 = vld [vmem:[#allocation11 + $0x38] sm:$0xff]  ;;  %v7793_v8 = vld [vmem:[#allocation11 + $0x30] sm:$0xff] }
 0x3be   :  { %2715 = vmatprep.subr.mxu0 %v7759_v14  ;;  %5923 = vmatprep.subr.mxu1 %v9316_v10  ;;  %9347 = vst [vmem:[#allocation71_spill] sm:$0xff] %v7783_v63  ;;  %v7785_v14 = vld [vmem:[#allocation11 + $0x58] sm:$0xff]  ;;  %9349 = vst [vmem:[#allocation73_spill] sm:$0xff] %v7789_v21  ;;  %6373 = vpow2.f32 %v5373_v40 }
 0x3bf   :  { %2716 = vmatpush1.msra.mxu0 %v7763_v2  ;;  %5924 = vmatpush3.msra.mxu1 %v7765_v11  ;;  %9348 = vst [vmem:[#allocation72_spill] sm:$0xff] %v7785_v14  ;;  %9350 = vst [vmem:[#allocation74_spill] sm:$0xff] %v7793_v8  ;;  %v7795_v11 = vld [vmem:[#allocation11 + $0x40] sm:$0xff]  ;;  %v2408_v2 = vrot.slane %v7485_v42, 2  ;;  %v9358_v42 = vld [vmem:[#allocation27_spill] sm:$0xff] }
 0x3c0   :  { %2717 = vmatprep.subr.mxu0 %v7769_v50  ;;  %5925 = vmatprep.subr.mxu1 %v9316_v10  ;;  %9351 = vst [vmem:[#allocation75_spill] sm:$0xff] %v7795_v11  ;;  %v7799_v50 = vld [vmem:[#allocation11 + $0x20] sm:$0xff] }
 0x3c1   :  { %2718 = vmatpush1.msra.mxu0 %v7773_v46  ;;  %5926 = vmatpush3.msra.mxu1 %v7775_v52  ;;  %9352 = vst [vmem:[#allocation76_spill] sm:$0xff] %v7799_v50  ;;  %v7803_v52 = vld [vmem:[#allocation11 + $0x18] sm:$0xff]  ;;  %v7809_v46 = vld [vmem:[#allocation11 + $0x8] sm:$0xff] }
 0x3c2   :  { %2719 = vmatprep.subr.mxu0 %v7779_v37  ;;  %5927 = vmatprep.subr.mxu1 %v9316_v10  ;;  %9353 = vst [vmem:[#allocation77_spill] sm:$0xff] %v7803_v52  ;;  %v7805_v37 = vld [vmem:[#allocation11 + $0x28] sm:$0xff]  ;;  %9355 = vst [vmem:[#allocation79_spill] sm:$0xff] %v7809_v46 }
 0x3c3   :  { %2720 = vmatpush1.msra.mxu0 %v7783_v63  ;;  %5928 = vmatpush3.msra.mxu1 %v7785_v14  ;;  %9354 = vst [vmem:[#allocation78_spill] sm:$0xff] %v7805_v37  ;;  %v7813_v14 = vld [vmem:[#allocation11] sm:$0xff]  ;;  %v7817_v63 = vld [vmem:[#allocation11 + $0x10] sm:$0xff] }
 0x3c4   :  { %2721 = vmatprep.subr.mxu0 %v7789_v21  ;;  %5929 = vmatprep.subr.mxu1 %v9316_v10  ;;  %9356 = vst [vmem:[#allocation80_spill] sm:$0xff] %v7813_v14  ;;  %9357 = vst [vmem:[#allocation81_spill] sm:$0xff] %v7817_v63 }
 0x3c5   :  { %2722 = vmatpush1.msra.mxu0 %v7793_v8  ;;  %5930 = vmatpush3.msra.mxu1 %v7795_v11 }
 0x3c6   :  { %v6372_v40 = vpop.eup %6371  ;;  %2723 = vmatprep.subr.mxu0 %v7799_v50  ;;  %5931 = vmatprep.subr.mxu1 %v9316_v10 }
 0x3c7   :  { %v2387_v21 = vadd.f32 1.0, %v6372_v40  ;;  %2724 = vmatpush1.msra.mxu0 %v7803_v52  ;;  %5932 = vmatpush3.msra.mxu1 %v7805_v37 }
 0x3c8   :  { %2725 = vmatprep.subr.mxu0 %v7809_v46  ;;  %5933 = vmatprep.subr.mxu1 %v9316_v10  ;;  %v2377_v46 = vadd.f32 %v7697_v26, %v7481_v43 }
 0x3c9   :  { %6375 = vrcp.f32 %v2387_v21  ;;  %2726 = vmatpush1.msra.mxu0 %v7813_v14  ;;  %2759 = vmatprep.mubr.f32.mxu0 %v9316_v10  ;;  %v1965_v14 = vld [vmem:[#allocation2 + $0x40] sm:$0x30] }
 0x3ca   :  { %5934 = vmatpush3.msra.mxu1 %v7817_v63  ;;  %5935 = vmatprep.mubr.msk.f32.mxu1 %vm6750_vm0, %v9316_v10  ;;  %v2401_v52 = vrot.slane %v2377_v46, 4  ;;  %v9373_v46 = vld [vmem:[#allocation46_spill] sm:$0xff] }
 0x3cb   :  { %2927 = vmatprep.subr.mxu0 %v7492_v61  ;;  %5938 = vmatprep.subr.mxu1 %v9316_v10  ;;  %v6374_v40 = vpop.eup %6373 }
 0x3cc   :  { %v2397_v37 = vadd.f32 1.0, %v6374_v40  ;;  %v9376_v40 = vld [vmem:[#allocation49_spill] sm:$0xff] }
 0x3ce   :  { %6377 = vrcp.f32 %v2397_v37 }
 0x3d6   :  { %v6376_v21 = vpop.eup %6375 }
 0x3d7   :  { %v2403_v50 = vmul.f32 %v6376_v21, %v2401_v52  ;;  %v9374_v52 = vld [vmem:[#allocation39_spill] sm:$0xff]  ;;  %v9377_v21 = vld [vmem:[#allocation42_spill] sm:$0xff] }
 0x3d9   :  { %v2404_v11 = vadd.f32 %v2403_v50, %v1965_v14  ;;  %v9372_v14 = vld [vmem:[#allocation38_spill] sm:$0xff] }
 0x3db   :  { %6379 = vtanh.f32 %v2404_v11  ;;  %v6378_v63 = vpop.eup %6377 }
 0x3dc   :  { %v2406_v8 = vsub.f32 1.0, %v6378_v63  ;;  %v2410_v45 = vmul.f32 %v6378_v63, %v2408_v2 }
 0x3e8   :  { %v6380_v28 = vpop.eup %6379 }
 0x3e9   :  { %v2407_v61 = vmul.f32 %v6380_v28, %v2406_v8  ;;  %v9371_v28 = vld [vmem:[#allocation36_spill] sm:$0xff] }
 0x3eb   :  { %v7831_v39 = vadd.f32 %v2410_v45, %v2407_v61  ;;  %v2640_v45 = vrot.slane %v7659_v20, 6  ;;  %v9370_v20 = vld [vmem:[#allocation43_spill] sm:$0xff] }
 0x3ed   :  { %2413 = vst [vmem:[#allocation3] sm:$0x30] %v7831_v39  ;;  %v2693_v26 = vrot.slane %v7831_v39, 4 }
 0x3ef   :  { %2760 = vmatmul.mubr.f32.vlgmr.msra.gmra.mxu0 %v2693_v26  ;;  %5936 = vmatmul.mubr.f32.vlgmr.msra.gmra.mxu1 %v2693_v26 }
 0x3f0   :  { %2928 = vmatpush1.msra.mxu0 %v7495_v47  ;;  %5939 = vmatpush3.msra.mxu1 %v7497_v30  ;;  %v9359_v47 = vld [vmem:[#allocation28_spill] sm:$0xff]  ;;  %v9360_v30 = vld [vmem:[#allocation29_spill] sm:$0xff] }
 0x3f1   :  { %2929 = vmatprep.subr.mxu0 %v7501_v49  ;;  %5940 = vmatprep.subr.mxu1 %v9316_v10  ;;  %v9361_v49 = vld [vmem:[#allocation30_spill] sm:$0xff] }
 0x3f2   :  { %2930 = vmatpush1.msra.mxu0 %v7505_v51  ;;  %5941 = vmatpush3.msra.mxu1 %v7507_v53  ;;  %v9362_v51 = vld [vmem:[#allocation31_spill] sm:$0xff]  ;;  %v9363_v53 = vld [vmem:[#allocation37_spill] sm:$0xff] }
 0x3f3   :  { %2931 = vmatprep.subr.mxu0 %v7511_v55  ;;  %5942 = vmatprep.subr.mxu1 %v9316_v10  ;;  %v9364_v55 = vld [vmem:[#allocation32_spill] sm:$0xff] }
 0x3f4   :  { %2932 = vmatpush1.msra.mxu0 %v7515_v57  ;;  %5943 = vmatpush3.msra.mxu1 %v7517_v60  ;;  %v9365_v57 = vld [vmem:[#allocation33_spill] sm:$0xff]  ;;  %v9366_v60 = vld [vmem:[#allocation40_spill] sm:$0xff] }
 0x3f5   :  { %2933 = vmatprep.subr.mxu0 %v7521_v0  ;;  %5944 = vmatprep.subr.mxu1 %v9316_v10  ;;  %v9367_v0 = vld [vmem:[#allocation34_spill] sm:$0xff] }
 0x3f6   :  { %2934 = vmatpush1.msra.mxu0 %v7525_v4  ;;  %5945 = vmatpush3.msra.mxu1 %v7527_v7  ;;  %v9368_v4 = vld [vmem:[#allocation35_spill] sm:$0xff] }
 0x3f7   :  { %2935 = vmatprep.subr.mxu0 %v7531_v12  ;;  %5946 = vmatprep.subr.mxu1 %v9316_v10 }
 0x3f8   :  { %2936 = vmatpush1.msra.mxu0 %v7535_v15  ;;  %5947 = vmatpush3.msra.mxu1 %v7537_v17  ;;  %v9369_v15 = vld [vmem:[#allocation26_spill] sm:$0xff] }
 0x3f9   :  { %2937 = vmatprep.subr.mxu0 %v7541_v59  ;;  %5948 = vmatprep.subr.mxu1 %v9316_v10 }
 0x3fa   :  { %2938 = vmatpush1.msra.mxu0 %v7545_v19  ;;  %5949 = vmatpush3.msra.mxu1 %v7547_v22 }
 0x3fb   :  { %2939 = vmatprep.subr.mxu0 %v7551_v24  ;;  %5950 = vmatprep.subr.mxu1 %v9316_v10 }
 0x3fc   :  { %2940 = vmatpush1.msra.mxu0 %v7553_v25  ;;  %5951 = vmatpush3.msra.mxu1 %v7555_v27  ;;  %v2414_v25 = vld [vmem:[#allocation2 + $0x30] sm:$0x30] }
 0x3fd   :  { %2941 = vmatprep.subr.mxu0 %v7559_v1  ;;  %5952 = vmatprep.subr.mxu1 %v9316_v10 }
 0x3fe   :  { %2942 = vmatpush1.msra.mxu0 %v7561_v29  ;;  %5953 = vmatpush3.msra.mxu1 %v7563_v58  ;;  %v2415_v58 = vld [vmem:[#allocation2] sm:$0x30] }
 0x3ff   :  { %2943 = vmatprep.subr.mxu0 %v7567_v33  ;;  %5954 = vmatprep.subr.mxu1 %v9316_v10 }
 0x400   :  { %2944 = vmatpush1.msra.mxu0 %v7571_v36  ;;  %5955 = vmatpush3.msra.mxu1 %v7573_v48 }
 0x401   :  { %2945 = vmatprep.subr.mxu0 %v7577_v3  ;;  %5956 = vmatprep.subr.mxu1 %v9316_v10 }
 0x402   :  { %2946 = vmatpush1.msra.mxu0 %v7581_v31  ;;  %5957 = vmatpush3.msra.mxu1 %v7583_v54 }
 0x403   :  { %2947 = vmatprep.subr.mxu0 %v7587_v6  ;;  %5958 = vmatprep.subr.mxu1 %v9316_v10 }
 0x404   :  { %2948 = vmatpush1.msra.mxu0 %v7591_v56  ;;  %5959 = vmatpush3.msra.mxu1 %v7593_v23 }
 0x405   :  { %2949 = vmatprep.subr.mxu0 %v7597_v16  ;;  %5960 = vmatprep.subr.mxu1 %v9316_v10 }
 0x406   :  { %2950 = vmatpush1.msra.mxu0 %v7601_v38  ;;  %5961 = vmatpush3.msra.mxu1 %v7603_v62  ;;  %v2416_v38 = vld [vmem:[#allocation2 + $0x58] sm:$0x30] }
 0x407   :  { %2951 = vmatprep.subr.mxu0 %v7607_v34  ;;  %5962 = vmatprep.subr.mxu1 %v9316_v10 }
 0x408   :  { %2952 = vmatpush1.msra.mxu0 %v7611_v5  ;;  %5963 = vmatpush3.msra.mxu1 %v9358_v42  ;;  %v9378_v42 = vld [vmem:[#allocation44_spill] sm:$0xff] }
 0x409   :  { %2953 = vmatprep.subr.mxu0 %v9359_v47  ;;  %5964 = vmatprep.subr.mxu1 %v9316_v10 }
 0x40a   :  { %2954 = vmatpush1.msra.mxu0 %v9360_v30  ;;  %5965 = vmatpush3.msra.mxu1 %v9361_v49  ;;  %v9379_v49 = vld [vmem:[#allocation52_spill] sm:$0xff] }
 0x40b   :  { %2955 = vmatprep.subr.mxu0 %v9362_v51  ;;  %5966 = vmatprep.subr.mxu1 %v9316_v10  ;;  %v9380_v51 = vld [vmem:[#allocation45_spill] sm:$0xff] }
 0x40c   :  { %2956 = vmatpush1.msra.mxu0 %v9363_v53  ;;  %5967 = vmatpush3.msra.mxu1 %v9364_v55  ;;  %v2417_v53 = vld [vmem:[#allocation2 + $0x48] sm:$0xc]  ;;  %v9381_v55 = vld [vmem:[#allocation47_spill] sm:$0xff] }
 0x40d   :  { %2957 = vmatprep.subr.mxu0 %v9365_v57  ;;  %5968 = vmatprep.subr.mxu1 %v9316_v10 }
 0x40e   :  { %2958 = vmatpush1.msra.mxu0 %v9366_v60  ;;  %2991 = vmatprep.mubr.f32.mxu0 %v9316_v10  ;;  %v9382_v60 = vld [vmem:[#allocation55_spill] sm:$0xff] }
 0x40f   :  { %5969 = vmatpush3.msra.mxu1 %v9367_v0  ;;  %5970 = vmatprep.mubr.msk.f32.mxu1 %vm6750_vm0, %v9316_v10  ;;  %v9383_v0 = vld [vmem:[#allocation48_spill] sm:$0xff] }
 0x410   :  { %3151 = vmatprep.subr.mxu0 %v9368_v4  ;;  %5973 = vmatprep.subr.mxu1 %v9316_v10  ;;  %v9384_v4 = vld [vmem:[#allocation50_spill] sm:$0xff] }
 0x46a   :  { %v2537_v7 = vpop.f32.mrf.mxu0  ;;  %v2608_v12 = vpop.f32.mrf.mxu1 }
 0x46b   :  { %v2538_v17 = vadd.f32 %v2537_v7, %v9369_v15  ;;  %v2609_v54 = vadd.f32 %v2608_v12, %v7394_v9 }
 0x46c   :  { %v2539_v59 = vpop.f32.mrf.mxu0  ;;  %v5902_v19 = vpop.f32.mrf.mxu1 }
 0x46d   :  { %v2613_v22 = vrot.slane %v2538_v17, 4  ;;  %v2540_v24 = vadd.f32 %v2539_v59, %v7386_v44  ;;  %v2633_v56 = vrot.slane %v2609_v54, 4  ;;  %v9385_v17 = vld [vmem:[#allocation58_spill] sm:$0xff]  ;;  %v9386_v59 = vld [vmem:[#allocation51_spill] sm:$0xff]  ;;  %v9387_v19 = vld [vmem:[#allocation53_spill] sm:$0xff] }
 0x46e   :  { %v9397_v54 = vld [vmem:[#allocation65_spill] sm:$0xff] }
 0x46f   :  { %v2615_v27 = vadd.f32 %v2613_v22, %v2414_v25  ;;  %v2623_v29 = vrot.slane %v2540_v24, 4  ;;  %v9388_v22 = vld [vmem:[#allocation54_spill] sm:$0xff]  ;;  %v9389_v24 = vld [vmem:[#allocation56_spill] sm:$0xff] }
 0x470   :  { %v2418_v25 = vld [vmem:[#allocation2 + $0x10] sm:$0xc] }
 0x471   :  { %v5374_v1 = vmul.f32 -1.442695, %v2615_v27  ;;  %v2625_v33 = vadd.f32 %v2623_v29, %v2415_v58  ;;  %v9390_v27 = vld [vmem:[#allocation57_spill] sm:$0xff]  ;;  %v9391_v29 = vld [vmem:[#allocation59_spill] sm:$0xff]  ;;  %v9392_v58 = vld [vmem:[#allocation60_spill] sm:$0xff] }
 0x473   :  { %6381 = vpow2.f32 %v5374_v1  ;;  %v5375_v36 = vmul.f32 -1.442695, %v2625_v33  ;;  %v9393_v33 = vld [vmem:[#allocation61_spill] sm:$0xff] }
 0x475   :  { %6383 = vpow2.f32 %v5375_v36  ;;  %v9394_v36 = vld [vmem:[#allocation62_spill] sm:$0xff] }
 0x480   :  { %v6382_v48 = vpop.eup %6381 }
 0x481   :  { %v2619_v3 = vadd.f32 1.0, %v6382_v48  ;;  %v9395_v48 = vld [vmem:[#allocation63_spill] sm:$0xff] }
 0x482   :  { %v6384_v31 = vpop.eup %6383 }
 0x483   :  { %6385 = vrcp.f32 %v2619_v3  ;;  %v2629_v6 = vadd.f32 1.0, %v6384_v31  ;;  %v9396_v3 = vld [vmem:[#allocation64_spill] sm:$0xff] }
 0x485   :  { %6387 = vrcp.f32 %v2629_v6  ;;  %v9398_v6 = vld [vmem:[#allocation66_spill] sm:$0xff] }
 0x490   :  { %v6386_v23 = vpop.eup %6385 }
 0x491   :  { %v2635_v16 = vmul.f32 %v6386_v23, %v2633_v56  ;;  %v9399_v56 = vld [vmem:[#allocation67_spill] sm:$0xff]  ;;  %v9400_v23 = vld [vmem:[#allocation68_spill] sm:$0xff] }
 0x492   :  { %v6388_v34 = vpop.eup %6387 }
 0x493   :  { %v2636_v62 = vadd.f32 %v2635_v16, %v2416_v38  ;;  %v2638_v5 = vsub.f32 1.0, %v6388_v34  ;;  %v2642_v63 = vmul.f32 %v6388_v34, %v2640_v45  ;;  %v9401_v16 = vld [vmem:[#allocation69_spill] sm:$0xff]  ;;  %v9402_v38 = vld [vmem:[#allocation70_spill] sm:$0xff]  ;;  %v9404_v34 = vld [vmem:[#allocation72_spill] sm:$0xff] }
 0x494   :  { %v9406_v45 = vld [vmem:[#allocation74_spill] sm:$0xff] }
 0x495   :  { %6389 = vtanh.f32 %v2636_v62  ;;  %v9403_v62 = vld [vmem:[#allocation71_spill] sm:$0xff] }
 0x4a2   :  { %v6390_v2 = vpop.eup %6389 }
 0x4a3   :  { %v2639_v37 = vmul.f32 %v6390_v2, %v2638_v5  ;;  %v9405_v5 = vld [vmem:[#allocation73_spill] sm:$0xff]  ;;  %v9407_v2 = vld [vmem:[#allocation75_spill] sm:$0xff] }
 0x4a5   :  { %v7906_v50 = vadd.f32 %v2642_v63, %v2639_v37  ;;  %v9408_v63 = vld [vmem:[#allocation76_spill] sm:$0xff] }
 0x4a7   :  { %2868 = vst [vmem:[#allocation3 + $0x18] sm:$0x30] %v7906_v50  ;;  %v2925_v11 = vrot.slane %v7906_v50, 4 }
 0x4a9   :  { %2992 = vmatmul.mubr.f32.vlgmr.msra.gmra.mxu0 %v2925_v11  ;;  %5971 = vmatmul.mubr.f32.vlgmr.msra.gmra.mxu1 %v2925_v11 }
 0x4aa   :  { %3152 = vmatpush1.msra.mxu0 %v7663_v18  ;;  %5974 = vmatpush3.msra.mxu1 %v7665_v13  ;;  %v9375_v13 = vld [vmem:[#allocation41_spill] sm:$0xff] }
 0x4ab   :  { %3153 = vmatprep.subr.mxu0 %v7667_v32  ;;  %5975 = vmatprep.subr.mxu1 %v9316_v10 }
 0x4ac   :  { %3154 = vmatpush1.msra.mxu0 %v9370_v20  ;;  %5976 = vmatpush3.msra.mxu1 %v9371_v28  ;;  %v9409_v20 = vld [vmem:[#allocation77_spill] sm:$0xff]  ;;  %v9410_v28 = vld [vmem:[#allocation78_spill] sm:$0xff] }
 0x4ad   :  { %3155 = vmatprep.subr.mxu0 %v9372_v14  ;;  %5977 = vmatprep.subr.mxu1 %v9316_v10  ;;  %v9411_v14 = vld [vmem:[#allocation79_spill] sm:$0xff] }
 0x4ae   :  { %3156 = vmatpush1.msra.mxu0 %v9373_v46  ;;  %5978 = vmatpush3.msra.mxu1 %v9374_v52  ;;  %v9412_v46 = vld [vmem:[#allocation80_spill] sm:$0xff]  ;;  %v9413_v52 = vld [vmem:[#allocation81_spill] sm:$0xff] }
 0x4af   :  { %v2761_v8 = vpop.f32.mrf.mxu0  ;;  %v7920_v18 = vpop.f32.mrf.mxu1  ;;  %3157 = vmatprep.subr.mxu0 %v9375_v13  ;;  %5979 = vmatprep.subr.mxu1 %v9316_v10 }
 0x4b0   :  { %v2762_v32 = vadd.f32 %v2761_v8, %v7410_v41  ;;  %3158 = vmatpush1.msra.mxu0 %v9376_v40  ;;  %5980 = vmatpush3.msra.mxu1 %v9377_v21  ;;  %v2833_v13 = vadd.f32 %v7920_v18, %v7481_v43  ;;  %v7990_v18 = vld [vmem:[#allocation8 + $0x170] sm:$0xff] }
 0x4b1   :  { %v2763_v61 = vpop.f32.mrf.mxu0  ;;  %v5937_v26 = vpop.f32.mrf.mxu1  ;;  %3159 = vmatprep.subr.mxu0 %v9378_v42  ;;  %5981 = vmatprep.subr.mxu1 %v9316_v10 }
 0x4b2   :  { %v2837_v47 = vrot.slane %v2762_v32, 6  ;;  %v2764_v30 = vadd.f32 %v2763_v61, %v7418_v35  ;;  %3160 = vmatpush1.msra.mxu0 %v9379_v49  ;;  %5982 = vmatpush3.msra.mxu1 %v9380_v51  ;;  %v2857_v40 = vrot.slane %v2833_v13, 6  ;;  %v2419_v26 = vld [vmem:[#allocation2 + $0x40] sm:$0xc]  ;;  %v2864_v49 = vrot.slane %v7831_v39, 2  ;;  %v7993_v39 = vld [vmem:[#allocation8 + $0x168] sm:$0xff] }
 0x4b3   :  { %3161 = vmatprep.subr.mxu0 %v9381_v55  ;;  %5983 = vmatprep.subr.mxu1 %v9316_v10  ;;  %v8121_v13 = vld [vmem:[#allocation8 + $0x40] sm:$0xff] }
 0x4b4   :  { %v2839_v57 = vadd.f32 %v2837_v47, %v2417_v53  ;;  %3162 = vmatpush1.msra.mxu0 %v9382_v60  ;;  %5984 = vmatpush3.msra.mxu1 %v9383_v0  ;;  %v2847_v12 = vrot.slane %v2764_v30, 6  ;;  %v7995_v0 = vld [vmem:[#allocation8 + $0x178] sm:$0xff]  ;;  %9418 = vst [vmem:[#allocation31_spill] sm:$0xff] %v8121_v13 }
 0x4b5   :  { %3163 = vmatprep.subr.mxu0 %v9384_v4  ;;  %5985 = vmatprep.subr.mxu1 %v9316_v10  ;;  %v7999_v4 = vld [vmem:[#allocation8 + $0x158] sm:$0xff] }
 0x4b6   :  { %v5376_v7 = vmul.f32 -1.442695, %v2839_v57  ;;  %3164 = vmatpush1.msra.mxu0 %v9385_v17  ;;  %5986 = vmatpush3.msra.mxu1 %v9386_v59  ;;  %v2849_v1 = vadd.f32 %v2847_v12, %v2418_v25  ;;  %v8005_v12 = vld [vmem:[#allocation8 + $0x160] sm:$0xff]  ;;  %v8013_v59 = vld [vmem:[#allocation8 + $0x138] sm:$0xff]  ;;  %v8025_v25 = vld [vmem:[#allocation8 + $0x130] sm:$0xff] }
 0x4b7   :  { %3165 = vmatprep.subr.mxu0 %v9387_v19  ;;  %5987 = vmatprep.subr.mxu1 %v9316_v10  ;;  %v8009_v17 = vld [vmem:[#allocation8 + $0x140] sm:$0xff]  ;;  %v8015_v19 = vld [vmem:[#allocation8 + $0x148] sm:$0xff] }
 0x4b8   :  { %6391 = vpow2.f32 %v5376_v7  ;;  %3166 = vmatpush1.msra.mxu0 %v9388_v22  ;;  %5988 = vmatpush3.msra.mxu1 %v9389_v24  ;;  %v5377_v31 = vmul.f32 -1.442695, %v2849_v1  ;;  %v8003_v7 = vld [vmem:[#allocation8 + $0x150] sm:$0xff]  ;;  %v8019_v22 = vld [vmem:[#allocation8 + $0x128] sm:$0xff]  ;;  %v8023_v24 = vld [vmem:[#allocation8 + $0x120] sm:$0xff] }
 0x4b9   :  { %3167 = vmatprep.subr.mxu0 %v9390_v27  ;;  %5989 = vmatprep.subr.mxu1 %v9316_v10  ;;  %v8029_v27 = vld [vmem:[#allocation8 + $0x110] sm:$0xff]  ;;  %v8033_v1 = vld [vmem:[#allocation8 + $0x108] sm:$0xff] }
 0x4ba   :  { %3168 = vmatpush1.msra.mxu0 %v9391_v29  ;;  %5990 = vmatpush3.msra.mxu1 %v9392_v58  ;;  %6393 = vpow2.f32 %v5377_v31  ;;  %v8035_v29 = vld [vmem:[#allocation8 + $0x118] sm:$0xff]  ;;  %v8053_v31 = vld [vmem:[#allocation8 + $0xe8] sm:$0xff] }
 0x4bb   :  { %3169 = vmatprep.subr.mxu0 %v9393_v33  ;;  %5991 = vmatprep.subr.mxu1 %v9316_v10  ;;  %v8039_v58 = vld [vmem:[#allocation8 + $0xf8] sm:$0xff]  ;;  %v8043_v33 = vld [vmem:[#allocation8 + $0xf0] sm:$0xff] }
 0x4bc   :  { %3170 = vmatpush1.msra.mxu0 %v9394_v36  ;;  %5992 = vmatpush3.msra.mxu1 %v9395_v48  ;;  %v8045_v36 = vld [vmem:[#allocation8 + $0x100] sm:$0xff] }
 0x4bd   :  { %3171 = vmatprep.subr.mxu0 %v9396_v3  ;;  %5993 = vmatprep.subr.mxu1 %v9316_v10  ;;  %v8049_v48 = vld [vmem:[#allocation8 + $0xe0] sm:$0xff]  ;;  %v8051_v3 = vld [vmem:[#allocation8 + $0xd8] sm:$0xff] }
 0x4be   :  { %3172 = vmatpush1.msra.mxu0 %v9397_v54  ;;  %5994 = vmatpush3.msra.mxu1 %v9398_v6  ;;  %v8057_v54 = vld [vmem:[#allocation8 + $0xc8] sm:$0xff]  ;;  %v8059_v6 = vld [vmem:[#allocation8 + $0xc0] sm:$0xff] }
 0x4bf   :  { %3173 = vmatprep.subr.mxu0 %v9399_v56  ;;  %5995 = vmatprep.subr.mxu1 %v9316_v10  ;;  %v8061_v56 = vld [vmem:[#allocation8 + $0xd0] sm:$0xff] }
 0x4c0   :  { %3174 = vmatpush1.msra.mxu0 %v9400_v23  ;;  %5996 = vmatpush3.msra.mxu1 %v9401_v16  ;;  %v8065_v23 = vld [vmem:[#allocation8 + $0xb0] sm:$0xff]  ;;  %v8069_v16 = vld [vmem:[#allocation8 + $0xa8] sm:$0xff] }
 0x4c1   :  { %3175 = vmatprep.subr.mxu0 %v9402_v38  ;;  %5997 = vmatprep.subr.mxu1 %v9316_v10  ;;  %v8071_v38 = vld [vmem:[#allocation8 + $0xb8] sm:$0xff] }
 0x4c2   :  { %3176 = vmatpush1.msra.mxu0 %v9403_v62  ;;  %5998 = vmatpush3.msra.mxu1 %v9404_v34  ;;  %v8075_v62 = vld [vmem:[#allocation8 + $0x98] sm:$0xff]  ;;  %v8079_v34 = vld [vmem:[#allocation8 + $0x90] sm:$0xff] }
 0x4c3   :  { %3177 = vmatprep.subr.mxu0 %v9405_v5  ;;  %5999 = vmatprep.subr.mxu1 %v9316_v10  ;;  %v8081_v5 = vld [vmem:[#allocation8 + $0xa0] sm:$0xff] }
 0x4c4   :  { %3178 = vmatpush1.msra.mxu0 %v9406_v45  ;;  %6000 = vmatpush3.msra.mxu1 %v9407_v2  ;;  %v8085_v45 = vld [vmem:[#allocation8 + $0x80] sm:$0xff]  ;;  %v8089_v2 = vld [vmem:[#allocation8 + $0x78] sm:$0xff] }
 0x4c5   :  { %v6392_v37 = vpop.eup %6391  ;;  %3179 = vmatprep.subr.mxu0 %v9408_v63  ;;  %6001 = vmatprep.subr.mxu1 %v9316_v10  ;;  %v8095_v63 = vld [vmem:[#allocation8 + $0x68] sm:$0xff] }
 0x4c6   :  { %v2843_v11 = vadd.f32 1.0, %v6392_v37  ;;  %3180 = vmatpush1.msra.mxu0 %v9409_v20  ;;  %6002 = vmatpush3.msra.mxu1 %v9410_v28  ;;  %v8091_v37 = vld [vmem:[#allocation8 + $0x88] sm:$0xff]  ;;  %v8101_v20 = vld [vmem:[#allocation8 + $0x70] sm:$0xff] }
 0x4c7   :  { %3181 = vmatprep.subr.mxu0 %v9411_v14  ;;  %6003 = vmatprep.subr.mxu1 %v9316_v10  ;;  %v6394_v8 = vpop.eup %6393  ;;  %v8105_v28 = vld [vmem:[#allocation8 + $0x50] sm:$0xff]  ;;  %v8109_v14 = vld [vmem:[#allocation8 + $0x48] sm:$0xff] }
 0x4c8   :  { %6395 = vrcp.f32 %v2843_v11  ;;  %3182 = vmatpush1.msra.mxu0 %v9412_v46  ;;  %3215 = vmatprep.mubr.f32.mxu0 %v9316_v10  ;;  %v2853_v32 = vadd.f32 1.0, %v6394_v8  ;;  %v8099_v11 = vld [vmem:[#allocation8 + $0x60] sm:$0xff]  ;;  %9414 = vst [vmem:[#allocation27_spill] sm:$0xff] %v8109_v14  ;;  %v8111_v46 = vld [vmem:[#allocation8 + $0x58] sm:$0xff]  ;;  %v8119_v8 = vld [vmem:[#allocation8 + $0x30] sm:$0xff] }
 0x4c9   :  { %6004 = vmatpush3.msra.mxu1 %v9413_v52  ;;  %6005 = vmatprep.mubr.msk.f32.mxu1 %vm6750_vm0, %v9316_v10  ;;  %9415 = vst [vmem:[#allocation28_spill] sm:$0xff] %v8111_v46  ;;  %v8115_v52 = vld [vmem:[#allocation8 + $0x38] sm:$0xff]  ;;  %9417 = vst [vmem:[#allocation30_spill] sm:$0xff] %v8119_v8 }
 0x4ca   :  { %6008 = vmatprep.subr.mxu1 %v9316_v10  ;;  %6397 = vrcp.f32 %v2853_v32  ;;  %3372 = vmatprep.subr.mxu0 %v7990_v18  ;;  %9416 = vst [vmem:[#allocation29_spill] sm:$0xff] %v8115_v52  ;;  %v8125_v32 = vld [vmem:[#allocation8 + $0x20] sm:$0xff] }
 0x4cb   :  { %9419 = vst [vmem:[#allocation37_spill] sm:$0xff] %v8125_v32 }
 0x4d5   :  { %v6396_v21 = vpop.eup %6395 }
 0x4d6   :  { %v2859_v61 = vmul.f32 %v6396_v21, %v2857_v40  ;;  %v8129_v40 = vld [vmem:[#allocation8 + $0x18] sm:$0xff]  ;;  %v8131_v21 = vld [vmem:[#allocation8 + $0x28] sm:$0xff] }
 0x4d7   :  { %v6398_v47 = vpop.eup %6397  ;;  %9420 = vst [vmem:[#allocation32_spill] sm:$0xff] %v8129_v40  ;;  %9421 = vst [vmem:[#allocation33_spill] sm:$0xff] %v8131_v21 }
 0x4d8   :  { %v2860_v42 = vadd.f32 %v2859_v61, %v2419_v26  ;;  %v2862_v30 = vsub.f32 1.0, %v6398_v47  ;;  %v2866_v55 = vmul.f32 %v6398_v47, %v2864_v49  ;;  %v8135_v61 = vld [vmem:[#allocation8 + $0x8] sm:$0xff]  ;;  %v8139_v26 = vld [vmem:[#allocation8] sm:$0xff]  ;;  %v8150_v47 = vld [vmem:[#allocation11 + $0x170] sm:$0xff] }
 0x4d9   :  { %9422 = vst [vmem:[#allocation40_spill] sm:$0xff] %v8135_v61  ;;  %9423 = vst [vmem:[#allocation34_spill] sm:$0xff] %v8139_v26 }
 0x4da   :  { %6399 = vtanh.f32 %v2860_v42  ;;  %v8141_v42 = vld [vmem:[#allocation8 + $0x10] sm:$0xff]  ;;  %9425 = vst [vmem:[#allocation43_spill] sm:$0xff] %v8150_v47 }
 0x4db   :  { %9424 = vst [vmem:[#allocation35_spill] sm:$0xff] %v8141_v42 }
 0x4e7   :  { %v6400_v51 = vpop.eup %6399 }
 0x4e8   :  { %v2863_v53 = vmul.f32 %v6400_v51, %v2862_v30 }
 0x4ea   :  { %v2867_v57 = vadd.f32 %v2866_v55, %v2863_v53 }
 0x4ec   :  { %2869 = vst [vmem:[#allocation3] sm:$0xc] %v2867_v57  ;;  %v7983_v60 = vrot.slane %v2867_v57, 2 }
 0x4ee   :  { %3216 = vmatmul.mubr.f32.vlgmr.msra.gmra.mxu0 %v7983_v60  ;;  %6006 = vmatmul.mubr.f32.vlgmr.msra.gmra.mxu1 %v7983_v60 }
 0x4ef   :  { %3436 = vmatprep.mubr.f32.mxu0 %v9316_v10  ;;  %6040 = vmatprep.mubr.msk.f32.mxu1 %vm6750_vm0, %v9316_v10 }
 0x4f0   :  { %3373 = vmatpush1.msra.mxu0 %v7993_v39  ;;  %6009 = vmatpush3.msra.mxu1 %v7995_v0 }
 0x4f1   :  { %3374 = vmatprep.subr.mxu0 %v7999_v4  ;;  %6010 = vmatprep.subr.mxu1 %v9316_v10 }
 0x4f2   :  { %3375 = vmatpush1.msra.mxu0 %v8003_v7  ;;  %6011 = vmatpush3.msra.mxu1 %v8005_v12 }
 0x4f3   :  { %3376 = vmatprep.subr.mxu0 %v8009_v17  ;;  %6012 = vmatprep.subr.mxu1 %v9316_v10 }
 0x4f4   :  { %3377 = vmatpush1.msra.mxu0 %v8013_v59  ;;  %6013 = vmatpush3.msra.mxu1 %v8015_v19 }
 0x4f5   :  { %3378 = vmatprep.subr.mxu0 %v8019_v22  ;;  %6014 = vmatprep.subr.mxu1 %v9316_v10 }
 0x4f6   :  { %3379 = vmatpush1.msra.mxu0 %v8023_v24  ;;  %6015 = vmatpush3.msra.mxu1 %v8025_v25 }
 0x4f7   :  { %3380 = vmatprep.subr.mxu0 %v8029_v27  ;;  %6016 = vmatprep.subr.mxu1 %v9316_v10 }
 0x4f8   :  { %3381 = vmatpush1.msra.mxu0 %v8033_v1  ;;  %6017 = vmatpush3.msra.mxu1 %v8035_v29 }
 0x4f9   :  { %3382 = vmatprep.subr.mxu0 %v8039_v58  ;;  %6018 = vmatprep.subr.mxu1 %v9316_v10 }
 0x4fa   :  { %3383 = vmatpush1.msra.mxu0 %v8043_v33  ;;  %6019 = vmatpush3.msra.mxu1 %v8045_v36 }
 0x4fb   :  { %3384 = vmatprep.subr.mxu0 %v8049_v48  ;;  %6020 = vmatprep.subr.mxu1 %v9316_v10 }
 0x4fc   :  { %3385 = vmatpush1.msra.mxu0 %v8051_v3  ;;  %6021 = vmatpush3.msra.mxu1 %v8053_v31 }
 0x4fd   :  { %3386 = vmatprep.subr.mxu0 %v8057_v54  ;;  %6022 = vmatprep.subr.mxu1 %v9316_v10 }
 0x4fe   :  { %3387 = vmatpush1.msra.mxu0 %v8059_v6  ;;  %6023 = vmatpush3.msra.mxu1 %v8061_v56 }
 0x4ff   :  { %3388 = vmatprep.subr.mxu0 %v8065_v23  ;;  %6024 = vmatprep.subr.mxu1 %v9316_v10 }
 0x500   :  { %3389 = vmatpush1.msra.mxu0 %v8069_v16  ;;  %6025 = vmatpush3.msra.mxu1 %v8071_v38 }
 0x501   :  { %3390 = vmatprep.subr.mxu0 %v8075_v62  ;;  %6026 = vmatprep.subr.mxu1 %v9316_v10 }
 0x502   :  { %3391 = vmatpush1.msra.mxu0 %v8079_v34  ;;  %6027 = vmatpush3.msra.mxu1 %v8081_v5 }
 0x503   :  { %3392 = vmatprep.subr.mxu0 %v8085_v45  ;;  %6028 = vmatprep.subr.mxu1 %v9316_v10 }
 0x504   :  { %3393 = vmatpush1.msra.mxu0 %v8089_v2  ;;  %6029 = vmatpush3.msra.mxu1 %v8091_v37 }
 0x505   :  { %3394 = vmatprep.subr.mxu0 %v8095_v63  ;;  %6030 = vmatprep.subr.mxu1 %v9316_v10 }
 0x506   :  { %3395 = vmatpush1.msra.mxu0 %v8099_v11  ;;  %6031 = vmatpush3.msra.mxu1 %v8101_v20 }
 0x507   :  { %3396 = vmatprep.subr.mxu0 %v8105_v28  ;;  %6032 = vmatprep.subr.mxu1 %v9316_v10 }
 0x508   :  { %3397 = vmatpush1.msra.mxu0 %v8109_v14  ;;  %6033 = vmatpush3.msra.mxu1 %v8111_v46 }
 0x509   :  { %3398 = vmatprep.subr.mxu0 %v8115_v52  ;;  %6034 = vmatprep.subr.mxu1 %v9316_v10 }
 0x50a   :  { %3399 = vmatpush1.msra.mxu0 %v8119_v8  ;;  %6035 = vmatpush3.msra.mxu1 %v8121_v13 }
 0x50b   :  { %3400 = vmatprep.subr.mxu0 %v8125_v32  ;;  %6036 = vmatprep.subr.mxu1 %v9316_v10 }
 0x50c   :  { %3401 = vmatpush1.msra.mxu0 %v8129_v40  ;;  %6037 = vmatpush3.msra.mxu1 %v8131_v21  ;;  %v2870_v21 = vld [vmem:[#allocation2 + $0x30] sm:$0xc0] }
 0x50d   :  { %3402 = vmatprep.subr.mxu0 %v8135_v61  ;;  %6038 = vmatprep.subr.mxu1 %v9316_v10 }
 0x50e   :  { %3403 = vmatpush1.msra.mxu0 %v8139_v26  ;;  %6039 = vmatpush3.msra.mxu1 %v8141_v42  ;;  %v2871_v42 = vld [vmem:[#allocation2] sm:$0xc0] }
 0x50f   :  { %6043 = vmatprep.subr.mxu1 %v9316_v10  ;;  %3582 = vmatprep.subr.mxu0 %v8150_v47 }
 0x569   :  { %v2993_v30 = vpop.f32.mrf.mxu0  ;;  %v3064_v49 = vpop.f32.mrf.mxu1 }
 0x56a   :  { %v2994_v51 = vadd.f32 %v2993_v30, %v9369_v15  ;;  %v3065_v30 = vadd.f32 %v3064_v49, %v7394_v9  ;;  %v8163_v49 = vld [vmem:[#allocation11 + $0x158] sm:$0xff] }
 0x56b   :  { %v2995_v53 = vpop.f32.mrf.mxu0  ;;  %v5972_v55 = vpop.f32.mrf.mxu1 }
 0x56c   :  { %v3069_v57 = vrot.slane %v2994_v51, 2  ;;  %v2996_v61 = vadd.f32 %v2995_v53, %v7386_v44  ;;  %v3089_v55 = vrot.slane %v3065_v30, 2  ;;  %v2872_v53 = vld [vmem:[#allocation2 + $0x58] sm:$0xc0]  ;;  %v8179_v30 = vld [vmem:[#allocation11 + $0x148] sm:$0xff] }
 0x56d   :  { %9429 = vst [vmem:[#allocation39_spill] sm:$0xff] %v8179_v30 }
 0x56e   :  { %v3071_v40 = vadd.f32 %v3069_v57, %v2870_v21  ;;  %v3079_v32 = vrot.slane %v2996_v61, 2  ;;  %v8177_v57 = vld [vmem:[#allocation11 + $0x138] sm:$0xff] }
 0x56f   :  { %9428 = vst [vmem:[#allocation46_spill] sm:$0xff] %v8177_v57 }
 0x570   :  { %v5378_v26 = vmul.f32 -1.442695, %v3071_v40  ;;  %v3081_v13 = vadd.f32 %v3079_v32, %v2871_v42  ;;  %v3096_v32 = vrot.slane %v7906_v50, 6  ;;  %v8169_v50 = vld [vmem:[#allocation11 + $0x160] sm:$0xff] }
 0x571   :  { %9426 = vst [vmem:[#allocation36_spill] sm:$0xff] %v8169_v50 }
 0x572   :  { %6401 = vpow2.f32 %v5378_v26  ;;  %v5379_v8 = vmul.f32 -1.442695, %v3081_v13 }
 0x574   :  { %6403 = vpow2.f32 %v5379_v8 }
 0x57f   :  { %v6402_v52 = vpop.eup %6401 }
 0x580   :  { %v3075_v47 = vadd.f32 1.0, %v6402_v52 }
 0x581   :  { %v6404_v46 = vpop.eup %6403 }
 0x582   :  { %6405 = vrcp.f32 %v3075_v47  ;;  %v3085_v15 = vadd.f32 1.0, %v6404_v46  ;;  %v8159_v47 = vld [vmem:[#allocation11 + $0x168] sm:$0xff]  ;;  %v8161_v46 = vld [vmem:[#allocation11 + $0x178] sm:$0xff] }
 0x584   :  { %6407 = vrcp.f32 %v3085_v15  ;;  %v8167_v15 = vld [vmem:[#allocation11 + $0x150] sm:$0xff] }
 0x58f   :  { %v6406_v51 = vpop.eup %6405 }
 0x590   :  { %v3091_v14 = vmul.f32 %v6406_v51, %v3089_v55  ;;  %v8183_v55 = vld [vmem:[#allocation11 + $0x128] sm:$0xff]  ;;  %v8187_v51 = vld [vmem:[#allocation11 + $0x120] sm:$0xff] }
 0x591   :  { %v6408_v40 = vpop.eup %6407  ;;  %9430 = vst [vmem:[#allocation41_spill] sm:$0xff] %v8183_v55  ;;  %9431 = vst [vmem:[#allocation49_spill] sm:$0xff] %v8187_v51 }
 0x592   :  { %v3092_v21 = vadd.f32 %v3091_v14, %v2872_v53  ;;  %v3094_v61 = vsub.f32 1.0, %v6408_v40  ;;  %v3098_v26 = vmul.f32 %v6408_v40, %v3096_v32  ;;  %v8173_v14 = vld [vmem:[#allocation11 + $0x140] sm:$0xff]  ;;  %v8189_v53 = vld [vmem:[#allocation11 + $0x130] sm:$0xff]  ;;  %v8199_v32 = vld [vmem:[#allocation11 + $0x108] sm:$0xff] }
 0x593   :  { %9427 = vst [vmem:[#allocation38_spill] sm:$0xff] %v8173_v14  ;;  %9432 = vst [vmem:[#allocation42_spill] sm:$0xff] %v8189_v53 }
 0x594   :  { %6409 = vtanh.f32 %v3092_v21  ;;  %v8193_v21 = vld [vmem:[#allocation11 + $0x110] sm:$0xff] }
 0x595   :  { %9433 = vst [vmem:[#allocation44_spill] sm:$0xff] %v8193_v21 }
 0x5a1   :  { %v6410_v13 = vpop.eup %6409 }
 0x5a2   :  { %v3095_v8 = vmul.f32 %v6410_v13, %v3094_v61  ;;  %v8201_v13 = vld [vmem:[#allocation11 + $0x118] sm:$0xff] }
 0x5a4   :  { %v3099_v52 = vadd.f32 %v3098_v26, %v3095_v8  ;;  %v8206_v26 = vld [vmem:[#allocation11 + $0xf8] sm:$0xff] }
 0x5a5   :  { %9434 = vst [vmem:[#allocation52_spill] sm:$0xff] %v8206_v26 }
 0x5a6   :  { %3313 = vst [vmem:[#allocation3 + $0x18] sm:$0xc0] %v3099_v52  ;;  %v8157_v42 = vrot.slane %v3099_v52, 6  ;;  %v2873_v52 = vld [vmem:[#allocation2 + $0x48] sm:$0x3] }
 0x5a8   :  { %3437 = vmatmul.mubr.f32.vlgmr.msra.gmra.mxu0 %v8157_v42  ;;  %6041 = vmatmul.mubr.f32.vlgmr.msra.gmra.mxu1 %v8157_v42 }
 0x5a9   :  { %3583 = vmatpush1.msra.mxu0 %v8159_v47  ;;  %6044 = vmatpush3.msra.mxu1 %v8161_v46 }
 0x5aa   :  { %3584 = vmatprep.subr.mxu0 %v8163_v49  ;;  %6045 = vmatprep.subr.mxu1 %v9316_v10 }
 0x5ab   :  { %3585 = vmatpush1.msra.mxu0 %v8167_v15  ;;  %6046 = vmatpush3.msra.mxu1 %v8169_v50 }
 0x5ac   :  { %3586 = vmatprep.subr.mxu0 %v8173_v14  ;;  %6047 = vmatprep.subr.mxu1 %v9316_v10  ;;  %v8212_v14 = vld [vmem:[#allocation11 + $0x100] sm:$0xff] }
 0x5ad   :  { %3587 = vmatpush1.msra.mxu0 %v8177_v57  ;;  %6048 = vmatpush3.msra.mxu1 %v8179_v30  ;;  %9436 = vst [vmem:[#allocation47_spill] sm:$0xff] %v8212_v14 }
 0x5ae   :  { %v3217_v40 = vpop.f32.mrf.mxu0  ;;  %v8195_v61 = vpop.f32.mrf.mxu1  ;;  %3588 = vmatprep.subr.mxu0 %v8183_v55  ;;  %6049 = vmatprep.subr.mxu1 %v9316_v10  ;;  %v8210_v55 = vld [vmem:[#allocation11 + $0xf0] sm:$0xff] }
 0x5af   :  { %v3218_v8 = vadd.f32 %v3217_v40, %v7410_v41  ;;  %3589 = vmatpush1.msra.mxu0 %v8187_v51  ;;  %6050 = vmatpush3.msra.mxu1 %v8189_v53  ;;  %9435 = vst [vmem:[#allocation45_spill] sm:$0xff] %v8210_v55  ;;  %v8216_v40 = vld [vmem:[#allocation11 + $0xe0] sm:$0xff] }
 0x5b0   :  { %v3219_v30 = vpop.f32.mrf.mxu0  ;;  %v6007_v57 = vpop.f32.mrf.mxu1  ;;  %3590 = vmatprep.subr.mxu0 %v8193_v21  ;;  %6051 = vmatprep.subr.mxu1 %v9316_v10  ;;  %9437 = vst [vmem:[#allocation55_spill] sm:$0xff] %v8216_v40  ;;  %v8222_v21 = vld [vmem:[#allocation11 + $0xe8] sm:$0xff] }
 0x5b1   :  { %v3292_v50 = vadd.f32 %v3218_v8, %v2873_v52  ;;  %3591 = vmatpush1.msra.mxu0 %v8199_v32  ;;  %6052 = vmatpush3.msra.mxu1 %v8201_v13  ;;  %v8220_v57 = vld [vmem:[#allocation11 + $0xd8] sm:$0xff]  ;;  %9439 = vst [vmem:[#allocation50_spill] sm:$0xff] %v8222_v21  ;;  %v3220_v51 = vadd.f32 %v3219_v30, %v7418_v35  ;;  %v8227_v8 = vld [vmem:[#allocation11 + $0xc8] sm:$0xff]  ;;  %v8231_v52 = vld [vmem:[#allocation11 + $0xc0] sm:$0xff] }
 0x5b2   :  { %3592 = vmatprep.subr.mxu0 %v8206_v26  ;;  %6053 = vmatprep.subr.mxu1 %v9316_v10  ;;  %9438 = vst [vmem:[#allocation48_spill] sm:$0xff] %v8220_v57  ;;  %9440 = vst [vmem:[#allocation58_spill] sm:$0xff] %v8227_v8  ;;  %v8233_v26 = vld [vmem:[#allocation11 + $0xd0] sm:$0xff]  ;;  %v2874_v30 = vld [vmem:[#allocation2 + $0x10] sm:$0x3] }
 0x5b3   :  { %v5380_v53 = vmul.f32 -1.442695, %v3292_v50  ;;  %3593 = vmatpush1.msra.mxu0 %v8210_v55  ;;  %6054 = vmatpush3.msra.mxu1 %v8212_v14  ;;  %9441 = vst [vmem:[#allocation51_spill] sm:$0xff] %v8231_v52  ;;  %9442 = vst [vmem:[#allocation53_spill] sm:$0xff] %v8233_v26  ;;  %v8237_v50 = vld [vmem:[#allocation11 + $0xb0] sm:$0xff]  ;;  %v8241_v14 = vld [vmem:[#allocation11 + $0xa8] sm:$0xff]  ;;  %v3299_v55 = vadd.f32 %v3220_v51, %v2874_v30 }
 0x5b4   :  { %3594 = vmatprep.subr.mxu0 %v8216_v40  ;;  %6055 = vmatprep.subr.mxu1 %v9316_v10  ;;  %9443 = vst [vmem:[#allocation54_spill] sm:$0xff] %v8237_v50  ;;  %9444 = vst [vmem:[#allocation56_spill] sm:$0xff] %v8241_v14  ;;  %v8243_v40 = vld [vmem:[#allocation11 + $0xb8] sm:$0xff]  ;;  %v8263_v30 = vld [vmem:[#allocation11 + $0x88] sm:$0xff] }
 0x5b5   :  { %6411 = vpow2.f32 %v5380_v53  ;;  %3595 = vmatpush1.msra.mxu0 %v8220_v57  ;;  %6056 = vmatpush3.msra.mxu1 %v8222_v21  ;;  %9445 = vst [vmem:[#allocation57_spill] sm:$0xff] %v8243_v40  ;;  %v8247_v53 = vld [vmem:[#allocation11 + $0x98] sm:$0xff]  ;;  %v8251_v21 = vld [vmem:[#allocation11 + $0x90] sm:$0xff]  ;;  %v8257_v57 = vld [vmem:[#allocation11 + $0x80] sm:$0xff] }
 0x5b6   :  { %3596 = vmatprep.subr.mxu0 %v8227_v8  ;;  %6057 = vmatprep.subr.mxu1 %v9316_v10  ;;  %9446 = vst [vmem:[#allocation59_spill] sm:$0xff] %v8247_v53  ;;  %9447 = vst [vmem:[#allocation60_spill] sm:$0xff] %v8251_v21  ;;  %v8253_v8 = vld [vmem:[#allocation11 + $0xa0] sm:$0xff]  ;;  %v8261_v51 = vld [vmem:[#allocation11 + $0x78] sm:$0xff] }
 0x5b7   :  { %3597 = vmatpush1.msra.mxu0 %v8231_v52  ;;  %6058 = vmatpush3.msra.mxu1 %v8233_v26  ;;  %9448 = vst [vmem:[#allocation61_spill] sm:$0xff] %v8253_v8  ;;  %9449 = vst [vmem:[#allocation62_spill] sm:$0xff] %v8257_v57  ;;  %v8267_v26 = vld [vmem:[#allocation11 + $0x68] sm:$0xff] }
 0x5b8   :  { %3598 = vmatprep.subr.mxu0 %v8237_v50  ;;  %6059 = vmatprep.subr.mxu1 %v9316_v10  ;;  %9450 = vst [vmem:[#allocation63_spill] sm:$0xff] %v8261_v51  ;;  %9451 = vst [vmem:[#allocation64_spill] sm:$0xff] %v8263_v30  ;;  %v5381_v50 = vmul.f32 -1.442695, %v3299_v55  ;;  %v8281_v55 = vld [vmem:[#allocation11 + $0x48] sm:$0xff] }
 0x5b9   :  { %3599 = vmatpush1.msra.mxu0 %v8241_v14  ;;  %6060 = vmatpush3.msra.mxu1 %v8243_v40  ;;  %9452 = vst [vmem:[#allocation65_spill] sm:$0xff] %v8267_v26  ;;  %v8271_v40 = vld [vmem:[#allocation11 + $0x60] sm:$0xff]  ;;  %v8277_v14 = vld [vmem:[#allocation11 + $0x50] sm:$0xff]  ;;  %9456 = vst [vmem:[#allocation69_spill] sm:$0xff] %v8281_v55 }
 0x5ba   :  { %3600 = vmatprep.subr.mxu0 %v8247_v53  ;;  %6061 = vmatprep.subr.mxu1 %v9316_v10  ;;  %9453 = vst [vmem:[#allocation66_spill] sm:$0xff] %v8271_v40  ;;  %v8273_v53 = vld [vmem:[#allocation11 + $0x70] sm:$0xff]  ;;  %9455 = vst [vmem:[#allocation68_spill] sm:$0xff] %v8277_v14  ;;  %6413 = vpow2.f32 %v5381_v50 }
 0x5bb   :  { %3601 = vmatpush1.msra.mxu0 %v8251_v21  ;;  %6062 = vmatpush3.msra.mxu1 %v8253_v8  ;;  %9454 = vst [vmem:[#allocation67_spill] sm:$0xff] %v8273_v53  ;;  %v8283_v8 = vld [vmem:[#allocation11 + $0x58] sm:$0xff]  ;;  %v8307_v21 = vld [vmem:[#allocation11 + $0x8] sm:$0xff] }
 0x5bc   :  { %3602 = vmatprep.subr.mxu0 %v8257_v57  ;;  %6063 = vmatprep.subr.mxu1 %v9316_v10  ;;  %9457 = vst [vmem:[#allocation70_spill] sm:$0xff] %v8283_v8  ;;  %v8287_v57 = vld [vmem:[#allocation11 + $0x38] sm:$0xff]  ;;  %9464 = vst [vmem:[#allocation77_spill] sm:$0xff] %v8307_v21 }
 0x5bd   :  { %3603 = vmatpush1.msra.mxu0 %v8261_v51  ;;  %6064 = vmatpush3.msra.mxu1 %v8263_v30  ;;  %9458 = vst [vmem:[#allocation71_spill] sm:$0xff] %v8287_v57  ;;  %v8291_v30 = vld [vmem:[#allocation11 + $0x30] sm:$0xff]  ;;  %v8297_v51 = vld [vmem:[#allocation11 + $0x20] sm:$0xff] }
 0x5be   :  { %3604 = vmatprep.subr.mxu0 %v8267_v26  ;;  %6065 = vmatprep.subr.mxu1 %v9316_v10  ;;  %9459 = vst [vmem:[#allocation72_spill] sm:$0xff] %v8291_v30  ;;  %v8293_v26 = vld [vmem:[#allocation11 + $0x40] sm:$0xff]  ;;  %9461 = vst [vmem:[#allocation74_spill] sm:$0xff] %v8297_v51 }
 0x5bf   :  { %3605 = vmatpush1.msra.mxu0 %v8271_v40  ;;  %6066 = vmatpush3.msra.mxu1 %v8273_v53  ;;  %9460 = vst [vmem:[#allocation73_spill] sm:$0xff] %v8293_v26  ;;  %v8301_v53 = vld [vmem:[#allocation11 + $0x18] sm:$0xff] }
 0x5c0   :  { %3606 = vmatprep.subr.mxu0 %v8277_v14  ;;  %6067 = vmatprep.subr.mxu1 %v9316_v10  ;;  %9462 = vst [vmem:[#allocation75_spill] sm:$0xff] %v8301_v53  ;;  %v8303_v14 = vld [vmem:[#allocation11 + $0x28] sm:$0xff] }
 0x5c1   :  { %3607 = vmatpush1.msra.mxu0 %v8281_v55  ;;  %6068 = vmatpush3.msra.mxu1 %v8283_v8  ;;  %9463 = vst [vmem:[#allocation76_spill] sm:$0xff] %v8303_v14  ;;  %v8311_v8 = vld [vmem:[#allocation11] sm:$0xff] }
 0x5c2   :  { %v6412_v50 = vpop.eup %6411  ;;  %3608 = vmatprep.subr.mxu0 %v8287_v57  ;;  %6069 = vmatprep.subr.mxu1 %v9316_v10  ;;  %9465 = vst [vmem:[#allocation78_spill] sm:$0xff] %v8311_v8  ;;  %v8315_v57 = vld [vmem:[#allocation11 + $0x10] sm:$0xff] }
 0x5c3   :  { %v3296_v40 = vadd.f32 1.0, %v6412_v50  ;;  %3609 = vmatpush1.msra.mxu0 %v8291_v30  ;;  %6070 = vmatpush3.msra.mxu1 %v8293_v26  ;;  %9466 = vst [vmem:[#allocation79_spill] sm:$0xff] %v8315_v57 }
 0x5c4   :  { %3610 = vmatprep.subr.mxu0 %v8297_v51  ;;  %6071 = vmatprep.subr.mxu1 %v9316_v10 }
 0x5c5   :  { %6415 = vrcp.f32 %v3296_v40  ;;  %3611 = vmatpush1.msra.mxu0 %v8301_v53  ;;  %6072 = vmatpush3.msra.mxu1 %v8303_v14 }
 0x5c6   :  { %3612 = vmatprep.subr.mxu0 %v8307_v21  ;;  %6073 = vmatprep.subr.mxu1 %v9316_v10  ;;  %v3289_v21 = vadd.f32 %v8195_v61, %v7481_v43 }
 0x5c7   :  { %3613 = vmatpush1.msra.mxu0 %v8311_v8  ;;  %3646 = vmatprep.mubr.f32.mxu0 %v9316_v10  ;;  %v6414_v40 = vpop.eup %6413  ;;  %v2875_v8 = vld [vmem:[#allocation2 + $0x40] sm:$0x3] }
 0x5c8   :  { %6074 = vmatpush3.msra.mxu1 %v8315_v57  ;;  %6075 = vmatprep.mubr.msk.f32.mxu1 %vm6750_vm0, %v9316_v10  ;;  %v3303_v50 = vadd.f32 1.0, %v6414_v40 }
 0x5c9   :  { %3812 = vmatprep.subr.mxu0 %v7990_v18  ;;  %6078 = vmatprep.subr.mxu1 %v9316_v10 }
 0x5ca   :  { %6417 = vrcp.f32 %v3303_v50 }
 0x5d2   :  { %v6416_v14 = vpop.eup %6415 }
 0x5d3   :  { %v3306_v53 = vmul.f32 %v6416_v14, %v3289_v21 }
 0x5d5   :  { %v3307_v51 = vadd.f32 %v3306_v53, %v2875_v8  ;;  %v9483_v8 = vld [vmem:[#allocation39_spill] sm:$0xff]  ;;  %v9486_v53 = vld [vmem:[#allocation42_spill] sm:$0xff] }
 0x5d7   :  { %6419 = vtanh.f32 %v3307_v51  ;;  %v6418_v26 = vpop.eup %6417 }
 0x5d8   :  { %v3309_v57 = vsub.f32 1.0, %v6418_v26  ;;  %v3311_v52 = vmul.f32 %v6418_v26, %v7983_v60  ;;  %v9467_v60 = vld [vmem:[#allocation27_spill] sm:$0xff]  ;;  %v9480_v26 = vld [vmem:[#allocation36_spill] sm:$0xff] }
 0x5e4   :  { %v6420_v30 = vpop.eup %6419 }
 0x5e5   :  { %v3310_v55 = vmul.f32 %v6420_v30, %v3309_v57  ;;  %v9482_v57 = vld [vmem:[#allocation46_spill] sm:$0xff] }
 0x5e7   :  { %v8329_v18 = vadd.f32 %v3311_v52, %v3310_v55  ;;  %v9487_v55 = vld [vmem:[#allocation44_spill] sm:$0xff] }
 0x5e9   :  { %3314 = vst [vmem:[#allocation3] sm:$0x3] %v8329_v18  ;;  %3647 = vmatmul.mubr.f32.vlgmr.msra.gmra.mxu0 %v8329_v18  ;;  %6076 = vmatmul.mubr.f32.vlgmr.msra.gmra.mxu1 %v8329_v18 }
 0x5ea   :  { %3813 = vmatpush1.msra.mxu0 %v7993_v39  ;;  %6079 = vmatpush3.msra.mxu1 %v7995_v0  ;;  %v9468_v39 = vld [vmem:[#allocation28_spill] sm:$0xff]  ;;  %v9469_v0 = vld [vmem:[#allocation29_spill] sm:$0xff] }
 0x5eb   :  { %3814 = vmatprep.subr.mxu0 %v7999_v4  ;;  %6080 = vmatprep.subr.mxu1 %v9316_v10  ;;  %v9470_v4 = vld [vmem:[#allocation30_spill] sm:$0xff] }
 0x5ec   :  { %3815 = vmatpush1.msra.mxu0 %v8003_v7  ;;  %6081 = vmatpush3.msra.mxu1 %v8005_v12  ;;  %v9471_v7 = vld [vmem:[#allocation31_spill] sm:$0xff]  ;;  %v9472_v12 = vld [vmem:[#allocation37_spill] sm:$0xff] }
 0x5ed   :  { %3816 = vmatprep.subr.mxu0 %v8009_v17  ;;  %6082 = vmatprep.subr.mxu1 %v9316_v10  ;;  %v9473_v17 = vld [vmem:[#allocation32_spill] sm:$0xff] }
 0x5ee   :  { %3817 = vmatpush1.msra.mxu0 %v8013_v59  ;;  %6083 = vmatpush3.msra.mxu1 %v8015_v19  ;;  %v9474_v59 = vld [vmem:[#allocation33_spill] sm:$0xff]  ;;  %v9475_v19 = vld [vmem:[#allocation40_spill] sm:$0xff] }
 0x5ef   :  { %3818 = vmatprep.subr.mxu0 %v8019_v22  ;;  %6084 = vmatprep.subr.mxu1 %v9316_v10  ;;  %v9476_v22 = vld [vmem:[#allocation34_spill] sm:$0xff] }
 0x5f0   :  { %3819 = vmatpush1.msra.mxu0 %v8023_v24  ;;  %6085 = vmatpush3.msra.mxu1 %v8025_v25  ;;  %v9477_v24 = vld [vmem:[#allocation35_spill] sm:$0xff] }
 0x5f1   :  { %3820 = vmatprep.subr.mxu0 %v8029_v27  ;;  %6086 = vmatprep.subr.mxu1 %v9316_v10  ;;  %v9478_v25 = vld [vmem:[#allocation43_spill] sm:$0xff] }
 0x5f2   :  { %3821 = vmatpush1.msra.mxu0 %v8033_v1  ;;  %6087 = vmatpush3.msra.mxu1 %v8035_v29  ;;  %v9479_v29 = vld [vmem:[#allocation26_spill] sm:$0xff] }
 0x5f3   :  { %3822 = vmatprep.subr.mxu0 %v8039_v58  ;;  %6088 = vmatprep.subr.mxu1 %v9316_v10 }
 0x5f4   :  { %3823 = vmatpush1.msra.mxu0 %v8043_v33  ;;  %6089 = vmatpush3.msra.mxu1 %v8045_v36  ;;  %v3315_v33 = vld [vmem:[#allocation2 + $0x8] sm:$0x3] }
 0x5f5   :  { %3824 = vmatprep.subr.mxu0 %v8049_v48  ;;  %6090 = vmatprep.subr.mxu1 %v9316_v10 }
 0x5f6   :  { %3825 = vmatpush1.msra.mxu0 %v8051_v3  ;;  %6091 = vmatpush3.msra.mxu1 %v8053_v31 }
 0x5f7   :  { %3826 = vmatprep.subr.mxu0 %v8057_v54  ;;  %6092 = vmatprep.subr.mxu1 %v9316_v10 }
 0x5f8   :  { %3827 = vmatpush1.msra.mxu0 %v8059_v6  ;;  %6093 = vmatpush3.msra.mxu1 %v8061_v56  ;;  %v3316_v6 = vld [vmem:[#allocation2 + $0x38] sm:$0x3] }
 0x5f9   :  { %3828 = vmatprep.subr.mxu0 %v8065_v23  ;;  %6094 = vmatprep.subr.mxu1 %v9316_v10 }
 0x5fa   :  { %3829 = vmatpush1.msra.mxu0 %v8069_v16  ;;  %6095 = vmatpush3.msra.mxu1 %v8071_v38 }
 0x5fb   :  { %3830 = vmatprep.subr.mxu0 %v8075_v62  ;;  %6096 = vmatprep.subr.mxu1 %v9316_v10 }
 0x5fc   :  { %3831 = vmatpush1.msra.mxu0 %v8079_v34  ;;  %6097 = vmatpush3.msra.mxu1 %v8081_v5 }
 0x5fd   :  { %3832 = vmatprep.subr.mxu0 %v8085_v45  ;;  %6098 = vmatprep.subr.mxu1 %v9316_v10 }
 0x5fe   :  { %3833 = vmatpush1.msra.mxu0 %v8089_v2  ;;  %6099 = vmatpush3.msra.mxu1 %v8091_v37  ;;  %v3317_v37 = vld [vmem:[#allocation2 + $0x28] sm:$0x3] }
 0x5ff   :  { %3834 = vmatprep.subr.mxu0 %v8095_v63  ;;  %6100 = vmatprep.subr.mxu1 %v9316_v10 }
 0x600   :  { %3835 = vmatpush1.msra.mxu0 %v8099_v11  ;;  %6101 = vmatpush3.msra.mxu1 %v8101_v20 }
 0x601   :  { %3836 = vmatprep.subr.mxu0 %v8105_v28  ;;  %6102 = vmatprep.subr.mxu1 %v9316_v10 }
 0x602   :  { %3837 = vmatpush1.msra.mxu0 %v9467_v60  ;;  %6103 = vmatpush3.msra.mxu1 %v9468_v39  ;;  %v3318_v60 = vld [vmem:[#allocation2 + $0x18] sm:$0xc0]  ;;  %v9488_v39 = vld [vmem:[#allocation52_spill] sm:$0xff] }
 0x603   :  { %3838 = vmatprep.subr.mxu0 %v9469_v0  ;;  %6104 = vmatprep.subr.mxu1 %v9316_v10 }
 0x604   :  { %3839 = vmatpush1.msra.mxu0 %v9470_v4  ;;  %6105 = vmatpush3.msra.mxu1 %v9471_v7  ;;  %v9489_v4 = vld [vmem:[#allocation45_spill] sm:$0xff]  ;;  %v9490_v7 = vld [vmem:[#allocation47_spill] sm:$0xff] }
 0x605   :  { %3840 = vmatprep.subr.mxu0 %v9472_v12  ;;  %6106 = vmatprep.subr.mxu1 %v9316_v10  ;;  %v9491_v12 = vld [vmem:[#allocation55_spill] sm:$0xff] }
 0x606   :  { %3841 = vmatpush1.msra.mxu0 %v9473_v17  ;;  %6107 = vmatpush3.msra.mxu1 %v9474_v59 }
 0x607   :  { %3842 = vmatprep.subr.mxu0 %v9475_v19  ;;  %6108 = vmatprep.subr.mxu1 %v9316_v10  ;;  %v9492_v19 = vld [vmem:[#allocation48_spill] sm:$0xff] }
 0x608   :  { %3843 = vmatpush1.msra.mxu0 %v9476_v22  ;;  %3876 = vmatprep.mubr.f32.mxu0 %v9316_v10  ;;  %v9495_v22 = vld [vmem:[#allocation51_spill] sm:$0xff] }
 0x609   :  { %6109 = vmatpush3.msra.mxu1 %v9477_v24  ;;  %6110 = vmatprep.mubr.msk.f32.mxu1 %vm6750_vm0, %v9316_v10  ;;  %v9496_v24 = vld [vmem:[#allocation53_spill] sm:$0xff] }
 0x60a   :  { %4037 = vmatprep.subr.mxu0 %v9478_v25  ;;  %6113 = vmatprep.subr.mxu1 %v9316_v10  ;;  %v3319_v25 = vld [vmem:[#allocation2 + $0x50] sm:$0xc0] }
 0x668   :  { %v3438_v27 = vpop.f32.mrf.mxu0  ;;  %v3509_v1 = vpop.f32.mrf.mxu1 }
 0x669   :  { %v3439_v58 = vadd.f32 %v3438_v27, %v9479_v29  ;;  %v3510_v5 = vadd.f32 %v3509_v1, %v7394_v9  ;;  %v9497_v27 = vld [vmem:[#allocation54_spill] sm:$0xff] }
 0x66a   :  { %v3440_v36 = vpop.f32.mrf.mxu0  ;;  %v6042_v48 = vpop.f32.mrf.mxu1 }
 0x66b   :  { %v3513_v3 = vadd.f32 %v3439_v58, %v3315_v33  ;;  %v3441_v54 = vadd.f32 %v3440_v36, %v7386_v44  ;;  %v9498_v58 = vld [vmem:[#allocation56_spill] sm:$0xff]  ;;  %v9499_v33 = vld [vmem:[#allocation57_spill] sm:$0xff]  ;;  %v9500_v36 = vld [vmem:[#allocation59_spill] sm:$0xff] }
 0x66c   :  { %v9501_v48 = vld [vmem:[#allocation60_spill] sm:$0xff] }
 0x66d   :  { %v5382_v31 = vmul.f32 -1.442695, %v3513_v3  ;;  %v3520_v56 = vadd.f32 %v3441_v54, %v3316_v6  ;;  %v9502_v3 = vld [vmem:[#allocation61_spill] sm:$0xff]  ;;  %v9504_v6 = vld [vmem:[#allocation63_spill] sm:$0xff] }
 0x66f   :  { %6421 = vpow2.f32 %v5382_v31  ;;  %v5383_v23 = vmul.f32 -1.442695, %v3520_v56  ;;  %v9503_v31 = vld [vmem:[#allocation62_spill] sm:$0xff]  ;;  %v9505_v56 = vld [vmem:[#allocation64_spill] sm:$0xff] }
 0x671   :  { %6423 = vpow2.f32 %v5383_v23  ;;  %v9506_v23 = vld [vmem:[#allocation65_spill] sm:$0xff] }
 0x67c   :  { %v6422_v16 = vpop.eup %6421 }
 0x67d   :  { %v3517_v38 = vadd.f32 1.0, %v6422_v16  ;;  %v9507_v16 = vld [vmem:[#allocation66_spill] sm:$0xff] }
 0x67e   :  { %v6424_v62 = vpop.eup %6423 }
 0x67f   :  { %6425 = vrcp.f32 %v3517_v38  ;;  %v3524_v34 = vadd.f32 1.0, %v6424_v62  ;;  %v9508_v38 = vld [vmem:[#allocation67_spill] sm:$0xff]  ;;  %v9509_v62 = vld [vmem:[#allocation68_spill] sm:$0xff] }
 0x681   :  { %6427 = vrcp.f32 %v3524_v34  ;;  %v9510_v34 = vld [vmem:[#allocation69_spill] sm:$0xff] }
 0x68c   :  { %v6426_v45 = vpop.eup %6425 }
 0x68d   :  { %v3527_v2 = vmul.f32 %v6426_v45, %v3510_v5  ;;  %v9511_v5 = vld [vmem:[#allocation70_spill] sm:$0xff]  ;;  %v9512_v45 = vld [vmem:[#allocation71_spill] sm:$0xff] }
 0x68e   :  { %v6428_v11 = vpop.eup %6427 }
 0x68f   :  { %v3528_v63 = vadd.f32 %v3527_v2, %v3317_v37  ;;  %v3530_v20 = vsub.f32 1.0, %v6428_v11  ;;  %v3532_v21 = vmul.f32 %v6428_v11, %v8157_v42  ;;  %v9481_v42 = vld [vmem:[#allocation38_spill] sm:$0xff]  ;;  %v9513_v2 = vld [vmem:[#allocation72_spill] sm:$0xff]  ;;  %v9514_v37 = vld [vmem:[#allocation73_spill] sm:$0xff] }
 0x690   :  { %v9515_v11 = vld [vmem:[#allocation74_spill] sm:$0xff] }
 0x691   :  { %6429 = vtanh.f32 %v3528_v63 }
 0x69e   :  { %v6430_v28 = vpop.eup %6429 }
 0x69f   :  { %v3531_v14 = vmul.f32 %v6430_v28, %v3530_v20  ;;  %v9516_v28 = vld [vmem:[#allocation75_spill] sm:$0xff] }
 0x6a1   :  { %v8405_v61 = vadd.f32 %v3532_v21, %v3531_v14  ;;  %v9517_v14 = vld [vmem:[#allocation76_spill] sm:$0xff]  ;;  %v9518_v21 = vld [vmem:[#allocation77_spill] sm:$0xff] }
 0x6a3   :  { %3756 = vst [vmem:[#allocation3 + $0x10] sm:$0x3] %v8405_v61  ;;  %3877 = vmatmul.mubr.f32.vlgmr.msra.gmra.mxu0 %v8405_v61  ;;  %6111 = vmatmul.mubr.f32.vlgmr.msra.gmra.mxu1 %v8405_v61 }
 0x6a4   :  { %4038 = vmatpush1.msra.mxu0 %v8159_v47  ;;  %6114 = vmatpush3.msra.mxu1 %v8161_v46  ;;  %v9484_v46 = vld [vmem:[#allocation41_spill] sm:$0xff] }
 0x6a5   :  { %4039 = vmatprep.subr.mxu0 %v8163_v49  ;;  %6115 = vmatprep.subr.mxu1 %v9316_v10 }
 0x6a6   :  { %4040 = vmatpush1.msra.mxu0 %v8167_v15  ;;  %6116 = vmatpush3.msra.mxu1 %v9480_v26  ;;  %v9485_v15 = vld [vmem:[#allocation49_spill] sm:$0xff]  ;;  %v9519_v26 = vld [vmem:[#allocation78_spill] sm:$0xff] }
 0x6a7   :  { %4041 = vmatprep.subr.mxu0 %v9481_v42  ;;  %6117 = vmatprep.subr.mxu1 %v9316_v10  ;;  %v9520_v42 = vld [vmem:[#allocation79_spill] sm:$0xff] }
 0x6a8   :  { %4042 = vmatpush1.msra.mxu0 %v9482_v57  ;;  %6118 = vmatpush3.msra.mxu1 %v9483_v8 }
 0x6a9   :  { %v3648_v52 = vpop.f32.mrf.mxu0  ;;  %v8420_v47 = vpop.f32.mrf.mxu1  ;;  %4043 = vmatprep.subr.mxu0 %v9484_v46  ;;  %6119 = vmatprep.subr.mxu1 %v9316_v10 }
 0x6aa   :  { %v3649_v49 = vadd.f32 %v3648_v52, %v7410_v41  ;;  %4044 = vmatpush1.msra.mxu0 %v9485_v15  ;;  %6120 = vmatpush3.msra.mxu1 %v9486_v53  ;;  %v3720_v8 = vadd.f32 %v8420_v47, %v7481_v43  ;;  %v3320_v53 = vld [vmem:[#allocation2 + $0x20] sm:$0xc0] }
 0x6ab   :  { %v3650_v51 = vpop.f32.mrf.mxu0  ;;  %v6077_v30 = vpop.f32.mrf.mxu1  ;;  %4045 = vmatprep.subr.mxu0 %v9487_v55  ;;  %6121 = vmatprep.subr.mxu1 %v9316_v10  ;;  %v3752_v55 = vrot.slane %v8329_v18, 2  ;;  %v8493_v18 = vld [vmem:[#allocation8 + $0x168] sm:$0xff] }
 0x6ac   :  { %v3724_v40 = vrot.slane %v3649_v49, 2  ;;  %v3651_v50 = vadd.f32 %v3650_v51, %v7418_v35  ;;  %4046 = vmatpush1.msra.mxu0 %v8199_v32  ;;  %6122 = vmatpush3.msra.mxu1 %v8201_v13  ;;  %v9493_v32 = vld [vmem:[#allocation50_spill] sm:$0xff]  ;;  %v3744_v46 = vrot.slane %v3720_v8, 2  ;;  %v8621_v8 = vld [vmem:[#allocation8 + $0x40] sm:$0xff] }
 0x6ad   :  { %4047 = vmatprep.subr.mxu0 %v9488_v39  ;;  %6123 = vmatprep.subr.mxu1 %v9316_v10  ;;  %v9494_v13 = vld [vmem:[#allocation58_spill] sm:$0xff]  ;;  %9525 = vst [vmem:[#allocation29_spill] sm:$0xff] %v8621_v8 }
 0x6ae   :  { %v3726_v0 = vadd.f32 %v3724_v40, %v3318_v60  ;;  %4048 = vmatpush1.msra.mxu0 %v9489_v4  ;;  %6124 = vmatpush3.msra.mxu1 %v9490_v7  ;;  %v3734_v59 = vrot.slane %v3651_v50, 2  ;;  %v8490_v4 = vld [vmem:[#allocation8 + $0x170] sm:$0xff]  ;;  %v8495_v7 = vld [vmem:[#allocation8 + $0x178] sm:$0xff] }
 0x6af   :  { %4049 = vmatprep.subr.mxu0 %v9491_v12  ;;  %6125 = vmatprep.subr.mxu1 %v9316_v10  ;;  %v8499_v12 = vld [vmem:[#allocation8 + $0x158] sm:$0xff] }
 0x6b0   :  { %v5384_v17 = vmul.f32 -1.442695, %v3726_v0  ;;  %4050 = vmatpush1.msra.mxu0 %v9492_v19  ;;  %6126 = vmatpush3.msra.mxu1 %v9493_v32  ;;  %v3736_v1 = vadd.f32 %v3734_v59, %v3319_v25  ;;  %v8505_v59 = vld [vmem:[#allocation8 + $0x160] sm:$0xff]  ;;  %v8513_v32 = vld [vmem:[#allocation8 + $0x138] sm:$0xff]  ;;  %v8525_v25 = vld [vmem:[#allocation8 + $0x130] sm:$0xff] }
 0x6b1   :  { %4051 = vmatprep.subr.mxu0 %v9494_v13  ;;  %6127 = vmatprep.subr.mxu1 %v9316_v10  ;;  %v8509_v19 = vld [vmem:[#allocation8 + $0x140] sm:$0xff]  ;;  %v8515_v13 = vld [vmem:[#allocation8 + $0x148] sm:$0xff] }
 0x6b2   :  { %6431 = vpow2.f32 %v5384_v17  ;;  %4052 = vmatpush1.msra.mxu0 %v9495_v22  ;;  %6128 = vmatpush3.msra.mxu1 %v9496_v24  ;;  %v5385_v54 = vmul.f32 -1.442695, %v3736_v1  ;;  %v8503_v17 = vld [vmem:[#allocation8 + $0x150] sm:$0xff]  ;;  %v8519_v22 = vld [vmem:[#allocation8 + $0x128] sm:$0xff]  ;;  %v8523_v24 = vld [vmem:[#allocation8 + $0x120] sm:$0xff] }
 0x6b3   :  { %4053 = vmatprep.subr.mxu0 %v9497_v27  ;;  %6129 = vmatprep.subr.mxu1 %v9316_v10  ;;  %v8529_v27 = vld [vmem:[#allocation8 + $0x110] sm:$0xff]  ;;  %v8533_v1 = vld [vmem:[#allocation8 + $0x108] sm:$0xff] }
 0x6b4   :  { %4054 = vmatpush1.msra.mxu0 %v9498_v58  ;;  %6130 = vmatpush3.msra.mxu1 %v9499_v33  ;;  %6433 = vpow2.f32 %v5385_v54  ;;  %v8535_v58 = vld [vmem:[#allocation8 + $0x118] sm:$0xff]  ;;  %v8553_v54 = vld [vmem:[#allocation8 + $0xe8] sm:$0xff] }
 0x6b5   :  { %4055 = vmatprep.subr.mxu0 %v9500_v36  ;;  %6131 = vmatprep.subr.mxu1 %v9316_v10  ;;  %v8539_v33 = vld [vmem:[#allocation8 + $0xf8] sm:$0xff]  ;;  %v8543_v36 = vld [vmem:[#allocation8 + $0xf0] sm:$0xff] }
 0x6b6   :  { %4056 = vmatpush1.msra.mxu0 %v9501_v48  ;;  %6132 = vmatpush3.msra.mxu1 %v9502_v3  ;;  %v8545_v48 = vld [vmem:[#allocation8 + $0x100] sm:$0xff] }
 0x6b7   :  { %4057 = vmatprep.subr.mxu0 %v9503_v31  ;;  %6133 = vmatprep.subr.mxu1 %v9316_v10  ;;  %v8547_v3 = vld [vmem:[#allocation8 + $0xe0] sm:$0xff]  ;;  %v8551_v31 = vld [vmem:[#allocation8 + $0xd8] sm:$0xff] }
 0x6b8   :  { %4058 = vmatpush1.msra.mxu0 %v9504_v6  ;;  %6134 = vmatpush3.msra.mxu1 %v9505_v56  ;;  %v8555_v6 = vld [vmem:[#allocation8 + $0xc8] sm:$0xff]  ;;  %v8559_v56 = vld [vmem:[#allocation8 + $0xc0] sm:$0xff] }
 0x6b9   :  { %4059 = vmatprep.subr.mxu0 %v9506_v23  ;;  %6135 = vmatprep.subr.mxu1 %v9316_v10  ;;  %v8561_v23 = vld [vmem:[#allocation8 + $0xd0] sm:$0xff] }
 0x6ba   :  { %4060 = vmatpush1.msra.mxu0 %v9507_v16  ;;  %6136 = vmatpush3.msra.mxu1 %v9508_v38  ;;  %v8565_v16 = vld [vmem:[#allocation8 + $0xb0] sm:$0xff]  ;;  %v8569_v38 = vld [vmem:[#allocation8 + $0xa8] sm:$0xff] }
 0x6bb   :  { %4061 = vmatprep.subr.mxu0 %v9509_v62  ;;  %6137 = vmatprep.subr.mxu1 %v9316_v10  ;;  %v8571_v62 = vld [vmem:[#allocation8 + $0xb8] sm:$0xff] }
 0x6bc   :  { %4062 = vmatpush1.msra.mxu0 %v9510_v34  ;;  %6138 = vmatpush3.msra.mxu1 %v9511_v5  ;;  %v8575_v34 = vld [vmem:[#allocation8 + $0x98] sm:$0xff]  ;;  %v8579_v5 = vld [vmem:[#allocation8 + $0x90] sm:$0xff] }
 0x6bd   :  { %4063 = vmatprep.subr.mxu0 %v9512_v45  ;;  %6139 = vmatprep.subr.mxu1 %v9316_v10  ;;  %v8581_v45 = vld [vmem:[#allocation8 + $0xa0] sm:$0xff] }
 0x6be   :  { %4064 = vmatpush1.msra.mxu0 %v9513_v2  ;;  %6140 = vmatpush3.msra.mxu1 %v9514_v37  ;;  %v8585_v2 = vld [vmem:[#allocation8 + $0x80] sm:$0xff]  ;;  %v8589_v37 = vld [vmem:[#allocation8 + $0x78] sm:$0xff] }
 0x6bf   :  { %v6432_v63 = vpop.eup %6431  ;;  %4065 = vmatprep.subr.mxu0 %v9515_v11  ;;  %6141 = vmatprep.subr.mxu1 %v9316_v10  ;;  %v8595_v11 = vld [vmem:[#allocation8 + $0x68] sm:$0xff] }
 0x6c0   :  { %v3730_v20 = vadd.f32 1.0, %v6432_v63  ;;  %4066 = vmatpush1.msra.mxu0 %v9516_v28  ;;  %6142 = vmatpush3.msra.mxu1 %v9517_v14  ;;  %v8591_v63 = vld [vmem:[#allocation8 + $0x88] sm:$0xff]  ;;  %v8601_v28 = vld [vmem:[#allocation8 + $0x70] sm:$0xff] }
 0x6c1   :  { %4067 = vmatprep.subr.mxu0 %v9518_v21  ;;  %6143 = vmatprep.subr.mxu1 %v9316_v10  ;;  %v6434_v57 = vpop.eup %6433  ;;  %v8605_v14 = vld [vmem:[#allocation8 + $0x50] sm:$0xff]  ;;  %v8609_v21 = vld [vmem:[#allocation8 + $0x48] sm:$0xff] }
 0x6c2   :  { %6435 = vrcp.f32 %v3730_v20  ;;  %4068 = vmatpush1.msra.mxu0 %v9519_v26  ;;  %4101 = vmatprep.mubr.f32.mxu0 %v9316_v10  ;;  %v3740_v52 = vadd.f32 1.0, %v6434_v57  ;;  %v8599_v20 = vld [vmem:[#allocation8 + $0x60] sm:$0xff]  ;;  %9521 = vst [vmem:[#allocation80_spill] sm:$0xff] %v8609_v21  ;;  %v8611_v26 = vld [vmem:[#allocation8 + $0x58] sm:$0xff]  ;;  %v8619_v57 = vld [vmem:[#allocation8 + $0x30] sm:$0xff] }
 0x6c3   :  { %6144 = vmatpush3.msra.mxu1 %v9520_v42  ;;  %6145 = vmatprep.mubr.msk.f32.mxu1 %vm6750_vm0, %v9316_v10  ;;  %9522 = vst [vmem:[#allocation81_spill] sm:$0xff] %v8611_v26  ;;  %v8615_v42 = vld [vmem:[#allocation8 + $0x38] sm:$0xff]  ;;  %9524 = vst [vmem:[#allocation28_spill] sm:$0xff] %v8619_v57 }
 0x6c4   :  { %6148 = vmatprep.subr.mxu1 %v9316_v10  ;;  %6437 = vrcp.f32 %v3740_v52  ;;  %4269 = vmatprep.subr.mxu0 %v8490_v4  ;;  %9523 = vst [vmem:[#allocation27_spill] sm:$0xff] %v8615_v42  ;;  %v8625_v52 = vld [vmem:[#allocation8 + $0x20] sm:$0xff] }
 0x6c5   :  { %9526 = vst [vmem:[#allocation30_spill] sm:$0xff] %v8625_v52 }
 0x6cf   :  { %v6436_v49 = vpop.eup %6435 }
 0x6d0   :  { %v3746_v15 = vmul.f32 %v6436_v49, %v3744_v46  ;;  %v8629_v46 = vld [vmem:[#allocation8 + $0x18] sm:$0xff]  ;;  %v8631_v49 = vld [vmem:[#allocation8 + $0x28] sm:$0xff] }
 0x6d1   :  { %v6438_v30 = vpop.eup %6437  ;;  %9527 = vst [vmem:[#allocation31_spill] sm:$0xff] %v8629_v46  ;;  %9528 = vst [vmem:[#allocation37_spill] sm:$0xff] %v8631_v49 }
 0x6d2   :  { %v3747_v51 = vadd.f32 %v3746_v15, %v3320_v53  ;;  %v3749_v40 = vsub.f32 1.0, %v6438_v30  ;;  %v3754_v39 = vmul.f32 %v6438_v30, %v3752_v55  ;;  %v8635_v15 = vld [vmem:[#allocation8 + $0x8] sm:$0xff]  ;;  %v8639_v53 = vld [vmem:[#allocation8] sm:$0xff]  ;;  %v8650_v30 = vld [vmem:[#allocation11 + $0x170] sm:$0xff] }
 0x6d3   :  { %9529 = vst [vmem:[#allocation32_spill] sm:$0xff] %v8635_v15  ;;  %9530 = vst [vmem:[#allocation33_spill] sm:$0xff] %v8639_v53 }
 0x6d4   :  { %6439 = vtanh.f32 %v3747_v51  ;;  %v8641_v51 = vld [vmem:[#allocation8 + $0x10] sm:$0xff]  ;;  %9532 = vst [vmem:[#allocation34_spill] sm:$0xff] %v8650_v30 }
 0x6d5   :  { %9531 = vst [vmem:[#allocation40_spill] sm:$0xff] %v8641_v51 }
 0x6e1   :  { %v6440_v50 = vpop.eup %6439 }
 0x6e2   :  { %v3750_v60 = vmul.f32 %v6440_v50, %v3749_v40 }
 0x6e4   :  { %v8483_v0 = vadd.f32 %v3754_v39, %v3750_v60 }
 0x6e6   :  { %3757 = vst [vmem:[#allocation3 + $0x8] sm:$0xc0] %v8483_v0  ;;  %v4035_v47 = vrot.slane %v8483_v0, 6 }
 0x6e8   :  { %4102 = vmatmul.mubr.f32.vlgmr.msra.gmra.mxu0 %v4035_v47  ;;  %6146 = vmatmul.mubr.f32.vlgmr.msra.gmra.mxu1 %v4035_v47 }
 0x6e9   :  { %4333 = vmatprep.mubr.f32.mxu0 %v9316_v10  ;;  %6180 = vmatprep.mubr.msk.f32.mxu1 %vm6750_vm0, %v9316_v10 }
 0x6ea   :  { %4270 = vmatpush1.msra.mxu0 %v8493_v18  ;;  %6149 = vmatpush3.msra.mxu1 %v8495_v7 }
 0x6eb   :  { %4271 = vmatprep.subr.mxu0 %v8499_v12  ;;  %6150 = vmatprep.subr.mxu1 %v9316_v10 }
 0x6ec   :  { %4272 = vmatpush1.msra.mxu0 %v8503_v17  ;;  %6151 = vmatpush3.msra.mxu1 %v8505_v59 }
 0x6ed   :  { %4273 = vmatprep.subr.mxu0 %v8509_v19  ;;  %6152 = vmatprep.subr.mxu1 %v9316_v10 }
 0x6ee   :  { %4274 = vmatpush1.msra.mxu0 %v8513_v32  ;;  %6153 = vmatpush3.msra.mxu1 %v8515_v13 }
 0x6ef   :  { %4275 = vmatprep.subr.mxu0 %v8519_v22  ;;  %6154 = vmatprep.subr.mxu1 %v9316_v10 }
 0x6f0   :  { %4276 = vmatpush1.msra.mxu0 %v8523_v24  ;;  %6155 = vmatpush3.msra.mxu1 %v8525_v25 }
 0x6f1   :  { %4277 = vmatprep.subr.mxu0 %v8529_v27  ;;  %6156 = vmatprep.subr.mxu1 %v9316_v10 }
 0x6f2   :  { %4278 = vmatpush1.msra.mxu0 %v8533_v1  ;;  %6157 = vmatpush3.msra.mxu1 %v8535_v58 }
 0x6f3   :  { %4279 = vmatprep.subr.mxu0 %v8539_v33  ;;  %6158 = vmatprep.subr.mxu1 %v9316_v10 }
 0x6f4   :  { %4280 = vmatpush1.msra.mxu0 %v8543_v36  ;;  %6159 = vmatpush3.msra.mxu1 %v8545_v48 }
 0x6f5   :  { %4281 = vmatprep.subr.mxu0 %v8547_v3  ;;  %6160 = vmatprep.subr.mxu1 %v9316_v10 }
 0x6f6   :  { %4282 = vmatpush1.msra.mxu0 %v8551_v31  ;;  %6161 = vmatpush3.msra.mxu1 %v8553_v54 }
 0x6f7   :  { %4283 = vmatprep.subr.mxu0 %v8555_v6  ;;  %6162 = vmatprep.subr.mxu1 %v9316_v10 }
 0x6f8   :  { %4284 = vmatpush1.msra.mxu0 %v8559_v56  ;;  %6163 = vmatpush3.msra.mxu1 %v8561_v23 }
 0x6f9   :  { %4285 = vmatprep.subr.mxu0 %v8565_v16  ;;  %6164 = vmatprep.subr.mxu1 %v9316_v10 }
 0x6fa   :  { %4286 = vmatpush1.msra.mxu0 %v8569_v38  ;;  %6165 = vmatpush3.msra.mxu1 %v8571_v62 }
 0x6fb   :  { %4287 = vmatprep.subr.mxu0 %v8575_v34  ;;  %6166 = vmatprep.subr.mxu1 %v9316_v10 }
 0x6fc   :  { %4288 = vmatpush1.msra.mxu0 %v8579_v5  ;;  %6167 = vmatpush3.msra.mxu1 %v8581_v45 }
 0x6fd   :  { %4289 = vmatprep.subr.mxu0 %v8585_v2  ;;  %6168 = vmatprep.subr.mxu1 %v9316_v10 }
 0x6fe   :  { %4290 = vmatpush1.msra.mxu0 %v8589_v37  ;;  %6169 = vmatpush3.msra.mxu1 %v8591_v63 }
 0x6ff   :  { %4291 = vmatprep.subr.mxu0 %v8595_v11  ;;  %6170 = vmatprep.subr.mxu1 %v9316_v10 }
 0x700   :  { %4292 = vmatpush1.msra.mxu0 %v8599_v20  ;;  %6171 = vmatpush3.msra.mxu1 %v8601_v28 }
 0x701   :  { %4293 = vmatprep.subr.mxu0 %v8605_v14  ;;  %6172 = vmatprep.subr.mxu1 %v9316_v10 }
 0x702   :  { %4294 = vmatpush1.msra.mxu0 %v8609_v21  ;;  %6173 = vmatpush3.msra.mxu1 %v8611_v26 }
 0x703   :  { %4295 = vmatprep.subr.mxu0 %v8615_v42  ;;  %6174 = vmatprep.subr.mxu1 %v9316_v10 }
 0x704   :  { %4296 = vmatpush1.msra.mxu0 %v8619_v57  ;;  %6175 = vmatpush3.msra.mxu1 %v8621_v8 }
 0x705   :  { %4297 = vmatprep.subr.mxu0 %v8625_v52  ;;  %6176 = vmatprep.subr.mxu1 %v9316_v10 }
 0x706   :  { %4298 = vmatpush1.msra.mxu0 %v8629_v46  ;;  %6177 = vmatpush3.msra.mxu1 %v8631_v49  ;;  %v3758_v49 = vld [vmem:[#allocation2 + $0x8] sm:$0xc] }
 0x707   :  { %4299 = vmatprep.subr.mxu0 %v8635_v15  ;;  %6178 = vmatprep.subr.mxu1 %v9316_v10 }
 0x708   :  { %4300 = vmatpush1.msra.mxu0 %v8639_v53  ;;  %6179 = vmatpush3.msra.mxu1 %v8641_v51  ;;  %v3759_v51 = vld [vmem:[#allocation2 + $0x38] sm:$0xc] }
 0x709   :  { %6183 = vmatprep.subr.mxu1 %v9316_v10  ;;  %4493 = vmatprep.subr.mxu0 %v8650_v30 }
 0x763   :  { %v3878_v55 = vpop.f32.mrf.mxu0  ;;  %v3949_v40 = vpop.f32.mrf.mxu1 }
 0x764   :  { %v3879_v50 = vadd.f32 %v3878_v55, %v9479_v29  ;;  %v3950_v55 = vadd.f32 %v3949_v40, %v7394_v9  ;;  %v8673_v40 = vld [vmem:[#allocation11 + $0x140] sm:$0xff] }
 0x765   :  { %v3880_v60 = vpop.f32.mrf.mxu0  ;;  %v6112_v39 = vpop.f32.mrf.mxu1  ;;  %9534 = vst [vmem:[#allocation43_spill] sm:$0xff] %v8673_v40 }
 0x766   :  { %v3954_v47 = vrot.slane %v3879_v50, 6  ;;  %v3881_v15 = vadd.f32 %v3880_v60, %v7386_v44  ;;  %v3974_v39 = vrot.slane %v3950_v55, 6  ;;  %v3760_v60 = vld [vmem:[#allocation2 + $0x28] sm:$0xc]  ;;  %v8679_v55 = vld [vmem:[#allocation11 + $0x148] sm:$0xff] }
 0x767   :  { %9536 = vst [vmem:[#allocation38_spill] sm:$0xff] %v8679_v55 }
 0x768   :  { %v3956_v46 = vadd.f32 %v3954_v47, %v3758_v49  ;;  %v3964_v52 = vrot.slane %v3881_v15, 6  ;;  %v3982_v15 = vrot.slane %v8405_v61, 6  ;;  %v8669_v61 = vld [vmem:[#allocation11 + $0x160] sm:$0xff]  ;;  %v8677_v47 = vld [vmem:[#allocation11 + $0x138] sm:$0xff] }
 0x769   :  { %9533 = vst [vmem:[#allocation35_spill] sm:$0xff] %v8669_v61  ;;  %9535 = vst [vmem:[#allocation36_spill] sm:$0xff] %v8677_v47 }
 0x76a   :  { %v5386_v53 = vmul.f32 -1.442695, %v3956_v46  ;;  %v3966_v8 = vadd.f32 %v3964_v52, %v3759_v51  ;;  %v8661_v51 = vld [vmem:[#allocation11 + $0x168] sm:$0xff] }
 0x76c   :  { %6441 = vpow2.f32 %v5386_v53  ;;  %v5387_v57 = vmul.f32 -1.442695, %v3966_v8 }
 0x76e   :  { %6443 = vpow2.f32 %v5387_v57 }
 0x779   :  { %v6442_v42 = vpop.eup %6441 }
 0x77a   :  { %v3960_v30 = vadd.f32 1.0, %v6442_v42 }
 0x77b   :  { %v6444_v26 = vpop.eup %6443 }
 0x77c   :  { %6445 = vrcp.f32 %v3960_v30  ;;  %v3970_v29 = vadd.f32 1.0, %v6444_v26  ;;  %v8663_v30 = vld [vmem:[#allocation11 + $0x178] sm:$0xff] }
 0x77e   :  { %6447 = vrcp.f32 %v3970_v29  ;;  %v8665_v29 = vld [vmem:[#allocation11 + $0x158] sm:$0xff] }
 0x789   :  { %v6446_v50 = vpop.eup %6445 }
 0x78a   :  { %v3976_v21 = vmul.f32 %v6446_v50, %v3974_v39  ;;  %v8683_v39 = vld [vmem:[#allocation11 + $0x128] sm:$0xff]  ;;  %v8687_v50 = vld [vmem:[#allocation11 + $0x120] sm:$0xff] }
 0x78b   :  { %v6448_v46 = vpop.eup %6447  ;;  %9537 = vst [vmem:[#allocation46_spill] sm:$0xff] %v8683_v39  ;;  %9538 = vst [vmem:[#allocation39_spill] sm:$0xff] %v8687_v50 }
 0x78c   :  { %v3977_v49 = vadd.f32 %v3976_v21, %v3760_v60  ;;  %v3979_v52 = vsub.f32 1.0, %v6448_v46  ;;  %v3984_v53 = vmul.f32 %v6448_v46, %v3982_v15  ;;  %v8667_v21 = vld [vmem:[#allocation11 + $0x150] sm:$0xff] }
 0x78d   :  { %v8689_v60 = vld [vmem:[#allocation11 + $0x130] sm:$0xff] }
 0x78e   :  { %6449 = vtanh.f32 %v3977_v49  ;;  %9539 = vst [vmem:[#allocation41_spill] sm:$0xff] %v8689_v60  ;;  %v8693_v49 = vld [vmem:[#allocation11 + $0x110] sm:$0xff] }
 0x78f   :  { %9540 = vst [vmem:[#allocation49_spill] sm:$0xff] %v8693_v49 }
 0x79b   :  { %v6450_v8 = vpop.eup %6449 }
 0x79c   :  { %v3980_v57 = vmul.f32 %v6450_v8, %v3979_v52  ;;  %v8699_v52 = vld [vmem:[#allocation11 + $0x108] sm:$0xff]  ;;  %v8701_v8 = vld [vmem:[#allocation11 + $0x118] sm:$0xff] }
 0x79d   :  { %9541 = vst [vmem:[#allocation42_spill] sm:$0xff] %v8699_v52  ;;  %9542 = vst [vmem:[#allocation44_spill] sm:$0xff] %v8701_v8 }
 0x79e   :  { %v8657_v42 = vadd.f32 %v3984_v53, %v3980_v57  ;;  %v8706_v53 = vld [vmem:[#allocation11 + $0xf8] sm:$0xff] }
 0x79f   :  { %9543 = vst [vmem:[#allocation52_spill] sm:$0xff] %v8706_v53 }
 0x7a0   :  { %4210 = vst [vmem:[#allocation3 + $0x10] sm:$0xc] %v8657_v42  ;;  %v4267_v26 = vrot.slane %v8657_v42, 2 }
 0x7a2   :  { %4334 = vmatmul.mubr.f32.vlgmr.msra.gmra.mxu0 %v4267_v26  ;;  %6181 = vmatmul.mubr.f32.vlgmr.msra.gmra.mxu1 %v4267_v26 }
 0x7a3   :  { %4494 = vmatpush1.msra.mxu0 %v8661_v51  ;;  %6184 = vmatpush3.msra.mxu1 %v8663_v30 }
 0x7a4   :  { %4495 = vmatprep.subr.mxu0 %v8665_v29  ;;  %6185 = vmatprep.subr.mxu1 %v9316_v10 }
 0x7a5   :  { %4496 = vmatpush1.msra.mxu0 %v8667_v21  ;;  %6186 = vmatpush3.msra.mxu1 %v8669_v61 }
 0x7a6   :  { %4497 = vmatprep.subr.mxu0 %v8673_v40  ;;  %6187 = vmatprep.subr.mxu1 %v9316_v10 }
 0x7a7   :  { %4498 = vmatpush1.msra.mxu0 %v8677_v47  ;;  %6188 = vmatpush3.msra.mxu1 %v8679_v55  ;;  %v8712_v47 = vld [vmem:[#allocation11 + $0x100] sm:$0xff] }
 0x7a8   :  { %v4103_v46 = vpop.f32.mrf.mxu0  ;;  %v8695_v15 = vpop.f32.mrf.mxu1  ;;  %4499 = vmatprep.subr.mxu0 %v8683_v39  ;;  %6189 = vmatprep.subr.mxu1 %v9316_v10  ;;  %v8710_v39 = vld [vmem:[#allocation11 + $0xf0] sm:$0xff]  ;;  %9545 = vst [vmem:[#allocation47_spill] sm:$0xff] %v8712_v47 }
 0x7a9   :  { %v4104_v57 = vadd.f32 %v4103_v46, %v7410_v41  ;;  %4500 = vmatpush1.msra.mxu0 %v8687_v50  ;;  %6190 = vmatpush3.msra.mxu1 %v8689_v60  ;;  %9544 = vst [vmem:[#allocation45_spill] sm:$0xff] %v8710_v39  ;;  %v8717_v46 = vld [vmem:[#allocation11 + $0xe0] sm:$0xff]  ;;  %v3761_v60 = vld [vmem:[#allocation2 + $0x18] sm:$0x30] }
 0x7aa   :  { %v4105_v26 = vpop.f32.mrf.mxu0  ;;  %v6147_v55 = vpop.f32.mrf.mxu1  ;;  %4501 = vmatprep.subr.mxu0 %v8693_v49  ;;  %6191 = vmatprep.subr.mxu1 %v9316_v10  ;;  %9546 = vst [vmem:[#allocation55_spill] sm:$0xff] %v8717_v46  ;;  %v8723_v49 = vld [vmem:[#allocation11 + $0xe8] sm:$0xff] }
 0x7ab   :  { %v4179_v40 = vrot.slane %v4104_v57, 4  ;;  %v4106_v61 = vadd.f32 %v4105_v26, %v7418_v35  ;;  %4502 = vmatpush1.msra.mxu0 %v8699_v52  ;;  %6192 = vmatpush3.msra.mxu1 %v8701_v8  ;;  %v8721_v55 = vld [vmem:[#allocation11 + $0xd8] sm:$0xff]  ;;  %9548 = vst [vmem:[#allocation50_spill] sm:$0xff] %v8723_v49  ;;  %v8727_v57 = vld [vmem:[#allocation11 + $0xc8] sm:$0xff]  ;;  %v8731_v26 = vld [vmem:[#allocation11 + $0xc0] sm:$0xff] }
 0x7ac   :  { %4503 = vmatprep.subr.mxu0 %v8706_v53  ;;  %6193 = vmatprep.subr.mxu1 %v9316_v10  ;;  %9547 = vst [vmem:[#allocation48_spill] sm:$0xff] %v8721_v55  ;;  %9549 = vst [vmem:[#allocation58_spill] sm:$0xff] %v8727_v57  ;;  %v8733_v53 = vld [vmem:[#allocation11 + $0xd0] sm:$0xff] }
 0x7ad   :  { %v4181_v50 = vadd.f32 %v4179_v40, %v3761_v60  ;;  %4504 = vmatpush1.msra.mxu0 %v8710_v39  ;;  %6194 = vmatpush3.msra.mxu1 %v8712_v47  ;;  %9550 = vst [vmem:[#allocation51_spill] sm:$0xff] %v8731_v26  ;;  %9551 = vst [vmem:[#allocation53_spill] sm:$0xff] %v8733_v53  ;;  %v4189_v52 = vrot.slane %v4106_v61, 4  ;;  %v8737_v40 = vld [vmem:[#allocation11 + $0xb0] sm:$0xff]  ;;  %v8741_v60 = vld [vmem:[#allocation11 + $0xa8] sm:$0xff] }
 0x7ae   :  { %4505 = vmatprep.subr.mxu0 %v8717_v46  ;;  %6195 = vmatprep.subr.mxu1 %v9316_v10  ;;  %9552 = vst [vmem:[#allocation54_spill] sm:$0xff] %v8737_v40  ;;  %9553 = vst [vmem:[#allocation56_spill] sm:$0xff] %v8741_v60  ;;  %v8743_v46 = vld [vmem:[#allocation11 + $0xb8] sm:$0xff] }
 0x7af   :  { %v5388_v8 = vmul.f32 -1.442695, %v4181_v50  ;;  %4506 = vmatpush1.msra.mxu0 %v8721_v55  ;;  %6196 = vmatpush3.msra.mxu1 %v8723_v49  ;;  %9554 = vst [vmem:[#allocation57_spill] sm:$0xff] %v8743_v46  ;;  %v8747_v61 = vld [vmem:[#allocation11 + $0x98] sm:$0xff]  ;;  %v3762_v50 = vld [vmem:[#allocation2 + $0x50] sm:$0x30] }
 0x7b0   :  { %4507 = vmatprep.subr.mxu0 %v8727_v57  ;;  %6197 = vmatprep.subr.mxu1 %v9316_v10  ;;  %9555 = vst [vmem:[#allocation59_spill] sm:$0xff] %v8747_v61  ;;  %v8751_v49 = vld [vmem:[#allocation11 + $0x90] sm:$0xff]  ;;  %v8753_v57 = vld [vmem:[#allocation11 + $0xa0] sm:$0xff]  ;;  %v4191_v55 = vadd.f32 %v4189_v52, %v3762_v50 }
 0x7b1   :  { %6451 = vpow2.f32 %v5388_v8  ;;  %4508 = vmatpush1.msra.mxu0 %v8731_v26  ;;  %6198 = vmatpush3.msra.mxu1 %v8733_v53  ;;  %9556 = vst [vmem:[#allocation60_spill] sm:$0xff] %v8751_v49  ;;  %9557 = vst [vmem:[#allocation61_spill] sm:$0xff] %v8753_v57  ;;  %v8757_v8 = vld [vmem:[#allocation11 + $0x80] sm:$0xff]  ;;  %v8761_v53 = vld [vmem:[#allocation11 + $0x78] sm:$0xff] }
 0x7b2   :  { %4509 = vmatprep.subr.mxu0 %v8737_v40  ;;  %6199 = vmatprep.subr.mxu1 %v9316_v10  ;;  %9558 = vst [vmem:[#allocation62_spill] sm:$0xff] %v8757_v8  ;;  %9559 = vst [vmem:[#allocation63_spill] sm:$0xff] %v8761_v53  ;;  %v8763_v40 = vld [vmem:[#allocation11 + $0x88] sm:$0xff]  ;;  %v8771_v52 = vld [vmem:[#allocation11 + $0x60] sm:$0xff] }
 0x7b3   :  { %4510 = vmatpush1.msra.mxu0 %v8741_v60  ;;  %6200 = vmatpush3.msra.mxu1 %v8743_v46  ;;  %9560 = vst [vmem:[#allocation64_spill] sm:$0xff] %v8763_v40  ;;  %v8767_v26 = vld [vmem:[#allocation11 + $0x68] sm:$0xff]  ;;  %9562 = vst [vmem:[#allocation66_spill] sm:$0xff] %v8771_v52  ;;  %v8773_v50 = vld [vmem:[#allocation11 + $0x70] sm:$0xff] }
 0x7b4   :  { %4511 = vmatprep.subr.mxu0 %v8747_v61  ;;  %6201 = vmatprep.subr.mxu1 %v9316_v10  ;;  %9561 = vst [vmem:[#allocation65_spill] sm:$0xff] %v8767_v26  ;;  %9563 = vst [vmem:[#allocation67_spill] sm:$0xff] %v8773_v50  ;;  %v5389_v61 = vmul.f32 -1.442695, %v4191_v55  ;;  %v8777_v46 = vld [vmem:[#allocation11 + $0x50] sm:$0xff] }
 0x7b5   :  { %4512 = vmatpush1.msra.mxu0 %v8751_v49  ;;  %6202 = vmatpush3.msra.mxu1 %v8753_v57  ;;  %9564 = vst [vmem:[#allocation68_spill] sm:$0xff] %v8777_v46  ;;  %v8781_v57 = vld [vmem:[#allocation11 + $0x48] sm:$0xff]  ;;  %v8787_v49 = vld [vmem:[#allocation11 + $0x38] sm:$0xff]  ;;  %v8791_v55 = vld [vmem:[#allocation11 + $0x30] sm:$0xff] }
 0x7b6   :  { %4513 = vmatprep.subr.mxu0 %v8757_v8  ;;  %6203 = vmatprep.subr.mxu1 %v9316_v10  ;;  %9565 = vst [vmem:[#allocation69_spill] sm:$0xff] %v8781_v57  ;;  %v8783_v8 = vld [vmem:[#allocation11 + $0x58] sm:$0xff]  ;;  %9567 = vst [vmem:[#allocation71_spill] sm:$0xff] %v8787_v49  ;;  %6453 = vpow2.f32 %v5389_v61 }
 0x7b7   :  { %4514 = vmatpush1.msra.mxu0 %v8761_v53  ;;  %6204 = vmatpush3.msra.mxu1 %v8763_v40  ;;  %9566 = vst [vmem:[#allocation70_spill] sm:$0xff] %v8783_v8  ;;  %9568 = vst [vmem:[#allocation72_spill] sm:$0xff] %v8791_v55  ;;  %v8793_v40 = vld [vmem:[#allocation11 + $0x40] sm:$0xff]  ;;  %v4206_v53 = vrot.slane %v8483_v0, 2  ;;  %v9576_v0 = vld [vmem:[#allocation80_spill] sm:$0xff] }
 0x7b8   :  { %4515 = vmatprep.subr.mxu0 %v8767_v26  ;;  %6205 = vmatprep.subr.mxu1 %v9316_v10  ;;  %9569 = vst [vmem:[#allocation73_spill] sm:$0xff] %v8793_v40  ;;  %v8797_v26 = vld [vmem:[#allocation11 + $0x20] sm:$0xff] }
 0x7b9   :  { %4516 = vmatpush1.msra.mxu0 %v8771_v52  ;;  %6206 = vmatpush3.msra.mxu1 %v8773_v50  ;;  %9570 = vst [vmem:[#allocation74_spill] sm:$0xff] %v8797_v26  ;;  %v8801_v50 = vld [vmem:[#allocation11 + $0x18] sm:$0xff]  ;;  %v8807_v52 = vld [vmem:[#allocation11 + $0x8] sm:$0xff] }
 0x7ba   :  { %4517 = vmatprep.subr.mxu0 %v8777_v46  ;;  %6207 = vmatprep.subr.mxu1 %v9316_v10  ;;  %9571 = vst [vmem:[#allocation75_spill] sm:$0xff] %v8801_v50  ;;  %v8803_v46 = vld [vmem:[#allocation11 + $0x28] sm:$0xff]  ;;  %9573 = vst [vmem:[#allocation77_spill] sm:$0xff] %v8807_v52 }
 0x7bb   :  { %4518 = vmatpush1.msra.mxu0 %v8781_v57  ;;  %6208 = vmatpush3.msra.mxu1 %v8783_v8  ;;  %9572 = vst [vmem:[#allocation76_spill] sm:$0xff] %v8803_v46  ;;  %v8811_v8 = vld [vmem:[#allocation11] sm:$0xff]  ;;  %v8815_v57 = vld [vmem:[#allocation11 + $0x10] sm:$0xff] }
 0x7bc   :  { %4519 = vmatprep.subr.mxu0 %v8787_v49  ;;  %6209 = vmatprep.subr.mxu1 %v9316_v10  ;;  %9574 = vst [vmem:[#allocation78_spill] sm:$0xff] %v8811_v8  ;;  %9575 = vst [vmem:[#allocation79_spill] sm:$0xff] %v8815_v57 }
 0x7bd   :  { %4520 = vmatpush1.msra.mxu0 %v8791_v55  ;;  %6210 = vmatpush3.msra.mxu1 %v8793_v40 }
 0x7be   :  { %v6452_v61 = vpop.eup %6451  ;;  %4521 = vmatprep.subr.mxu0 %v8797_v26  ;;  %6211 = vmatprep.subr.mxu1 %v9316_v10 }
 0x7bf   :  { %v4185_v49 = vadd.f32 1.0, %v6452_v61  ;;  %4522 = vmatpush1.msra.mxu0 %v8801_v50  ;;  %6212 = vmatpush3.msra.mxu1 %v8803_v46 }
 0x7c0   :  { %4523 = vmatprep.subr.mxu0 %v8807_v52  ;;  %6213 = vmatprep.subr.mxu1 %v9316_v10  ;;  %v4175_v52 = vadd.f32 %v8695_v15, %v7481_v43 }
 0x7c1   :  { %6455 = vrcp.f32 %v4185_v49  ;;  %4524 = vmatpush1.msra.mxu0 %v8811_v8  ;;  %4557 = vmatprep.mubr.f32.mxu0 %v9316_v10  ;;  %v3763_v8 = vld [vmem:[#allocation2 + $0x20] sm:$0x30] }
 0x7c2   :  { %6214 = vmatpush3.msra.mxu1 %v8815_v57  ;;  %6215 = vmatprep.mubr.msk.f32.mxu1 %vm6750_vm0, %v9316_v10  ;;  %v4199_v50 = vrot.slane %v4175_v52, 4  ;;  %v9590_v52 = vld [vmem:[#allocation43_spill] sm:$0xff] }
 0x7c3   :  { %4725 = vmatprep.subr.mxu0 %v8490_v4  ;;  %6218 = vmatprep.subr.mxu1 %v9316_v10  ;;  %v6454_v61 = vpop.eup %6453 }
 0x7c4   :  { %v4195_v46 = vadd.f32 1.0, %v6454_v61 }
 0x7c6   :  { %6457 = vrcp.f32 %v4195_v46  ;;  %v4438_v46 = vrot.slane %v8657_v42, 6  ;;  %v9589_v42 = vld [vmem:[#allocation35_spill] sm:$0xff] }
 0x7ce   :  { %v6456_v49 = vpop.eup %6455 }
 0x7cf   :  { %v4201_v26 = vmul.f32 %v6456_v49, %v4199_v50  ;;  %v9591_v50 = vld [vmem:[#allocation36_spill] sm:$0xff]  ;;  %v9595_v49 = vld [vmem:[#allocation41_spill] sm:$0xff] }
 0x7d1   :  { %v4202_v40 = vadd.f32 %v4201_v26, %v3763_v8 }
 0x7d3   :  { %6459 = vtanh.f32 %v4202_v40  ;;  %v6458_v57 = vpop.eup %6457 }
 0x7d4   :  { %v4204_v55 = vsub.f32 1.0, %v6458_v57  ;;  %v4208_v47 = vmul.f32 %v6458_v57, %v4206_v53 }
 0x7e0   :  { %v6460_v60 = vpop.eup %6459 }
 0x7e1   :  { %v4205_v4 = vmul.f32 %v6460_v60, %v4204_v55  ;;  %v9592_v55 = vld [vmem:[#allocation38_spill] sm:$0xff] }
 0x7e3   :  { %v8829_v39 = vadd.f32 %v4208_v47, %v4205_v4 }
 0x7e5   :  { %4211 = vst [vmem:[#allocation3 + $0x8] sm:$0x30] %v8829_v39  ;;  %v4491_v15 = vrot.slane %v8829_v39, 4 }
 0x7e7   :  { %4558 = vmatmul.mubr.f32.vlgmr.msra.gmra.mxu0 %v4491_v15  ;;  %6216 = vmatmul.mubr.f32.vlgmr.msra.gmra.mxu1 %v4491_v15 }
 0x7e8   :  { %4726 = vmatpush1.msra.mxu0 %v8493_v18  ;;  %6219 = vmatpush3.msra.mxu1 %v8495_v7  ;;  %v9577_v18 = vld [vmem:[#allocation81_spill] sm:$0xff]  ;;  %v9578_v7 = vld [vmem:[#allocation27_spill] sm:$0xff] }
 0x7e9   :  { %4727 = vmatprep.subr.mxu0 %v8499_v12  ;;  %6220 = vmatprep.subr.mxu1 %v9316_v10  ;;  %v9579_v12 = vld [vmem:[#allocation28_spill] sm:$0xff] }
 0x7ea   :  { %4728 = vmatpush1.msra.mxu0 %v8503_v17  ;;  %6221 = vmatpush3.msra.mxu1 %v8505_v59  ;;  %v9580_v17 = vld [vmem:[#allocation29_spill] sm:$0xff]  ;;  %v9581_v59 = vld [vmem:[#allocation30_spill] sm:$0xff] }
 0x7eb   :  { %4729 = vmatprep.subr.mxu0 %v8509_v19  ;;  %6222 = vmatprep.subr.mxu1 %v9316_v10  ;;  %v9582_v19 = vld [vmem:[#allocation31_spill] sm:$0xff] }
 0x7ec   :  { %4730 = vmatpush1.msra.mxu0 %v8513_v32  ;;  %6223 = vmatpush3.msra.mxu1 %v8515_v13  ;;  %v9583_v32 = vld [vmem:[#allocation37_spill] sm:$0xff]  ;;  %v9584_v13 = vld [vmem:[#allocation32_spill] sm:$0xff] }
 0x7ed   :  { %4731 = vmatprep.subr.mxu0 %v8519_v22  ;;  %6224 = vmatprep.subr.mxu1 %v9316_v10  ;;  %v9585_v22 = vld [vmem:[#allocation33_spill] sm:$0xff] }
 0x7ee   :  { %4732 = vmatpush1.msra.mxu0 %v8523_v24  ;;  %6225 = vmatpush3.msra.mxu1 %v8525_v25  ;;  %v9586_v24 = vld [vmem:[#allocation40_spill] sm:$0xff]  ;;  %v9587_v25 = vld [vmem:[#allocation34_spill] sm:$0xff] }
 0x7ef   :  { %4733 = vmatprep.subr.mxu0 %v8529_v27  ;;  %6226 = vmatprep.subr.mxu1 %v9316_v10 }
 0x7f0   :  { %4734 = vmatpush1.msra.mxu0 %v8533_v1  ;;  %6227 = vmatpush3.msra.mxu1 %v8535_v58  ;;  %v9588_v58 = vld [vmem:[#allocation26_spill] sm:$0xff] }
 0x7f1   :  { %4735 = vmatprep.subr.mxu0 %v8539_v33  ;;  %6228 = vmatprep.subr.mxu1 %v9316_v10 }
 0x7f2   :  { %4736 = vmatpush1.msra.mxu0 %v8543_v36  ;;  %6229 = vmatpush3.msra.mxu1 %v8545_v48 }
 0x7f3   :  { %4737 = vmatprep.subr.mxu0 %v8547_v3  ;;  %6230 = vmatprep.subr.mxu1 %v9316_v10 }
 0x7f4   :  { %4738 = vmatpush1.msra.mxu0 %v8551_v31  ;;  %6231 = vmatpush3.msra.mxu1 %v8553_v54  ;;  %v4212_v54 = vld [vmem:[#allocation2 + $0x8] sm:$0x30] }
 0x7f5   :  { %4739 = vmatprep.subr.mxu0 %v8555_v6  ;;  %6232 = vmatprep.subr.mxu1 %v9316_v10 }
 0x7f6   :  { %4740 = vmatpush1.msra.mxu0 %v8559_v56  ;;  %6233 = vmatpush3.msra.mxu1 %v8561_v23 }
 0x7f7   :  { %4741 = vmatprep.subr.mxu0 %v8565_v16  ;;  %6234 = vmatprep.subr.mxu1 %v9316_v10  ;;  %v4213_v16 = vld [vmem:[#allocation2 + $0x38] sm:$0x30] }
 0x7f8   :  { %4742 = vmatpush1.msra.mxu0 %v8569_v38  ;;  %6235 = vmatpush3.msra.mxu1 %v8571_v62 }
 0x7f9   :  { %4743 = vmatprep.subr.mxu0 %v8575_v34  ;;  %6236 = vmatprep.subr.mxu1 %v9316_v10 }
 0x7fa   :  { %4744 = vmatpush1.msra.mxu0 %v8579_v5  ;;  %6237 = vmatpush3.msra.mxu1 %v8581_v45 }
 0x7fb   :  { %4745 = vmatprep.subr.mxu0 %v8585_v2  ;;  %6238 = vmatprep.subr.mxu1 %v9316_v10 }
 0x7fc   :  { %4746 = vmatpush1.msra.mxu0 %v8589_v37  ;;  %6239 = vmatpush3.msra.mxu1 %v8591_v63 }
 0x7fd   :  { %4747 = vmatprep.subr.mxu0 %v8595_v11  ;;  %6240 = vmatprep.subr.mxu1 %v9316_v10 }
 0x7fe   :  { %4748 = vmatpush1.msra.mxu0 %v8599_v20  ;;  %6241 = vmatpush3.msra.mxu1 %v8601_v28  ;;  %v4214_v28 = vld [vmem:[#allocation2 + $0x28] sm:$0x30] }
 0x7ff   :  { %4749 = vmatprep.subr.mxu0 %v8605_v14  ;;  %6242 = vmatprep.subr.mxu1 %v9316_v10 }
 0x800   :  { %4750 = vmatpush1.msra.mxu0 %v9576_v0  ;;  %6243 = vmatpush3.msra.mxu1 %v9577_v18  ;;  %v9596_v0 = vld [vmem:[#allocation49_spill] sm:$0xff] }
 0x801   :  { %4751 = vmatprep.subr.mxu0 %v9578_v7  ;;  %6244 = vmatprep.subr.mxu1 %v9316_v10 }
 0x802   :  { %4752 = vmatpush1.msra.mxu0 %v9579_v12  ;;  %6245 = vmatpush3.msra.mxu1 %v9580_v17  ;;  %v9597_v12 = vld [vmem:[#allocation42_spill] sm:$0xff]  ;;  %v9598_v17 = vld [vmem:[#allocation44_spill] sm:$0xff] }
 0x803   :  { %4753 = vmatprep.subr.mxu0 %v9581_v59  ;;  %6246 = vmatprep.subr.mxu1 %v9316_v10  ;;  %v4215_v59 = vld [vmem:[#allocation2 + $0x18] sm:$0xc] }
 0x804   :  { %4754 = vmatpush1.msra.mxu0 %v9582_v19  ;;  %6247 = vmatpush3.msra.mxu1 %v9583_v32  ;;  %v9599_v19 = vld [vmem:[#allocation52_spill] sm:$0xff] }
 0x805   :  { %4755 = vmatprep.subr.mxu0 %v9584_v13  ;;  %6248 = vmatprep.subr.mxu1 %v9316_v10  ;;  %v9600_v13 = vld [vmem:[#allocation45_spill] sm:$0xff] }
 0x806   :  { %4756 = vmatpush1.msra.mxu0 %v9585_v22  ;;  %4789 = vmatprep.mubr.f32.mxu0 %v9316_v10  ;;  %v9601_v22 = vld [vmem:[#allocation47_spill] sm:$0xff] }
 0x807   :  { %6249 = vmatpush3.msra.mxu1 %v9586_v24  ;;  %6250 = vmatprep.mubr.msk.f32.mxu1 %vm6750_vm0, %v9316_v10  ;;  %v9602_v24 = vld [vmem:[#allocation55_spill] sm:$0xff] }
 0x808   :  { %4949 = vmatprep.subr.mxu0 %v9587_v25  ;;  %6253 = vmatprep.subr.mxu1 %v9316_v10 }
 0x862   :  { %v4335_v27 = vpop.f32.mrf.mxu0  ;;  %v4406_v1 = vpop.f32.mrf.mxu1 }
 0x863   :  { %v4336_v33 = vadd.f32 %v4335_v27, %v9588_v58  ;;  %v4407_v2 = vadd.f32 %v4406_v1, %v7394_v9  ;;  %v9603_v1 = vld [vmem:[#allocation48_spill] sm:$0xff] }
 0x864   :  { %v4337_v36 = vpop.f32.mrf.mxu0  ;;  %v6182_v48 = vpop.f32.mrf.mxu1 }
 0x865   :  { %v4411_v3 = vrot.slane %v4336_v33, 4  ;;  %v4338_v31 = vadd.f32 %v4337_v36, %v7386_v44  ;;  %v4431_v63 = vrot.slane %v4407_v2, 4  ;;  %v9604_v33 = vld [vmem:[#allocation50_spill] sm:$0xff]  ;;  %v9606_v48 = vld [vmem:[#allocation51_spill] sm:$0xff]  ;;  %v9616_v2 = vld [vmem:[#allocation64_spill] sm:$0xff] }
 0x866   :  { %v9605_v36 = vld [vmem:[#allocation58_spill] sm:$0xff] }
 0x867   :  { %v4413_v6 = vadd.f32 %v4411_v3, %v4212_v54  ;;  %v4421_v23 = vrot.slane %v4338_v31, 4  ;;  %v9607_v3 = vld [vmem:[#allocation53_spill] sm:$0xff]  ;;  %v4216_v31 = vld [vmem:[#allocation2 + $0x50] sm:$0xc] }
 0x868   :  { %v9608_v54 = vld [vmem:[#allocation54_spill] sm:$0xff] }
 0x869   :  { %v5390_v56 = vmul.f32 -1.442695, %v4413_v6  ;;  %v4423_v38 = vadd.f32 %v4421_v23, %v4213_v16  ;;  %v9610_v23 = vld [vmem:[#allocation57_spill] sm:$0xff]  ;;  %v9611_v16 = vld [vmem:[#allocation59_spill] sm:$0xff] }
 0x86b   :  { %6461 = vpow2.f32 %v5390_v56  ;;  %v5391_v62 = vmul.f32 -1.442695, %v4423_v38  ;;  %v9609_v56 = vld [vmem:[#allocation56_spill] sm:$0xff] }
 0x86c   :  { %v9612_v38 = vld [vmem:[#allocation60_spill] sm:$0xff] }
 0x86d   :  { %6463 = vpow2.f32 %v5391_v62  ;;  %v9613_v62 = vld [vmem:[#allocation61_spill] sm:$0xff] }
 0x878   :  { %v6462_v34 = vpop.eup %6461 }
 0x879   :  { %v4417_v5 = vadd.f32 1.0, %v6462_v34  ;;  %v9614_v34 = vld [vmem:[#allocation62_spill] sm:$0xff] }
 0x87a   :  { %v6464_v45 = vpop.eup %6463 }
 0x87b   :  { %6465 = vrcp.f32 %v4417_v5  ;;  %v4427_v37 = vadd.f32 1.0, %v6464_v45  ;;  %v9615_v45 = vld [vmem:[#allocation63_spill] sm:$0xff] }
 0x87d   :  { %6467 = vrcp.f32 %v4427_v37  ;;  %v9617_v37 = vld [vmem:[#allocation65_spill] sm:$0xff] }
 0x888   :  { %v6466_v11 = vpop.eup %6465 }
 0x889   :  { %v4433_v20 = vmul.f32 %v6466_v11, %v4431_v63  ;;  %v9618_v63 = vld [vmem:[#allocation66_spill] sm:$0xff]  ;;  %v9619_v11 = vld [vmem:[#allocation67_spill] sm:$0xff] }
 0x88a   :  { %v6468_v47 = vpop.eup %6467 }
 0x88b   :  { %v4434_v14 = vadd.f32 %v4433_v20, %v4214_v28  ;;  %v4436_v53 = vsub.f32 1.0, %v6468_v47  ;;  %v4440_v40 = vmul.f32 %v6468_v47, %v4438_v46  ;;  %v9620_v20 = vld [vmem:[#allocation68_spill] sm:$0xff]  ;;  %v9621_v28 = vld [vmem:[#allocation69_spill] sm:$0xff]  ;;  %v9623_v47 = vld [vmem:[#allocation71_spill] sm:$0xff] }
 0x88c   :  { %v9625_v46 = vld [vmem:[#allocation73_spill] sm:$0xff] }
 0x88d   :  { %6469 = vtanh.f32 %v4434_v14  ;;  %v9622_v14 = vld [vmem:[#allocation70_spill] sm:$0xff] }
 0x89a   :  { %v6470_v57 = vpop.eup %6469 }
 0x89b   :  { %v4437_v26 = vmul.f32 %v6470_v57, %v4436_v53  ;;  %v9624_v53 = vld [vmem:[#allocation72_spill] sm:$0xff] }
 0x89d   :  { %v8904_v60 = vadd.f32 %v4440_v40, %v4437_v26  ;;  %v9626_v26 = vld [vmem:[#allocation74_spill] sm:$0xff] }
 0x89f   :  { %4666 = vst [vmem:[#allocation3 + $0x10] sm:$0x30] %v8904_v60  ;;  %v4723_v8 = vrot.slane %v8904_v60, 4 }
 0x8a1   :  { %4790 = vmatmul.mubr.f32.vlgmr.msra.gmra.mxu0 %v4723_v8  ;;  %6251 = vmatmul.mubr.f32.vlgmr.msra.gmra.mxu1 %v4723_v8  ;;  %v9627_v8 = vld [vmem:[#allocation75_spill] sm:$0xff] }
 0x8a2   :  { %4950 = vmatpush1.msra.mxu0 %v8661_v51  ;;  %6254 = vmatpush3.msra.mxu1 %v8663_v30  ;;  %v9593_v30 = vld [vmem:[#allocation46_spill] sm:$0xff] }
 0x8a3   :  { %4951 = vmatprep.subr.mxu0 %v8665_v29  ;;  %6255 = vmatprep.subr.mxu1 %v9316_v10 }
 0x8a4   :  { %4952 = vmatpush1.msra.mxu0 %v8667_v21  ;;  %6256 = vmatpush3.msra.mxu1 %v9589_v42  ;;  %v9594_v21 = vld [vmem:[#allocation39_spill] sm:$0xff]  ;;  %v9628_v42 = vld [vmem:[#allocation76_spill] sm:$0xff] }
 0x8a5   :  { %4953 = vmatprep.subr.mxu0 %v9590_v52  ;;  %6257 = vmatprep.subr.mxu1 %v9316_v10  ;;  %v9629_v52 = vld [vmem:[#allocation77_spill] sm:$0xff] }
 0x8a6   :  { %4954 = vmatpush1.msra.mxu0 %v9591_v50  ;;  %6258 = vmatpush3.msra.mxu1 %v9592_v55  ;;  %v9630_v50 = vld [vmem:[#allocation78_spill] sm:$0xff]  ;;  %v9631_v55 = vld [vmem:[#allocation79_spill] sm:$0xff] }
 0x8a7   :  { %v4559_v61 = vpop.f32.mrf.mxu0  ;;  %v8918_v51 = vpop.f32.mrf.mxu1  ;;  %4955 = vmatprep.subr.mxu0 %v9593_v30  ;;  %6259 = vmatprep.subr.mxu1 %v9316_v10 }
 0x8a8   :  { %v4560_v29 = vadd.f32 %v4559_v61, %v7410_v41  ;;  %4956 = vmatpush1.msra.mxu0 %v9594_v21  ;;  %6260 = vmatpush3.msra.mxu1 %v9595_v49  ;;  %v4631_v30 = vadd.f32 %v8918_v51, %v7481_v43  ;;  %v5148_v51 = vld [vmem:[#allocation14 + $0xf8] sm:$0xff] }
 0x8a9   :  { %v4561_v4 = vpop.f32.mrf.mxu0  ;;  %v6217_v15 = vpop.f32.mrf.mxu1  ;;  %4957 = vmatprep.subr.mxu0 %v9596_v0  ;;  %6261 = vmatprep.subr.mxu1 %v9316_v10 }
 0x8aa   :  { %v4635_v18 = vrot.slane %v4560_v29, 6  ;;  %v4562_v7 = vadd.f32 %v4561_v4, %v7418_v35  ;;  %4958 = vmatpush1.msra.mxu0 %v9597_v12  ;;  %6262 = vmatpush3.msra.mxu1 %v9598_v17  ;;  %v4655_v21 = vrot.slane %v4631_v30, 6  ;;  %v4217_v15 = vld [vmem:[#allocation2 + $0x20] sm:$0xc]  ;;  %v4662_v12 = vrot.slane %v8829_v39, 2  ;;  %v5146_v39 = vld [vmem:[#allocation14 + $0xe8] sm:$0xff] }
 0x8ab   :  { %4959 = vmatprep.subr.mxu0 %v9599_v19  ;;  %6263 = vmatprep.subr.mxu1 %v9316_v10  ;;  %v4669_v30 = vld [vmem:[#allocation2 + $0x38] sm:$0xc0] }
 0x8ac   :  { %v4637_v32 = vadd.f32 %v4635_v18, %v4215_v59  ;;  %4960 = vmatpush1.msra.mxu0 %v9600_v13  ;;  %6264 = vmatpush3.msra.mxu1 %v9601_v22  ;;  %v4645_v27 = vrot.slane %v4562_v7, 6  ;;  %v5132_v13 = vld [vmem:[#allocation14 + $0x78] sm:$0xff]  ;;  %v5147_v22 = vld [vmem:[#allocation14 + $0xf0] sm:$0xff] }
 0x8ad   :  { %4961 = vmatprep.subr.mxu0 %v9602_v24  ;;  %6265 = vmatprep.subr.mxu1 %v9316_v10  ;;  %v5131_v24 = vld [vmem:[#allocation14 + $0x70] sm:$0xff] }
 0x8ae   :  { %v5392_v25 = vmul.f32 -1.442695, %v4637_v32  ;;  %4962 = vmatpush1.msra.mxu0 %v9603_v1  ;;  %6266 = vmatpush3.msra.mxu1 %v9604_v33  ;;  %v4647_v6 = vadd.f32 %v4645_v27, %v4216_v31  ;;  %v5145_v27 = vld [vmem:[#allocation14 + $0xe0] sm:$0xff]  ;;  %v5144_v33 = vld [vmem:[#allocation14 + $0xd8] sm:$0xff]  ;;  %v5142_v31 = vld [vmem:[#allocation14 + $0xc8] sm:$0xff] }
 0x8af   :  { %4963 = vmatprep.subr.mxu0 %v9605_v36  ;;  %6267 = vmatprep.subr.mxu1 %v9316_v10  ;;  %v5129_v1 = vld [vmem:[#allocation14 + $0x60] sm:$0xff]  ;;  %v5128_v36 = vld [vmem:[#allocation14 + $0x58] sm:$0xff] }
 0x8b0   :  { %6471 = vpow2.f32 %v5392_v25  ;;  %4964 = vmatpush1.msra.mxu0 %v9606_v48  ;;  %6268 = vmatpush3.msra.mxu1 %v9607_v3  ;;  %v5393_v5 = vmul.f32 -1.442695, %v4647_v6  ;;  %v5130_v25 = vld [vmem:[#allocation14 + $0x68] sm:$0xff]  ;;  %v5143_v48 = vld [vmem:[#allocation14 + $0xd0] sm:$0xff]  ;;  %v5141_v6 = vld [vmem:[#allocation14 + $0xc0] sm:$0xff] }
 0x8b1   :  { %4965 = vmatprep.subr.mxu0 %v9608_v54  ;;  %6269 = vmatprep.subr.mxu1 %v9316_v10  ;;  %v5127_v3 = vld [vmem:[#allocation14 + $0x50] sm:$0xff]  ;;  %v5126_v54 = vld [vmem:[#allocation14 + $0x48] sm:$0xff] }
 0x8b2   :  { %4966 = vmatpush1.msra.mxu0 %v9609_v56  ;;  %6270 = vmatpush3.msra.mxu1 %v9610_v23  ;;  %6473 = vpow2.f32 %v5393_v5  ;;  %v5125_v56 = vld [vmem:[#allocation14 + $0x40] sm:$0xff]  ;;  %v5140_v23 = vld [vmem:[#allocation14 + $0xb8] sm:$0xff]  ;;  %v5122_v5 = vld [vmem:[#allocation14 + $0x28] sm:$0xff] }
 0x8b3   :  { %4967 = vmatprep.subr.mxu0 %v9611_v16  ;;  %6271 = vmatprep.subr.mxu1 %v9316_v10  ;;  %v5124_v16 = vld [vmem:[#allocation14 + $0x38] sm:$0xff] }
 0x8b4   :  { %4968 = vmatpush1.msra.mxu0 %v9612_v38  ;;  %6272 = vmatpush3.msra.mxu1 %v9613_v62  ;;  %v5139_v38 = vld [vmem:[#allocation14 + $0xb0] sm:$0xff] }
 0x8b5   :  { %4969 = vmatprep.subr.mxu0 %v9614_v34  ;;  %6273 = vmatprep.subr.mxu1 %v9316_v10  ;;  %v5123_v62 = vld [vmem:[#allocation14 + $0x30] sm:$0xff]  ;;  %v5138_v34 = vld [vmem:[#allocation14 + $0xa8] sm:$0xff] }
 0x8b6   :  { %4970 = vmatpush1.msra.mxu0 %v9615_v45  ;;  %6274 = vmatpush3.msra.mxu1 %v9616_v2  ;;  %v5137_v45 = vld [vmem:[#allocation14 + $0xa0] sm:$0xff] }
 0x8b7   :  { %4971 = vmatprep.subr.mxu0 %v9617_v37  ;;  %6275 = vmatprep.subr.mxu1 %v9316_v10 }
 0x8b8   :  { %4972 = vmatpush1.msra.mxu0 %v9618_v63  ;;  %6276 = vmatpush3.msra.mxu1 %v9619_v11  ;;  %v5121_v63 = vld [vmem:[#allocation14 + $0x20] sm:$0xff]  ;;  %v5136_v11 = vld [vmem:[#allocation14 + $0x98] sm:$0xff] }
 0x8b9   :  { %4973 = vmatprep.subr.mxu0 %v9620_v20  ;;  %6277 = vmatprep.subr.mxu1 %v9316_v10  ;;  %v5120_v20 = vld [vmem:[#allocation14 + $0x18] sm:$0xff] }
 0x8ba   :  { %4974 = vmatpush1.msra.mxu0 %v9621_v28  ;;  %6278 = vmatpush3.msra.mxu1 %v9622_v14  ;;  %v5135_v14 = vld [vmem:[#allocation14 + $0x90] sm:$0xff] }
 0x8bb   :  { %4975 = vmatprep.subr.mxu0 %v9623_v47  ;;  %6279 = vmatprep.subr.mxu1 %v9316_v10 }
 0x8bc   :  { %4976 = vmatpush1.msra.mxu0 %v9624_v53  ;;  %6280 = vmatpush3.msra.mxu1 %v9625_v46  ;;  %v5119_v46 = vld [vmem:[#allocation14 + $0x10] sm:$0xff] }
 0x8bd   :  { %v6472_v57 = vpop.eup %6471  ;;  %4977 = vmatprep.subr.mxu0 %v9626_v26  ;;  %6281 = vmatprep.subr.mxu1 %v9316_v10 }
 0x8be   :  { %v4641_v40 = vadd.f32 1.0, %v6472_v57  ;;  %4978 = vmatpush1.msra.mxu0 %v9627_v8  ;;  %6282 = vmatpush3.msra.mxu1 %v9628_v42  ;;  %v4668_v8 = vld [vmem:[#allocation2 + $0x8] sm:$0xc0]  ;;  %v5118_v42 = vld [vmem:[#allocation14 + $0x8] sm:$0xff] }
 0x8bf   :  { %4979 = vmatprep.subr.mxu0 %v9629_v52  ;;  %6283 = vmatprep.subr.mxu1 %v9316_v10  ;;  %v6474_v61 = vpop.eup %6473 }
 0x8c0   :  { %6475 = vrcp.f32 %v4641_v40  ;;  %4980 = vmatpush1.msra.mxu0 %v9630_v50  ;;  %5013 = vmatprep.mubr.f32.mxu0 %v9316_v10  ;;  %v4651_v29 = vadd.f32 1.0, %v6474_v61  ;;  %v5134_v40 = vld [vmem:[#allocation14 + $0x88] sm:$0xff]  ;;  %v5133_v50 = vld [vmem:[#allocation14 + $0x80] sm:$0xff] }
 0x8c1   :  { %6284 = vmatpush3.msra.mxu1 %v9631_v55  ;;  %6285 = vmatprep.mubr.msk.f32.mxu1 %vm6750_vm0, %v9316_v10  ;;  %v5117_v55 = vld [vmem:[#allocation14] sm:$0xff] }
 0x8c2   :  { %6477 = vrcp.f32 %v4651_v29  ;;  %5672 = vmatprep.subr.mxu0 %v5148_v51  ;;  %v5236_v51 = vld [vmem:[#allocation17 + $0x28] sm:$0xff] }
 0x8cd   :  { %v6476_v49 = vpop.eup %6475 }
 0x8ce   :  { %v4657_v4 = vmul.f32 %v6476_v49, %v4655_v21  ;;  %v5246_v21 = vld [vmem:[#allocation17 + $0x78] sm:$0xff] }
 0x8cf   :  { %v6478_v18 = vpop.eup %6477  ;;  %6288 = vmatprep.subr.mxu1 %v5246_v21 }
 0x8d0   :  { %v4658_v0 = vadd.f32 %v4657_v4, %v4217_v15  ;;  %v4660_v7 = vsub.f32 1.0, %v6478_v18  ;;  %v4664_v19 = vmul.f32 %v6478_v18, %v4662_v12  ;;  %v5244_v4 = vld [vmem:[#allocation17 + $0x68] sm:$0xff]  ;;  %v5243_v15 = vld [vmem:[#allocation17 + $0x60] sm:$0xff]  ;;  %v5241_v18 = vld [vmem:[#allocation17 + $0x50] sm:$0xff] }
 0x8d2   :  { %6479 = vtanh.f32 %v4658_v0  ;;  %v5242_v0 = vld [vmem:[#allocation17 + $0x58] sm:$0xff] }
 0x8df   :  { %v6480_v17 = vpop.eup %6479 }
 0x8e0   :  { %v4661_v59 = vmul.f32 %v6480_v17, %v4660_v7  ;;  %v5240_v17 = vld [vmem:[#allocation17 + $0x48] sm:$0xff] }
 0x8e2   :  { %v4665_v10 = vadd.f32 %v4664_v19, %v4661_v59  ;;  %v5239_v59 = vld [vmem:[#allocation17 + $0x40] sm:$0xff]  ;;  %v5238_v19 = vld [vmem:[#allocation17 + $0x38] sm:$0xff] }
 0x8e4   :  { %4667 = vst [vmem:[#allocation3 + $0x8] sm:$0xc] %v4665_v10  ;;  %v8980_v32 = vrot.slane %v4665_v10, 2  ;;  %v5237_v10 = vld [vmem:[#allocation17 + $0x30] sm:$0xff] }
 0x8e6   :  { %5014 = vmatmul.mubr.f32.vlgmr.msra.gmra.mxu0 %v8980_v32  ;;  %6286 = vmatmul.mubr.f32.vlgmr.msra.gmra.mxu1 %v8980_v32 }
 0x8e7   :  { %5673 = vmatpush3.msra.mxu0 %v5132_v13  ;;  %6289 = vmatpush3.msra.mxu1 %v5246_v21  ;;  %v5231_v21 = vld [vmem:[#allocation17] sm:$0xff] }
 0x8e8   :  { %5674 = vmatprep.subr.mxu0 %v5147_v22 }
 0x8e9   :  { %5675 = vmatpush3.msra.mxu0 %v5131_v24 }
 0x8ea   :  { %5676 = vmatprep.subr.mxu0 %v5146_v39 }
 0x8eb   :  { %5677 = vmatpush3.msra.mxu0 %v5130_v25 }
 0x8ec   :  { %5678 = vmatprep.subr.mxu0 %v5145_v27 }
 0x8ed   :  { %5679 = vmatpush3.msra.mxu0 %v5129_v1  ;;  %v4670_v1 = vld [vmem:[#allocation2 + $0x28] sm:$0xc0] }
 0x8ee   :  { %5680 = vmatprep.subr.mxu0 %v5144_v33 }
 0x8ef   :  { %5681 = vmatpush3.msra.mxu0 %v5128_v36 }
 0x8f0   :  { %5682 = vmatprep.subr.mxu0 %v5143_v48  ;;  %v4894_v48 = vrot.slane %v8904_v60, 6 }
 0x8f1   :  { %5683 = vmatpush3.msra.mxu0 %v5127_v3 }
 0x8f2   :  { %5684 = vmatprep.subr.mxu0 %v5142_v31 }
 0x8f3   :  { %5685 = vmatpush3.msra.mxu0 %v5126_v54 }
 0x8f4   :  { %5686 = vmatprep.subr.mxu0 %v5141_v6 }
 0x8f5   :  { %5687 = vmatpush3.msra.mxu0 %v5125_v56 }
 0x8f6   :  { %5688 = vmatprep.subr.mxu0 %v5140_v23 }
 0x8f7   :  { %5689 = vmatpush3.msra.mxu0 %v5124_v16 }
 0x8f8   :  { %5690 = vmatprep.subr.mxu0 %v5139_v38  ;;  %v4671_v38 = vld [vmem:[#allocation2 + $0x18] sm:$0x3] }
 0x8f9   :  { %5691 = vmatpush3.msra.mxu0 %v5123_v62 }
 0x8fa   :  { %5692 = vmatprep.subr.mxu0 %v5138_v34 }
 0x8fb   :  { %5693 = vmatpush3.msra.mxu0 %v5122_v5 }
 0x8fc   :  { %5694 = vmatprep.subr.mxu0 %v5137_v45 }
 0x8fd   :  { %5695 = vmatpush3.msra.mxu0 %v5121_v63 }
 0x8fe   :  { %5696 = vmatprep.subr.mxu0 %v5136_v11 }
 0x8ff   :  { %5697 = vmatpush3.msra.mxu0 %v5120_v20 }
 0x900   :  { %5698 = vmatprep.subr.mxu0 %v5135_v14 }
 0x901   :  { %5699 = vmatpush3.msra.mxu0 %v5119_v46  ;;  %v4673_v46 = vld [vmem:[#allocation2 + $0x20] sm:$0x3] }
 0x902   :  { %5700 = vmatprep.subr.mxu0 %v5134_v40 }
 0x903   :  { %5701 = vmatpush3.msra.mxu0 %v5118_v42 }
 0x904   :  { %5702 = vmatprep.subr.mxu0 %v5133_v50 }
 0x905   :  { %5703 = vmatpush3.msra.mxu0 %v5117_v55  ;;  %v5113_v55 = vld [vmem:[#allocation3 + $0x18] sm:$0xff] }
 0x961   :  { %v4791_v2 = vpop.f32.mrf.mxu0  ;;  %v8984_v37 = vpop.f32.mrf.mxu1 }
 0x962   :  { %v4792_v28 = vadd.f32 %v4791_v2, %v9588_v58  ;;  %v4863_v22 = vadd.f32 %v8984_v37, %v7394_v9  ;;  %v4672_v37 = vld [vmem:[#allocation2 + $0x50] sm:$0x3] }
 0x963   :  { %v4793_v47 = vpop.f32.mrf.mxu0  ;;  %v6252_v53 = vpop.f32.mrf.mxu1 }
 0x964   :  { %v4867_v57 = vrot.slane %v4792_v28, 2  ;;  %v4794_v26 = vadd.f32 %v4793_v47, %v7386_v44  ;;  %v5245_v44 = vld [vmem:[#allocation17 + $0x70] sm:$0xff]  ;;  %v4887_v39 = vrot.slane %v4863_v22, 2 }
 0x965   :  { %6290 = vmatprep.subr.mxu1 %v5245_v44 }
 0x966   :  { %v4869_v52 = vadd.f32 %v4867_v57, %v4668_v8  ;;  %v4877_v61 = vrot.slane %v4794_v26, 2  ;;  %6291 = vmatpush3.msra.mxu1 %v5245_v44 }
 0x967   :  { %6292 = vmatprep.subr.mxu1 %v5244_v4 }
 0x968   :  { %v5394_v58 = vmul.f32 -1.442695, %v4869_v52  ;;  %v4879_v29 = vadd.f32 %v4877_v61, %v4669_v30  ;;  %6293 = vmatpush3.msra.mxu1 %v5244_v4  ;;  %v5235_v61 = vld [vmem:[#allocation17 + $0x20] sm:$0xff]  ;;  %v5234_v30 = vld [vmem:[#allocation17 + $0x18] sm:$0xff] }
 0x969   :  { %6294 = vmatprep.subr.mxu1 %v5243_v15 }
 0x96a   :  { %6481 = vpow2.f32 %v5394_v58  ;;  %v5395_v49 = vmul.f32 -1.442695, %v4879_v29  ;;  %6295 = vmatpush3.msra.mxu1 %v5243_v15  ;;  %v5116_v58 = vld [vmem:[#allocation3] sm:$0xff] }
 0x96b   :  { %6296 = vmatprep.subr.mxu1 %v5242_v0  ;;  %v5233_v29 = vld [vmem:[#allocation17 + $0x10] sm:$0xff] }
 0x96c   :  { %6483 = vpow2.f32 %v5395_v49  ;;  %6297 = vmatpush3.msra.mxu1 %v5242_v0  ;;  %v5398_v49 = vld [vmem:[#allocation15] ss:$0 sm:$0xff] }
 0x96d   :  { %6298 = vmatprep.subr.mxu1 %v5241_v18 }
 0x96e   :  { %6299 = vmatpush3.msra.mxu1 %v5241_v18 }
 0x96f   :  { %6300 = vmatprep.subr.mxu1 %v5240_v17 }
 0x970   :  { %6301 = vmatpush3.msra.mxu1 %v5240_v17 }
 0x971   :  { %6302 = vmatprep.subr.mxu1 %v5239_v59 }
 0x972   :  { %6303 = vmatpush3.msra.mxu1 %v5239_v59 }
 0x973   :  { %6304 = vmatprep.subr.mxu1 %v5238_v19 }
 0x974   :  { %6305 = vmatpush3.msra.mxu1 %v5238_v19  ;;  %v5399_v19 = vld [vmem:[#allocation18] ss:$0 sm:$0xff] }
 0x975   :  { %6306 = vmatprep.subr.mxu1 %v5237_v10 }
 0x976   :  { %6307 = vmatpush3.msra.mxu1 %v5237_v10 }
 0x977   :  { %v6482_v7 = vpop.eup %6481  ;;  %6308 = vmatprep.subr.mxu1 %v5236_v51 }
 0x978   :  { %v4873_v12 = vadd.f32 1.0, %v6482_v7  ;;  %6309 = vmatpush3.msra.mxu1 %v5236_v51 }
 0x979   :  { %v6484_v13 = vpop.eup %6483  ;;  %6310 = vmatprep.subr.mxu1 %v5235_v61 }
 0x97a   :  { %6485 = vrcp.f32 %v4873_v12  ;;  %v4883_v24 = vadd.f32 1.0, %v6484_v13  ;;  %6311 = vmatpush3.msra.mxu1 %v5235_v61 }
 0x97b   :  { %6312 = vmatprep.subr.mxu1 %v5234_v30 }
 0x97c   :  { %6487 = vrcp.f32 %v4883_v24  ;;  %6313 = vmatpush3.msra.mxu1 %v5234_v30 }
 0x97d   :  { %6314 = vmatprep.subr.mxu1 %v5233_v29 }
 0x97e   :  { %6315 = vmatpush3.msra.mxu1 %v5233_v29 }
 0x987   :  { %v6486_v25 = vpop.eup %6485 }
 0x988   :  { %v4889_v27 = vmul.f32 %v6486_v25, %v4887_v39 }
 0x989   :  { %v6488_v36 = vpop.eup %6487 }
 0x98a   :  { %v4890_v33 = vadd.f32 %v4889_v27, %v4670_v1  ;;  %v4892_v3 = vsub.f32 1.0, %v6488_v36  ;;  %v4896_v6 = vmul.f32 %v6488_v36, %v4894_v48 }
 0x98c   :  { %6489 = vtanh.f32 %v4890_v33 }
 0x999   :  { %v6490_v31 = vpop.eup %6489 }
 0x99a   :  { %v4893_v54 = vmul.f32 %v6490_v31, %v4892_v3 }
 0x99c   :  { %v4897_v56 = vadd.f32 %v4896_v6, %v4893_v54 }
 0x99e   :  { %5111 = vst [vmem:[#allocation3 + $0x10] sm:$0xc0] %v4897_v56 }
 0x9a6   :  { %v5015_v9 = vpop.f32.mrf.mxu0  ;;  %v5086_v23 = vpop.f32.mrf.mxu1 }
 0x9a7   :  { %v5016_v16 = vadd.f32 %v5015_v9, %v7410_v41  ;;  %v5087_v47 = vadd.f32 %v5086_v23, %v7481_v43  ;;  %v5115_v43 = vld [vmem:[#allocation3 + $0x10] sm:$0xff] }
 0x9a8   :  { %v5017_v62 = vpop.f32.mrf.mxu0  ;;  %v6287_v34 = vpop.f32.mrf.mxu1 }
 0x9a9   :  { %v5090_v5 = vadd.f32 %v5016_v16, %v4671_v38  ;;  %v5018_v2 = vadd.f32 %v5017_v62, %v7418_v35 }
 0x9ab   :  { %v5396_v45 = vmul.f32 -1.442695, %v5090_v5  ;;  %v5097_v60 = vadd.f32 %v5018_v2, %v4672_v37 }
 0x9ad   :  { %6491 = vpow2.f32 %v5396_v45  ;;  %v5397_v63 = vmul.f32 -1.442695, %v5097_v60 }
 0x9af   :  { %6493 = vpow2.f32 %v5397_v63 }
 0x9ba   :  { %v6492_v11 = vpop.eup %6491 }
 0x9bb   :  { %v5094_v20 = vadd.f32 1.0, %v6492_v11 }
 0x9bc   :  { %v6494_v28 = vpop.eup %6493 }
 0x9bd   :  { %6495 = vrcp.f32 %v5094_v20  ;;  %v5101_v14 = vadd.f32 1.0, %v6494_v28 }
 0x9bf   :  { %6497 = vrcp.f32 %v5101_v14 }
 0x9ca   :  { %v6496_v41 = vpop.eup %6495 }
 0x9cb   :  { %v5104_v53 = vmul.f32 %v6496_v41, %v5087_v47 }
 0x9cc   :  { %v6498_v26 = vpop.eup %6497 }
 0x9cd   :  { %v5105_v57 = vadd.f32 %v5104_v53, %v4673_v46  ;;  %v5107_v35 = vsub.f32 1.0, %v6498_v26  ;;  %v5109_v42 = vmul.f32 %v6498_v26, %v8980_v32  ;;  %v5232_v32 = vld [vmem:[#allocation17 + $0x8] sm:$0xff] }
 0x9ce   :  { %6316 = vmatprep.subr.mxu1 %v5232_v32 }
 0x9cf   :  { %6499 = vtanh.f32 %v5105_v57  ;;  %6317 = vmatpush3.msra.mxu1 %v5232_v32 }
 0x9d0   :  { %6318 = vmatprep.subr.mxu1 %v5231_v21 }
 0x9d1   :  { %6319 = vmatpush3.msra.mxu1 %v5231_v21 }
 0x9dc   :  { %v6500_v40 = vpop.eup %6499 }
 0x9dd   :  { %v5108_v8 = vmul.f32 %v6500_v40, %v5107_v35 }
 0x9df   :  { %v5110_v52 = vadd.f32 %v5109_v42, %v5108_v8 }
 0x9e1   :  { %5112 = vst [vmem:[#allocation3 + $0x8] sm:$0x3] %v5110_v52 }
 0x9e8   :  { %v5114_v50 = vld [vmem:[#allocation3 + $0x8] sm:$0xff] }
 0x9e9   :  { %5220 = vmatprep.mubr.f32.mxu0 %v5114_v50 }
 0x9ea   :  { %5221 = vmatmul.mubr.f32.vlgmr.msra.gmra.mxu0 %v5113_v55 }
 0x9eb   :  { %5225 = vmatprep.mubr.f32.mxu0 %v5116_v58 }
 0x9ee   :  { %5226 = vmatmul.mubr.f32.gmra.mxu0 %v5115_v43 }
 0xaaa   :  { %v5704_v44 = vpop.f32.mrf.mxu0 }
 0xaac   :  { %v5705_v4 = vpop.f32.mrf.mxu0 }
 0xaad   :  { %v5706_v15 = vadd.f32 %v5705_v4, %v5704_v44 }
 0xaae   :  { %v5707_v0 = vpop.f32.mrf.mxu0 }
 0xaaf   :  { %v5223_v18 = vadd.f32 %v5706_v15, %v5398_v49 }
 0xab0   :  { %v5708_v7 = vpop.f32.mrf.mxu0 }
 0xab1   :  { %v5709_v12 = vadd.f32 %v5708_v7, %v5707_v0  ;;  %6320 = vmatprep.mubr.f32.mxu1 %v5223_v18 }
 0xab3   :  { %v5228_v17 = vadd.f32 %v5709_v12, %v5398_v49 }
 0xab5   :  { %6321 = vmatmul.mubr.f32.vlgmr.msra.gmra.mxu1 %v5228_v17 }
 0xb75   :  { %v6322_v59 = vpop.f32.mrf.mxu1 }
 0xb76   :  { %v5326_v13 = vadd.f32 %v6322_v59, %v5399_v19 }
 0xb77   :  { %v5320_v10 = vpop.f32.mrf.mxu1 }
 0xb78   :  { %v5321_v51 = vadd.f32 %v5399_v19, %v5320_v10  ;;  %v5333_v24 = vsel %vm5329_vm1, %v5326_v13, -inf }
 0xb7a   :  { %v5330_v22 = vsel %vm5329_vm1, %v5321_v51, -inf }
 0xb7b   :  { %5331 = vmax.xlane.f32.xlu0 %v5330_v22 }
 0xb7f   :  { %5334 = vmax.xlane.f32.xlu0 %v5333_v24 }
 0xc04   :  { %v5332_v39 = vpop.xlane.xlu0 %5331 }
 0xc05   :  { %v5336_v25 = vsub.f32 %v5321_v51, %v5332_v39 }
 0xc07   :  { %v5338_v27 = vmul.f32 1.442695, %v5336_v25 }
 0xc08   :  { %v5335_v1 = vpop.xlane.xlu0 %5334 }
 0xc09   :  { %6501 = vpow2.f32 %v5338_v27  ;;  %v5337_v33 = vsub.f32 %v5326_v13, %v5335_v1 }
 0xc0b   :  { %v5340_v36 = vmul.f32 1.442695, %v5337_v33 }
 0xc0d   :  { %6503 = vpow2.f32 %v5340_v36 }
 0xc16   :  { %v6502_v48 = vpop.eup %6501 }
 0xc17   :  { %v5342_v3 = vsel %vm5329_vm1, %v6502_v48, 0.0 }
 0xc18   :  { %5343 = vadd.xlane.f32.xlu1 %v5342_v3 }
 0xc1a   :  { %v6504_v31 = vpop.eup %6503 }
 0xc1b   :  { %v5345_v54 = vsel %vm5329_vm1, %v6504_v31, 0.0 }
 0xc1c   :  { %5346 = vadd.xlane.f32.xlu1 %v5345_v54 }
 0xca1   :  { %v5344_v6 = vpop.xlane.xlu1 %5343 }
 0xca2   :  { %6505 = vlog2.f32 %v5344_v6 }
 0xca5   :  { %v5347_v56 = vpop.xlane.xlu1 %5346 }
 0xca6   :  { %6507 = vlog2.f32 %v5347_v56 }
 0xcaf   :  { %v6506_v9 = vpop.eup %6505 }
 0xcb0   :  { %v5349_v23 = vmul.f32 0.6931472, %v6506_v9 }
 0xcb2   :  { %v5352_v16 = vsub.f32 %v5336_v25, %v5349_v23 }
 0xcb3   :  { %v6508_v38 = vpop.eup %6507 }
 0xcb4   :  { %5354 = vst.msk [vmem:[%s9018_s11] sm:$0xff] %vm5329_vm1, %v5352_v16  ;;  %v5351_v62 = vmul.f32 0.6931472, %v6508_v38 }
 0xcb6   :  { %v5353_v34 = vsub.f32 %v5337_v33, %v5351_v62 }
 0xcb8   :  { %5355 = vst.msk [vmem:[%s9018_s11 + $0x8] sm:$0xff] %vm5329_vm1, %v5353_v34 }
 0xcb9   :  { %5360 = vsyncpa [#allocation5], 1 }
 0xcba   :  { %5361 = vsyncpa [#allocation7], 1 }
 0xcbb   :  { %5362 = vsyncpa [#allocation10], 1 }
 0xcbc   :  { %5363 = vsyncpa [#allocation13], 1 }
 0xcbd   :  { %5364 = vsyncpa [#allocation16], 1 }
 0xcbe   :  { %5365 = vsyncpa [#allocation19], 1 }

</bundles_post_ra>
